<compile_context>
chip_gen: v5e
topology: v5e:2x2
jax: 0.10.0
libtpu: 0.0.40
codegen_flags: <defaults>
</compile_context>

<pallas_src>
import numpy as np
import jax
import jax.numpy as jnp
from jax.experimental import pallas as pl
from jax.experimental.pallas import tpu as pltpu

HEADS = 8
HEAD_DIM = 16
HC = HEADS * HEAD_DIM          # 128
NUM_LAYERS = 4
BN_EPS = 1e-5


# ------------------------------------------------------------------ helpers
def _full_spec(shape):
    return pl.BlockSpec(shape, lambda: (0,) * len(shape))


def block_diag(blocks):
    """Host-side block-diagonal assembly (param preprocessing, runs once)."""
    rows = sum(b.shape[0] for b in blocks)
    cols = sum(b.shape[1] for b in blocks)
    out = jnp.zeros((rows, cols), jnp.float32)
    r = c = 0
    for b in blocks:
        out = out.at[r:r + b.shape[0], c:c + b.shape[1]].set(b.astype(jnp.float32))
        r += b.shape[0]
        c += b.shape[1]
    return out


# ------------------------------------------------------------------ kernels
def _branch_kernel(x_ref, adj_ref, ea_ref, nw_ref, nb_ref,
                   wl_ref, bl_ref, wr_ref, br_ref, we_ref, attbd_ref, gb_ref,
                   gamma_ref, beta_ref, mean_ref, var_ref, hexp_ref, o_ref):
    """One (modality, graph) per grid step: node_embed + 4x(GATv2+BN+res+ReLU)."""
    N = x_ref.shape[2]
    x = x_ref[0, 0]                          # (N, 2)
    adj = adj_ref[0, 0]                      # (N, N)  mask (incl. self-loops)
    ea3 = ea_ref[0, 0][:, :, None]           # (N, N, 1)
    adj3 = adj[:, :, None]                   # (N, N, 1)
    hexp = hexp_ref[...]                     # (HEADS, HC) head-expand matrix

    # node_embed: Linear(2,64)+ReLU (Dropout = identity), zero-padded to 128 lanes
    h = jnp.maximum(
        jnp.dot(x, nw_ref[...], preferred_element_type=jnp.float32) + nb_ref[0], 0.0)  # (N, HC)

    for l in range(NUM_LAYERS):
        # ---- GATv2Conv(in, 16, heads=8, edge_dim=1), all heads lane-dense ----
        hb = h.astype(jnp.bfloat16)          # bf16 MXU operands, f32 accumulate
        xl = jnp.dot(hb, wl_ref[0, l], preferred_element_type=jnp.float32) + bl_ref[0, l]  # source/messages
        xr = jnp.dot(hb, wr_ref[0, l], preferred_element_type=jnp.float32) + br_ref[0, l]  # target
        # z[i, j, :] = x_i(target) + x_j(source) + edge_ij * W_e
        z = xr[:, None, :] + xl[None, :, :] + ea3 * we_ref[0, l][None, None, :]  # (N, N, HC)
        z = jnp.where(z > 0, z, 0.2 * z)     # LeakyReLU(0.2)
        # all-head logits via one block-diagonal matmul: (N*N, HC) @ (HC, HEADS)
        logits = jnp.dot(z.reshape(N * N, HC), attbd_ref[0, l],
                         preferred_element_type=jnp.float32).reshape(N, N, HEADS)
        logits = jnp.where(adj3 > 0, logits, -1e30)
        mmax = jnp.max(logits, axis=1, keepdims=True)
        e = jnp.exp(logits - mmax) * adj3
        denom = jnp.sum(e, axis=1, keepdims=True)
        alpha = e * pl.reciprocal(jnp.maximum(denom, 1e-20), approx=True)        # (N, N, HEADS)
        # expand per-head alpha to all 128 lanes with one matmul, aggregate over j
        aexp = jnp.dot(alpha.reshape(N * N, HEADS), hexp,
                       preferred_element_type=jnp.float32).reshape(N, N, HC)
        agg = jnp.sum(aexp * xl[None, :, :], axis=1) + gb_ref[0, l]              # (N, HC)
        # ---- eval-mode BatchNorm + residual (layers 2..4) + ReLU ----
        inv = jax.lax.rsqrt(var_ref[0, l] + BN_EPS)
        y = (agg - mean_ref[0, l]) * inv * gamma_ref[0, l] + beta_ref[0, l]
        h = jnp.maximum(y + h, 0.0) if l > 0 else jnp.maximum(y, 0.0)

    o_ref[0, 0] = h                          # (N, HC) node features (pooled later)


def _head_fc_kernel(hn_ref, gf_ref, w1_ref, b1_ref, w2_ref, b2_ref,
                    fw1_ref, fb1_ref, fw2_ref, fb2_ref, fw3_ref, fb3_ref, o_ref):
    """Mean pooling + fused 4 global-feature heads (block-diag) + final fc MLP."""
    hn = hn_ref[...]                          # (2, B, N, HC)
    pd = jnp.mean(hn[0], axis=1)              # (B, HC) pooled DTI branch
    pf = jnp.mean(hn[1], axis=1)              # (B, HC) pooled fMRI branch

    gf = gf_ref[...]                          # (B, 17)
    # fused meta/bio/graph_dti/graph_fmri heads (two block-diagonal matmuls)
    h1 = jnp.maximum(
        jnp.dot(gf, w1_ref[...], preferred_element_type=jnp.float32) + b1_ref[0], 0.0)   # (B, 112)
    glob = jnp.maximum(
        jnp.dot(h1, w2_ref[...], preferred_element_type=jnp.float32) + b2_ref[0], 0.0)   # (B, 112)

    fw1 = fw1_ref[...]                        # (368, 128); concat avoided via row slices
    f1 = (jnp.dot(pd, fw1[0:HC], preferred_element_type=jnp.float32)
          + jnp.dot(pf, fw1[HC:2 * HC], preferred_element_type=jnp.float32)
          + jnp.dot(glob, fw1[2 * HC:], preferred_element_type=jnp.float32)
          + fb1_ref[0])
    f1 = jnp.maximum(f1, 0.0)
    f2 = jnp.maximum(
        jnp.dot(f1, fw2_ref[...], preferred_element_type=jnp.float32) + fb2_ref[0], 0.0)
    o_ref[...] = jnp.dot(f2, fw3_ref[...], preferred_element_type=jnp.float32) + fb3_ref[0]


# ------------------------------------------------------------------ wrappers
def gat_branches(x_all, adj_all, ea_all, f):
    """x_all: (2, B, N, 2); returns node features (2, B, N, HC)."""
    Mm, B, N, Fin = x_all.shape

    def const(shape):
        return pl.BlockSpec(shape, lambda m, b, _s=len(shape): (0,) * _s)

    def per_mod(shape):
        nd = len(shape)
        return pl.BlockSpec((1,) + shape[1:], lambda m, b, _n=nd: (m,) + (0,) * (_n - 1))

    return pl.pallas_call(
        _branch_kernel,
        out_shape=jax.ShapeDtypeStruct((Mm, B, N, HC), jnp.float32),
        grid=(Mm, B),
        in_specs=[
            pl.BlockSpec((1, 1, N, Fin), lambda m, b: (m, b, 0, 0)),
            pl.BlockSpec((1, 1, N, N), lambda m, b: (m, b, 0, 0)),
            pl.BlockSpec((1, 1, N, N), lambda m, b: (m, b, 0, 0)),
            const(f["node_w"].shape), const(f["node_b"].shape),
            per_mod(f["wl"].shape), per_mod(f["bl"].shape),
            per_mod(f["wr"].shape), per_mod(f["br"].shape),
            per_mod(f["we"].shape), per_mod(f["attbd"].shape),
            per_mod(f["gbias"].shape),
            per_mod(f["gamma"].shape), per_mod(f["beta"].shape),
            per_mod(f["mean"].shape), per_mod(f["var"].shape),
            const(f["hexp"].shape),
        ],
        out_specs=pl.BlockSpec((1, 1, N, HC), lambda m, b: (m, b, 0, 0)),
        compiler_params=pltpu.CompilerParams(
            dimension_semantics=("parallel", "parallel")),
    )(x_all, adj_all, ea_all, f["node_w"], f["node_b"],
      f["wl"], f["bl"], f["wr"], f["br"], f["we"], f["attbd"], f["gbias"],
      f["gamma"], f["beta"], f["mean"], f["var"], f["hexp"])


def head_fc(h_nodes, gfeat, f):
    B = gfeat.shape[0]
    args = (h_nodes, gfeat, f["gh_w1"], f["gh_b1"], f["gh_w2"], f["gh_b2"],
            f["fc_w1"], f["fc_b1"], f["fc_w2"], f["fc_b2"], f["fc_w3"], f["fc_b3"])
    return pl.pallas_call(
        _head_fc_kernel,
        out_shape=jax.ShapeDtypeStruct((B, 1), jnp.float32),
        in_specs=[_full_spec(a.shape) for a in args],
        out_specs=_full_spec((B, 1)),
    )(*args)


# ------------------------------------------------------------------ parameter init
def init_linear(key, fin, fout):
    kw, kb = jax.random.split(key)
    s = 1.0 / np.sqrt(fin)
    w = jax.random.uniform(kw, (fin, fout), jnp.float32, -s, s)
    b = jax.random.uniform(kb, (1, fout), jnp.float32, -s, s)
    return w, b


def init_gat(key, fin, H=HEADS, C=HEAD_DIM):
    hc = H * C
    ks = jax.random.split(key, 4)
    s = 1.0 / np.sqrt(fin)
    return dict(
        wl=jax.random.uniform(ks[0], (fin, hc), jnp.float32, -s, s),
        bl=jnp.zeros((1, hc), jnp.float32),
        wr=jax.random.uniform(ks[1], (fin, hc), jnp.float32, -s, s),
        br=jnp.zeros((1, hc), jnp.float32),
        we=jax.random.uniform(ks[2], (1, hc), jnp.float32, -1.0, 1.0),
        att=jax.random.uniform(ks[3], (H, C), jnp.float32,
                               -1.0 / np.sqrt(C), 1.0 / np.sqrt(C)),
        bias=jnp.zeros((1, hc), jnp.float32),
    )


def init_bn(dim=HC):
    return dict(gamma=jnp.ones((1, dim), jnp.float32),
                beta=jnp.zeros((1, dim), jnp.float32),
                mean=jnp.zeros((1, dim), jnp.float32),
                var=jnp.ones((1, dim), jnp.float32))


def init_params(key):
    keys = jax.random.split(key, 32)
    ki = iter(keys)
    p = {}
    p["node_w"], p["node_b"] = init_linear(next(ki), 2, 64)

    p["gat_dti"] = [init_gat(next(ki), 64)] + [init_gat(next(ki), 128) for _ in range(3)]
    p["bn_dti"] = [init_bn() for _ in range(4)]
    p["gat_fmri"] = [init_gat(next(ki), 64)] + [init_gat(next(ki), 128) for _ in range(3)]
    p["bn_fmri"] = [init_bn() for _ in range(4)]

    def head(fin, hdim):
        w1, b1 = init_linear(next(ki), fin, hdim)
        w2, b2 = init_linear(next(ki), hdim, hdim)
        return dict(w1=w1, b1=b1, w2=w2, b2=b2)

    p["meta_head"] = head(2, 16)
    p["bio_head"] = head(7, 32)
    p["graph_dti_head"] = head(4, 32)
    p["graph_fmri_head"] = head(4, 32)

    w1, b1 = init_linear(next(ki), 368, 128)
    w2, b2 = init_linear(next(ki), 128, 64)
    w3, b3 = init_linear(next(ki), 64, 1)
    p["fc"] = dict(w1=w1, b1=b1, w2=w2, b2=b2, w3=w3, b3=b3)
    return p


def fuse_params(p):
    """One-time host-side packing: layer/modality stacking, zero-padding and
    block-diagonal fusion so the forward pass needs only 2 pallas_calls."""
    H, C = HEADS, HEAD_DIM
    f = {}
    # node_embed padded to 128 output lanes (extra lanes are exact zeros)
    f["node_w"] = jnp.pad(p["node_w"], ((0, 0), (0, HC - 64)))          # (2, 128)
    f["node_b"] = jnp.pad(p["node_b"], ((0, 0), (0, HC - 64)))          # (1, 128)

    def stack_branch(gats, bns):
        wl, wr, bl, br, we, attbd, gbias = [], [], [], [], [], [], []
        gamma, beta, mean, var = [], [], [], []
        for g in gats:
            w_l, w_r = g["wl"], g["wr"]
            if w_l.shape[0] < HC:   # layer 0: Fin=64 -> zero-pad input rows to 128
                w_l = jnp.pad(w_l, ((0, HC - w_l.shape[0]), (0, 0)))
                w_r = jnp.pad(w_r, ((0, HC - w_r.shape[0]), (0, 0)))
            wl.append(w_l); wr.append(w_r)
            bl.append(g["bl"][0]); br.append(g["br"][0])
            we.append(g["we"][0]); gbias.append(g["bias"][0])
            attbd.append(block_diag([g["att"][h].reshape(C, 1) for h in range(H)]))
        for b in bns:
            gamma.append(b["gamma"][0]); beta.append(b["beta"][0])
            mean.append(b["mean"][0]); var.append(b["var"][0])
        return dict(
            wl=jnp.stack(wl).astype(jnp.bfloat16),     # (4, 128, 128) bf16 MXU operands
            wr=jnp.stack(wr).astype(jnp.bfloat16),
            bl=jnp.stack(bl), br=jnp.stack(br), we=jnp.stack(we),
            attbd=jnp.stack(attbd), gbias=jnp.stack(gbias),
            gamma=jnp.stack(gamma), beta=jnp.stack(beta),
            mean=jnp.stack(mean), var=jnp.stack(var))

    b_dti = stack_branch(p["gat_dti"], p["bn_dti"])
    b_fmri = stack_branch(p["gat_fmri"], p["bn_fmri"])
    for k in b_dti:                                     # modality axis first: (2, 4, ...)
        f[k] = jnp.stack([b_dti[k], b_fmri[k]])

    # head-expand matrix: (HEADS, HC), E[h, h*C:(h+1)*C] = 1
    f["hexp"] = block_diag([jnp.ones((1, C), jnp.float32) for _ in range(H)])

    # global-feature heads fused into one block-diagonal 2-layer MLP (slice order
    # matches gfeat columns: meta[0:2], bio[2:9], graph_dti[9:13], graph_fmri[13:17])
    heads = [p["meta_head"], p["bio_head"], p["graph_dti_head"], p["graph_fmri_head"]]
    f["gh_w1"] = block_diag([h["w1"] for h in heads])                   # (17, 112)
    f["gh_b1"] = jnp.concatenate([h["b1"] for h in heads], axis=1)      # (1, 112)
    f["gh_w2"] = block_diag([h["w2"] for h in heads])                   # (112, 112)
    f["gh_b2"] = jnp.concatenate([h["b2"] for h in heads], axis=1)      # (1, 112)

    f["fc_w1"] = p["fc"]["w1"]; f["fc_b1"] = p["fc"]["b1"]
    f["fc_w2"] = p["fc"]["w2"]; f["fc_b2"] = p["fc"]["b2"]
    f["fc_w3"] = p["fc"]["w3"]; f["fc_b3"] = p["fc"]["b3"]
    return f


# ------------------------------------------------------------------ forward
def forward(fused, x_dti, adj_dti, ea_dti, x_fmri, adj_fmri, ea_fmri, gfeat):
    x_all = jnp.stack([x_dti, x_fmri])        # (2, B, N, 2)
    adj_all = jnp.stack([adj_dti, adj_fmri])  # (2, B, N, N)
    ea_all = jnp.stack([ea_dti, ea_fmri])     # (2, B, N, N)
    h_nodes = gat_branches(x_all, adj_all, ea_all, fused)   # (2, B, N, 128)
    return head_fc(h_nodes, gfeat, fused)                   # (B, 1)


# ------------------------------------------------------------------ synthetic data
def make_graph(key, B, N):
    k1, k2 = jax.random.split(key)
    eye = jnp.eye(N, dtype=jnp.float32)[None]
    adj = (jax.random.uniform(k1, (B, N, N)) < 0.3).astype(jnp.float32) * (1.0 - eye)
    ea = jax.random.uniform(k2, (B, N, N)) * adj
    # add self loops; self-loop edge attr = mean of incoming edge attrs per target node
    deg = jnp.sum(adj, axis=2, keepdims=True)
    loop_ea = jnp.sum(ea, axis=2, keepdims=True) / jnp.maximum(deg, 1.0)
    adj = adj + eye
    ea = ea + eye * loop_ea
    return adj, ea


if __name__ == "__main__":
    # TODO(synk): Dropout layers are identity (eval mode); PyG sparse edge_index /
    # batching is represented as dense padded adjacency with materialized self-loops.
    B, N = 2, 16
    key = jax.random.PRNGKey(0)
    kp, kx1, kx2, kg1, kg2, kgl = jax.random.split(key, 6)

    params = init_params(kp)
    fused = fuse_params(params)

    x_dti = jax.random.normal(kx1, (B, N, 2), jnp.float32)
    x_fmri = jax.random.normal(kx2, (B, N, 2), jnp.float32)
    adj_dti, ea_dti = make_graph(kg1, B, N)
    adj_fmri, ea_fmri = make_graph(kg2, B, N)
    # global features: dti (13) ++ fmri (4) -> 17 per graph
    gfeat = jax.random.normal(kgl, (B, 17), jnp.float32)

    out = forward(fused, x_dti, adj_dti, ea_dti, x_fmri, adj_fmri, ea_fmri, gfeat)
    out = jax.block_until_ready(out)
    assert out.shape == (B, 1)
    print("KERNEL_OK")
</pallas_src>

<mosaic_0001>
module attributes {stable_mosaic.version = 11 : i64} {
  func.func @_branch_kernel(%arg0: i32, %arg1: i32, %arg2: memref<1x1x16x2xf32, #tpu.memory_space<vmem>>, %arg3: memref<1x1x16x16xf32, #tpu.memory_space<vmem>>, %arg4: memref<1x1x16x16xf32, #tpu.memory_space<vmem>>, %arg5: memref<2x128xf32, #tpu.memory_space<vmem>>, %arg6: memref<1x128xf32, #tpu.memory_space<vmem>>, %arg7: memref<1x4x128x128xbf16, #tpu.memory_space<vmem>>, %arg8: memref<1x4x128xf32, #tpu.memory_space<vmem>>, %arg9: memref<1x4x128x128xbf16, #tpu.memory_space<vmem>>, %arg10: memref<1x4x128xf32, #tpu.memory_space<vmem>>, %arg11: memref<1x4x128xf32, #tpu.memory_space<vmem>>, %arg12: memref<1x4x128x8xf32, #tpu.memory_space<vmem>>, %arg13: memref<1x4x128xf32, #tpu.memory_space<vmem>>, %arg14: memref<1x4x128xf32, #tpu.memory_space<vmem>>, %arg15: memref<1x4x128xf32, #tpu.memory_space<vmem>>, %arg16: memref<1x4x128xf32, #tpu.memory_space<vmem>>, %arg17: memref<1x4x128xf32, #tpu.memory_space<vmem>>, %arg18: memref<8x128xf32, #tpu.memory_space<vmem>>, %arg19: memref<1x1x16x128xf32, #tpu.memory_space<vmem>>) attributes {dimension_semantics = [#tpu.dimension_semantics<parallel>, #tpu.dimension_semantics<parallel>], iteration_bounds = array<i64: 2, 2>, scalar_prefetch = 0 : i64, scratch_operands = 0 : i64, tpu.core_type = #tpu.core_type<tc>, window_params = [{transform_indices = @transform_0, window_bounds = array<i64: 1, 1, 16, 2>}, {transform_indices = @transform_1, window_bounds = array<i64: 1, 1, 16, 16>}, {transform_indices = @transform_2, window_bounds = array<i64: 1, 1, 16, 16>}, {pipeline_mode = #tpu.pipeline_mode<synchronous>, transform_indices = @transform_3, window_bounds = array<i64: 2, 128>}, {pipeline_mode = #tpu.pipeline_mode<synchronous>, transform_indices = @transform_4, window_bounds = array<i64: 1, 128>}, {transform_indices = @transform_5, window_bounds = array<i64: 1, 4, 128, 128>}, {transform_indices = @transform_6, window_bounds = array<i64: 1, 4, 128>}, {transform_indices = @transform_7, window_bounds = array<i64: 1, 4, 128, 128>}, {transform_indices = @transform_8, window_bounds = array<i64: 1, 4, 128>}, {transform_indices = @transform_9, window_bounds = array<i64: 1, 4, 128>}, {transform_indices = @transform_10, window_bounds = array<i64: 1, 4, 128, 8>}, {transform_indices = @transform_11, window_bounds = array<i64: 1, 4, 128>}, {transform_indices = @transform_12, window_bounds = array<i64: 1, 4, 128>}, {transform_indices = @transform_13, window_bounds = array<i64: 1, 4, 128>}, {transform_indices = @transform_14, window_bounds = array<i64: 1, 4, 128>}, {transform_indices = @transform_15, window_bounds = array<i64: 1, 4, 128>}, {pipeline_mode = #tpu.pipeline_mode<synchronous>, transform_indices = @transform_16, window_bounds = array<i64: 8, 128>}, {transform_indices = @transform_17, window_bounds = array<i64: 1, 1, 16, 128>}]} {
    %c0 = arith.constant 0 : index
    %c0_0 = arith.constant 0 : index
    %c0_1 = arith.constant 0 : index
    %c0_2 = arith.constant 0 : index
    %0 = vector.load %arg2[%c0, %c0_0, %c0_1, %c0_2] : memref<1x1x16x2xf32, #tpu.memory_space<vmem>>, vector<1x1x16x2xf32>
    %1 = vector.shape_cast %0 : vector<1x1x16x2xf32> to vector<16x2xf32>
    %c0_3 = arith.constant 0 : index
    %c0_4 = arith.constant 0 : index
    %c0_5 = arith.constant 0 : index
    %c0_6 = arith.constant 0 : index
    %2 = vector.load %arg3[%c0_3, %c0_4, %c0_5, %c0_6] : memref<1x1x16x16xf32, #tpu.memory_space<vmem>>, vector<1x1x16x16xf32>
    %3 = vector.shape_cast %2 : vector<1x1x16x16xf32> to vector<16x16xf32>
    %c0_7 = arith.constant 0 : index
    %c0_8 = arith.constant 0 : index
    %c0_9 = arith.constant 0 : index
    %c0_10 = arith.constant 0 : index
    %4 = vector.load %arg4[%c0_7, %c0_8, %c0_9, %c0_10] : memref<1x1x16x16xf32, #tpu.memory_space<vmem>>, vector<1x1x16x16xf32>
    %5 = vector.shape_cast %4 : vector<1x1x16x16xf32> to vector<16x16xf32>
    %6 = vector.shape_cast %5 : vector<16x16xf32> to vector<16x16x1xf32>
    %7 = vector.shape_cast %3 : vector<16x16xf32> to vector<16x16x1xf32>
    %c0_11 = arith.constant 0 : index
    %c0_12 = arith.constant 0 : index
    %8 = vector.load %arg18[%c0_11, %c0_12] : memref<8x128xf32, #tpu.memory_space<vmem>>, vector<8x128xf32>
    %c0_13 = arith.constant 0 : index
    %c0_14 = arith.constant 0 : index
    %9 = vector.load %arg5[%c0_13, %c0_14] : memref<2x128xf32, #tpu.memory_space<vmem>>, vector<2x128xf32>
    %cst = arith.constant dense<0.000000e+00> : vector<16x128xf32>
    %10 = tpu.matmul %1, %9, %cst {dimension_numbers = #tpu.dot_dimension_numbers<[1], [0], [0], [1], [0, 0, 1, 1], [], []>} : vector<16x2xf32>, vector<2x128xf32>, vector<16x128xf32> -> vector<16x128xf32>
    %c0_15 = arith.constant 0 : index
    %c0_16 = arith.constant 0 : index
    %11 = vector.load %arg6[%c0_15, %c0_16] : memref<1x128xf32, #tpu.memory_space<vmem>>, vector<1x128xf32>
    %12 = vector.shape_cast %11 : vector<1x128xf32> to vector<128xf32>
    %13 = vector.shape_cast %12 : vector<128xf32> to vector<1x128xf32>
    %14 = vector.broadcast %13 : vector<1x128xf32> to vector<16x128xf32>
    %15 = arith.addf %10, %14 : vector<16x128xf32>
    %cst_17 = arith.constant 0.000000e+00 : f32
    %16 = vector.broadcast %cst_17 : f32 to vector<16x128xf32>
    %17 = arith.maximumf %15, %16 : vector<16x128xf32>
    %18 = arith.truncf %17 : vector<16x128xf32> to vector<16x128xbf16>
    %c0_18 = arith.constant 0 : index
    %c0_19 = arith.constant 0 : index
    %c0_20 = arith.constant 0 : index
    %c0_21 = arith.constant 0 : index
    %19 = vector.load %arg7[%c0_18, %c0_19, %c0_20, %c0_21] : memref<1x4x128x128xbf16, #tpu.memory_space<vmem>>, vector<1x1x128x128xbf16>
    %20 = vector.shape_cast %19 : vector<1x1x128x128xbf16> to vector<128x128xbf16>
    %cst_22 = arith.constant dense<0.000000e+00> : vector<16x128xf32>
    %21 = tpu.matmul %18, %20, %cst_22 {dimension_numbers = #tpu.dot_dimension_numbers<[1], [0], [0], [1], [0, 0, 1, 1], [], []>} : vector<16x128xbf16>, vector<128x128xbf16>, vector<16x128xf32> -> vector<16x128xf32>
    %c0_23 = arith.constant 0 : index
    %c0_24 = arith.constant 0 : index
    %c0_25 = arith.constant 0 : index
    %22 = vector.load %arg8[%c0_23, %c0_24, %c0_25] : memref<1x4x128xf32, #tpu.memory_space<vmem>>, vector<1x1x128xf32>
    %23 = vector.shape_cast %22 : vector<1x1x128xf32> to vector<128xf32>
    %24 = vector.shape_cast %23 : vector<128xf32> to vector<1x128xf32>
    %25 = vector.broadcast %24 : vector<1x128xf32> to vector<16x128xf32>
    %26 = arith.addf %21, %25 : vector<16x128xf32>
    %c0_26 = arith.constant 0 : index
    %c0_27 = arith.constant 0 : index
    %c0_28 = arith.constant 0 : index
    %c0_29 = arith.constant 0 : index
    %27 = vector.load %arg9[%c0_26, %c0_27, %c0_28, %c0_29] : memref<1x4x128x128xbf16, #tpu.memory_space<vmem>>, vector<1x1x128x128xbf16>
    %28 = vector.shape_cast %27 : vector<1x1x128x128xbf16> to vector<128x128xbf16>
    %cst_30 = arith.constant dense<0.000000e+00> : vector<16x128xf32>
    %29 = tpu.matmul %18, %28, %cst_30 {dimension_numbers = #tpu.dot_dimension_numbers<[1], [0], [0], [1], [0, 0, 1, 1], [], []>} : vector<16x128xbf16>, vector<128x128xbf16>, vector<16x128xf32> -> vector<16x128xf32>
    %c0_31 = arith.constant 0 : index
    %c0_32 = arith.constant 0 : index
    %c0_33 = arith.constant 0 : index
    %30 = vector.load %arg10[%c0_31, %c0_32, %c0_33] : memref<1x4x128xf32, #tpu.memory_space<vmem>>, vector<1x1x128xf32>
    %31 = vector.shape_cast %30 : vector<1x1x128xf32> to vector<128xf32>
    %32 = vector.shape_cast %31 : vector<128xf32> to vector<1x128xf32>
    %33 = vector.broadcast %32 : vector<1x128xf32> to vector<16x128xf32>
    %34 = arith.addf %29, %33 : vector<16x128xf32>
    %35 = vector.shape_cast %34 : vector<16x128xf32> to vector<16x1x128xf32>
    %36 = vector.shape_cast %26 : vector<16x128xf32> to vector<1x16x128xf32>
    %37 = vector.broadcast %35 : vector<16x1x128xf32> to vector<16x16x128xf32>
    %38 = vector.broadcast %36 : vector<1x16x128xf32> to vector<16x16x128xf32>
    %39 = arith.addf %37, %38 : vector<16x16x128xf32>
    %c0_34 = arith.constant 0 : index
    %c0_35 = arith.constant 0 : index
    %c0_36 = arith.constant 0 : index
    %40 = vector.load %arg11[%c0_34, %c0_35, %c0_36] : memref<1x4x128xf32, #tpu.memory_space<vmem>>, vector<1x1x128xf32>
    %41 = vector.shape_cast %40 : vector<1x1x128xf32> to vector<128xf32>
    %42 = vector.shape_cast %41 : vector<128xf32> to vector<1x1x128xf32>
    %43 = vector.broadcast %6 : vector<16x16x1xf32> to vector<16x16x128xf32>
    %44 = vector.broadcast %42 : vector<1x1x128xf32> to vector<16x16x128xf32>
    %45 = arith.mulf %43, %44 : vector<16x16x128xf32>
    %46 = arith.addf %39, %45 : vector<16x16x128xf32>
    %cst_37 = arith.constant 0.000000e+00 : f32
    %47 = vector.broadcast %cst_37 : f32 to vector<16x16x128xf32>
    %48 = arith.cmpf ogt, %46, %47 : vector<16x16x128xf32>
    %cst_38 = arith.constant 2.000000e-01 : f32
    %49 = vector.broadcast %cst_38 : f32 to vector<16x16x128xf32>
    %50 = arith.mulf %49, %46 : vector<16x16x128xf32>
    %51 = arith.select %48, %46, %50 : vector<16x16x128xi1>, vector<16x16x128xf32>
    %52 = vector.shape_cast %51 : vector<16x16x128xf32> to vector<256x128xf32>
    %c0_39 = arith.constant 0 : index
    %c0_40 = arith.constant 0 : index
    %c0_41 = arith.constant 0 : index
    %c0_42 = arith.constant 0 : index
    %53 = vector.load %arg12[%c0_39, %c0_40, %c0_41, %c0_42] : memref<1x4x128x8xf32, #tpu.memory_space<vmem>>, vector<1x1x128x8xf32>
    %54 = vector.shape_cast %53 : vector<1x1x128x8xf32> to vector<128x8xf32>
    %cst_43 = arith.constant dense<0.000000e+00> : vector<256x8xf32>
    %55 = tpu.matmul %52, %54, %cst_43 {dimension_numbers = #tpu.dot_dimension_numbers<[1], [0], [0], [1], [0, 0, 1, 1], [], []>} : vector<256x128xf32>, vector<128x8xf32>, vector<256x8xf32> -> vector<256x8xf32>
    %56 = vector.shape_cast %55 : vector<256x8xf32> to vector<16x16x8xf32>
    %cst_44 = arith.constant 0.000000e+00 : f32
    %57 = vector.broadcast %cst_44 : f32 to vector<16x16x1xf32>
    %58 = arith.cmpf ogt, %7, %57 : vector<16x16x1xf32>
    %cst_45 = arith.constant -1.000000e+30 : f32
    %59 = vector.shape_cast %58 : vector<16x16x1xi1> to vector<16x16x1xi1>
    %60 = vector.broadcast %59 : vector<16x16x1xi1> to vector<16x16x8xi1>
    %61 = vector.broadcast %cst_45 : f32 to vector<16x16x8xf32>
    %62 = arith.select %60, %56, %61 : vector<16x16x8xi1>, vector<16x16x8xf32>
    %cst_46 = arith.constant dense<0xFF800000> : vector<16x8xf32>
    %63 = vector.multi_reduction <maximumf>, %62, %cst_46 [1] : vector<16x16x8xf32> to vector<16x8xf32>
    %64 = vector.shape_cast %63 : vector<16x8xf32> to vector<16x1x8xf32>
    %65 = vector.broadcast %64 : vector<16x1x8xf32> to vector<16x16x8xf32>
    %66 = arith.subf %62, %65 : vector<16x16x8xf32>
    %67 = math.exp %66 : vector<16x16x8xf32>
    %68 = vector.broadcast %7 : vector<16x16x1xf32> to vector<16x16x8xf32>
    %69 = arith.mulf %67, %68 : vector<16x16x8xf32>
    %cst_47 = arith.constant dense<0.000000e+00> : vector<16x8xf32>
    %70 = vector.multi_reduction <add>, %69, %cst_47 [1] : vector<16x16x8xf32> to vector<16x8xf32>
    %71 = vector.shape_cast %70 : vector<16x8xf32> to vector<16x1x8xf32>
    %cst_48 = arith.constant 9.99999968E-21 : f32
    %72 = vector.broadcast %cst_48 : f32 to vector<16x1x8xf32>
    %73 = arith.maximumf %71, %72 : vector<16x1x8xf32>
    %74 = tpu.reciprocal %73 {approx = true} : vector<16x1x8xf32> -> vector<16x1x8xf32>
    %75 = vector.broadcast %74 : vector<16x1x8xf32> to vector<16x16x8xf32>
    %76 = arith.mulf %69, %75 : vector<16x16x8xf32>
    %77 = vector.shape_cast %76 : vector<16x16x8xf32> to vector<256x8xf32>
    %cst_49 = arith.constant dense<0.000000e+00> : vector<256x128xf32>
    %78 = tpu.matmul %77, %8, %cst_49 {dimension_numbers = #tpu.dot_dimension_numbers<[1], [0], [0], [1], [0, 0, 1, 1], [], []>} : vector<256x8xf32>, vector<8x128xf32>, vector<256x128xf32> -> vector<256x128xf32>
    %79 = vector.shape_cast %78 : vector<256x128xf32> to vector<16x16x128xf32>
    %80 = vector.shape_cast %26 : vector<16x128xf32> to vector<1x16x128xf32>
    %81 = vector.broadcast %80 : vector<1x16x128xf32> to vector<16x16x128xf32>
    %82 = arith.mulf %79, %81 : vector<16x16x128xf32>
    %cst_50 = arith.constant dense<0.000000e+00> : vector<16x128xf32>
    %83 = vector.multi_reduction <add>, %82, %cst_50 [1] : vector<16x16x128xf32> to vector<16x128xf32>
    %c0_51 = arith.constant 0 : index
    %c0_52 = arith.constant 0 : index
    %c0_53 = arith.constant 0 : index
    %84 = vector.load %arg13[%c0_51, %c0_52, %c0_53] : memref<1x4x128xf32, #tpu.memory_space<vmem>>, vector<1x1x128xf32>
    %85 = vector.shape_cast %84 : vector<1x1x128xf32> to vector<128xf32>
    %86 = vector.shape_cast %85 : vector<128xf32> to vector<1x128xf32>
    %87 = vector.broadcast %86 : vector<1x128xf32> to vector<16x128xf32>
    %88 = arith.addf %83, %87 : vector<16x128xf32>
    %c0_54 = arith.constant 0 : index
    %c0_55 = arith.constant 0 : index
    %c0_56 = arith.constant 0 : index
    %89 = vector.load %arg17[%c0_54, %c0_55, %c0_56] : memref<1x4x128xf32, #tpu.memory_space<vmem>>, vector<1x1x128xf32>
    %90 = vector.shape_cast %89 : vector<1x1x128xf32> to vector<128xf32>
    %cst_57 = arith.constant 9.99999974E-6 : f32
    %91 = vector.broadcast %cst_57 : f32 to vector<128xf32>
    %92 = arith.addf %90, %91 : vector<128xf32>
    %93 = math.rsqrt %92 : vector<128xf32>
    %c0_58 = arith.constant 0 : index
    %c0_59 = arith.constant 0 : index
    %c0_60 = arith.constant 0 : index
    %94 = vector.load %arg16[%c0_58, %c0_59, %c0_60] : memref<1x4x128xf32, #tpu.memory_space<vmem>>, vector<1x1x128xf32>
    %95 = vector.shape_cast %94 : vector<1x1x128xf32> to vector<128xf32>
    %96 = vector.shape_cast %95 : vector<128xf32> to vector<1x128xf32>
    %97 = vector.broadcast %96 : vector<1x128xf32> to vector<16x128xf32>
    %98 = arith.subf %88, %97 : vector<16x128xf32>
    %99 = vector.shape_cast %93 : vector<128xf32> to vector<1x128xf32>
    %100 = vector.broadcast %99 : vector<1x128xf32> to vector<16x128xf32>
    %101 = arith.mulf %98, %100 : vector<16x128xf32>
    %c0_61 = arith.constant 0 : index
    %c0_62 = arith.constant 0 : index
    %c0_63 = arith.constant 0 : index
    %102 = vector.load %arg14[%c0_61, %c0_62, %c0_63] : memref<1x4x128xf32, #tpu.memory_space<vmem>>, vector<1x1x128xf32>
    %103 = vector.shape_cast %102 : vector<1x1x128xf32> to vector<128xf32>
    %104 = vector.shape_cast %103 : vector<128xf32> to vector<1x128xf32>
    %105 = vector.broadcast %104 : vector<1x128xf32> to vector<16x128xf32>
    %106 = arith.mulf %101, %105 : vector<16x128xf32>
    %c0_64 = arith.constant 0 : index
    %c0_65 = arith.constant 0 : index
    %c0_66 = arith.constant 0 : index
    %107 = vector.load %arg15[%c0_64, %c0_65, %c0_66] : memref<1x4x128xf32, #tpu.memory_space<vmem>>, vector<1x1x128xf32>
    %108 = vector.shape_cast %107 : vector<1x1x128xf32> to vector<128xf32>
    %109 = vector.shape_cast %108 : vector<128xf32> to vector<1x128xf32>
    %110 = vector.broadcast %109 : vector<1x128xf32> to vector<16x128xf32>
    %111 = arith.addf %106, %110 : vector<16x128xf32>
    %cst_67 = arith.constant 0.000000e+00 : f32
    %112 = vector.broadcast %cst_67 : f32 to vector<16x128xf32>
    %113 = arith.maximumf %111, %112 : vector<16x128xf32>
    %114 = arith.truncf %113 : vector<16x128xf32> to vector<16x128xbf16>
    %c0_68 = arith.constant 0 : index
    %c1 = arith.constant 1 : index
    %c0_69 = arith.constant 0 : index
    %c0_70 = arith.constant 0 : index
    %115 = vector.load %arg7[%c0_68, %c1, %c0_69, %c0_70] : memref<1x4x128x128xbf16, #tpu.memory_space<vmem>>, vector<1x1x128x128xbf16>
    %116 = vector.shape_cast %115 : vector<1x1x128x128xbf16> to vector<128x128xbf16>
    %cst_71 = arith.constant dense<0.000000e+00> : vector<16x128xf32>
    %117 = tpu.matmul %114, %116, %cst_71 {dimension_numbers = #tpu.dot_dimension_numbers<[1], [0], [0], [1], [0, 0, 1, 1], [], []>} : vector<16x128xbf16>, vector<128x128xbf16>, vector<16x128xf32> -> vector<16x128xf32>
    %c0_72 = arith.constant 0 : index
    %c1_73 = arith.constant 1 : index
    %c0_74 = arith.constant 0 : index
    %118 = vector.load %arg8[%c0_72, %c1_73, %c0_74] : memref<1x4x128xf32, #tpu.memory_space<vmem>>, vector<1x1x128xf32>
    %119 = vector.shape_cast %118 : vector<1x1x128xf32> to vector<128xf32>
    %120 = vector.shape_cast %119 : vector<128xf32> to vector<1x128xf32>
    %121 = vector.broadcast %120 : vector<1x128xf32> to vector<16x128xf32>
    %122 = arith.addf %117, %121 : vector<16x128xf32>
    %c0_75 = arith.constant 0 : index
    %c1_76 = arith.constant 1 : index
    %c0_77 = arith.constant 0 : index
    %c0_78 = arith.constant 0 : index
    %123 = vector.load %arg9[%c0_75, %c1_76, %c0_77, %c0_78] : memref<1x4x128x128xbf16, #tpu.memory_space<vmem>>, vector<1x1x128x128xbf16>
    %124 = vector.shape_cast %123 : vector<1x1x128x128xbf16> to vector<128x128xbf16>
    %cst_79 = arith.constant dense<0.000000e+00> : vector<16x128xf32>
    %125 = tpu.matmul %114, %124, %cst_79 {dimension_numbers = #tpu.dot_dimension_numbers<[1], [0], [0], [1], [0, 0, 1, 1], [], []>} : vector<16x128xbf16>, vector<128x128xbf16>, vector<16x128xf32> -> vector<16x128xf32>
    %c0_80 = arith.constant 0 : index
    %c1_81 = arith.constant 1 : index
    %c0_82 = arith.constant 0 : index
    %126 = vector.load %arg10[%c0_80, %c1_81, %c0_82] : memref<1x4x128xf32, #tpu.memory_space<vmem>>, vector<1x1x128xf32>
    %127 = vector.shape_cast %126 : vector<1x1x128xf32> to vector<128xf32>
    %128 = vector.shape_cast %127 : vector<128xf32> to vector<1x128xf32>
    %129 = vector.broadcast %128 : vector<1x128xf32> to vector<16x128xf32>
    %130 = arith.addf %125, %129 : vector<16x128xf32>
    %131 = vector.shape_cast %130 : vector<16x128xf32> to vector<16x1x128xf32>
    %132 = vector.shape_cast %122 : vector<16x128xf32> to vector<1x16x128xf32>
    %133 = vector.broadcast %131 : vector<16x1x128xf32> to vector<16x16x128xf32>
    %134 = vector.broadcast %132 : vector<1x16x128xf32> to vector<16x16x128xf32>
    %135 = arith.addf %133, %134 : vector<16x16x128xf32>
    %c0_83 = arith.constant 0 : index
    %c1_84 = arith.constant 1 : index
    %c0_85 = arith.constant 0 : index
    %136 = vector.load %arg11[%c0_83, %c1_84, %c0_85] : memref<1x4x128xf32, #tpu.memory_space<vmem>>, vector<1x1x128xf32>
    %137 = vector.shape_cast %136 : vector<1x1x128xf32> to vector<128xf32>
    %138 = vector.shape_cast %137 : vector<128xf32> to vector<1x1x128xf32>
    %139 = vector.broadcast %6 : vector<16x16x1xf32> to vector<16x16x128xf32>
    %140 = vector.broadcast %138 : vector<1x1x128xf32> to vector<16x16x128xf32>
    %141 = arith.mulf %139, %140 : vector<16x16x128xf32>
    %142 = arith.addf %135, %141 : vector<16x16x128xf32>
    %cst_86 = arith.constant 0.000000e+00 : f32
    %143 = vector.broadcast %cst_86 : f32 to vector<16x16x128xf32>
    %144 = arith.cmpf ogt, %142, %143 : vector<16x16x128xf32>
    %cst_87 = arith.constant 2.000000e-01 : f32
    %145 = vector.broadcast %cst_87 : f32 to vector<16x16x128xf32>
    %146 = arith.mulf %145, %142 : vector<16x16x128xf32>
    %147 = arith.select %144, %142, %146 : vector<16x16x128xi1>, vector<16x16x128xf32>
    %148 = vector.shape_cast %147 : vector<16x16x128xf32> to vector<256x128xf32>
    %c0_88 = arith.constant 0 : index
    %c1_89 = arith.constant 1 : index
    %c0_90 = arith.constant 0 : index
    %c0_91 = arith.constant 0 : index
    %149 = vector.load %arg12[%c0_88, %c1_89, %c0_90, %c0_91] : memref<1x4x128x8xf32, #tpu.memory_space<vmem>>, vector<1x1x128x8xf32>
    %150 = vector.shape_cast %149 : vector<1x1x128x8xf32> to vector<128x8xf32>
    %cst_92 = arith.constant dense<0.000000e+00> : vector<256x8xf32>
    %151 = tpu.matmul %148, %150, %cst_92 {dimension_numbers = #tpu.dot_dimension_numbers<[1], [0], [0], [1], [0, 0, 1, 1], [], []>} : vector<256x128xf32>, vector<128x8xf32>, vector<256x8xf32> -> vector<256x8xf32>
    %152 = vector.shape_cast %151 : vector<256x8xf32> to vector<16x16x8xf32>
    %cst_93 = arith.constant 0.000000e+00 : f32
    %153 = vector.broadcast %cst_93 : f32 to vector<16x16x1xf32>
    %154 = arith.cmpf ogt, %7, %153 : vector<16x16x1xf32>
    %cst_94 = arith.constant -1.000000e+30 : f32
    %155 = vector.shape_cast %154 : vector<16x16x1xi1> to vector<16x16x1xi1>
    %156 = vector.broadcast %155 : vector<16x16x1xi1> to vector<16x16x8xi1>
    %157 = vector.broadcast %cst_94 : f32 to vector<16x16x8xf32>
    %158 = arith.select %156, %152, %157 : vector<16x16x8xi1>, vector<16x16x8xf32>
    %cst_95 = arith.constant dense<0xFF800000> : vector<16x8xf32>
    %159 = vector.multi_reduction <maximumf>, %158, %cst_95 [1] : vector<16x16x8xf32> to vector<16x8xf32>
    %160 = vector.shape_cast %159 : vector<16x8xf32> to vector<16x1x8xf32>
    %161 = vector.broadcast %160 : vector<16x1x8xf32> to vector<16x16x8xf32>
    %162 = arith.subf %158, %161 : vector<16x16x8xf32>
    %163 = math.exp %162 : vector<16x16x8xf32>
    %164 = vector.broadcast %7 : vector<16x16x1xf32> to vector<16x16x8xf32>
    %165 = arith.mulf %163, %164 : vector<16x16x8xf32>
    %cst_96 = arith.constant dense<0.000000e+00> : vector<16x8xf32>
    %166 = vector.multi_reduction <add>, %165, %cst_96 [1] : vector<16x16x8xf32> to vector<16x8xf32>
    %167 = vector.shape_cast %166 : vector<16x8xf32> to vector<16x1x8xf32>
    %cst_97 = arith.constant 9.99999968E-21 : f32
    %168 = vector.broadcast %cst_97 : f32 to vector<16x1x8xf32>
    %169 = arith.maximumf %167, %168 : vector<16x1x8xf32>
    %170 = tpu.reciprocal %169 {approx = true} : vector<16x1x8xf32> -> vector<16x1x8xf32>
    %171 = vector.broadcast %170 : vector<16x1x8xf32> to vector<16x16x8xf32>
    %172 = arith.mulf %165, %171 : vector<16x16x8xf32>
    %173 = vector.shape_cast %172 : vector<16x16x8xf32> to vector<256x8xf32>
    %cst_98 = arith.constant dense<0.000000e+00> : vector<256x128xf32>
    %174 = tpu.matmul %173, %8, %cst_98 {dimension_numbers = #tpu.dot_dimension_numbers<[1], [0], [0], [1], [0, 0, 1, 1], [], []>} : vector<256x8xf32>, vector<8x128xf32>, vector<256x128xf32> -> vector<256x128xf32>
    %175 = vector.shape_cast %174 : vector<256x128xf32> to vector<16x16x128xf32>
    %176 = vector.shape_cast %122 : vector<16x128xf32> to vector<1x16x128xf32>
    %177 = vector.broadcast %176 : vector<1x16x128xf32> to vector<16x16x128xf32>
    %178 = arith.mulf %175, %177 : vector<16x16x128xf32>
    %cst_99 = arith.constant dense<0.000000e+00> : vector<16x128xf32>
    %179 = vector.multi_reduction <add>, %178, %cst_99 [1] : vector<16x16x128xf32> to vector<16x128xf32>
    %c0_100 = arith.constant 0 : index
    %c1_101 = arith.constant 1 : index
    %c0_102 = arith.constant 0 : index
    %180 = vector.load %arg13[%c0_100, %c1_101, %c0_102] : memref<1x4x128xf32, #tpu.memory_space<vmem>>, vector<1x1x128xf32>
    %181 = vector.shape_cast %180 : vector<1x1x128xf32> to vector<128xf32>
    %182 = vector.shape_cast %181 : vector<128xf32> to vector<1x128xf32>
    %183 = vector.broadcast %182 : vector<1x128xf32> to vector<16x128xf32>
    %184 = arith.addf %179, %183 : vector<16x128xf32>
    %c0_103 = arith.constant 0 : index
    %c1_104 = arith.constant 1 : index
    %c0_105 = arith.constant 0 : index
    %185 = vector.load %arg17[%c0_103, %c1_104, %c0_105] : memref<1x4x128xf32, #tpu.memory_space<vmem>>, vector<1x1x128xf32>
    %186 = vector.shape_cast %185 : vector<1x1x128xf32> to vector<128xf32>
    %cst_106 = arith.constant 9.99999974E-6 : f32
    %187 = vector.broadcast %cst_106 : f32 to vector<128xf32>
    %188 = arith.addf %186, %187 : vector<128xf32>
    %189 = math.rsqrt %188 : vector<128xf32>
    %c0_107 = arith.constant 0 : index
    %c1_108 = arith.constant 1 : index
    %c0_109 = arith.constant 0 : index
    %190 = vector.load %arg16[%c0_107, %c1_108, %c0_109] : memref<1x4x128xf32, #tpu.memory_space<vmem>>, vector<1x1x128xf32>
    %191 = vector.shape_cast %190 : vector<1x1x128xf32> to vector<128xf32>
    %192 = vector.shape_cast %191 : vector<128xf32> to vector<1x128xf32>
    %193 = vector.broadcast %192 : vector<1x128xf32> to vector<16x128xf32>
    %194 = arith.subf %184, %193 : vector<16x128xf32>
    %195 = vector.shape_cast %189 : vector<128xf32> to vector<1x128xf32>
    %196 = vector.broadcast %195 : vector<1x128xf32> to vector<16x128xf32>
    %197 = arith.mulf %194, %196 : vector<16x128xf32>
    %c0_110 = arith.constant 0 : index
    %c1_111 = arith.constant 1 : index
    %c0_112 = arith.constant 0 : index
    %198 = vector.load %arg14[%c0_110, %c1_111, %c0_112] : memref<1x4x128xf32, #tpu.memory_space<vmem>>, vector<1x1x128xf32>
    %199 = vector.shape_cast %198 : vector<1x1x128xf32> to vector<128xf32>
    %200 = vector.shape_cast %199 : vector<128xf32> to vector<1x128xf32>
    %201 = vector.broadcast %200 : vector<1x128xf32> to vector<16x128xf32>
    %202 = arith.mulf %197, %201 : vector<16x128xf32>
    %c0_113 = arith.constant 0 : index
    %c1_114 = arith.constant 1 : index
    %c0_115 = arith.constant 0 : index
    %203 = vector.load %arg15[%c0_113, %c1_114, %c0_115] : memref<1x4x128xf32, #tpu.memory_space<vmem>>, vector<1x1x128xf32>
    %204 = vector.shape_cast %203 : vector<1x1x128xf32> to vector<128xf32>
    %205 = vector.shape_cast %204 : vector<128xf32> to vector<1x128xf32>
    %206 = vector.broadcast %205 : vector<1x128xf32> to vector<16x128xf32>
    %207 = arith.addf %202, %206 : vector<16x128xf32>
    %208 = arith.addf %207, %113 : vector<16x128xf32>
    %cst_116 = arith.constant 0.000000e+00 : f32
    %209 = vector.broadcast %cst_116 : f32 to vector<16x128xf32>
    %210 = arith.maximumf %208, %209 : vector<16x128xf32>
    %211 = arith.truncf %210 : vector<16x128xf32> to vector<16x128xbf16>
    %c0_117 = arith.constant 0 : index
    %c2 = arith.constant 2 : index
    %c0_118 = arith.constant 0 : index
    %c0_119 = arith.constant 0 : index
    %212 = vector.load %arg7[%c0_117, %c2, %c0_118, %c0_119] : memref<1x4x128x128xbf16, #tpu.memory_space<vmem>>, vector<1x1x128x128xbf16>
    %213 = vector.shape_cast %212 : vector<1x1x128x128xbf16> to vector<128x128xbf16>
    %cst_120 = arith.constant dense<0.000000e+00> : vector<16x128xf32>
    %214 = tpu.matmul %211, %213, %cst_120 {dimension_numbers = #tpu.dot_dimension_numbers<[1], [0], [0], [1], [0, 0, 1, 1], [], []>} : vector<16x128xbf16>, vector<128x128xbf16>, vector<16x128xf32> -> vector<16x128xf32>
    %c0_121 = arith.constant 0 : index
    %c2_122 = arith.constant 2 : index
    %c0_123 = arith.constant 0 : index
    %215 = vector.load %arg8[%c0_121, %c2_122, %c0_123] : memref<1x4x128xf32, #tpu.memory_space<vmem>>, vector<1x1x128xf32>
    %216 = vector.shape_cast %215 : vector<1x1x128xf32> to vector<128xf32>
    %217 = vector.shape_cast %216 : vector<128xf32> to vector<1x128xf32>
    %218 = vector.broadcast %217 : vector<1x128xf32> to vector<16x128xf32>
    %219 = arith.addf %214, %218 : vector<16x128xf32>
    %c0_124 = arith.constant 0 : index
    %c2_125 = arith.constant 2 : index
    %c0_126 = arith.constant 0 : index
    %c0_127 = arith.constant 0 : index
    %220 = vector.load %arg9[%c0_124, %c2_125, %c0_126, %c0_127] : memref<1x4x128x128xbf16, #tpu.memory_space<vmem>>, vector<1x1x128x128xbf16>
    %221 = vector.shape_cast %220 : vector<1x1x128x128xbf16> to vector<128x128xbf16>
    %cst_128 = arith.constant dense<0.000000e+00> : vector<16x128xf32>
    %222 = tpu.matmul %211, %221, %cst_128 {dimension_numbers = #tpu.dot_dimension_numbers<[1], [0], [0], [1], [0, 0, 1, 1], [], []>} : vector<16x128xbf16>, vector<128x128xbf16>, vector<16x128xf32> -> vector<16x128xf32>
    %c0_129 = arith.constant 0 : index
    %c2_130 = arith.constant 2 : index
    %c0_131 = arith.constant 0 : index
    %223 = vector.load %arg10[%c0_129, %c2_130, %c0_131] : memref<1x4x128xf32, #tpu.memory_space<vmem>>, vector<1x1x128xf32>
    %224 = vector.shape_cast %223 : vector<1x1x128xf32> to vector<128xf32>
    %225 = vector.shape_cast %224 : vector<128xf32> to vector<1x128xf32>
    %226 = vector.broadcast %225 : vector<1x128xf32> to vector<16x128xf32>
    %227 = arith.addf %222, %226 : vector<16x128xf32>
    %228 = vector.shape_cast %227 : vector<16x128xf32> to vector<16x1x128xf32>
    %229 = vector.shape_cast %219 : vector<16x128xf32> to vector<1x16x128xf32>
    %230 = vector.broadcast %228 : vector<16x1x128xf32> to vector<16x16x128xf32>
    %231 = vector.broadcast %229 : vector<1x16x128xf32> to vector<16x16x128xf32>
    %232 = arith.addf %230, %231 : vector<16x16x128xf32>
    %c0_132 = arith.constant 0 : index
    %c2_133 = arith.constant 2 : index
    %c0_134 = arith.constant 0 : index
    %233 = vector.load %arg11[%c0_132, %c2_133, %c0_134] : memref<1x4x128xf32, #tpu.memory_space<vmem>>, vector<1x1x128xf32>
    %234 = vector.shape_cast %233 : vector<1x1x128xf32> to vector<128xf32>
    %235 = vector.shape_cast %234 : vector<128xf32> to vector<1x1x128xf32>
    %236 = vector.broadcast %6 : vector<16x16x1xf32> to vector<16x16x128xf32>
    %237 = vector.broadcast %235 : vector<1x1x128xf32> to vector<16x16x128xf32>
    %238 = arith.mulf %236, %237 : vector<16x16x128xf32>
    %239 = arith.addf %232, %238 : vector<16x16x128xf32>
    %cst_135 = arith.constant 0.000000e+00 : f32
    %240 = vector.broadcast %cst_135 : f32 to vector<16x16x128xf32>
    %241 = arith.cmpf ogt, %239, %240 : vector<16x16x128xf32>
    %cst_136 = arith.constant 2.000000e-01 : f32
    %242 = vector.broadcast %cst_136 : f32 to vector<16x16x128xf32>
    %243 = arith.mulf %242, %239 : vector<16x16x128xf32>
    %244 = arith.select %241, %239, %243 : vector<16x16x128xi1>, vector<16x16x128xf32>
    %245 = vector.shape_cast %244 : vector<16x16x128xf32> to vector<256x128xf32>
    %c0_137 = arith.constant 0 : index
    %c2_138 = arith.constant 2 : index
    %c0_139 = arith.constant 0 : index
    %c0_140 = arith.constant 0 : index
    %246 = vector.load %arg12[%c0_137, %c2_138, %c0_139, %c0_140] : memref<1x4x128x8xf32, #tpu.memory_space<vmem>>, vector<1x1x128x8xf32>
    %247 = vector.shape_cast %246 : vector<1x1x128x8xf32> to vector<128x8xf32>
    %cst_141 = arith.constant dense<0.000000e+00> : vector<256x8xf32>
    %248 = tpu.matmul %245, %247, %cst_141 {dimension_numbers = #tpu.dot_dimension_numbers<[1], [0], [0], [1], [0, 0, 1, 1], [], []>} : vector<256x128xf32>, vector<128x8xf32>, vector<256x8xf32> -> vector<256x8xf32>
    %249 = vector.shape_cast %248 : vector<256x8xf32> to vector<16x16x8xf32>
    %cst_142 = arith.constant 0.000000e+00 : f32
    %250 = vector.broadcast %cst_142 : f32 to vector<16x16x1xf32>
    %251 = arith.cmpf ogt, %7, %250 : vector<16x16x1xf32>
    %cst_143 = arith.constant -1.000000e+30 : f32
    %252 = vector.shape_cast %251 : vector<16x16x1xi1> to vector<16x16x1xi1>
    %253 = vector.broadcast %252 : vector<16x16x1xi1> to vector<16x16x8xi1>
    %254 = vector.broadcast %cst_143 : f32 to vector<16x16x8xf32>
    %255 = arith.select %253, %249, %254 : vector<16x16x8xi1>, vector<16x16x8xf32>
    %cst_144 = arith.constant dense<0xFF800000> : vector<16x8xf32>
    %256 = vector.multi_reduction <maximumf>, %255, %cst_144 [1] : vector<16x16x8xf32> to vector<16x8xf32>
    %257 = vector.shape_cast %256 : vector<16x8xf32> to vector<16x1x8xf32>
    %258 = vector.broadcast %257 : vector<16x1x8xf32> to vector<16x16x8xf32>
    %259 = arith.subf %255, %258 : vector<16x16x8xf32>
    %260 = math.exp %259 : vector<16x16x8xf32>
    %261 = vector.broadcast %7 : vector<16x16x1xf32> to vector<16x16x8xf32>
    %262 = arith.mulf %260, %261 : vector<16x16x8xf32>
    %cst_145 = arith.constant dense<0.000000e+00> : vector<16x8xf32>
    %263 = vector.multi_reduction <add>, %262, %cst_145 [1] : vector<16x16x8xf32> to vector<16x8xf32>
    %264 = vector.shape_cast %263 : vector<16x8xf32> to vector<16x1x8xf32>
    %cst_146 = arith.constant 9.99999968E-21 : f32
    %265 = vector.broadcast %cst_146 : f32 to vector<16x1x8xf32>
    %266 = arith.maximumf %264, %265 : vector<16x1x8xf32>
    %267 = tpu.reciprocal %266 {approx = true} : vector<16x1x8xf32> -> vector<16x1x8xf32>
    %268 = vector.broadcast %267 : vector<16x1x8xf32> to vector<16x16x8xf32>
    %269 = arith.mulf %262, %268 : vector<16x16x8xf32>
    %270 = vector.shape_cast %269 : vector<16x16x8xf32> to vector<256x8xf32>
    %cst_147 = arith.constant dense<0.000000e+00> : vector<256x128xf32>
    %271 = tpu.matmul %270, %8, %cst_147 {dimension_numbers = #tpu.dot_dimension_numbers<[1], [0], [0], [1], [0, 0, 1, 1], [], []>} : vector<256x8xf32>, vector<8x128xf32>, vector<256x128xf32> -> vector<256x128xf32>
    %272 = vector.shape_cast %271 : vector<256x128xf32> to vector<16x16x128xf32>
    %273 = vector.shape_cast %219 : vector<16x128xf32> to vector<1x16x128xf32>
    %274 = vector.broadcast %273 : vector<1x16x128xf32> to vector<16x16x128xf32>
    %275 = arith.mulf %272, %274 : vector<16x16x128xf32>
    %cst_148 = arith.constant dense<0.000000e+00> : vector<16x128xf32>
    %276 = vector.multi_reduction <add>, %275, %cst_148 [1] : vector<16x16x128xf32> to vector<16x128xf32>
    %c0_149 = arith.constant 0 : index
    %c2_150 = arith.constant 2 : index
    %c0_151 = arith.constant 0 : index
    %277 = vector.load %arg13[%c0_149, %c2_150, %c0_151] : memref<1x4x128xf32, #tpu.memory_space<vmem>>, vector<1x1x128xf32>
    %278 = vector.shape_cast %277 : vector<1x1x128xf32> to vector<128xf32>
    %279 = vector.shape_cast %278 : vector<128xf32> to vector<1x128xf32>
    %280 = vector.broadcast %279 : vector<1x128xf32> to vector<16x128xf32>
    %281 = arith.addf %276, %280 : vector<16x128xf32>
    %c0_152 = arith.constant 0 : index
    %c2_153 = arith.constant 2 : index
    %c0_154 = arith.constant 0 : index
    %282 = vector.load %arg17[%c0_152, %c2_153, %c0_154] : memref<1x4x128xf32, #tpu.memory_space<vmem>>, vector<1x1x128xf32>
    %283 = vector.shape_cast %282 : vector<1x1x128xf32> to vector<128xf32>
    %cst_155 = arith.constant 9.99999974E-6 : f32
    %284 = vector.broadcast %cst_155 : f32 to vector<128xf32>
    %285 = arith.addf %283, %284 : vector<128xf32>
    %286 = math.rsqrt %285 : vector<128xf32>
    %c0_156 = arith.constant 0 : index
    %c2_157 = arith.constant 2 : index
    %c0_158 = arith.constant 0 : index
    %287 = vector.load %arg16[%c0_156, %c2_157, %c0_158] : memref<1x4x128xf32, #tpu.memory_space<vmem>>, vector<1x1x128xf32>
    %288 = vector.shape_cast %287 : vector<1x1x128xf32> to vector<128xf32>
    %289 = vector.shape_cast %288 : vector<128xf32> to vector<1x128xf32>
    %290 = vector.broadcast %289 : vector<1x128xf32> to vector<16x128xf32>
    %291 = arith.subf %281, %290 : vector<16x128xf32>
    %292 = vector.shape_cast %286 : vector<128xf32> to vector<1x128xf32>
    %293 = vector.broadcast %292 : vector<1x128xf32> to vector<16x128xf32>
    %294 = arith.mulf %291, %293 : vector<16x128xf32>
    %c0_159 = arith.constant 0 : index
    %c2_160 = arith.constant 2 : index
    %c0_161 = arith.constant 0 : index
    %295 = vector.load %arg14[%c0_159, %c2_160, %c0_161] : memref<1x4x128xf32, #tpu.memory_space<vmem>>, vector<1x1x128xf32>
    %296 = vector.shape_cast %295 : vector<1x1x128xf32> to vector<128xf32>
    %297 = vector.shape_cast %296 : vector<128xf32> to vector<1x128xf32>
    %298 = vector.broadcast %297 : vector<1x128xf32> to vector<16x128xf32>
    %299 = arith.mulf %294, %298 : vector<16x128xf32>
    %c0_162 = arith.constant 0 : index
    %c2_163 = arith.constant 2 : index
    %c0_164 = arith.constant 0 : index
    %300 = vector.load %arg15[%c0_162, %c2_163, %c0_164] : memref<1x4x128xf32, #tpu.memory_space<vmem>>, vector<1x1x128xf32>
    %301 = vector.shape_cast %300 : vector<1x1x128xf32> to vector<128xf32>
    %302 = vector.shape_cast %301 : vector<128xf32> to vector<1x128xf32>
    %303 = vector.broadcast %302 : vector<1x128xf32> to vector<16x128xf32>
    %304 = arith.addf %299, %303 : vector<16x128xf32>
    %305 = arith.addf %304, %210 : vector<16x128xf32>
    %cst_165 = arith.constant 0.000000e+00 : f32
    %306 = vector.broadcast %cst_165 : f32 to vector<16x128xf32>
    %307 = arith.maximumf %305, %306 : vector<16x128xf32>
    %308 = arith.truncf %307 : vector<16x128xf32> to vector<16x128xbf16>
    %c0_166 = arith.constant 0 : index
    %c3 = arith.constant 3 : index
    %c0_167 = arith.constant 0 : index
    %c0_168 = arith.constant 0 : index
    %309 = vector.load %arg7[%c0_166, %c3, %c0_167, %c0_168] : memref<1x4x128x128xbf16, #tpu.memory_space<vmem>>, vector<1x1x128x128xbf16>
    %310 = vector.shape_cast %309 : vector<1x1x128x128xbf16> to vector<128x128xbf16>
    %cst_169 = arith.constant dense<0.000000e+00> : vector<16x128xf32>
    %311 = tpu.matmul %308, %310, %cst_169 {dimension_numbers = #tpu.dot_dimension_numbers<[1], [0], [0], [1], [0, 0, 1, 1], [], []>} : vector<16x128xbf16>, vector<128x128xbf16>, vector<16x128xf32> -> vector<16x128xf32>
    %c0_170 = arith.constant 0 : index
    %c3_171 = arith.constant 3 : index
    %c0_172 = arith.constant 0 : index
    %312 = vector.load %arg8[%c0_170, %c3_171, %c0_172] : memref<1x4x128xf32, #tpu.memory_space<vmem>>, vector<1x1x128xf32>
    %313 = vector.shape_cast %312 : vector<1x1x128xf32> to vector<128xf32>
    %314 = vector.shape_cast %313 : vector<128xf32> to vector<1x128xf32>
    %315 = vector.broadcast %314 : vector<1x128xf32> to vector<16x128xf32>
    %316 = arith.addf %311, %315 : vector<16x128xf32>
    %c0_173 = arith.constant 0 : index
    %c3_174 = arith.constant 3 : index
    %c0_175 = arith.constant 0 : index
    %c0_176 = arith.constant 0 : index
    %317 = vector.load %arg9[%c0_173, %c3_174, %c0_175, %c0_176] : memref<1x4x128x128xbf16, #tpu.memory_space<vmem>>, vector<1x1x128x128xbf16>
    %318 = vector.shape_cast %317 : vector<1x1x128x128xbf16> to vector<128x128xbf16>
    %cst_177 = arith.constant dense<0.000000e+00> : vector<16x128xf32>
    %319 = tpu.matmul %308, %318, %cst_177 {dimension_numbers = #tpu.dot_dimension_numbers<[1], [0], [0], [1], [0, 0, 1, 1], [], []>} : vector<16x128xbf16>, vector<128x128xbf16>, vector<16x128xf32> -> vector<16x128xf32>
    %c0_178 = arith.constant 0 : index
    %c3_179 = arith.constant 3 : index
    %c0_180 = arith.constant 0 : index
    %320 = vector.load %arg10[%c0_178, %c3_179, %c0_180] : memref<1x4x128xf32, #tpu.memory_space<vmem>>, vector<1x1x128xf32>
    %321 = vector.shape_cast %320 : vector<1x1x128xf32> to vector<128xf32>
    %322 = vector.shape_cast %321 : vector<128xf32> to vector<1x128xf32>
    %323 = vector.broadcast %322 : vector<1x128xf32> to vector<16x128xf32>
    %324 = arith.addf %319, %323 : vector<16x128xf32>
    %325 = vector.shape_cast %324 : vector<16x128xf32> to vector<16x1x128xf32>
    %326 = vector.shape_cast %316 : vector<16x128xf32> to vector<1x16x128xf32>
    %327 = vector.broadcast %325 : vector<16x1x128xf32> to vector<16x16x128xf32>
    %328 = vector.broadcast %326 : vector<1x16x128xf32> to vector<16x16x128xf32>
    %329 = arith.addf %327, %328 : vector<16x16x128xf32>
    %c0_181 = arith.constant 0 : index
    %c3_182 = arith.constant 3 : index
    %c0_183 = arith.constant 0 : index
    %330 = vector.load %arg11[%c0_181, %c3_182, %c0_183] : memref<1x4x128xf32, #tpu.memory_space<vmem>>, vector<1x1x128xf32>
    %331 = vector.shape_cast %330 : vector<1x1x128xf32> to vector<128xf32>
    %332 = vector.shape_cast %331 : vector<128xf32> to vector<1x1x128xf32>
    %333 = vector.broadcast %6 : vector<16x16x1xf32> to vector<16x16x128xf32>
    %334 = vector.broadcast %332 : vector<1x1x128xf32> to vector<16x16x128xf32>
    %335 = arith.mulf %333, %334 : vector<16x16x128xf32>
    %336 = arith.addf %329, %335 : vector<16x16x128xf32>
    %cst_184 = arith.constant 0.000000e+00 : f32
    %337 = vector.broadcast %cst_184 : f32 to vector<16x16x128xf32>
    %338 = arith.cmpf ogt, %336, %337 : vector<16x16x128xf32>
    %cst_185 = arith.constant 2.000000e-01 : f32
    %339 = vector.broadcast %cst_185 : f32 to vector<16x16x128xf32>
    %340 = arith.mulf %339, %336 : vector<16x16x128xf32>
    %341 = arith.select %338, %336, %340 : vector<16x16x128xi1>, vector<16x16x128xf32>
    %342 = vector.shape_cast %341 : vector<16x16x128xf32> to vector<256x128xf32>
    %c0_186 = arith.constant 0 : index
    %c3_187 = arith.constant 3 : index
    %c0_188 = arith.constant 0 : index
    %c0_189 = arith.constant 0 : index
    %343 = vector.load %arg12[%c0_186, %c3_187, %c0_188, %c0_189] : memref<1x4x128x8xf32, #tpu.memory_space<vmem>>, vector<1x1x128x8xf32>
    %344 = vector.shape_cast %343 : vector<1x1x128x8xf32> to vector<128x8xf32>
    %cst_190 = arith.constant dense<0.000000e+00> : vector<256x8xf32>
    %345 = tpu.matmul %342, %344, %cst_190 {dimension_numbers = #tpu.dot_dimension_numbers<[1], [0], [0], [1], [0, 0, 1, 1], [], []>} : vector<256x128xf32>, vector<128x8xf32>, vector<256x8xf32> -> vector<256x8xf32>
    %346 = vector.shape_cast %345 : vector<256x8xf32> to vector<16x16x8xf32>
    %cst_191 = arith.constant 0.000000e+00 : f32
    %347 = vector.broadcast %cst_191 : f32 to vector<16x16x1xf32>
    %348 = arith.cmpf ogt, %7, %347 : vector<16x16x1xf32>
    %cst_192 = arith.constant -1.000000e+30 : f32
    %349 = vector.shape_cast %348 : vector<16x16x1xi1> to vector<16x16x1xi1>
    %350 = vector.broadcast %349 : vector<16x16x1xi1> to vector<16x16x8xi1>
    %351 = vector.broadcast %cst_192 : f32 to vector<16x16x8xf32>
    %352 = arith.select %350, %346, %351 : vector<16x16x8xi1>, vector<16x16x8xf32>
    %cst_193 = arith.constant dense<0xFF800000> : vector<16x8xf32>
    %353 = vector.multi_reduction <maximumf>, %352, %cst_193 [1] : vector<16x16x8xf32> to vector<16x8xf32>
    %354 = vector.shape_cast %353 : vector<16x8xf32> to vector<16x1x8xf32>
    %355 = vector.broadcast %354 : vector<16x1x8xf32> to vector<16x16x8xf32>
    %356 = arith.subf %352, %355 : vector<16x16x8xf32>
    %357 = math.exp %356 : vector<16x16x8xf32>
    %358 = vector.broadcast %7 : vector<16x16x1xf32> to vector<16x16x8xf32>
    %359 = arith.mulf %357, %358 : vector<16x16x8xf32>
    %cst_194 = arith.constant dense<0.000000e+00> : vector<16x8xf32>
    %360 = vector.multi_reduction <add>, %359, %cst_194 [1] : vector<16x16x8xf32> to vector<16x8xf32>
    %361 = vector.shape_cast %360 : vector<16x8xf32> to vector<16x1x8xf32>
    %cst_195 = arith.constant 9.99999968E-21 : f32
    %362 = vector.broadcast %cst_195 : f32 to vector<16x1x8xf32>
    %363 = arith.maximumf %361, %362 : vector<16x1x8xf32>
    %364 = tpu.reciprocal %363 {approx = true} : vector<16x1x8xf32> -> vector<16x1x8xf32>
    %365 = vector.broadcast %364 : vector<16x1x8xf32> to vector<16x16x8xf32>
    %366 = arith.mulf %359, %365 : vector<16x16x8xf32>
    %367 = vector.shape_cast %366 : vector<16x16x8xf32> to vector<256x8xf32>
    %cst_196 = arith.constant dense<0.000000e+00> : vector<256x128xf32>
    %368 = tpu.matmul %367, %8, %cst_196 {dimension_numbers = #tpu.dot_dimension_numbers<[1], [0], [0], [1], [0, 0, 1, 1], [], []>} : vector<256x8xf32>, vector<8x128xf32>, vector<256x128xf32> -> vector<256x128xf32>
    %369 = vector.shape_cast %368 : vector<256x128xf32> to vector<16x16x128xf32>
    %370 = vector.shape_cast %316 : vector<16x128xf32> to vector<1x16x128xf32>
    %371 = vector.broadcast %370 : vector<1x16x128xf32> to vector<16x16x128xf32>
    %372 = arith.mulf %369, %371 : vector<16x16x128xf32>
    %cst_197 = arith.constant dense<0.000000e+00> : vector<16x128xf32>
    %373 = vector.multi_reduction <add>, %372, %cst_197 [1] : vector<16x16x128xf32> to vector<16x128xf32>
    %c0_198 = arith.constant 0 : index
    %c3_199 = arith.constant 3 : index
    %c0_200 = arith.constant 0 : index
    %374 = vector.load %arg13[%c0_198, %c3_199, %c0_200] : memref<1x4x128xf32, #tpu.memory_space<vmem>>, vector<1x1x128xf32>
    %375 = vector.shape_cast %374 : vector<1x1x128xf32> to vector<128xf32>
    %376 = vector.shape_cast %375 : vector<128xf32> to vector<1x128xf32>
    %377 = vector.broadcast %376 : vector<1x128xf32> to vector<16x128xf32>
    %378 = arith.addf %373, %377 : vector<16x128xf32>
    %c0_201 = arith.constant 0 : index
    %c3_202 = arith.constant 3 : index
    %c0_203 = arith.constant 0 : index
    %379 = vector.load %arg17[%c0_201, %c3_202, %c0_203] : memref<1x4x128xf32, #tpu.memory_space<vmem>>, vector<1x1x128xf32>
    %380 = vector.shape_cast %379 : vector<1x1x128xf32> to vector<128xf32>
    %cst_204 = arith.constant 9.99999974E-6 : f32
    %381 = vector.broadcast %cst_204 : f32 to vector<128xf32>
    %382 = arith.addf %380, %381 : vector<128xf32>
    %383 = math.rsqrt %382 : vector<128xf32>
    %c0_205 = arith.constant 0 : index
    %c3_206 = arith.constant 3 : index
    %c0_207 = arith.constant 0 : index
    %384 = vector.load %arg16[%c0_205, %c3_206, %c0_207] : memref<1x4x128xf32, #tpu.memory_space<vmem>>, vector<1x1x128xf32>
    %385 = vector.shape_cast %384 : vector<1x1x128xf32> to vector<128xf32>
    %386 = vector.shape_cast %385 : vector<128xf32> to vector<1x128xf32>
    %387 = vector.broadcast %386 : vector<1x128xf32> to vector<16x128xf32>
    %388 = arith.subf %378, %387 : vector<16x128xf32>
    %389 = vector.shape_cast %383 : vector<128xf32> to vector<1x128xf32>
    %390 = vector.broadcast %389 : vector<1x128xf32> to vector<16x128xf32>
    %391 = arith.mulf %388, %390 : vector<16x128xf32>
    %c0_208 = arith.constant 0 : index
    %c3_209 = arith.constant 3 : index
    %c0_210 = arith.constant 0 : index
    %392 = vector.load %arg14[%c0_208, %c3_209, %c0_210] : memref<1x4x128xf32, #tpu.memory_space<vmem>>, vector<1x1x128xf32>
    %393 = vector.shape_cast %392 : vector<1x1x128xf32> to vector<128xf32>
    %394 = vector.shape_cast %393 : vector<128xf32> to vector<1x128xf32>
    %395 = vector.broadcast %394 : vector<1x128xf32> to vector<16x128xf32>
    %396 = arith.mulf %391, %395 : vector<16x128xf32>
    %c0_211 = arith.constant 0 : index
    %c3_212 = arith.constant 3 : index
    %c0_213 = arith.constant 0 : index
    %397 = vector.load %arg15[%c0_211, %c3_212, %c0_213] : memref<1x4x128xf32, #tpu.memory_space<vmem>>, vector<1x1x128xf32>
    %398 = vector.shape_cast %397 : vector<1x1x128xf32> to vector<128xf32>
    %399 = vector.shape_cast %398 : vector<128xf32> to vector<1x128xf32>
    %400 = vector.broadcast %399 : vector<1x128xf32> to vector<16x128xf32>
    %401 = arith.addf %396, %400 : vector<16x128xf32>
    %402 = arith.addf %401, %307 : vector<16x128xf32>
    %cst_214 = arith.constant 0.000000e+00 : f32
    %403 = vector.broadcast %cst_214 : f32 to vector<16x128xf32>
    %404 = arith.maximumf %402, %403 : vector<16x128xf32>
    %c0_215 = arith.constant 0 : index
    %c0_216 = arith.constant 0 : index
    %c0_217 = arith.constant 0 : index
    %c0_218 = arith.constant 0 : index
    %405 = vector.load %arg19[%c0_215, %c0_216, %c0_217, %c0_218] : memref<1x1x16x128xf32, #tpu.memory_space<vmem>>, vector<1x1x16x128xf32>
    %406 = vector.shape_cast %405 : vector<1x1x16x128xf32> to vector<16x128xf32>
    %407 = vector.shape_cast %404 : vector<16x128xf32> to vector<1x1x16x128xf32>
    tpu.vector_store %arg19[%c0_215, %c0_216, %c0_217, %c0_218], %407 {strides = array<i32>} : memref<1x1x16x128xf32, #tpu.memory_space<vmem>>, vector<1x1x16x128xf32>,
    return
  }
  func.func @transform_0(%arg0: i32, %arg1: i32) -> (i32, i32, i32, i32) {
    %c0_i32 = arith.constant 0 : i32
    %c0_i32_0 = arith.constant 0 : i32
    %c0_i32_1 = arith.constant 0 : i32
    return %arg0, %arg1, %c0_i32, %c0_i32_0 : i32, i32, i32, i32
  }
  func.func @transform_1(%arg0: i32, %arg1: i32) -> (i32, i32, i32, i32) {
    %c0_i32 = arith.constant 0 : i32
    %c0_i32_0 = arith.constant 0 : i32
    %c0_i32_1 = arith.constant 0 : i32
    return %arg0, %arg1, %c0_i32, %c0_i32_0 : i32, i32, i32, i32
  }
  func.func @transform_2(%arg0: i32, %arg1: i32) -> (i32, i32, i32, i32) {
    %c0_i32 = arith.constant 0 : i32
    %c0_i32_0 = arith.constant 0 : i32
    %c0_i32_1 = arith.constant 0 : i32
    return %arg0, %arg1, %c0_i32, %c0_i32_0 : i32, i32, i32, i32
  }
  func.func @transform_3(%arg0: i32, %arg1: i32) -> (i32, i32) {
    %c0_i32 = arith.constant 0 : i32
    %c0_i32_0 = arith.constant 0 : i32
    %c0_i32_1 = arith.constant 0 : i32
    return %c0_i32, %c0_i32_0 : i32, i32
  }
  func.func @transform_4(%arg0: i32, %arg1: i32) -> (i32, i32) {
    %c0_i32 = arith.constant 0 : i32
    %c0_i32_0 = arith.constant 0 : i32
    %c0_i32_1 = arith.constant 0 : i32
    return %c0_i32, %c0_i32_0 : i32, i32
  }
  func.func @transform_5(%arg0: i32, %arg1: i32) -> (i32, i32, i32, i32) {
    %c0_i32 = arith.constant 0 : i32
    %c0_i32_0 = arith.constant 0 : i32
    %c0_i32_1 = arith.constant 0 : i32
    %c0_i32_2 = arith.constant 0 : i32
    return %arg0, %c0_i32, %c0_i32_0, %c0_i32_1 : i32, i32, i32, i32
  }
  func.func @transform_6(%arg0: i32, %arg1: i32) -> (i32, i32, i32) {
    %c0_i32 = arith.constant 0 : i32
    %c0_i32_0 = arith.constant 0 : i32
    %c0_i32_1 = arith.constant 0 : i32
    return %arg0, %c0_i32, %c0_i32_0 : i32, i32, i32
  }
  func.func @transform_7(%arg0: i32, %arg1: i32) -> (i32, i32, i32, i32) {
    %c0_i32 = arith.constant 0 : i32
    %c0_i32_0 = arith.constant 0 : i32
    %c0_i32_1 = arith.constant 0 : i32
    %c0_i32_2 = arith.constant 0 : i32
    return %arg0, %c0_i32, %c0_i32_0, %c0_i32_1 : i32, i32, i32, i32
  }
  func.func @transform_8(%arg0: i32, %arg1: i32) -> (i32, i32, i32) {
    %c0_i32 = arith.constant 0 : i32
    %c0_i32_0 = arith.constant 0 : i32
    %c0_i32_1 = arith.constant 0 : i32
    return %arg0, %c0_i32, %c0_i32_0 : i32, i32, i32
  }
  func.func @transform_9(%arg0: i32, %arg1: i32) -> (i32, i32, i32) {
    %c0_i32 = arith.constant 0 : i32
    %c0_i32_0 = arith.constant 0 : i32
    %c0_i32_1 = arith.constant 0 : i32
    return %arg0, %c0_i32, %c0_i32_0 : i32, i32, i32
  }
  func.func @transform_10(%arg0: i32, %arg1: i32) -> (i32, i32, i32, i32) {
    %c0_i32 = arith.constant 0 : i32
    %c0_i32_0 = arith.constant 0 : i32
    %c0_i32_1 = arith.constant 0 : i32
    %c0_i32_2 = arith.constant 0 : i32
    return %arg0, %c0_i32, %c0_i32_0, %c0_i32_1 : i32, i32, i32, i32
  }
  func.func @transform_11(%arg0: i32, %arg1: i32) -> (i32, i32, i32) {
    %c0_i32 = arith.constant 0 : i32
    %c0_i32_0 = arith.constant 0 : i32
    %c0_i32_1 = arith.constant 0 : i32
    return %arg0, %c0_i32, %c0_i32_0 : i32, i32, i32
  }
  func.func @transform_12(%arg0: i32, %arg1: i32) -> (i32, i32, i32) {
    %c0_i32 = arith.constant 0 : i32
    %c0_i32_0 = arith.constant 0 : i32
    %c0_i32_1 = arith.constant 0 : i32
    return %arg0, %c0_i32, %c0_i32_0 : i32, i32, i32
  }
  func.func @transform_13(%arg0: i32, %arg1: i32) -> (i32, i32, i32) {
    %c0_i32 = arith.constant 0 : i32
    %c0_i32_0 = arith.constant 0 : i32
    %c0_i32_1 = arith.constant 0 : i32
    return %arg0, %c0_i32, %c0_i32_0 : i32, i32, i32
  }
  func.func @transform_14(%arg0: i32, %arg1: i32) -> (i32, i32, i32) {
    %c0_i32 = arith.constant 0 : i32
    %c0_i32_0 = arith.constant 0 : i32
    %c0_i32_1 = arith.constant 0 : i32
    return %arg0, %c0_i32, %c0_i32_0 : i32, i32, i32
  }
  func.func @transform_15(%arg0: i32, %arg1: i32) -> (i32, i32, i32) {
    %c0_i32 = arith.constant 0 : i32
    %c0_i32_0 = arith.constant 0 : i32
    %c0_i32_1 = arith.constant 0 : i32
    return %arg0, %c0_i32, %c0_i32_0 : i32, i32, i32
  }
  func.func @transform_16(%arg0: i32, %arg1: i32) -> (i32, i32) {
    %c0_i32 = arith.constant 0 : i32
    %c0_i32_0 = arith.constant 0 : i32
    %c0_i32_1 = arith.constant 0 : i32
    return %c0_i32, %c0_i32_0 : i32, i32
  }
  func.func @transform_17(%arg0: i32, %arg1: i32) -> (i32, i32, i32, i32) {
    %c0_i32 = arith.constant 0 : i32
    %c0_i32_0 = arith.constant 0 : i32
    %c0_i32_1 = arith.constant 0 : i32
    return %arg0, %arg1, %c0_i32, %c0_i32_0 : i32, i32, i32, i32
  }
}

</mosaic_0001>

<bundles_post_ra>
// kernel: tpu_custom_call.1
= control target key start
LH: loop header
LB: loop body
LE: loop exit
PB: predicated region body
PF: predicated region fallthrough
CT: control target
= control target key end

     0   :  { %s13987_s0 = inlined_call_operand.vmem [shape: f32[2,2,16,2], index: 0, kind: input, shape index: {}]   ;;  %s13988_s1 = inlined_call_operand.vmem [shape: f32[2,2,16,16], index: 1, kind: input, shape index: {}]   ;;  %s13989_s2 = inlined_call_operand.hbm [shape: f32[2,2,16,16], index: 2, kind: input, shape index: {}]   ;;  %s13990_s3 = inlined_call_operand.hbm [shape: f32[2,128], index: 3, kind: input, shape index: {}]   ;;  %s13991_s4 = inlined_call_operand.vmem [shape: f32[1,128], index: 4, kind: input, shape index: {}]   ;;  %s13992_s5 = inlined_call_operand.vmem [shape: bf16[2,4,128,128], index: 5, kind: input, shape index: {}]   ;;  %s13993_s6 = inlined_call_operand.vmem [shape: f32[2,4,128], index: 6, kind: input, shape index: {}]   ;;  %s13994_s7 = inlined_call_operand.vmem [shape: bf16[2,4,128,128], index: 7, kind: input, shape index: {}]   ;;  %s13995_s8 = inlined_call_operand.vmem [shape: f32[2,4,128], index: 8, kind: input, shape index: {}]   ;;  %s13996_s9 = inlined_call_operand.hbm [shape: f32[2,4,128], index: 9, kind: input, shape index: {}]   ;;  %s13997_s10 = inlined_call_operand.vmem [shape: f32[2,4,128,8], index: 10, kind: input, shape index: {}]   ;;  %s13998_s11 = inlined_call_operand.hbm [shape: f32[2,4,128], index: 11, kind: input, shape index: {}]   ;;  %s13999_s12 = inlined_call_operand.hbm [shape: f32[2,4,128], index: 12, kind: input, shape index: {}]   ;;  %s14000_s13 = inlined_call_operand.hbm [shape: f32[2,4,128], index: 13, kind: input, shape index: {}]   ;;  %s14001_s14 = inlined_call_operand.hbm [shape: f32[2,4,128], index: 14, kind: input, shape index: {}]   ;;  %s14002_s15 = inlined_call_operand.hbm [shape: f32[2,4,128], index: 15, kind: input, shape index: {}]   ;;  %s14003_s16 = inlined_call_operand.hbm [shape: f32[8,128], index: 16, kind: input, shape index: {}]   ;;  %s14004_s17 = inlined_call_operand.hbm [shape: f32[2,2,16,128], index: 17, kind: output, shape index: {}]  }
   0x1   :  { %14240 = sst [smem:[#allocation95_spill]] %s13987_s0 }
   0x2   :  { %14241 = sst [smem:[#allocation96_spill]] %s13988_s1 }
   0x3   :  { %14242 = sst [smem:[#allocation97_spill]] %s13989_s2 }
   0x4   :  { %14243 = sst [smem:[#allocation98_spill]] %s13990_s3 }
   0x5   :  { %14244 = sst [smem:[#allocation99_spill]] %s13991_s4 }
   0x6   :  { %14245 = sst [smem:[#allocation100_spill]] %s13992_s5 }
   0x7   :  { %14246 = sst [smem:[#allocation101_spill]] %s13993_s6 }
   0x8   :  { %14247 = sst [smem:[#allocation102_spill]] %s13994_s7 }
   0x9   :  { %14248 = sst [smem:[#allocation103_spill]] %s13995_s8 }
   0xa   :  { %14249 = sst [smem:[#allocation104_spill]] %s13996_s9 }
   0xb   :  { %14250 = sst [smem:[#allocation105_spill]] %s13997_s10 }
   0xc   :  { %14251 = sst [smem:[#allocation106_spill]] %s13998_s11 }
   0xd   :  { %14252 = sst [smem:[#allocation107_spill]] %s13999_s12 }
   0xe   :  { %14253 = sst [smem:[#allocation108_spill]] %s14000_s13 }
   0xf   :  { %14254 = sst [smem:[#allocation109_spill]] %s14001_s14 }
  0x10   :  { %14255 = sst [smem:[#allocation110_spill]] %s14002_s15 }
  0x11   :  { %14256 = sst [smem:[#allocation111_spill]] %s14003_s16 }
  0x12   :  { %14257 = sst [smem:[#allocation112_spill]] %s14004_s17 }
  0x13   :  { %22 = vsyncpa [#allocation3], 0 }
  0x14   :  { %24 = vsyncpa [#allocation3 + $0x1], 0 }
  0x15   :  { %25 = vsyncpa [#allocation6], 0 }
  0x16   :  { %26 = vsyncpa [#allocation4], 0 }
  0x17   :  { %28 = vsyncpa [#allocation4 + $0x1], 0  ;;  %s10077_s24 = smov 0   ;;  %s10079_s25 = smov 0  }
  0x18   :  { %s10081_s26 = smov 0   ;;  %s10083_s27 = smov 0  }
  0x19   :  { %s10085_s28 = smov 0   ;;  %s10087_s29 = smov 0  }
  0x1a   :  { %s10089_s0 = smov 0   ;;  %s10091_s30 = smov 0  }
  0x1b   :  { %s10093_s18 = smov 0   ;;  %s10095_s19 = smov 0  }
  0x1c   :  { %s10097_s1 = smov 0  }
  0x1d LB: > { %14258 = sst [smem:[#allocation20_spill]] %s9947_s26  ;;  %s43_s20 = sadd.s32 1, %s9971_s18  ;;  %s9979_s1 = sphi %s10097_s1, %s34_s1   ;;  %s9975_s19 = sphi %s10095_s19, %s14667_s19   ;;  %s9971_s18 = sphi %s10093_s18, %s14661_s18   ;;  %s9967_s30 = sphi %s10091_s30, %s14660_s30   ;;  %s9963_s0 = sphi %s10089_s0, %s14659_s0   ;;  %s9959_s29 = sphi %s10087_s29, %s14658_s29   ;;  %s9955_s28 = sphi %s10085_s28, %s14666_s28   ;;  %s9951_s27 = sphi %s10083_s27, %s14665_s27   ;;  %s9947_s26 = sphi %s10081_s26, %s14656_s26   ;;  %s9943_s25 = sphi %s10079_s25, %s14664_s25   ;;  %s9939_s24 = sphi %s10077_s24, %s14663_s24  }
  0x1e   : > { %14259 = sst [smem:[#allocation21_spill]] %s9959_s29  ;;  %s46_s21 = sadd.s32 1, %s9975_s19 }
  0x1f   : > { %14260 = sst [smem:[#allocation22_spill]] %s9963_s0  ;;  %p44_p0 = scmp.ge.s32.totalorder %s43_s20, 2 }
  0x20   : > { %14261 = sst [smem:[#allocation23_spill]] %s9967_s30  ;;  %s111_s22 = sadd.s32 1, %s9959_s29 }
  0x21   : > { %14262 = sst [smem:[#allocation24_spill]] %s9971_s18  ;;  %p118_p1 = scmp.ne.s32.totalorder %s9959_s29, %s9955_s28 }
  0x22   : > { %14263 = sst [smem:[#allocation25_spill]] %s9975_s19  ;;  %p119_p2 = scmp.eq.s32.totalorder %s9979_s1, 0 }
  0x23   : > { %s14669_s20 = smov (%p44_p0, %s43_s20), 0  ;;  %s14671_s21 = smov (!%p44_p0, %s46_s21), %s9975_s19 }
  0x24   : > { %14264 = sst [smem:[#allocation26_spill]] %s14669_s20  ;;  %s107_s23 = ssub.s32 %s9971_s18, %s14669_s20 }
  0x25   : > { %p10148_p3 = por %p119_p2, %p118_p1  ;;  %p48_p4 = scmp.ge.s32.totalorder %s14671_s21, 2 }
  0x26   : > { %p9013_p5 = scmp.lt.s32.totalorder %s9979_s1, 4  ;;  %s576_s10 = sand.u32 1, %s9979_s1  }
  0x27   : > { %s14673_s21 = smov (%p48_p4, %s14671_s21), 0  ;;  %s578_s8 = sand.u32 1, %s9959_s29  }
  0x28   : > { %14266 = sst [smem:[#allocation27_spill]] %s14673_s21  ;;  %s106_s4 = ssub.s32 %s9975_s19, %s14673_s21 }
  0x29   : > { %s8309_s7 = sshll.u32 %s578_s8, 4  ;;  %s108_s5 = sor.u32 %s107_s23, %s106_s4 }
  0x2a   : > { %p281_p6 = scmp.eq.s32.totalorder %s106_s4, 0  ;;  %p109_p7 = scmp.eq.s32.totalorder %s108_s5, 0 }
  0x2b   : > { %s8310_s20 = sshll.u32 %s9971_s18, 1  ;;  %s10161_s6 = sshll.u32 %s9975_s19, 2 }
  0x2c   : > { %s10164_s0 = scalar_select %p109_p7, %s9959_s29, %s111_s22  }
  0x2d   : > { %s585_s30 = sadd.s32 %s10161_s6, %s8310_s20  ;;  %s580_s15 = scalar_lea.vmem [#allocation2], %s8309_s7 }
  0x2e   : > { %14267 = sst [smem:[#allocation28_spill]] %s10164_s0  ;;  %s590_s16 = sshll.u32 %s580_s15, 4  ;;  %s591_s16 = int_to_ptr.vmem [resolvable:$true] %s590_s16 }
  0x2f   : > { %s8312_s8 = sshll.u32 %s585_s30, 3  ;;  %s14268_s2 = sld [smem:[#allocation97_spill]] }
  0x30   : > { %p8986_p8 = pnand %p9013_p5, %p10148_p3  ;;  %s10174_s22 = scalar_lea.sflag [#allocation3], %s576_s10 }
  0x31   : > { %s9981_s20 = smov 128   ;;  %s9982_s7 = smov 8  }
  0x32   : > { %s14269_s9 = sld [smem:[#allocation104_spill]]  ;;  %s283_s23 = sadd.s32 1, %s9947_s26 }
  0x33   : > { %p290_p9 = scmp.ne.s32.totalorder %s9947_s26, %s9943_s25  ;;  %s632_s10 = sand.u32 1, %s9947_s26  }
  0x34   : > { %s10186_s17 = scalar_select %p281_p6, %s9947_s26, %s283_s23  }
  0x35   : > { %s587_s21 = scalar_lea.hbm %s14268_s2, %s8312_s8  ;;  %p292_p10 = por %p290_p9, %p119_p2 }
  0x36   : > { %s588_s19 = sshll.u32 %s587_s21, 4  ;;  %14270 = sst [smem:[#allocation29_spill]] %s10186_s17  ;;  %s589_s19 = int_to_ptr.hbm [resolvable:$true] %s588_s19 }
  0x37   : > { %8988 = dma.hbm_to_vmem [thread:$0]  (!%p8986_p8), %s589_s19, 256, %s591_s16, %s10174_s22, %s9981_s20, %s9981_s20, %s9982_s7  }
  0x38   : > { %s638_s18 = scalar_lea.hbm %s14269_s9, %s10161_s6  ;;  %s10191_s21 = sshll.u32 %s632_s10, 2 }
  0x39   : > { %s640_s8 = sshll.u32 %s638_s18, 4  ;;  %s634_s16 = scalar_lea.vmem [#allocation7], %s10191_s21  ;;  %s641_s8 = int_to_ptr.hbm [resolvable:$true] %s640_s8 }
  0x3a   : > { %s642_s19 = sshll.u32 %s634_s16, 4  ;;  %p10196_p11 = pnand %p9013_p5, %p292_p10  ;;  %s643_s19 = int_to_ptr.vmem [resolvable:$true] %s642_s19 }
  0x3b   : > { %s14272_s11 = sld [smem:[#allocation106_spill]]  ;;  %s661_s15 = scalar_lea.vmem [#allocation8], %s10191_s21 }
  0x3c   : > { %8991 = dma.hbm_to_vmem [thread:$0]  (!%p10196_p11), %s641_s8, 64, %s643_s19, %s10174_s22  }
  0x3d   : > { %s669_s30 = sshll.u32 %s661_s15, 4  ;;  %s14273_s12 = sld [smem:[#allocation107_spill]]  ;;  %s670_s30 = int_to_ptr.vmem [resolvable:$true] %s669_s30 }
  0x3e   : > { %s680_s8 = scalar_lea.vmem [#allocation9], %s10191_s21  ;;  %s14274_s13 = sld [smem:[#allocation108_spill]] }
  0x3f   : > { %s688_s19 = sshll.u32 %s680_s8, 4  ;;  %s10228_s10 = sadd.s32 4294967295, %s9979_s1   ;;  %s689_s19 = int_to_ptr.vmem [resolvable:$true] %s688_s19 }
  0x40   : > { %p124_p12 = scmp.ne.s32.totalorder %s9955_s28, %s9951_s27  ;;  %p125_p13 = scmp.eq.s32.totalorder %s10228_s10, 0 }
  0x41   : > { %s665_s7 = scalar_lea.hbm %s14272_s11, %s10161_s6  ;;  %p296_p0 = scmp.ne.s32.totalorder %s9943_s25, %s9939_s24 }
  0x42   : > { %s667_s18 = sshll.u32 %s665_s7, 4  ;;  %p499_p2 = scmp.eq.s32.totalorder %s10228_s10, 3  ;;  %s668_s18 = int_to_ptr.hbm [resolvable:$true] %s667_s18 }
  0x43   : > { %8994 = dma.hbm_to_vmem [thread:$0]  (!%p10196_p11), %s668_s18, 64, %s670_s30, %s10174_s22  }
  0x44   : > { %s684_s16 = scalar_lea.hbm %s14273_s12, %s10161_s6  ;;  %s703_s18 = scalar_lea.hbm %s14274_s13, %s10161_s6 }
  0x45   : > { %s686_s4 = sshll.u32 %s684_s16, 4  ;;  %s705_s15 = sshll.u32 %s703_s18, 4  ;;  %s687_s4 = int_to_ptr.hbm [resolvable:$true] %s686_s4  ;;  %s706_s15 = int_to_ptr.hbm [resolvable:$true] %s705_s15 }
  0x46   : > { %8997 = dma.hbm_to_vmem [thread:$0]  (!%p10196_p11), %s687_s4, 64, %s689_s19, %s10174_s22  }
  0x47   : > { %s699_s30 = scalar_lea.vmem [#allocation10], %s10191_s21  ;;  %s8304_s16 = sadd.s32 4294967294, %s9979_s1  }
  0x48   : > { %s707_s23 = sshll.u32 %s699_s30, 4  ;;  %p10239_p3 = por %p125_p13, %p124_p12  ;;  %s708_s23 = int_to_ptr.vmem [resolvable:$true] %s707_s23 }
  0x49   : > { %9000 = dma.hbm_to_vmem [thread:$0]  (!%p10196_p11), %s706_s15, 64, %s708_s23, %s10174_s22  }
  0x4a   : > { %p505_p4 = scmp.eq.s32.totalorder %s8304_s16, 3  ;;  %p10245_p5 = por %p296_p0, %p125_p13 }
  0x4b   : > { %p10252_p6 = por %p499_p2, %p118_p1  ;;  %p8305_p8 = scmp.ge.s32.totalorder %s9979_s1, 1 }
  0x4c   : > { %p10256_p7 = por %p505_p4, %p124_p12  ;;  %p512_p9 = scmp.lt.s32.totalorder %s9979_s1, 5 }
  0x4d   : > { %s14279_s3 = sld [smem:[#allocation98_spill]]  ;;  %s9983_s30 = smov [#allocation5]  }
  0x4e   : > { %p10265_p10 = pnand %p8305_p8, %p512_p9  ;;  %s526_s23 = sshll.u32 %s9983_s30, 4  ;;  %s527_s23 = int_to_ptr.vmem [resolvable:$true] %s526_s23 }
  0x4f   : > { %s14281_s14 = sld [smem:[#allocation109_spill]]  ;;  %s718_s20 = scalar_lea.vmem [#allocation11], %s10191_s21 }
  0x50   : > { %p8978_p1 = pneg %p10265_p10  ;;  %s726_s7 = sshll.u32 %s718_s20, 4  ;;  %s727_s7 = int_to_ptr.vmem [resolvable:$true] %s726_s7 }
  0x51   : > { %s14282_s12 = sld [smem:[#allocation111_spill]]  ;;  %s9984_s2 = smov [#allocation13]  }
  0x52   : > { %p8979_p12 = pnand %p8978_p1, %p125_p13  ;;  %s541_s16 = sshll.u32 %s9984_s2, 4  ;;  %s542_s16 = int_to_ptr.vmem [resolvable:$true] %s541_s16 }
  0x53   : > { %s524_s18 = sshll.u32 %s14279_s3, 4  ;;  %s14283_s0 = sld [smem:[#allocation110_spill]]  ;;  %s525_s18 = int_to_ptr.hbm [resolvable:$true] %s524_s18 }
  0x54   : > { %8981 = dma.hbm_to_vmem [thread:$0]  (!%p8979_p12), %s525_s18, 32, %s527_s23, [#allocation6]  }
  0x55   : > { %s722_s9 = scalar_lea.hbm %s14281_s14, %s10161_s6  ;;  %s737_s17 = scalar_lea.vmem [#allocation12], %s10191_s21 }
  0x56   : > { %s724_s3 = sshll.u32 %s722_s9, 4  ;;  %s745_s26 = sshll.u32 %s737_s17, 4  ;;  %s725_s3 = int_to_ptr.hbm [resolvable:$true] %s724_s3  ;;  %s746_s26 = int_to_ptr.vmem [resolvable:$true] %s745_s26 }
  0x57   : > { %s539_s13 = sshll.u32 %s14282_s12, 4  ;;  %s540_s13 = int_to_ptr.hbm [resolvable:$true] %s539_s13 }
  0x58   : > { %9003 = dma.hbm_to_vmem [thread:$0]  (!%p10196_p11), %s725_s3, 64, %s727_s7, %s10174_s22  }
  0x59   : > { %s741_s29 = scalar_lea.hbm %s14283_s0, %s10161_s6  ;;  %754 = sbr.rel (%p10265_p10) target bundleno = 3263 (0xcbf), region = 88 }
  0x5a   : > { %8984 = dma.hbm_to_vmem [thread:$0]  (!%p8979_p12), %s540_s13, 128, %s542_s16, [#allocation6]  }
  0x5b   : > { %s743_s9 = sshll.u32 %s741_s29, 4  ;;  %s744_s9 = int_to_ptr.hbm [resolvable:$true] %s743_s9 }
  0x5c   : > { %9006 = dma.hbm_to_vmem [thread:$0]  (!%p10196_p11), %s744_s9, 64, %s746_s26, %s10174_s22  }
  0x5e   : > { %s756_s3 = sand.u32 1, %s10228_s10   ;;  %s14014_s11 = sand.u32 1, %s9955_s28  }
  0x5f   : > { %s10298_s12 = sshll.u32 %s14014_s11, 4  ;;  %s757_s6 = scalar_lea.sflag [#allocation3], %s756_s3 }
  0x60   : > { %s760_s13 = scalar_lea.vmem [#allocation2], %s10298_s12 }
  0x61   : > { %9918 = dma.done.wait (%p10239_p3), %s757_s6, 256  }
  0x62   : > { %9920 = vsyncadd (%p10239_p3), %s757_s6, 4294967040 }
  0x63   : > { %9922 = dma.done.wait (%p125_p13), [#allocation6], 32  }
  0x64   : > { %9924 = vsyncadd (%p125_p13), [#allocation6], 4294967264  ;;  %s773_s14 = sand.u32 1, %s9943_s25  }
  0x65   : > { %s8328_s26 = sshll.u32 %s773_s14, 2 }
  0x66   : > { %s10310_s29 = scalar_lea.vmem [#allocation7], %s8328_s26 }
  0x67   : > { %9926 = dma.done.wait (%p10245_p5), %s757_s6, 384  }
  0x68   : > { %9928 = vsyncadd (%p10245_p5), %s757_s6, 4294966912  ;;  %s10316_s0 = scalar_lea.vmem [#allocation8], %s8328_s26  ;;  %s10318_s22 = scalar_lea.vmem [#allocation9], %s8328_s26 }
  0x69   : > { %s10320_s17 = scalar_lea.vmem [#allocation10], %s8328_s26  ;;  %s10322_s21 = scalar_lea.vmem [#allocation11], %s8328_s26 }
  0x6a   : > { %s10324_s5 = scalar_lea.vmem [#allocation12], %s8328_s26 }
  0x6b   : > { %9930 = dma.done.wait (%p125_p13), [#allocation6], 128  }
  0x6c   : > { %9932 = vsyncadd (%p125_p13), [#allocation6], 4294967168  ;;  %s14284_s4 = sld [smem:[#allocation23_spill]]  ;;  %v1001_v0 = vlaneseq  ;;  %vm1429_vm0 = vcmask 1041408   ;;  %vm1422_vm1 = vcmask 15360   ;;  %v998_v3 = vld [vmem:[%s760_s13] sm:$0xff] }
  0x6d   : > { %s14285_s18 = sld [smem:[#allocation22_spill]]  ;;  %v1417_v2 = vld [vmem:[#allocation5] sm:$0x3]  ;;  %v1026_v5 = vperm.slane %v998_v3, 2  ;;  %v1013_v6 = vperm.slane %v998_v3, 1  ;;  %v1000_v7 = vperm.slane %v998_v3, 0 }
  0x6e   : > { %v10332_v1 = vshrl.u32 %v1001_v0, 7  ;;  %s14286_s16 = sld [smem:[#allocation101_spill]]  ;;  %8350 = vmatpush.msk.msra.mxu0 %vm1429_vm0, %v1417_v2  ;;  %v1039_v10 = vperm.slane %v998_v3, 3  ;;  %v1052_v11 = vperm.slane %v998_v3, 4  ;;  %v1065_v12 = vperm.slane %v998_v3, 5  ;;  %v10378_v15 = vld [vmem:[%s760_s13 + $0x8] sm:$0xff] }
  0x6f   : > { %s14287_s14 = sld [smem:[#allocation95_spill]]  ;;  %v1078_v13 = vperm.slane %v998_v3, 6  ;;  %v1091_v14 = vperm.slane %v998_v3, 7  ;;  %v1117_v16 = vperm.slane %v10378_v15, 1  ;;  %v1104_v18 = vperm.slane %v10378_v15, 0 }
  0x70   : > { %9115 = vset.pattern.permute.xlu2 %v10332_v1  ;;  %9113 = vset.pattern.permute.xlu1 %v10332_v1  ;;  %v10363_v8 = vadd.s32 8, %v10332_v1  ;;  %s14288_s30 = sld [smem:[#allocation96_spill]]  ;;  %v1143_v25 = vperm.slane %v10378_v15, 3  ;;  %v1130_v32 = vperm.slane %v10378_v15, 2  ;;  %v1169_v39 = vperm.slane %v10378_v15, 5 }
  0x71   : > { %9111 = vset.pattern.permute.xlu0 %v10332_v1  ;;  %s14289_s6 = sld [smem:[#allocation100_spill]]  ;;  %v1195_v43 = vperm.slane %v10378_v15, 7  ;;  %v1156_v49 = vperm.slane %v10378_v15, 4  ;;  %v1182_v54 = vperm.slane %v10378_v15, 6 }
  0x72   : > { %p953_p11 = scmp.lt.s32.totalorder %s14284_s4, 1  ;;  %s14292_s13 = sld [smem:[#allocation103_spill]] }
  0x73   : > { %p955_p0 = scmp.lt.s32.totalorder %s14285_s18, 1 }
  0x74   : > { %s10335_s8 = scalar_select %p953_p11, %s14284_s4, 1 }
  0x75   : > { %s956_s15 = scalar_select %p955_p0, %s14285_s18, 1 }
  0x76   : > { %s10341_s10 = sshll.u32 %s10335_s8, 2 }
  0x77   : > { %s8336_s23 = sshll.u32 %s956_s15, 1  ;;  %s10351_s20 = scalar_lea.vmem %s14286_s16, %s10341_s10 }
  0x78   : > { %s10345_s7 = sadd.s32 %s10341_s10, %s8336_s23  ;;  %1031 = vperm.xlu2 %9115, %v1026_v5   ;;  %1018 = vperm.xlu1 %9113, %v1013_v6   ;;  %s8887_s16 = sshll.u32 %s10335_s8, 8 }
  0x79   : > { %s8338_s9 = sshll.u32 %s10345_s7, 3  ;;  %1005 = vperm.xlu0 %9111, %v1000_v7   ;;  %s14290_s7 = sld [smem:[#allocation102_spill]] }
  0x7a   : > { %s961_s26 = scalar_lea.vmem %s14287_s14, %s8338_s9  ;;  %s10387_s2 = scalar_lea.vmem %s14288_s30, %s8338_s9 }
  0x7b   : > { %v994_v4 = vld [vmem:[%s961_s26] sm:$0xff]  ;;  %v995_v9 = vld [vmem:[%s961_s26 + $0x8] sm:$0xff]  ;;  %s10397_s14 = scalar_lea.vmem %s14289_s6, %s8887_s16  ;;  %s14291_s23 = sld [smem:[#allocation99_spill]] }
  0x7c   : > { %8351 = vmatmul.msk.f32.vlgmr.msra.gmra.mxu0 %vm1422_vm1, %v994_v4  ;;  %v10391_v17 = vld [vmem:[%s10387_s2] sm:$0xff]  ;;  %v8897_v20 = vld [vmem:[%s10397_s14 + $0x38] sm:$0xff]  ;;  %v8896_v22 = vld [vmem:[%s10397_s14 + $0x30] sm:$0xff]  ;;  %s10445_s3 = scalar_lea.vmem %s14292_s13, %s10341_s10  ;;  %s8889_s6 = sshll.u32 %s10335_s8, 9 }
  0x7d   : > { %v1221_v19 = vperm.slane %v10391_v17, 1  ;;  %1525 = vmatpush.bf16.msra.mxu3 %v8897_v20  ;;  %v1208_v24 = vperm.slane %v10391_v17, 0  ;;  %v8895_v26 = vld [vmem:[%s10397_s14 + $0x28] sm:$0xff]  ;;  %v8894_v28 = vld [vmem:[%s10397_s14 + $0x20] sm:$0xff]  ;;  %v8893_v30 = vld [vmem:[%s10397_s14 + $0x18] sm:$0xff]  ;;  %v1234_v40 = vperm.slane %v10391_v17, 2 }
  0x7e   : > { %v8892_v33 = vld [vmem:[%s10397_s14 + $0x10] sm:$0xff]  ;;  %v8891_v35 = vld [vmem:[%s10397_s14 + $0x8] sm:$0xff]  ;;  %v8890_v37 = vld [vmem:[%s10397_s14] sm:$0xff]  ;;  %v1273_v41 = vperm.slane %v10391_v17, 5  ;;  %v1247_v48 = vperm.slane %v10391_v17, 3  ;;  %v1260_v53 = vperm.slane %v10391_v17, 4 }
  0x7f   : > { %s10402_s15 = scalar_lea.vmem %s14290_s7, %s8887_s16  ;;  %s14293_s7 = sld [smem:[#allocation105_spill]] }
  0x80   : > { %9116 = vset.pattern.permute.xlu2 %v10363_v8  ;;  %9114 = vset.pattern.permute.xlu1 %v10363_v8  ;;  %v8905_v21 = vld [vmem:[%s10402_s15 + $0x38] sm:$0xff]  ;;  %v8904_v23 = vld [vmem:[%s10402_s15 + $0x30] sm:$0xff]  ;;  %v8903_v27 = vld [vmem:[%s10402_s15 + $0x28] sm:$0xff] }
  0x81   : > { %9112 = vset.pattern.permute.xlu0 %v10363_v8  ;;  %1605 = vmatpush.bf16.msra.mxu2 %v8905_v21  ;;  %v8902_v29 = vld [vmem:[%s10402_s15 + $0x20] sm:$0xff]  ;;  %v8901_v31 = vld [vmem:[%s10402_s15 + $0x18] sm:$0xff]  ;;  %v8900_v34 = vld [vmem:[%s10402_s15 + $0x10] sm:$0xff] }
  0x82   : > { %1526 = vmatpush.bf16.msra.mxu3 %v8896_v22  ;;  %v8899_v36 = vld [vmem:[%s10402_s15 + $0x8] sm:$0xff]  ;;  %v8898_v38 = vld [vmem:[%s10402_s15] sm:$0xff] }
  0x83   : > { %v9154_v44 = vld [vmem:[%s14291_s23] ss:$0 sm:$0xff] }
  0x84   : > { %8352 = vmatmul.msk.f32.gmra.mxu0 %vm1422_vm1, %v995_v9  ;;  %v10480_v9 = vld [vmem:[%s10445_s3] ss:$0 sm:$0xff] }
  0x85   : > { %1606 = vmatpush.bf16.msra.mxu2 %v8904_v23  ;;  %s10458_s11 = scalar_lea.vmem %s14293_s7, %s8889_s6 }
  0x86   : > { %1527 = vmatpush.bf16.msra.mxu3 %v8895_v26  ;;  %v1876_v55 = vld [vmem:[%s10458_s11 + $0x78] sm:$0xff]  ;;  %v1875_v56 = vld [vmem:[%s10458_s11 + $0x70] sm:$0xff]  ;;  %v1874_v57 = vld [vmem:[%s10458_s11 + $0x68] sm:$0xff] }
  0x87   : > { %v1873_v58 = vld [vmem:[%s10458_s11 + $0x60] sm:$0xff]  ;;  %v1872_v59 = vld [vmem:[%s10458_s11 + $0x58] sm:$0xff]  ;;  %v1871_v60 = vld [vmem:[%s10458_s11 + $0x50] sm:$0xff] }
  0x88   : > { %1037 = vperm.xlu2 %9116, %v1026_v5   ;;  %1024 = vperm.xlu1 %9114, %v1013_v6   ;;  %v1870_v61 = vld [vmem:[%s10458_s11 + $0x48] sm:$0xff]  ;;  %v1869_v62 = vld [vmem:[%s10458_s11 + $0x40] sm:$0xff]  ;;  %v1868_v63 = vld [vmem:[%s10458_s11 + $0x38] sm:$0xff] }
  0x89   : > { %1011 = vperm.xlu0 %9112, %v1000_v7   ;;  %1607 = vmatpush.bf16.msra.mxu2 %v8903_v27  ;;  %v1867_v0 = vld [vmem:[%s10458_s11 + $0x30] sm:$0xff]  ;;  %v1866_v2 = vld [vmem:[%s10458_s11 + $0x28] sm:$0xff]  ;;  %v1865_v3 = vld [vmem:[%s10458_s11 + $0x20] sm:$0xff] }
  0x8a   : > { %1528 = vmatpush.bf16.msra.mxu3 %v8894_v28  ;;  %v1864_v4 = vld [vmem:[%s10458_s11 + $0x18] sm:$0xff]  ;;  %v1863_v5 = vld [vmem:[%s10458_s11 + $0x10] sm:$0xff]  ;;  %v1862_v6 = vld [vmem:[%s10458_s11 + $0x8] sm:$0xff] }
  0x8b   : > { %v1861_v7 = vld [vmem:[%s10458_s11] sm:$0xff] }
  0x8d   : > { %1608 = vmatpush.bf16.msra.mxu2 %v8902_v29 }
  0x8e   : > { %1529 = vmatpush.bf16.msra.mxu3 %v8893_v30 }
  0x90   : > { %1050 = vperm.xlu2 %9116, %v1039_v10   ;;  %9117 = vset.pattern.permute.xlu1 %v10332_v1 }
  0x91   : > { %9118 = vset.pattern.permute.xlu0 %v10332_v1  ;;  %1609 = vmatpush.bf16.msra.mxu2 %v8901_v31 }
  0x92   : > { %1530 = vmatpush.bf16.msra.mxu3 %v8892_v33 }
  0x95   : > { %1610 = vmatpush.bf16.msra.mxu2 %v8900_v34 }
  0x96   : > { %1531 = vmatpush.bf16.msra.mxu3 %v8891_v35 }
  0x98   : > { %9120 = vset.pattern.permute.xlu2 %v10332_v1  ;;  %1044 = vperm.xlu1 %9117, %v1039_v10  }
  0x99   : > { %1057 = vperm.xlu0 %9118, %v1052_v11   ;;  %1611 = vmatpush.bf16.msra.mxu2 %v8899_v36 }
  0x9a   : > { %1532 = vmatpush.bf16.msra.mxu3 %v8890_v37 }
  0x9d   : > { %1612 = vmatpush.bf16.msra.mxu2 %v8898_v38 }
  0x9e   : > { %1877 = vmatpush.msrb.mxu3 %v1876_v55 }
  0xa0   : > { %1070 = vperm.xlu2 %9120, %v1065_v12   ;;  %9119 = vset.pattern.permute.xlu1 %v10363_v8 }
  0xa1   : > { %9121 = vset.pattern.permute.xlu0 %v10363_v8  ;;  %1878 = vmatpush.msrb.mxu3 %v1875_v56 }
  0xa3   : > { %1879 = vmatpush.msrb.mxu3 %v1874_v57 }
  0xa5   : > { %1880 = vmatpush.msrb.mxu3 %v1873_v58 }
  0xa7   : > { %1881 = vmatpush.msrb.mxu3 %v1872_v59 }
  0xa8   : > { %1083 = vperm.xlu2 %9120, %v1078_v13   ;;  %1063 = vperm.xlu1 %9119, %v1052_v11   ;;  %v9150_v11 = vld [vmem:[%s10351_s20] ss:$0 sm:$0xff] }
  0xa9   : > { %1089 = vperm.xlu0 %9121, %v1078_v13   ;;  %1882 = vmatpush.msrb.mxu3 %v1871_v60 }
  0xab   : > { %1883 = vmatpush.msrb.mxu3 %v1870_v61 }
  0xad   : > { %1884 = vmatpush.msrb.mxu3 %v1869_v62 }
  0xaf   : > { %1885 = vmatpush.msrb.mxu3 %v1868_v63 }
  0xb0   : > { %9123 = vset.pattern.permute.xlu2 %v10363_v8  ;;  %1076 = vperm.xlu1 %9119, %v1065_v12  }
  0xb1   : > { %9124 = vset.pattern.permute.xlu0 %v10332_v1  ;;  %1886 = vmatpush.msrb.mxu3 %v1867_v0 }
  0xb3   : > { %1887 = vmatpush.msrb.mxu3 %v1866_v2 }
  0xb5   : > { %1888 = vmatpush.msrb.mxu3 %v1865_v3 }
  0xb7   : > { %1889 = vmatpush.msrb.mxu3 %v1864_v4 }
  0xb8   : > { %1102 = vperm.xlu2 %9123, %v1091_v14   ;;  %9122 = vset.pattern.permute.xlu1 %v10332_v1 }
  0xb9   : > { %1122 = vperm.xlu0 %9124, %v1117_v16   ;;  %1890 = vmatpush.msrb.mxu3 %v1863_v5 }
  0xbb   : > { %1891 = vmatpush.msrb.mxu3 %v1862_v6 }
  0xbd   : > { %1892 = vmatpush.msrb.mxu3 %v1861_v7 }
  0xc0   : > { %1115 = vperm.xlu2 %9123, %v1104_v18   ;;  %1096 = vperm.xlu1 %9122, %v1091_v14   ;;  %v10486_v14 = vld [vmem:[%s10310_s29] ss:$0 sm:$0xff] }
  0xc1   : > { %1226 = vperm.xlu0 %9124, %v1221_v19  }
  0xc8   : > { %1109 = vperm.xlu1 %9122, %v1104_v18   ;;  %1219 = vperm.xlu2 %9123, %v1208_v24  }
  0xc9   : > { %1148 = vperm.xlu0 %9124, %v1143_v25  }
  0xd0   : > { %9126 = vset.pattern.permute.xlu2 %v10332_v1  ;;  %1213 = vperm.xlu1 %9122, %v1208_v24  }
  0xd1   : > { %9129 = vset.pattern.permute.xlu0 %v10363_v8 }
  0xd8   : > { %1135 = vperm.xlu2 %9126, %v1130_v32   ;;  %9125 = vset.pattern.permute.xlu1 %v10363_v8 }
  0xd9   : > { %1154 = vperm.xlu0 %9129, %v1143_v25  }
  0xe0   : > { %9127 = vset.pattern.permute.xlu2 %v10363_v8  ;;  %1128 = vperm.xlu1 %9125, %v1117_v16  }
  0xe1   : > { %9133 = vset.pattern.permute.xlu0 %v10332_v1 }
  0xe8   : > { %1141 = vperm.xlu2 %9127, %v1130_v32   ;;  %1232 = vperm.xlu1 %9125, %v1221_v19  }
  0xe9   : > { %1174 = vperm.xlu0 %9133, %v1169_v39  }
  0xea   : > { %v10505_v31 = vpop.permute.xlu1 %1018 }
  0xeb   : > { %v10482_v10 = vpop.permute.xlu0 %1005  ;;  %14296 = vst [vmem:[#allocation32_spill] sm:$0xff] %v10505_v31  ;;  %v1703_v33 = vmul.f32 %v10486_v14, %v10505_v31 }
  0xec   : > { %14294 = vst [vmem:[#allocation30_spill] sm:$0xff] %v10482_v10  ;;  %v1701_v19 = vmul.f32 %v10486_v14, %v10482_v10 }
  0xf0   : > { %1245 = vperm.xlu2 %9127, %v1234_v40   ;;  %9128 = vset.pattern.permute.xlu1 %v10332_v1 }
  0xf1   : > { %1278 = vperm.xlu0 %9133, %v1273_v41  }
  0xf8   : > { %9130 = vset.pattern.permute.xlu2 %v10332_v1  ;;  %1239 = vperm.xlu1 %9128, %v1234_v40  }
  0xf9   : > { %v1450_v42 = vpop.f32.mrf.mxu0  ;;  %1200 = vperm.xlu0 %9133, %v1195_v43  }
  0xfa   : > { %v1451_v45 = vadd.f32 %v9154_v44, %v1450_v42  ;;  %v10510_v38 = vpop.permute.xlu1 %1024 }
  0xfb   : > { %v10498_v23 = vpop.permute.xlu0 %1011  ;;  %14297 = vst [vmem:[#allocation33_spill] sm:$0xff] %v10510_v38 }
  0xfc   : > { %v1456_v50 = vmax.f32 %v1451_v45, 0.0  ;;  %14295 = vst [vmem:[#allocation31_spill] sm:$0xff] %v10498_v23  ;;  %v1702_v25 = vmul.f32 %v10486_v14, %v10498_v23 }
 0x100   : > { %1252 = vperm.xlu2 %9130, %v1247_v48   ;;  %1161 = vperm.xlu1 %9128, %v1156_v49  }
 0x101   : > { %v1453_v46 = vpop.f32.mrf.mxu0  ;;  %9139 = vset.pattern.permute.xlu0 %v10363_v8 }
 0x102   : > { %v1454_v47 = vadd.f32 %v9154_v44, %v1453_v46  ;;  %v10516_v46 = vpop.permute.xlu2 %1031 }
 0x103   : > { %14298 = vst [vmem:[#allocation34_spill] sm:$0xff] %v10516_v46 }
 0x104   : > { %v1457_v51 = vmax.f32 %v1454_v47, 0.0  ;;  %v1705_v47 = vmul.f32 %v10486_v14, %v10516_v46 }
 0x106   : > { %v1458_v52 = vpack.c.bf16 %v1457_v51, %v1456_v50 }
 0x108   : > { %1533 = vmatmul.bf16.vlgmr.msra.gmra.mxu3 %v1458_v52  ;;  %1613 = vmatmul.bf16.vlgmr.msra.gmra.mxu2 %v1458_v52 }
 0x109   : > { %9132 = vset.pattern.permute.xlu2 %v10363_v8  ;;  %9131 = vset.pattern.permute.xlu1 %v10363_v8 }
 0x10a   : > { %1206 = vperm.xlu0 %9139, %v1195_v43   ;;  %v10521_v52 = vpop.permute.xlu2 %1037  ;;  %v10527_v60 = vpop.permute.xlu1 %1044 }
 0x10b   : > { %14299 = vst [vmem:[#allocation35_spill] sm:$0xff] %v10521_v52  ;;  %v1707_v61 = vmul.f32 %v10486_v14, %v10527_v60 }
 0x10c   : > { %14300 = vst [vmem:[#allocation36_spill] sm:$0xff] %v10527_v60 }
 0x111   : > { %1167 = vperm.xlu2 %9132, %v1156_v49   ;;  %1258 = vperm.xlu1 %9131, %v1247_v48  }
 0x112   : > { %9140 = vset.pattern.permute.xlu0 %v10332_v1  ;;  %v10532_v3 = vpop.permute.xlu2 %1050 }
 0x113   : > { %14301 = vst [vmem:[#allocation37_spill] sm:$0xff] %v10532_v3  ;;  %v1708_v4 = vmul.f32 %v10486_v14, %v10532_v3 }
 0x119   : > { %1271 = vperm.xlu2 %9132, %v1260_v53   ;;  %9134 = vset.pattern.permute.xlu1 %v10332_v1 }
 0x121   : > { %9136 = vset.pattern.permute.xlu2 %v10332_v1  ;;  %1265 = vperm.xlu1 %9134, %v1260_v53   ;;  %v1706_v53 = vmul.f32 %v10486_v14, %v10521_v52 }
 0x129   : > { %1187 = vperm.xlu2 %9136, %v1182_v54   ;;  %9135 = vset.pattern.permute.xlu1 %v10363_v8 }
 0x131   : > { %9137 = vset.pattern.permute.xlu2 %v10363_v8  ;;  %1180 = vperm.xlu1 %9135, %v1169_v39   ;;  %v1704_v39 = vmul.f32 %v10486_v14, %v10510_v38 }
 0x139   : > { %1193 = vperm.xlu2 %9137, %v1182_v54   ;;  %1284 = vperm.xlu1 %9135, %v1273_v41  }
 0x141   : > { %9138 = vset.pattern.permute.xlu1 %v10332_v1 }
 0x18b   : > { %v1534_v12 = vpop.f32.mrf.mxu3  ;;  %v1614_v13 = vpop.f32.mrf.mxu2 }
 0x18c   : > { %v10489_v15 = vadd.f32 %v10480_v9, %v1614_v13  ;;  %v10491_v16 = vadd.f32 %v9150_v11, %v1534_v12 }
 0x18e   : > { %v1635_v18 = vperm.slane %v10489_v15, 0  ;;  %v1621_v22 = vrot.slane %v10489_v15, 1  ;;  %v1622_v42 = vrot.slane %v10489_v15, 2  ;;  %v1623_v56 = vrot.slane %v10489_v15, 3 }
 0x18f   : > { %v1624_v7 = vrot.slane %v10489_v15, 4 }
 0x190   : > { %v1667_v20 = vadd.f32 %v1635_v18, %v10491_v16  ;;  %v1636_v30 = vperm.slane %v1621_v22, 0  ;;  %v1637_v45 = vperm.slane %v1622_v42, 0  ;;  %v1638_v59 = vperm.slane %v1623_v56, 0 }
 0x191   : > { %v1639_v13 = vperm.slane %v1624_v7, 0 }
 0x192   : > { %v1733_v21 = vadd.f32 %v1701_v19, %v1667_v20  ;;  %v1669_v35 = vadd.f32 %v1636_v30, %v10491_v16  ;;  %v1671_v49 = vadd.f32 %v1637_v45, %v10491_v16  ;;  %v1673_v63 = vadd.f32 %v1638_v59, %v10491_v16 }
 0x193   : > { %v1536_v24 = vpop.f32.mrf.mxu3 }
 0x194   : > { %v10502_v26 = vadd.f32 %v9150_v11, %v1536_v24  ;;  %vm1765_vm2 = vcmp.gt.f32.partialorder %v1733_v21, 0.0  ;;  %v1797_v27 = vmul.f32 0.2, %v1733_v21  ;;  %v1735_v37 = vadd.f32 %v1703_v33, %v1669_v35 }
 0x195   : > { %v1737_v51 = vadd.f32 %v1705_v47, %v1671_v49  ;;  %v1739_v2 = vadd.f32 %v1707_v61, %v1673_v63  ;;  %v1286_v35 = vperm.slane %v10391_v17, 6  ;;  %v1626_v49 = vrot.slane %v10489_v15, 6 }
 0x196   : > { %v1829_v28 = vsel %vm1765_vm2, %v1733_v21, %v1797_v27  ;;  %v1668_v29 = vadd.f32 %v1635_v18, %v10502_v26  ;;  %v1799_v40 = vmul.f32 0.2, %v1735_v37  ;;  %v1670_v41 = vadd.f32 %v1636_v30, %v10502_v26  ;;  %v10538_v18 = vpop.permute.xlu0 %1057 }
 0x197   : > { %1893 = vmatmul.f32.vlgmr.msrb.gmra.mxu3 %v1829_v28  ;;  %vm1767_vm4 = vcmp.gt.f32.partialorder %v1735_v37, 0.0  ;;  %v1801_v54 = vmul.f32 0.2, %v1737_v51  ;;  %v1672_v55 = vadd.f32 %v1637_v45, %v10502_v26  ;;  %vm1769_vm6 = vcmp.gt.f32.partialorder %v1737_v51, 0.0  ;;  %14302 = vst [vmem:[#allocation38_spill] sm:$0xff] %v10538_v18  ;;  %1291 = vperm.xlu1 %9138, %v1286_v35  }
 0x198   : > { %v1734_v32 = vadd.f32 %v1702_v25, %v1668_v29  ;;  %v1831_v43 = vsel %vm1767_vm4, %v1735_v37, %v1799_v40  ;;  %v1736_v44 = vadd.f32 %v1704_v39, %v1670_v41  ;;  %v1803_v5 = vmul.f32 0.2, %v1739_v2  ;;  %v10543_v25 = vpop.permute.xlu1 %1063  ;;  %1297 = vperm.xlu2 %9137, %v1286_v35  }
 0x199   : > { %v1833_v57 = vsel %vm1769_vm6, %v1737_v51, %v1801_v54  ;;  %v1738_v58 = vadd.f32 %v1706_v53, %v1672_v55  ;;  %v1674_v6 = vadd.f32 %v1638_v59, %v10502_v26  ;;  %vm1771_vm8 = vcmp.gt.f32.partialorder %v1739_v2, 0.0  ;;  %14303 = vst [vmem:[#allocation39_spill] sm:$0xff] %v10543_v25 }
 0x19a   : > { %v1798_v34 = vmul.f32 0.2, %v1734_v32  ;;  %vm1766_vm3 = vcmp.gt.f32.partialorder %v1734_v32, 0.0  ;;  %v1800_v48 = vmul.f32 0.2, %v1736_v44  ;;  %vm1768_vm5 = vcmp.gt.f32.partialorder %v1736_v44, 0.0 }
 0x19b   : > { %v1802_v62 = vmul.f32 0.2, %v1738_v58  ;;  %vm1770_vm7 = vcmp.gt.f32.partialorder %v1738_v58, 0.0  ;;  %v1835_v11 = vsel %vm1771_vm8, %v1739_v2, %v1803_v5  ;;  %v1740_v12 = vadd.f32 %v1708_v4, %v1674_v6 }
 0x19c   : > { %v1830_v36 = vsel %vm1766_vm3, %v1734_v32, %v1798_v34  ;;  %v1832_v50 = vsel %vm1768_vm5, %v1736_v44, %v1800_v48  ;;  %v1709_v19 = vmul.f32 %v10486_v14, %v10538_v18  ;;  %v1675_v21 = vadd.f32 %v1639_v13, %v10491_v16 }
 0x19d   : > { %v1834_v0 = vsel %vm1770_vm7, %v1738_v58, %v1802_v62  ;;  %v1804_v20 = vmul.f32 0.2, %v1740_v12  ;;  %vm1772_vm9 = vcmp.gt.f32.partialorder %v1740_v12, 0.0  ;;  %v1710_v27 = vmul.f32 %v10486_v14, %v10543_v25 }
 0x19e   : > { %v1741_v24 = vadd.f32 %v1709_v19, %v1675_v21  ;;  %v1676_v29 = vadd.f32 %v1639_v13, %v10502_v26  ;;  %v1625_v30 = vrot.slane %v10489_v15, 5  ;;  %v1641_v54 = vperm.slane %v1626_v49, 0  ;;  %v10571_v62 = vpop.permute.xlu0 %1089 }
 0x19f   : > { %1896 = vmatmul.f32.gmra.mxu3 %v1830_v36  ;;  %v1836_v22 = vsel %vm1772_vm9, %v1740_v12, %v1804_v20  ;;  %v10550_v36 = vpop.permute.xlu2 %1070  ;;  %14307 = vst [vmem:[#allocation43_spill] sm:$0xff] %v10571_v62  ;;  %v1714_v63 = vmul.f32 %v10486_v14, %v10571_v62  ;;  %v1627_v4 = vrot.slane %v10489_v15, 7  ;;  %vm2118_vm5 = vcmask 64512  }
 0x1a0   : > { %v1805_v28 = vmul.f32 0.2, %v1741_v24  ;;  %vm1773_vm10 = vcmp.gt.f32.partialorder %v1741_v24, 0.0  ;;  %v1742_v33 = vadd.f32 %v1710_v27, %v1676_v29  ;;  %v1640_v34 = vperm.slane %v1625_v30, 0  ;;  %14304 = vst [vmem:[#allocation40_spill] sm:$0xff] %v10550_v36  ;;  %v10556_v44 = vpop.permute.xlu1 %1076 }
 0x1a1   : > { %v1711_v37 = vmul.f32 %v10486_v14, %v10550_v36  ;;  %14305 = vst [vmem:[#allocation41_spill] sm:$0xff] %v10556_v44  ;;  %v1712_v45 = vmul.f32 %v10486_v14, %v10556_v44  ;;  %v1679_v58 = vadd.f32 %v1641_v54, %v10491_v16  ;;  %v1680_v2 = vadd.f32 %v1641_v54, %v10502_v26 }
 0x1a2   : > { %v1837_v32 = vsel %vm1773_vm10, %v1741_v24, %v1805_v28  ;;  %v1806_v39 = vmul.f32 0.2, %v1742_v33  ;;  %v1677_v40 = vadd.f32 %v1640_v34, %v10491_v16  ;;  %vm1774_vm11 = vcmp.gt.f32.partialorder %v1742_v33, 0.0 }
 0x1a3   : > { %v1678_v48 = vadd.f32 %v1640_v34, %v10502_v26  ;;  %v1746_v6 = vadd.f32 %v1714_v63, %v1680_v2  ;;  %v1642_v7 = vperm.slane %v1627_v4, 0 }
 0x1a4   : > { %v1838_v41 = vsel %vm1774_vm11, %v1742_v33, %v1806_v39  ;;  %v1743_v42 = vadd.f32 %v1711_v37, %v1677_v40 }
 0x1a5   : > { %v1744_v53 = vadd.f32 %v1712_v45, %v1678_v48  ;;  %v1810_v13 = vmul.f32 0.2, %v1746_v6  ;;  %v1681_v19 = vadd.f32 %v1642_v7, %v10491_v16  ;;  %vm1778_vm15 = vcmp.gt.f32.partialorder %v1746_v6, 0.0 }
 0x1a6   : > { %v1807_v47 = vmul.f32 0.2, %v1743_v42  ;;  %vm1775_vm12 = vcmp.gt.f32.partialorder %v1743_v42, 0.0  ;;  %v1682_v29 = vadd.f32 %v1642_v7, %v10502_v26  ;;  %v10606_v54 = vpop.permute.xlu0 %1122 }
 0x1a7   : > { %1899 = vmatmul.f32.gmra.mxu3 %v1831_v43  ;;  %v1299_v43 = vperm.slane %v10391_v17, 7  ;;  %v10566_v55 = vpop.permute.xlu2 %1083  ;;  %vm1776_vm13 = vcmp.gt.f32.partialorder %v1744_v53, 0.0  ;;  %v1842_v20 = vsel %vm1778_vm15, %v1746_v6, %v1810_v13  ;;  %14313 = vst [vmem:[#allocation49_spill] sm:$0xff] %v10606_v54 }
 0x1a8   : > { %v1839_v51 = vsel %vm1775_vm12, %v1743_v42, %v1807_v47  ;;  %14306 = vst [vmem:[#allocation42_spill] sm:$0xff] %v10566_v55  ;;  %v1713_v56 = vmul.f32 %v10486_v14, %v10566_v55 }
 0x1a9   : > { %1304 = vperm.xlu1 %9138, %v1299_v43   ;;  %1310 = vperm.xlu2 %9137, %v1299_v43  }
 0x1aa   : > { %v1745_v61 = vadd.f32 %v1713_v56, %v1679_v58 }
 0x1ac   : > { %vm1777_vm14 = vcmp.gt.f32.partialorder %v1745_v61, 0.0 }
 0x1af   : > { %1902 = vmatmul.f32.gmra.mxu3 %v1832_v50  ;;  %v10563_v50 = vld [vmem:[%s10387_s2 + $0x8] sm:$0xff]  ;;  %v10584_v24 = vpop.permute.xlu2 %1102  ;;  %s14654_s2 = sand.u32 1, %s9955_s28  }
 0x1b0   : > { %v1312_v17 = vperm.slane %v10563_v50, 0  ;;  %14309 = vst [vmem:[#allocation45_spill] sm:$0xff] %v10584_v24  ;;  %v1716_v15 = vmul.f32 %v10486_v14, %v10584_v24 }
 0x1b2   : > { %1317 = vperm.xlu1 %9138, %v1312_v17   ;;  %1323 = vperm.xlu2 %9137, %v1312_v17   ;;  %v1719_v17 = vmul.f32 %v10486_v14, %v10606_v54 }
 0x1b7   : > { %1905 = vmatmul.f32.gmra.mxu3 %v1833_v57  ;;  %v1808_v57 = vmul.f32 0.2, %v1744_v53 }
 0x1b9   : > { %v1840_v59 = vsel %vm1776_vm13, %v1744_v53, %v1808_v57 }
 0x1ba   : > { %9141 = vset.pattern.permute.xlu1 %v10363_v8  ;;  %9142 = vset.pattern.permute.xlu2 %v10332_v1 }
 0x1bf   : > { %1908 = vmatmul.f32.gmra.mxu3 %v1834_v0  ;;  %v1809_v0 = vmul.f32 0.2, %v1745_v61 }
 0x1c1   : > { %v1841_v5 = vsel %vm1777_vm14, %v1745_v61, %v1809_v0 }
 0x1c7   : > { %1911 = vmatmul.f32.gmra.mxu3 %v1835_v11  ;;  %v10579_v11 = vpop.permute.xlu1 %1096 }
 0x1c8   : > { %14308 = vst [vmem:[#allocation44_spill] sm:$0xff] %v10579_v11  ;;  %v1715_v12 = vmul.f32 %v10486_v14, %v10579_v11 }
 0x1ca   : > { %v1747_v21 = vadd.f32 %v1715_v12, %v1681_v19 }
 0x1cc   : > { %v1811_v28 = vmul.f32 0.2, %v1747_v21  ;;  %vm1779_vm0 = vcmp.gt.f32.partialorder %v1747_v21, 0.0 }
 0x1ce   : > { %v1843_v30 = vsel %vm1779_vm0, %v1747_v21, %v1811_v28 }
 0x1cf   : > { %1914 = vmatmul.f32.gmra.mxu3 %v1836_v22  ;;  %v1616_v22 = vpop.f32.mrf.mxu2  ;;  %v10593_v34 = vpop.permute.xlu1 %1109 }
 0x1d0   : > { %v10589_v27 = vadd.f32 %v10480_v9, %v1616_v22  ;;  %14310 = vst [vmem:[#allocation46_spill] sm:$0xff] %v10593_v34  ;;  %v1717_v35 = vmul.f32 %v10486_v14, %v10593_v34 }
 0x1d2   : > { %v1643_v33 = vperm.slane %v10589_v27, 0  ;;  %v1628_v47 = vrot.slane %v10589_v27, 1  ;;  %v1629_v12 = vrot.slane %v10589_v27, 2 }
 0x1d4   : > { %v1683_v39 = vadd.f32 %v1643_v33, %v10491_v16  ;;  %v1684_v45 = vadd.f32 %v1643_v33, %v10502_v26  ;;  %v1644_v53 = vperm.slane %v1628_v47, 0 }
 0x1d6   : > { %v1749_v40 = vadd.f32 %v1717_v35, %v1683_v39  ;;  %v1685_v58 = vadd.f32 %v1644_v53, %v10491_v16  ;;  %v1686_v7 = vadd.f32 %v1644_v53, %v10502_v26 }
 0x1d7   : > { %1917 = vmatmul.f32.gmra.mxu3 %v1837_v32  ;;  %v1748_v32 = vadd.f32 %v1716_v15, %v1682_v29  ;;  %v10604_v48 = vpop.permute.xlu1 %1213  ;;  %v1325_v29 = vperm.slane %v10563_v50, 1 }
 0x1d8   : > { %v1813_v43 = vmul.f32 0.2, %v1749_v40  ;;  %vm1781_vm2 = vcmp.gt.f32.partialorder %v1749_v40, 0.0  ;;  %14312 = vst [vmem:[#allocation48_spill] sm:$0xff] %v10604_v48  ;;  %v1751_v0 = vadd.f32 %v1719_v17, %v1685_v58  ;;  %vm1990_vm4 = vcmp.gt.f32.partialorder %v10604_v48, 0.0 }
 0x1d9   : > { %v1812_v37 = vmul.f32 0.2, %v1748_v32  ;;  %vm1780_vm1 = vcmp.gt.f32.partialorder %v1748_v32, 0.0  ;;  %1330 = vperm.xlu0 %9140, %v1325_v29   ;;  %1336 = vperm.xlu1 %9141, %v1325_v29   ;;  %v1338_v17 = vperm.slane %v10563_v50, 2 }
 0x1da   : > { %v1845_v49 = vsel %vm1781_vm2, %v1749_v40, %v1813_v43  ;;  %v1815_v6 = vmul.f32 0.2, %v1751_v0  ;;  %vm1783_vm7 = vcmp.gt.f32.partialorder %v1751_v0, 0.0 }
 0x1db   : > { %v1844_v9 = vsel %vm1780_vm1, %v1748_v32, %v1812_v37  ;;  %1343 = vperm.xlu2 %9142, %v1338_v17  }
 0x1dc   : > { %v1847_v15 = vsel %vm1783_vm7, %v1751_v0, %v1815_v6  ;;  %v1630_v6 = vrot.slane %v10589_v27, 3 }
 0x1df   : > { %1920 = vmatmul.f32.gmra.mxu3 %v1838_v41  ;;  %v10598_v41 = vpop.permute.xlu2 %1115  ;;  %v10613_v61 = vpop.permute.xlu1 %1128 }
 0x1e0   : > { %14311 = vst [vmem:[#allocation47_spill] sm:$0xff] %v10598_v41  ;;  %v1718_v42 = vmul.f32 %v10486_v14, %v10598_v41  ;;  %v1720_v2 = vmul.f32 %v10486_v14, %v10613_v61 }
 0x1e1   : > { %14315 = vst [vmem:[#allocation51_spill] sm:$0xff] %v10613_v61  ;;  %9143 = vset.pattern.permute.xlu0 %v10363_v8  ;;  %1349 = vperm.xlu1 %9141, %v1338_v17  }
 0x1e2   : > { %v1752_v28 = vadd.f32 %v1720_v2, %v1686_v7 }
 0x1e4   : > { %vm1784_vm8 = vcmp.gt.f32.partialorder %v1752_v28, 0.0 }
 0x1e7   : > { %1923 = vmatmul.f32.gmra.mxu3 %v1839_v51  ;;  %v1750_v51 = vadd.f32 %v1718_v42, %v1684_v45  ;;  %v10630_v33 = vpop.permute.xlu1 %1232  ;;  %v10635_v42 = vpop.permute.xlu0 %1226 }
 0x1e8   : > { %14317 = vst [vmem:[#allocation53_spill] sm:$0xff] %v10630_v33  ;;  %vm1992_vm9 = vcmp.gt.f32.partialorder %v10635_v42, 0.0  ;;  %vm1993_vm10 = vcmp.gt.f32.partialorder %v10630_v33, 0.0 }
 0x1e9   : > { %v1814_v57 = vmul.f32 0.2, %v1750_v51  ;;  %vm1782_vm3 = vcmp.gt.f32.partialorder %v1750_v51, 0.0  ;;  %14318 = vst [vmem:[#allocation54_spill] sm:$0xff] %v10635_v42  ;;  %9144 = vset.pattern.permute.xlu1 %v10332_v1 }
 0x1eb   : > { %v1846_v63 = vsel %vm1782_vm3, %v1750_v51, %v1814_v57 }
 0x1ef   : > { %1926 = vmatmul.f32.gmra.mxu3 %v1840_v59  ;;  %v10611_v59 = vpop.permute.xlu2 %1219 }
 0x1f0   : > { %14314 = vst [vmem:[#allocation50_spill] sm:$0xff] %v10611_v59  ;;  %vm1991_vm6 = vcmp.gt.f32.partialorder %v10611_v59, 0.0 }
 0x1f7   : > { %1929 = vmatmul.f32.gmra.mxu3 %v1841_v5  ;;  %v10627_v21 = vpop.permute.xlu2 %1135 }
 0x1f8   : > { %14316 = vst [vmem:[#allocation52_spill] sm:$0xff] %v10627_v21  ;;  %v1721_v37 = vmul.f32 %v10486_v14, %v10627_v21 }
 0x1ff   : > { %1932 = vmatmul.f32.gmra.mxu3 %v1842_v20  ;;  %v10637_v51 = vpop.permute.xlu2 %1141 }
 0x200   : > { %14319 = vst [vmem:[#allocation55_spill] sm:$0xff] %v10637_v51 }
 0x207   : > { %1935 = vmatmul.f32.gmra.mxu3 %v1843_v30  ;;  %v1645_v30 = vperm.slane %v1629_v12, 0 }
 0x209   : > { %v1687_v40 = vadd.f32 %v1645_v30, %v10491_v16 }
 0x20f   : > { %1938 = vmatmul.f32.gmra.mxu3 %v1844_v9  ;;  %v1816_v9 = vmul.f32 0.2, %v1752_v28 }
 0x211   : > { %v1848_v47 = vsel %vm1784_vm8, %v1752_v28, %v1816_v9 }
 0x217   : > { %1941 = vmatmul.f32.gmra.mxu3 %v1845_v49  ;;  %v1753_v49 = vadd.f32 %v1721_v37, %v1687_v40  ;;  %v1646_v37 = vperm.slane %v1630_v6, 0 }
 0x219   : > { %v1817_v2 = vmul.f32 0.2, %v1753_v49  ;;  %vm1785_vm11 = vcmp.gt.f32.partialorder %v1753_v49, 0.0 }
 0x21a   : > { %v1894_v56 = vpop.f32.mrf.mxu3 }
 0x21b   : > { %v2086_v4 = vsel %vm1990_vm4, %v1894_v56, -1e+30  ;;  %v1722_v56 = vmul.f32 %v10486_v14, %v10637_v51 }
 0x21c   : > { %v2119_v19 = vsel %vm2118_vm5, %v2086_v4, -inf }
 0x21f   : > { %1944 = vmatmul.f32.gmra.mxu3 %v1846_v63  ;;  %v10648_v63 = vpop.permute.xlu1 %1239 }
 0x220   : > { %14320 = vst [vmem:[#allocation56_spill] sm:$0xff] %v10648_v63  ;;  %vm1994_vm13 = vcmp.gt.f32.partialorder %v10648_v63, 0.0 }
 0x222   : > { %v1897_v5 = vpop.f32.mrf.mxu3 }
 0x223   : > { %v2087_v13 = vsel %vm1991_vm6, %v1897_v5, -1e+30  ;;  %v1688_v5 = vadd.f32 %v1645_v30, %v10502_v26 }
 0x224   : > { %v2120_v20 = vsel %vm2118_vm5, %v2087_v13, -inf }
 0x225   : > { %v2121_v22 = vmax.f32 %v2119_v19, %v2120_v20  ;;  %v1754_v30 = vadd.f32 %v1722_v56, %v1688_v5 }
 0x227   : > { %v2122_v32 = vrot.slane %v2121_v22, 4  ;;  %1947 = vmatmul.f32.gmra.mxu3 %v1847_v15  ;;  %v10658_v15 = vpop.permute.xlu0 %1148  ;;  %vm1786_vm12 = vcmp.gt.f32.partialorder %v1754_v30, 0.0 }
 0x228   : > { %14321 = vst [vmem:[#allocation57_spill] sm:$0xff] %v10658_v15  ;;  %v1723_v9 = vmul.f32 %v10486_v14, %v10658_v15 }
 0x229   : > { %v2123_v35 = vmax.f32 %v2121_v22, %v2122_v32 }
 0x22a   : > { %v1900_v39 = vpop.f32.mrf.mxu3 }
 0x22b   : > { %v2124_v43 = vrot.slane %v2123_v35, 2  ;;  %v10646_v58 = vsel %vm1992_vm9, %v1900_v39, -1e+30 }
 0x22c   : > { %v2128_v20 = vsel %vm2118_vm5, %v10646_v58, -inf }
 0x22d   : > { %v2125_v45 = vmax.f32 %v2123_v35, %v2124_v43  ;;  %v1849_v35 = vsel %vm1785_vm11, %v1753_v49, %v1817_v2  ;;  %v1818_v43 = vmul.f32 0.2, %v1754_v30  ;;  %v10666_v49 = vpop.permute.xlu1 %1161 }
 0x22e   : > { %14323 = vst [vmem:[#allocation59_spill] sm:$0xff] %v10666_v49 }
 0x22f   : > { %v2126_v53 = vrot.slane %v2125_v45, 1  ;;  %1950 = vmatmul.f32.gmra.mxu3 %v1848_v47  ;;  %v10671_v5 = vpop.permute.xlu0 %1154 }
 0x230   : > { %14324 = vst [vmem:[#allocation60_spill] sm:$0xff] %v10671_v5 }
 0x231   : > { %v2127_v57 = vmax.f32 %v2125_v45, %v2126_v53  ;;  %v1689_v45 = vadd.f32 %v1646_v37, %v10491_v16 }
 0x232   : > { %v1903_v0 = vpop.f32.mrf.mxu3 }
 0x233   : > { %v2263_v7 = vsub.f32 %v2086_v4, %v2127_v57  ;;  %v2264_v12 = vsub.f32 %v2087_v13, %v2127_v57  ;;  %v2089_v19 = vsel %vm1993_vm10, %v1903_v0, -1e+30  ;;  %v10660_v13 = vpop.permute.xlu2 %1245  ;;  %v1850_v57 = vsel %vm1786_vm12, %v1754_v30, %v1818_v43 }
 0x234   : > { %v2129_v22 = vsel %vm2118_vm5, %v2089_v19, -inf  ;;  %14322 = vst [vmem:[#allocation58_spill] sm:$0xff] %v10660_v13  ;;  %v1755_v0 = vadd.f32 %v1723_v9, %v1689_v45  ;;  %vm1995_vm14 = vcmp.gt.f32.partialorder %v10660_v13, 0.0 }
 0x235   : > { %v2295_v28 = vmul.f32 1.442695, %v2263_v7  ;;  %v2297_v29 = vmul.f32 1.442695, %v2264_v12  ;;  %v2130_v32 = vmax.f32 %v2128_v20, %v2129_v22  ;;  %v1416_v12 = vld [vmem:[#allocation13] sm:$0xff]  ;;  %v1724_v20 = vmul.f32 %v10486_v14, %v10671_v5 }
 0x236   : > { %2710 = vmatpush.msrb.mxu0 %v1416_v12  ;;  %vm1787_vm15 = vcmp.gt.f32.partialorder %v1755_v0, 0.0  ;;  %v10701_v12 = vpop.permute.xlu1 %1258 }
 0x237   : > { %9179 = vpow2.f32 %v2295_v28  ;;  %v2131_v4 = vrot.slane %v2130_v32, 4  ;;  %1953 = vmatmul.f32.gmra.mxu3 %v1849_v35  ;;  %v1690_v35 = vadd.f32 %v1646_v37, %v10502_v26  ;;  %14326 = vst [vmem:[#allocation62_spill] sm:$0xff] %v10701_v12  ;;  %vm14204_vm2 = vcmp.gt.f32.partialorder %v10701_v12, 0.0  ;;  %v10743_v3 = vpop.permute.xlu0 %1174 }
 0x238   : > { %9181 = vpow2.f32 %v2297_v29  ;;  %14330 = vst [vmem:[#allocation66_spill] sm:$0xff] %v10743_v3 }
 0x239   : > { %v2132_v39 = vmax.f32 %v2130_v32, %v2131_v4  ;;  %v1819_v4 = vmul.f32 0.2, %v1755_v0 }
 0x23a   : > { %v1906_v40 = vpop.f32.mrf.mxu3 }
 0x23b   : > { %v2133_v47 = vrot.slane %v2132_v39, 2  ;;  %v10685_v32 = vsel %vm1994_vm13, %v1906_v40, -1e+30  ;;  %v10690_v43 = vpop.permute.xlu2 %1252 }
 0x23c   : > { %14325 = vst [vmem:[#allocation61_spill] sm:$0xff] %v10690_v43  ;;  %v2137_v37 = vsel %vm2118_vm5, %v10685_v32, -inf  ;;  %vm14239_vm1 = vcmp.gt.f32.partialorder %v10690_v43, 0.0 }
 0x23d   : > { %v9180_v53 = vpop.eup %9179  ;;  %v2134_v17 = vmax.f32 %v2132_v39, %v2133_v47  ;;  %v1631_v39 = vrot.slane %v10589_v27, 4 }
 0x23e   : > { %v9182_v56 = vpop.eup %9181  ;;  %v10669_v2 = vmul.f32 %v9180_v53, %v10604_v48  ;;  %v1725_v48 = vmul.f32 %v10486_v14, %v10666_v49 }
 0x23f   : > { %v10674_v6 = vmul.f32 %v9182_v56, %v10611_v59  ;;  %v2135_v7 = vrot.slane %v2134_v17, 1  ;;  %1956 = vmatmul.f32.gmra.mxu3 %v1850_v57 }
 0x240   : > { %v2391_v22 = vsel %vm2118_vm5, %v10669_v2, 0.0 }
 0x241   : > { %v2392_v28 = vsel %vm2118_vm5, %v10674_v6, 0.0  ;;  %v2136_v29 = vmax.f32 %v2134_v17, %v2135_v7 }
 0x242   : > { %v1909_v30 = vpop.f32.mrf.mxu3  ;;  %v2393_v9 = vadd.f32 %v2392_v28, %v2391_v22  ;;  %v1851_v22 = vsel %vm1787_vm15, %v1755_v0, %v1819_v4 }
 0x243   : > { %v2265_v45 = vsub.f32 %v10646_v58, %v2136_v29  ;;  %v2266_v47 = vsub.f32 %v2089_v19, %v2136_v29  ;;  %v10695_v53 = vsel %vm1995_vm14, %v1909_v30, -1e+30  ;;  %v1756_v58 = vadd.f32 %v1724_v20, %v1690_v35  ;;  %v10706_v35 = vpop.permute.xlu2 %1167 }
 0x244   : > { %v2138_v40 = vsel %vm2118_vm5, %v10695_v53, -inf  ;;  %v2394_v17 = vrot.slane %v2393_v9, 4  ;;  %v1647_v19 = vperm.slane %v1631_v39, 0  ;;  %14327 = vst [vmem:[#allocation63_spill] sm:$0xff] %v10706_v35 }
 0x245   : > { %v2299_v56 = vmul.f32 1.442695, %v2265_v45  ;;  %v2301_v57 = vmul.f32 1.442695, %v2266_v47  ;;  %v2139_v7 = vmax.f32 %v2137_v37, %v2138_v40  ;;  %v1820_v18 = vmul.f32 0.2, %v1756_v58 }
 0x246   : > { %v2395_v28 = vadd.f32 %v2394_v17, %v2393_v9  ;;  %v1691_v45 = vadd.f32 %v1647_v19, %v10491_v16  ;;  %vm1788_vm0 = vcmp.gt.f32.partialorder %v1756_v58, 0.0 }
 0x247   : > { %9183 = vpow2.f32 %v2299_v56  ;;  %v2140_v29 = vrot.slane %v2139_v7, 4  ;;  %1959 = vmatmul.f32.gmra.mxu3 %v1851_v22  ;;  %v1852_v9 = vsel %vm1788_vm0, %v1756_v58, %v1820_v18 }
 0x248   : > { %9185 = vpow2.f32 %v2301_v57  ;;  %v2396_v30 = vrot.slane %v2395_v28, 2  ;;  %v1757_v40 = vadd.f32 %v1725_v48, %v1691_v45  ;;  %v1726_v57 = vmul.f32 %v10486_v14, %v10706_v35 }
 0x249   : > { %v2141_v59 = vmax.f32 %v2139_v7, %v2140_v29  ;;  %v10717_v29 = vpop.permute.xlu1 %1265  ;;  %v1632_v48 = vrot.slane %v10589_v27, 5  ;;  %v1692_v45 = vadd.f32 %v1647_v19, %v10502_v26 }
 0x24a   : > { %v1912_v25 = vpop.f32.mrf.mxu3  ;;  %v2397_v47 = vadd.f32 %v2396_v30, %v2395_v28  ;;  %v1351_v28 = vperm.slane %v10563_v50, 3  ;;  %14328 = vst [vmem:[#allocation64_spill] sm:$0xff] %v10717_v29  ;;  %vm1789_vm3 = vcmp.gt.f32.partialorder %v1757_v40, 0.0  ;;  %vm14133_vm8 = vcmp.gt.f32.partialorder %v10717_v29, 0.0 }
 0x24b   : > { %v2142_v37 = vrot.slane %v2141_v59, 2  ;;  %v10725_v30 = vsel %vm14239_vm1, %v1912_v25, -1e+30 }
 0x24c   : > { %v2398_v0 = vrot.slane %v2397_v47, 1  ;;  %1362 = vperm.xlu0 %9143, %v1351_v28   ;;  %1356 = vperm.xlu2 %9142, %v1351_v28   ;;  %v2146_v19 = vsel %vm2118_vm5, %v10725_v30, -inf }
 0x24d   : > { %v9184_v20 = vpop.eup %9183  ;;  %v2143_v4 = vmax.f32 %v2141_v59, %v2142_v37 }
 0x24e   : > { %v9186_v39 = vpop.eup %9185  ;;  %v2399_v17 = vadd.f32 %v2398_v0, %v2397_v47  ;;  %v10709_v56 = vmul.f32 %v9184_v20, %v10635_v42  ;;  %v1821_v0 = vmul.f32 0.2, %v1757_v40 }
 0x24f   : > { %v10714_v7 = vmul.f32 %v9186_v39, %v10630_v33  ;;  %v2144_v22 = vrot.slane %v2143_v4, 1  ;;  %1962 = vmatmul.f32.gmra.mxu3 %v1852_v9 }
 0x250   : > { %v2535_v18 = vmax.f32 %v2399_v17, 1e-20  ;;  %v2400_v59 = vsel %vm2118_vm5, %v10709_v56, 0.0 }
 0x251   : > { %v2145_v58 = vmax.f32 %v2143_v4, %v2144_v22  ;;  %v2401_v47 = vsel %vm2118_vm5, %v10714_v7, 0.0 }
 0x252   : > { %v1915_v37 = vpop.f32.mrf.mxu3  ;;  %9187 = vrcp.f32 %v2535_v18  ;;  %v2402_v20 = vadd.f32 %v2401_v47, %v2400_v59  ;;  %v1853_v59 = vsel %vm1789_vm3, %v1757_v40, %v1821_v0  ;;  %v1758_v47 = vadd.f32 %v1726_v57, %v1692_v45  ;;  %v10750_v57 = vpop.permute.xlu1 %1180 }
 0x253   : > { %v2267_v39 = vsub.f32 %v10685_v32, %v2145_v58  ;;  %v2268_v4 = vsub.f32 %v10695_v53, %v2145_v58  ;;  %v10735_v25 = vsel %vm14204_vm2, %v1915_v37, -1e+30  ;;  %v1648_v32 = vperm.slane %v1632_v48, 0  ;;  %v10741_v53 = vpop.permute.xlu2 %1271  ;;  %14331 = vst [vmem:[#allocation67_spill] sm:$0xff] %v10750_v57 }
 0x254   : > { %v2147_v9 = vsel %vm2118_vm5, %v10735_v25, -inf  ;;  %v2403_v17 = vrot.slane %v2402_v20, 4  ;;  %14329 = vst [vmem:[#allocation65_spill] sm:$0xff] %v10741_v53  ;;  %9145 = vset.pattern.permute.xlu2 %v10363_v8  ;;  %9146 = vset.pattern.permute.xlu0 %v10332_v1  ;;  %v1727_v40 = vmul.f32 %v10486_v14, %v10743_v3  ;;  %v1822_v45 = vmul.f32 0.2, %v1758_v47 }
 0x255   : > { %v2303_v22 = vmul.f32 1.442695, %v2267_v39  ;;  %v2305_v28 = vmul.f32 1.442695, %v2268_v4  ;;  %v2148_v18 = vmax.f32 %v2146_v19, %v2147_v9  ;;  %v1693_v0 = vadd.f32 %v1648_v32, %v10491_v16 }
 0x256   : > { %v2404_v33 = vadd.f32 %v2403_v17, %v2402_v20  ;;  %vm1790_vm7 = vcmp.gt.f32.partialorder %v1758_v47, 0.0  ;;  %v1728_v19 = vmul.f32 %v10486_v14, %v10750_v57  ;;  %vm14132_vm11 = vcmp.gt.f32.partialorder %v10741_v53, 0.0 }
 0x257   : > { %9189 = vpow2.f32 %v2303_v22  ;;  %v2149_v58 = vrot.slane %v2148_v18, 4  ;;  %1965 = vmatmul.f32.gmra.mxu3 %v1853_v59  ;;  %v1854_v22 = vsel %vm1790_vm7, %v1758_v47, %v1822_v45 }
 0x258   : > { %v9188_v37 = vpop.eup %9187  ;;  %9191 = vpow2.f32 %v2305_v28  ;;  %v2405_v42 = vrot.slane %v2404_v33, 2  ;;  %v1759_v28 = vadd.f32 %v1727_v40, %v1693_v0 }
 0x259   : > { %v2150_v60 = vmax.f32 %v2148_v18, %v2149_v58  ;;  %v2567_v52 = vmul.f32 %v9188_v37, %v10669_v2 }
 0x25a   : > { %v1918_v48 = vpop.f32.mrf.mxu3  ;;  %v2406_v20 = vadd.f32 %v2405_v42, %v2404_v33  ;;  %v1633_v42 = vrot.slane %v10589_v27, 6  ;;  %vm1791_vm12 = vcmp.gt.f32.partialorder %v1759_v28, 0.0 }
 0x25b   : > { %v2151_v39 = vrot.slane %v2150_v60, 2  ;;  %8417 = vmatmul.msk.f32.vlgmr.msrb.gmra.mxu0 %vm2118_vm5, %v2567_v52  ;;  %v1364_v52 = vperm.slane %v10563_v50, 4  ;;  %v10768_v40 = vpop.permute.xlu2 %1187  ;;  %v10772_v0 = vsel %vm14133_vm8, %v1918_v48, -1e+30  ;;  %vm14134_vm8 = vcmask 1047559  }
 0x25c   : > { %v2407_v4 = vrot.slane %v2406_v20, 1  ;;  %14332 = vst [vmem:[#allocation68_spill] sm:$0xff] %v10768_v40 }
 0x25d   : > { %v9190_v2 = vpop.eup %9189  ;;  %v2152_v9 = vmax.f32 %v2150_v60, %v2151_v39  ;;  %v1694_v60 = vadd.f32 %v1648_v32, %v10502_v26  ;;  %1369 = vperm.xlu1 %9144, %v1364_v52   ;;  %1375 = vperm.xlu2 %9145, %v1364_v52   ;;  %v1823_v32 = vmul.f32 0.2, %v1759_v28 }
 0x25e   : > { %v9192_v17 = vpop.eup %9191  ;;  %v2408_v18 = vadd.f32 %v2407_v4, %v2406_v20  ;;  %v10757_v59 = vmul.f32 %v9190_v2, %v10648_v63  ;;  %v2568_v20 = vmul.f32 %v9188_v37, %v10674_v6  ;;  %v2155_v6 = vsel %vm2118_vm5, %v10772_v0, -inf }
 0x25f   : > { %v10760_v58 = vmul.f32 %v9192_v17, %v10660_v13  ;;  %v2153_v33 = vrot.slane %v2152_v9, 1  ;;  %1968 = vmatmul.f32.gmra.mxu3 %v1854_v22  ;;  %v1649_v22 = vperm.slane %v1633_v42, 0  ;;  %v1855_v52 = vsel %vm1791_vm12, %v1759_v28, %v1823_v32 }
 0x260   : > { %v2536_v57 = vmax.f32 %v2408_v18, 1e-20  ;;  %v2409_v47 = vsel %vm2118_vm5, %v10757_v59, 0.0  ;;  %v1729_v13 = vmul.f32 %v10486_v14, %v10768_v40 }
 0x261   : > { %v2154_v45 = vmax.f32 %v2152_v9, %v2153_v33  ;;  %v2410_v39 = vsel %vm2118_vm5, %v10760_v58, 0.0  ;;  %v1695_v42 = vadd.f32 %v1649_v22, %v10491_v16 }
 0x262   : > { %v1921_v4 = vpop.f32.mrf.mxu3  ;;  %9193 = vrcp.f32 %v2536_v57  ;;  %v2411_v2 = vadd.f32 %v2410_v39, %v2409_v47  ;;  %v1760_v47 = vadd.f32 %v1728_v19, %v1694_v60 }
 0x263   : > { %v2269_v17 = vsub.f32 %v10725_v30, %v2154_v45  ;;  %v2270_v9 = vsub.f32 %v10735_v25, %v2154_v45  ;;  %v10782_v48 = vsel %vm14132_vm11, %v1921_v4, -1e+30  ;;  %8418 = vmatmul.msk.f32.gmra.mxu0 %vm2118_vm5, %v2568_v20  ;;  %v1377_v25 = vperm.slane %v10563_v50, 5  ;;  %v10790_v4 = vpop.permute.xlu0 %1278  ;;  %v10796_v32 = vpop.permute.xlu2 %1193 }
 0x264   : > { %v2156_v37 = vsel %vm2118_vm5, %v10782_v48, -inf  ;;  %v2412_v57 = vrot.slane %v2411_v2, 4  ;;  %14333 = vst [vmem:[#allocation69_spill] sm:$0xff] %v10790_v4  ;;  %v1824_v28 = vmul.f32 0.2, %v1760_v47  ;;  %vm1792_vm15 = vcmp.gt.f32.partialorder %v1760_v47, 0.0 }
 0x265   : > { %v2307_v18 = vmul.f32 1.442695, %v2269_v17  ;;  %v2309_v33 = vmul.f32 1.442695, %v2270_v9  ;;  %v2157_v30 = vmax.f32 %v2155_v6, %v2156_v37  ;;  %1382 = vperm.xlu1 %9144, %v1377_v25   ;;  %1388 = vperm.xlu2 %9145, %v1377_v25   ;;  %14334 = vst [vmem:[#allocation70_spill] sm:$0xff] %v10796_v32  ;;  %v1761_v37 = vadd.f32 %v1729_v13, %v1695_v42 }
 0x266   : > { %v2413_v45 = vadd.f32 %v2412_v57, %v2411_v2  ;;  %v1634_v13 = vrot.slane %v10589_v27, 7  ;;  %vm14131_vm0 = vcmp.gt.f32.partialorder %v10790_v4, 0.0  ;;  %vm14135_vm11 = vcmask 1046534  }
 0x267   : > { %9195 = vpow2.f32 %v2307_v18  ;;  %v2158_v39 = vrot.slane %v2157_v30, 4  ;;  %1971 = vmatmul.f32.gmra.mxu3 %v1855_v52  ;;  %vm1793_vm3 = vcmp.gt.f32.partialorder %v1761_v37, 0.0 }
 0x268   : > { %v9194_v20 = vpop.eup %9193  ;;  %9197 = vpow2.f32 %v2309_v33  ;;  %v2414_v17 = vrot.slane %v2413_v45, 2 }
 0x269   : > { %v2159_v9 = vmax.f32 %v2157_v30, %v2158_v39  ;;  %v2569_v6 = vmul.f32 %v9194_v20, %v10709_v56  ;;  %v1730_v30 = vmul.f32 %v10486_v14, %v10796_v32  ;;  %v1856_v56 = vsel %vm1792_vm15, %v1760_v47, %v1824_v28 }
 0x26a   : > { %v1924_v19 = vpop.f32.mrf.mxu3  ;;  %v2415_v60 = vadd.f32 %v2414_v17, %v2413_v45  ;;  %v10804_v17 = vpop.permute.xlu1 %1284 }
 0x26b   : > { %v2160_v2 = vrot.slane %v2159_v9, 2  ;;  %8419 = vmatmul.msk.f32.gmra.mxu0 %vm2118_vm5, %v2569_v6  ;;  %14335 = vst [vmem:[#allocation71_spill] sm:$0xff] %v10804_v17  ;;  %v1696_v6 = vadd.f32 %v1649_v22, %v10502_v26  ;;  %v10814_v28 = vsel %vm14131_vm0, %v1924_v19, -1e+30  ;;  %v10821_v27 = vpop.permute.xlu0 %1200  ;;  %vm14130_vm7 = vcmp.gt.f32.partialorder %v10804_v17, 0.0 }
 0x26c   : > { %v2416_v57 = vrot.slane %v2415_v60, 1  ;;  %14336 = vst [vmem:[#allocation72_spill] sm:$0xff] %v10821_v27  ;;  %vm14164_vm0 = vcmask 1045509  }
 0x26d   : > { %v9196_v18 = vpop.eup %9195  ;;  %v2161_v33 = vmax.f32 %v2159_v9, %v2160_v2  ;;  %9147 = vset.pattern.permute.xlu1 %v10363_v8  ;;  %9148 = vset.pattern.permute.xlu2 %v10332_v1 }
 0x26e   : > { %v9198_v52 = vpop.eup %9197  ;;  %v2417_v39 = vadd.f32 %v2416_v57, %v2415_v60  ;;  %v10810_v9 = vmul.f32 %v9196_v18, %v10690_v43  ;;  %v2570_v60 = vmul.f32 %v9194_v20, %v10714_v7  ;;  %v1825_v57 = vmul.f32 0.2, %v1761_v37 }
 0x26f   : > { %v10802_v25 = vmul.f32 %v9198_v52, %v10701_v12  ;;  %v2162_v45 = vrot.slane %v2161_v33, 1  ;;  %1974 = vmatmul.f32.gmra.mxu3 %v1856_v56 }
 0x270   : > { %v2537_v42 = vmax.f32 %v2417_v39, 1e-20  ;;  %v2418_v19 = vsel %vm2118_vm5, %v10810_v9, 0.0 }
 0x271   : > { %v2163_v47 = vmax.f32 %v2161_v33, %v2162_v45  ;;  %v2419_v22 = vsel %vm2118_vm5, %v10802_v25, 0.0  ;;  %v2164_v33 = vsel %vm2118_vm5, %v10814_v28, -inf }
 0x272   : > { %v1927_v2 = vpop.f32.mrf.mxu3  ;;  %9199 = vrcp.f32 %v2537_v42  ;;  %v2420_v1 = vadd.f32 %v2419_v22, %v2418_v19 }
 0x273   : > { %v2271_v18 = vsub.f32 %v10772_v0, %v2163_v47  ;;  %v2272_v7 = vsub.f32 %v10782_v48, %v2163_v47  ;;  %v10830_v20 = vsel %vm14130_vm7, %v1927_v2, -1e+30  ;;  %8420 = vmatmul.msk.f32.gmra.mxu0 %vm2118_vm5, %v2570_v60  ;;  %v1857_v0 = vsel %vm1793_vm3, %v1761_v37, %v1825_v57 }
 0x274   : > { %v2165_v52 = vsel %vm2118_vm5, %v10830_v20, -inf  ;;  %v2421_v42 = vrot.slane %v2420_v1, 4  ;;  %v1762_v48 = vadd.f32 %v1730_v30, %v1696_v6  ;;  %v1650_v47 = vperm.slane %v1634_v13, 0  ;;  %v10843_v13 = vpop.permute.xlu0 %1206 }
 0x275   : > { %v2311_v56 = vmul.f32 1.442695, %v2271_v18  ;;  %v2313_v39 = vmul.f32 1.442695, %v2272_v7  ;;  %v2166_v45 = vmax.f32 %v2164_v33, %v2165_v52  ;;  %v1731_v18 = vmul.f32 %v10486_v14, %v10821_v27  ;;  %14337 = vst [vmem:[#allocation73_spill] sm:$0xff] %v10843_v13 }
 0x276   : > { %v2422_v32 = vadd.f32 %v2421_v42, %v2420_v1  ;;  %v1826_v33 = vmul.f32 0.2, %v1762_v48  ;;  %v1697_v37 = vadd.f32 %v1650_v47, %v10491_v16  ;;  %vm1794_vm12 = vcmp.gt.f32.partialorder %v1762_v48, 0.0  ;;  %v10845_v1 = vpop.permute.xlu1 %1291 }
 0x277   : > { %9201 = vpow2.f32 %v2311_v56  ;;  %v2167_v2 = vrot.slane %v2166_v45, 4  ;;  %1977 = vmatmul.f32.gmra.mxu3 %v1857_v0  ;;  %14338 = vst [vmem:[#allocation74_spill] sm:$0xff] %v10845_v1  ;;  %vm14120_vm15 = vcmp.gt.f32.partialorder %v10845_v1, 0.0  ;;  %vm14165_vm7 = vcmask 1044484  }
 0x278   : > { %v9200_v60 = vpop.eup %9199  ;;  %9203 = vpow2.f32 %v2313_v39  ;;  %v2423_v12 = vrot.slane %v2422_v32, 2  ;;  %v1858_v14 = vsel %vm1794_vm12, %v1762_v48, %v1826_v33  ;;  %v1763_v39 = vadd.f32 %v1731_v18, %v1697_v37  ;;  %v10859_v48 = vpop.permute.xlu2 %1297 }
 0x279   : > { %v2168_v22 = vmax.f32 %v2166_v45, %v2167_v2  ;;  %v2571_v19 = vmul.f32 %v9200_v60, %v10757_v59  ;;  %v9571_v45 = vld [vmem:[%s10310_s29] ss:$0 sm:$0xff]  ;;  %14339 = vst [vmem:[#allocation75_spill] sm:$0xff] %v10859_v48  ;;  %v2572_v37 = vmul.f32 %v9200_v60, %v10760_v58  ;;  %vm14047_vm3 = vcmp.gt.f32.partialorder %v10859_v48, 0.0 }
 0x27a   : > { %v1930_v7 = vpop.f32.mrf.mxu3  ;;  %v2424_v6 = vadd.f32 %v2423_v12, %v2422_v32  ;;  %v1732_v42 = vmul.f32 %v9571_v45, %v10843_v13  ;;  %v1390_v12 = vperm.slane %v10563_v50, 6  ;;  %vm1795_vm12 = vcmp.gt.f32.partialorder %v1763_v39, 0.0 }
 0x27b   : > { %v2169_v30 = vrot.slane %v2168_v22, 2  ;;  %8421 = vmatmul.msk.f32.gmra.mxu0 %vm2118_vm5, %v2571_v19  ;;  %v1403_v19 = vperm.slane %v10563_v50, 7  ;;  %v10863_v33 = vsel %vm14120_vm15, %v1930_v7, -1e+30 }
 0x27c   : > { %v2425_v52 = vrot.slane %v2424_v6, 1  ;;  %1395 = vperm.xlu0 %9146, %v1390_v12   ;;  %1401 = vperm.xlu1 %9147, %v1390_v12   ;;  %v2173_v60 = vsel %vm2118_vm5, %v10863_v33, -inf }
 0x27d   : > { %v9202_v57 = vpop.eup %9201  ;;  %v2170_v59 = vmax.f32 %v2168_v22, %v2169_v30  ;;  %v1698_v22 = vadd.f32 %v1650_v47, %v10502_v26  ;;  %v1827_v47 = vmul.f32 0.2, %v1763_v39  ;;  %1408 = vperm.xlu2 %9148, %v1403_v19  }
 0x27e   : > { %v9204_v56 = vpop.eup %9203  ;;  %v2426_v32 = vadd.f32 %v2425_v52, %v2424_v6  ;;  %v10857_v30 = vmul.f32 %v9202_v57, %v10717_v29 }
 0x27f   : > { %v10851_v0 = vmul.f32 %v9204_v56, %v10741_v53  ;;  %v2171_v2 = vrot.slane %v2170_v59, 1  ;;  %1980 = vmatmul.f32.gmra.mxu3 %v1858_v14 }
 0x280   : > { %v2538_v57 = vmax.f32 %v2426_v32, 1e-20  ;;  %v2427_v52 = vsel %vm2118_vm5, %v10857_v30, 0.0  ;;  %v1859_v32 = vsel %vm1795_vm12, %v1763_v39, %v1827_v47 }
 0x281   : > { %v2172_v18 = vmax.f32 %v2170_v59, %v2171_v2  ;;  %v2428_v6 = vsel %vm2118_vm5, %v10851_v0, 0.0 }
 0x282   : > { %v1933_v50 = vpop.f32.mrf.mxu3  ;;  %9205 = vrcp.f32 %v2538_v57  ;;  %v2429_v14 = vadd.f32 %v2428_v6, %v2427_v52 }
 0x283   : > { %v2273_v59 = vsub.f32 %v10814_v28, %v2172_v18  ;;  %v2274_v7 = vsub.f32 %v10830_v20, %v2172_v18  ;;  %v2099_v58 = vsel %vm14047_vm3, %v1933_v50, -1e+30  ;;  %8422 = vmatmul.msk.f32.gmra.mxu0 %vm2118_vm5, %v2572_v37  ;;  %v1764_v28 = vadd.f32 %v1732_v42, %v1698_v22 }
 0x284   : > { %v2174_v56 = vsel %vm2118_vm5, %v2099_v58, -inf  ;;  %v2430_v13 = vrot.slane %v2429_v14, 4  ;;  %1414 = vperm.xlu1 %9147, %v1403_v19   ;;  %9149 = vset.pattern.permute.xlu0 %v10363_v8  ;;  %v10885_v8 = vpop.permute.xlu1 %1304 }
 0x285   : > { %v2315_v45 = vmul.f32 1.442695, %v2273_v59  ;;  %v2317_v2 = vmul.f32 1.442695, %v2274_v7  ;;  %v2175_v12 = vmax.f32 %v2173_v60, %v2174_v56  ;;  %v1828_v29 = vmul.f32 0.2, %v1764_v28  ;;  %v10891_v56 = vpop.permute.xlu2 %1310 }
 0x286   : > { %v2431_v18 = vadd.f32 %v2430_v13, %v2429_v14  ;;  %vm1796_vm3 = vcmp.gt.f32.partialorder %v1764_v28, 0.0  ;;  %14340 = vst [vmem:[#allocation76_spill] sm:$0xff] %v10885_v8  ;;  %vm14049_vm12 = vcmp.gt.f32.partialorder %v10885_v8, 0.0 }
 0x287   : > { %9207 = vpow2.f32 %v2315_v45  ;;  %v2176_v20 = vrot.slane %v2175_v12, 4  ;;  %1983 = vmatmul.f32.gmra.mxu3 %v1859_v32  ;;  %v1860_v59 = vsel %vm1796_vm3, %v1764_v28, %v1828_v29  ;;  %14341 = vst [vmem:[#allocation77_spill] sm:$0xff] %v10891_v56  ;;  %vm14048_vm3 = vcmp.gt.f32.partialorder %v10891_v56, 0.0 }
 0x288   : > { %9209 = vpow2.f32 %v2317_v2  ;;  %v9206_v50 = vpop.eup %9205  ;;  %v2432_v57 = vrot.slane %v2431_v18, 2 }
 0x289   : > { %v2177_v37 = vmax.f32 %v2175_v12, %v2176_v20  ;;  %v2573_v52 = vmul.f32 %v9206_v50, %v10810_v9 }
 0x28a   : > { %v1936_v53 = vpop.f32.mrf.mxu3  ;;  %v2433_v39 = vadd.f32 %v2432_v57, %v2431_v18  ;;  %v2574_v57 = vmul.f32 %v9206_v50, %v10802_v25 }
 0x28b   : > { %v2178_v6 = vrot.slane %v2177_v37, 2  ;;  %8423 = vmatmul.msk.f32.gmra.mxu0 %vm2118_vm5, %v2573_v52  ;;  %v2100_v29 = vsel %vm14049_vm12, %v1936_v53, -1e+30 }
 0x28c   : > { %v2434_v13 = vrot.slane %v2433_v39, 1  ;;  %v2182_v53 = vsel %vm2118_vm5, %v2100_v29, -inf }
 0x28d   : > { %v9208_v42 = vpop.eup %9207  ;;  %v2179_v22 = vmax.f32 %v2177_v37, %v2178_v6 }
 0x28e   : > { %v9210_v47 = vpop.eup %9209  ;;  %v10888_v60 = vmul.f32 %v9208_v42, %v10790_v4  ;;  %v2435_v9 = vadd.f32 %v2434_v13, %v2433_v39 }
 0x28f   : > { %v10883_v19 = vmul.f32 %v9210_v47, %v10804_v17  ;;  %v2180_v7 = vrot.slane %v2179_v22, 1  ;;  %1986 = vmatmul.f32.gmra.mxu3 %v1860_v59 }
 0x290   : > { %v2436_v45 = vsel %vm2118_vm5, %v10888_v60, 0.0  ;;  %v2539_v32 = vmax.f32 %v2435_v9, 1e-20 }
 0x291   : > { %v2181_v14 = vmax.f32 %v2179_v22, %v2180_v7  ;;  %v2437_v2 = vsel %vm2118_vm5, %v10883_v19, 0.0 }
 0x292   : > { %v1939_v12 = vpop.f32.mrf.mxu3  ;;  %v2438_v28 = vadd.f32 %v2437_v2, %v2436_v45  ;;  %9211 = vrcp.f32 %v2539_v32  ;;  %v10908_v2 = vpop.permute.xlu1 %1317 }
 0x293   : > { %v2275_v20 = vsub.f32 %v10863_v33, %v2181_v14  ;;  %v2276_v18 = vsub.f32 %v2099_v58, %v2181_v14  ;;  %v2101_v37 = vsel %vm14048_vm3, %v1939_v12, -1e+30  ;;  %8424 = vmatmul.msk.f32.gmra.mxu0 %vm2118_vm5, %v2574_v57  ;;  %14342 = vst [vmem:[#allocation78_spill] sm:$0xff] %v10908_v2  ;;  %vm14051_vm3 = vcmp.gt.f32.partialorder %v10908_v2, 0.0 }
 0x294   : > { %v2183_v6 = vsel %vm2118_vm5, %v2101_v37, -inf  ;;  %v2439_v52 = vrot.slane %v2438_v28, 4 }
 0x295   : > { %v2319_v39 = vmul.f32 1.442695, %v2275_v20  ;;  %v2321_v42 = vmul.f32 1.442695, %v2276_v18  ;;  %v2184_v22 = vmax.f32 %v2182_v53, %v2183_v6  ;;  %v10911_v20 = vpop.permute.xlu2 %1323 }
 0x296   : > { %v2440_v47 = vadd.f32 %v2439_v52, %v2438_v28  ;;  %14343 = vst [vmem:[#allocation79_spill] sm:$0xff] %v10911_v20  ;;  %vm14050_vm12 = vcmp.gt.f32.partialorder %v10911_v20, 0.0 }
 0x297   : > { %9213 = vpow2.f32 %v2319_v39  ;;  %v2185_v33 = vrot.slane %v2184_v22, 4 }
 0x298   : > { %9215 = vpow2.f32 %v2321_v42  ;;  %v2441_v58 = vrot.slane %v2440_v47, 2  ;;  %v9212_v13 = vpop.eup %9211 }
 0x299   : > { %v2186_v59 = vmax.f32 %v2184_v22, %v2185_v33  ;;  %v2575_v9 = vmul.f32 %v9212_v13, %v10857_v30 }
 0x29a   : > { %v1942_v7 = vpop.f32.mrf.mxu3  ;;  %v2442_v25 = vadd.f32 %v2441_v58, %v2440_v47 }
 0x29b   : > { %v2187_v50 = vrot.slane %v2186_v59, 2  ;;  %8425 = vmatmul.msk.f32.gmra.mxu0 %vm2118_vm5, %v2575_v9  ;;  %v2102_v52 = vsel %vm14051_vm3, %v1942_v7, -1e+30 }
 0x29c   : > { %v2443_v14 = vrot.slane %v2442_v25, 1  ;;  %v2191_v7 = vsel %vm2118_vm5, %v2102_v52, -inf }
 0x29d   : > { %v9214_v45 = vpop.eup %9213  ;;  %v2188_v12 = vmax.f32 %v2186_v59, %v2187_v50 }
 0x29e   : > { %v9216_v32 = vpop.eup %9215  ;;  %v2444_v28 = vadd.f32 %v2443_v14, %v2442_v25  ;;  %v10917_v53 = vmul.f32 %v9214_v45, %v10845_v1  ;;  %v2576_v25 = vmul.f32 %v9212_v13, %v10851_v0 }
 0x29f   : > { %v10914_v18 = vmul.f32 %v9216_v32, %v10859_v48  ;;  %v2189_v57 = vrot.slane %v2188_v12, 1 }
 0x2a0   : > { %v2540_v30 = vmax.f32 %v2444_v28, 1e-20  ;;  %v2445_v39 = vsel %vm2118_vm5, %v10917_v53, 0.0 }
 0x2a1   : > { %v2190_v6 = vmax.f32 %v2188_v12, %v2189_v57  ;;  %v2446_v42 = vsel %vm2118_vm5, %v10914_v18, 0.0 }
 0x2a2   : > { %v1945_v22 = vpop.f32.mrf.mxu3  ;;  %9217 = vrcp.f32 %v2540_v30  ;;  %v2447_v47 = vadd.f32 %v2446_v42, %v2445_v39  ;;  %v10934_v39 = vpop.permute.xlu0 %1330 }
 0x2a3   : > { %v2277_v33 = vsub.f32 %v2100_v29, %v2190_v6  ;;  %v2278_v58 = vsub.f32 %v2101_v37, %v2190_v6  ;;  %v2103_v59 = vsel %vm14050_vm12, %v1945_v22, -1e+30  ;;  %8426 = vmatmul.msk.f32.gmra.mxu0 %vm2118_vm5, %v2576_v25  ;;  %14344 = vst [vmem:[#allocation80_spill] sm:$0xff] %v10934_v39  ;;  %vm14055_vm12 = vcmp.gt.f32.partialorder %v10934_v39, 0.0 }
 0x2a4   : > { %v2192_v50 = vsel %vm2118_vm5, %v2103_v59, -inf  ;;  %v2448_v9 = vrot.slane %v2447_v47, 4 }
 0x2a5   : > { %v2323_v14 = vmul.f32 1.442695, %v2277_v33  ;;  %v2325_v45 = vmul.f32 1.442695, %v2278_v58  ;;  %v2193_v12 = vmax.f32 %v2191_v7, %v2192_v50  ;;  %v10941_v50 = vpop.permute.xlu1 %1336 }
 0x2a6   : > { %v2449_v32 = vadd.f32 %v2448_v9, %v2447_v47  ;;  %14345 = vst [vmem:[#allocation81_spill] sm:$0xff] %v10941_v50  ;;  %vm14054_vm3 = vcmp.gt.f32.partialorder %v10941_v50, 0.0 }
 0x2a7   : > { %9219 = vpow2.f32 %v2323_v14  ;;  %v2194_v28 = vrot.slane %v2193_v12, 4 }
 0x2a8   : > { %v9218_v29 = vpop.eup %9217  ;;  %9221 = vpow2.f32 %v2325_v45  ;;  %v2450_v37 = vrot.slane %v2449_v32, 2 }
 0x2a9   : > { %v2195_v57 = vmax.f32 %v2193_v12, %v2194_v28  ;;  %v2577_v30 = vmul.f32 %v9218_v29, %v10888_v60 }
 0x2aa   : > { %v1948_v0 = vpop.f32.mrf.mxu3  ;;  %v2451_v13 = vadd.f32 %v2450_v37, %v2449_v32 }
 0x2ab   : > { %v2196_v6 = vrot.slane %v2195_v57, 2  ;;  %8427 = vmatmul.msk.f32.gmra.mxu0 %vm2118_vm5, %v2577_v30  ;;  %v2104_v45 = vsel %vm14055_vm12, %v1948_v0, -1e+30 }
 0x2ac   : > { %v2452_v42 = vrot.slane %v2451_v13, 1 }
 0x2ad   : > { %v9220_v22 = vpop.eup %9219  ;;  %v2197_v33 = vmax.f32 %v2195_v57, %v2196_v6  ;;  %v2578_v6 = vmul.f32 %v9218_v29, %v10883_v19 }
 0x2ae   : > { %v9222_v58 = vpop.eup %9221  ;;  %v2453_v47 = vadd.f32 %v2452_v42, %v2451_v13  ;;  %v10944_v60 = vmul.f32 %v9220_v22, %v10885_v8  ;;  %v2200_v42 = vsel %vm2118_vm5, %v2104_v45, -inf }
 0x2af   : > { %v10939_v25 = vmul.f32 %v9222_v58, %v10891_v56  ;;  %v2198_v7 = vrot.slane %v2197_v33, 1 }
 0x2b0   : > { %v2541_v9 = vmax.f32 %v2453_v47, 1e-20  ;;  %v2454_v12 = vsel %vm2118_vm5, %v10944_v60, 0.0 }
 0x2b1   : > { %v2199_v14 = vmax.f32 %v2197_v33, %v2198_v7  ;;  %v2455_v32 = vsel %vm2118_vm5, %v10939_v25, 0.0 }
 0x2b2   : > { %v1951_v28 = vpop.f32.mrf.mxu3  ;;  %9223 = vrcp.f32 %v2541_v9  ;;  %v2456_v37 = vadd.f32 %v2455_v32, %v2454_v12 }
 0x2b3   : > { %v2279_v57 = vsub.f32 %v2102_v52, %v2199_v14  ;;  %v2280_v30 = vsub.f32 %v2103_v59, %v2199_v14  ;;  %v2105_v13 = vsel %vm14054_vm3, %v1951_v28, -1e+30  ;;  %8428 = vmatmul.msk.f32.gmra.mxu0 %vm2118_vm5, %v2578_v6  ;;  %v10960_v28 = vpop.permute.xlu2 %1343 }
 0x2b4   : > { %v2201_v0 = vsel %vm2118_vm5, %v2105_v13, -inf  ;;  %v2457_v22 = vrot.slane %v2456_v37, 4  ;;  %14346 = vst [vmem:[#allocation82_spill] sm:$0xff] %v10960_v28  ;;  %vm14063_vm3 = vcmp.gt.f32.partialorder %v10960_v28, 0.0 }
 0x2b5   : > { %v2327_v33 = vmul.f32 1.442695, %v2279_v57  ;;  %v2329_v58 = vmul.f32 1.442695, %v2280_v30  ;;  %v2202_v47 = vmax.f32 %v2200_v42, %v2201_v0  ;;  %v10967_v0 = vpop.permute.xlu1 %1349 }
 0x2b6   : > { %v2458_v7 = vadd.f32 %v2457_v22, %v2456_v37  ;;  %14347 = vst [vmem:[#allocation83_spill] sm:$0xff] %v10967_v0  ;;  %vm14062_vm12 = vcmp.gt.f32.partialorder %v10967_v0, 0.0 }
 0x2b7   : > { %9225 = vpow2.f32 %v2327_v33  ;;  %v2203_v9 = vrot.slane %v2202_v47, 4 }
 0x2b8   : > { %v9224_v52 = vpop.eup %9223  ;;  %9227 = vpow2.f32 %v2329_v58  ;;  %v2459_v59 = vrot.slane %v2458_v7, 2 }
 0x2b9   : > { %v2204_v14 = vmax.f32 %v2202_v47, %v2203_v9  ;;  %v2579_v12 = vmul.f32 %v9224_v52, %v10917_v53 }
 0x2ba   : > { %v1954_v19 = vpop.f32.mrf.mxu3  ;;  %v2460_v29 = vadd.f32 %v2459_v59, %v2458_v7 }
 0x2bb   : > { %v2205_v32 = vrot.slane %v2204_v14, 2  ;;  %8429 = vmatmul.msk.f32.gmra.mxu0 %vm2118_vm5, %v2579_v12  ;;  %v2106_v47 = vsel %vm14063_vm3, %v1954_v19, -1e+30  ;;  %v10986_v8 = vpop.permute.xlu2 %1356 }
 0x2bc   : > { %v2461_v56 = vrot.slane %v2460_v29, 1  ;;  %v2209_v19 = vsel %vm2118_vm5, %v2106_v47, -inf  ;;  %14348 = vst [vmem:[#allocation84_spill] sm:$0xff] %v10986_v8 }
 0x2bd   : > { %v9226_v57 = vpop.eup %9225  ;;  %v2206_v30 = vmax.f32 %v2204_v14, %v2205_v32  ;;  %v2580_v32 = vmul.f32 %v9224_v52, %v10914_v18 }
 0x2be   : > { %v9228_v6 = vpop.eup %9227  ;;  %v2462_v37 = vadd.f32 %v2461_v56, %v2460_v29  ;;  %v10970_v22 = vmul.f32 %v9226_v57, %v10908_v2 }
 0x2bf   : > { %v10965_v42 = vmul.f32 %v9228_v6, %v10911_v20  ;;  %v2207_v53 = vrot.slane %v2206_v30, 1 }
 0x2c0   : > { %v2542_v33 = vmax.f32 %v2462_v37, 1e-20  ;;  %v2463_v7 = vsel %vm2118_vm5, %v10970_v22, 0.0 }
 0x2c1   : > { %v2208_v58 = vmax.f32 %v2206_v30, %v2207_v53  ;;  %v2464_v56 = vsel %vm2118_vm5, %v10965_v42, 0.0 }
 0x2c2   : > { %v1957_v9 = vpop.f32.mrf.mxu3  ;;  %9229 = vrcp.f32 %v2542_v33  ;;  %v2465_v59 = vadd.f32 %v2464_v56, %v2463_v7 }
 0x2c3   : > { %v2281_v14 = vsub.f32 %v2104_v45, %v2208_v58  ;;  %v2282_v12 = vsub.f32 %v2105_v13, %v2208_v58  ;;  %v2107_v29 = vsel %vm14062_vm12, %v1957_v9, -1e+30  ;;  %8430 = vmatmul.msk.f32.gmra.mxu0 %vm2118_vm5, %v2580_v32  ;;  %vm14065_vm12 = vcmp.gt.f32.partialorder %v10986_v8, 0.0 }
 0x2c4   : > { %v2210_v57 = vsel %vm2118_vm5, %v2107_v29, -inf  ;;  %v2466_v30 = vrot.slane %v2465_v59, 4 }
 0x2c5   : > { %v2331_v6 = vmul.f32 1.442695, %v2281_v14  ;;  %v2333_v37 = vmul.f32 1.442695, %v2282_v12  ;;  %v2211_v53 = vmax.f32 %v2209_v19, %v2210_v57  ;;  %v10989_v12 = vpop.permute.xlu0 %1362 }
 0x2c6   : > { %v2467_v20 = vadd.f32 %v2466_v30, %v2465_v59  ;;  %14349 = vst [vmem:[#allocation85_spill] sm:$0xff] %v10989_v12  ;;  %vm14064_vm3 = vcmp.gt.f32.partialorder %v10989_v12, 0.0 }
 0x2c7   : > { %9231 = vpow2.f32 %v2331_v6  ;;  %v2212_v33 = vrot.slane %v2211_v53, 4 }
 0x2c8   : > { %v9230_v45 = vpop.eup %9229  ;;  %9233 = vpow2.f32 %v2333_v37  ;;  %v2468_v13 = vrot.slane %v2467_v20, 2 }
 0x2c9   : > { %v2213_v58 = vmax.f32 %v2211_v53, %v2212_v33  ;;  %v2581_v7 = vmul.f32 %v9230_v45, %v10944_v60  ;;  %v2582_v53 = vmul.f32 %v9230_v45, %v10939_v25 }
 0x2ca   : > { %v1960_v18 = vpop.f32.mrf.mxu3  ;;  %v2469_v52 = vadd.f32 %v2468_v13, %v2467_v20 }
 0x2cb   : > { %v2214_v56 = vrot.slane %v2213_v58, 2  ;;  %8431 = vmatmul.msk.f32.gmra.mxu0 %vm2118_vm5, %v2581_v7  ;;  %v2108_v6 = vsel %vm14065_vm12, %v1960_v18, -1e+30 }
 0x2cc   : > { %v2470_v9 = vrot.slane %v2469_v52, 1 }
 0x2cd   : > { %v9232_v2 = vpop.eup %9231  ;;  %v2215_v14 = vmax.f32 %v2213_v58, %v2214_v56  ;;  %v2218_v56 = vsel %vm2118_vm5, %v2108_v6, -inf }
 0x2ce   : > { %v9234_v59 = vpop.eup %9233  ;;  %v2471_v32 = vadd.f32 %v2470_v9, %v2469_v52  ;;  %v10995_v60 = vmul.f32 %v9232_v2, %v10934_v39 }
 0x2cf   : > { %v10992_v19 = vmul.f32 %v9234_v59, %v10941_v50  ;;  %v2216_v57 = vrot.slane %v2215_v14, 1 }
 0x2d0   : > { %v2543_v20 = vmax.f32 %v2471_v32, 1e-20  ;;  %v2472_v33 = vsel %vm2118_vm5, %v10995_v60, 0.0 }
 0x2d1   : > { %v2217_v30 = vmax.f32 %v2215_v14, %v2216_v57  ;;  %v2473_v2 = vsel %vm2118_vm5, %v10992_v19, 0.0 }
 0x2d2   : > { %v1963_v37 = vpop.f32.mrf.mxu3  ;;  %9235 = vrcp.f32 %v2543_v20  ;;  %v2474_v52 = vadd.f32 %v2473_v2, %v2472_v33  ;;  %v11014_v2 = vpop.permute.xlu1 %1369 }
 0x2d3   : > { %v2283_v13 = vsub.f32 %v2106_v47, %v2217_v30  ;;  %v2284_v58 = vsub.f32 %v2107_v29, %v2217_v30  ;;  %v2109_v7 = vsel %vm14064_vm3, %v1963_v37, -1e+30  ;;  %8432 = vmatmul.msk.f32.gmra.mxu0 %vm2118_vm5, %v2582_v53  ;;  %14350 = vst [vmem:[#allocation86_spill] sm:$0xff] %v11014_v2  ;;  %vm14075_vm3 = vcmp.gt.f32.partialorder %v11014_v2, 0.0 }
 0x2d4   : > { %v2219_v18 = vsel %vm2118_vm5, %v2109_v7, -inf  ;;  %v2475_v45 = vrot.slane %v2474_v52, 4 }
 0x2d5   : > { %v2335_v9 = vmul.f32 1.442695, %v2283_v13  ;;  %v2337_v14 = vmul.f32 1.442695, %v2284_v58  ;;  %v2220_v25 = vmax.f32 %v2218_v56, %v2219_v18 }
 0x2d6   : > { %v2476_v29 = vadd.f32 %v2475_v45, %v2474_v52  ;;  %v11024_v52 = vpop.permute.xlu2 %1375 }
 0x2d7   : > { %9237 = vpow2.f32 %v2335_v9  ;;  %v2221_v59 = vrot.slane %v2220_v25, 4  ;;  %14351 = vst [vmem:[#allocation87_spill] sm:$0xff] %v11024_v52  ;;  %vm14074_vm12 = vcmp.gt.f32.partialorder %v11024_v52, 0.0 }
 0x2d8   : > { %v9236_v32 = vpop.eup %9235  ;;  %9239 = vpow2.f32 %v2337_v14  ;;  %v11011_v47 = vpop.f32.mrf.mxu0  ;;  %v2477_v37 = vrot.slane %v2476_v29, 2 }
 0x2d9   : > { %v2222_v57 = vmax.f32 %v2220_v25, %v2221_v59  ;;  %v2583_v20 = vmul.f32 %v9236_v32, %v10970_v22 }
 0x2da   : > { %v1966_v30 = vpop.f32.mrf.mxu3  ;;  %v2478_v13 = vadd.f32 %v2477_v37, %v2476_v29 }
 0x2db   : > { %v2223_v33 = vrot.slane %v2222_v57, 2  ;;  %8433 = vmatmul.msk.f32.gmra.mxu0 %vm2118_vm5, %v2583_v20  ;;  %v2110_v29 = vsel %vm14075_vm3, %v1966_v30, -1e+30  ;;  %v2584_v20 = vmul.f32 %v9236_v32, %v10965_v42 }
 0x2dc   : > { %v2479_v18 = vrot.slane %v2478_v13, 1  ;;  %v2227_v30 = vsel %vm2118_vm5, %v2110_v29, -inf }
 0x2dd   : > { %v9238_v58 = vpop.eup %9237  ;;  %v2224_v56 = vmax.f32 %v2222_v57, %v2223_v33 }
 0x2de   : > { %v9240_v53 = vpop.eup %9239  ;;  %v11022_v22 = vmul.f32 %v9238_v58, %v10960_v28  ;;  %v2480_v45 = vadd.f32 %v2479_v18, %v2478_v13 }
 0x2df   : > { %v11018_v9 = vmul.f32 %v9240_v53, %v10967_v0  ;;  %v2225_v14 = vrot.slane %v2224_v56, 1 }
 0x2e0   : > { %v11026_v25 = vpop.f32.mrf.mxu0  ;;  %v2544_v37 = vmax.f32 %v2480_v45, 1e-20  ;;  %v2481_v58 = vsel %vm2118_vm5, %v11022_v22, 0.0 }
 0x2e1   : > { %v2226_v59 = vmax.f32 %v2224_v56, %v2225_v14  ;;  %v2482_v0 = vsel %vm2118_vm5, %v11018_v9, 0.0 }
 0x2e2   : > { %v1969_v57 = vpop.f32.mrf.mxu3  ;;  %9241 = vrcp.f32 %v2544_v37 }
 0x2e3   : > { %v2285_v33 = vsub.f32 %v2108_v6, %v2226_v59  ;;  %v2286_v53 = vsub.f32 %v2109_v7, %v2226_v59  ;;  %v2111_v13 = vsel %vm14074_vm12, %v1969_v57, -1e+30  ;;  %8434 = vmatmul.msk.f32.gmra.mxu0 %vm2118_vm5, %v2584_v20  ;;  %v2483_v6 = vadd.f32 %v2482_v0, %v2481_v58  ;;  %v11045_v0 = vpop.permute.xlu1 %1382 }
 0x2e4   : > { %v2228_v42 = vsel %vm2118_vm5, %v2111_v13, -inf  ;;  %14352 = vst [vmem:[#allocation88_spill] sm:$0xff] %v11045_v0  ;;  %vm14089_vm12 = vcmp.gt.f32.partialorder %v11045_v0, 0.0 }
 0x2e5   : > { %v2339_v56 = vmul.f32 1.442695, %v2285_v33  ;;  %v2341_v18 = vmul.f32 1.442695, %v2286_v53  ;;  %v2229_v7 = vmax.f32 %v2227_v30, %v2228_v42  ;;  %v2484_v14 = vrot.slane %v2483_v6, 4 }
 0x2e7   : > { %9243 = vpow2.f32 %v2339_v56  ;;  %v2230_v45 = vrot.slane %v2229_v7, 4  ;;  %v2485_v57 = vadd.f32 %v2484_v14, %v2483_v6 }
 0x2e8   : > { %9245 = vpow2.f32 %v2341_v18  ;;  %v11041_v32 = vpop.f32.mrf.mxu0  ;;  %v9242_v59 = vpop.eup %9241 }
 0x2e9   : > { %v2231_v37 = vmax.f32 %v2229_v7, %v2230_v45  ;;  %v2585_v33 = vmul.f32 %v9242_v59, %v10995_v60  ;;  %v2486_v53 = vrot.slane %v2485_v57, 2  ;;  %v11050_v18 = vpop.permute.xlu2 %1388 }
 0x2ea   : > { %v1972_v28 = vpop.f32.mrf.mxu3  ;;  %14353 = vst [vmem:[#allocation89_spill] sm:$0xff] %v11050_v18  ;;  %vm14088_vm3 = vcmp.gt.f32.partialorder %v11050_v18, 0.0 }
 0x2eb   : > { %v2232_v50 = vrot.slane %v2231_v37, 2  ;;  %8435 = vmatmul.msk.f32.gmra.mxu0 %vm2118_vm5, %v2585_v33  ;;  %v2487_v58 = vadd.f32 %v2486_v53, %v2485_v57  ;;  %v2112_v45 = vsel %vm14089_vm12, %v1972_v28, -1e+30  ;;  %v2586_v53 = vmul.f32 %v9242_v59, %v10992_v19 }
 0x2ec   : > { %v2236_v28 = vsel %vm2118_vm5, %v2112_v45, -inf }
 0x2ed   : > { %v9244_v20 = vpop.eup %9243  ;;  %v2233_v30 = vmax.f32 %v2231_v37, %v2232_v50  ;;  %v2488_v60 = vrot.slane %v2487_v58, 1 }
 0x2ee   : > { %v9246_v39 = vpop.eup %9245  ;;  %v11053_v42 = vmul.f32 %v9244_v20, %v10986_v8  ;;  %v11073_v19 = vpop.permute.xlu0 %1395 }
 0x2ef   : > { %v11048_v56 = vmul.f32 %v9246_v39, %v10989_v12  ;;  %v2234_v14 = vrot.slane %v2233_v30, 1  ;;  %v2489_v57 = vadd.f32 %v2488_v60, %v2487_v58  ;;  %14354 = vst [vmem:[#allocation90_spill] sm:$0xff] %v11073_v19 }
 0x2f0   : > { %v11055_v6 = vpop.f32.mrf.mxu0  ;;  %v2490_v50 = vsel %vm2118_vm5, %v11053_v42, 0.0 }
 0x2f1   : > { %v2491_v7 = vsel %vm2118_vm5, %v11048_v56, 0.0  ;;  %v2235_v37 = vmax.f32 %v2233_v30, %v2234_v14  ;;  %v2545_v12 = vmax.f32 %v2489_v57, 1e-20 }
 0x2f2   : > { %v1975_v39 = vpop.f32.mrf.mxu3  ;;  %v2492_v8 = vadd.f32 %v2491_v7, %v2490_v50 }
 0x2f3   : > { %v2113_v33 = vsel %vm14088_vm3, %v1975_v39, -1e+30  ;;  %v2287_v48 = vsub.f32 %v2110_v29, %v2235_v37  ;;  %v2288_v1 = vsub.f32 %v2111_v13, %v2235_v37  ;;  %8436 = vmatmul.msk.f32.gmra.mxu0 %vm2118_vm5, %v2586_v53  ;;  %9247 = vrcp.f32 %v2545_v12  ;;  %v11077_v53 = vpop.permute.xlu1 %1401 }
 0x2f4   : > { %v2237_v20 = vsel %vm2118_vm5, %v2113_v33, -inf  ;;  %v2493_v60 = vrot.slane %v2492_v8, 4  ;;  %vm14099_vm3 = vcmp.gt.f32.partialorder %v11073_v19, 0.0  ;;  %14355 = vst [vmem:[#allocation91_spill] sm:$0xff] %v11077_v53  ;;  %vm14098_vm12 = vcmp.gt.f32.partialorder %v11077_v53, 0.0 }
 0x2f5   : > { %v2238_v58 = vmax.f32 %v2236_v28, %v2237_v20  ;;  %v2343_v17 = vmul.f32 1.442695, %v2287_v48  ;;  %v2345_v30 = vmul.f32 1.442695, %v2288_v1 }
 0x2f6   : > { %v2494_v39 = vadd.f32 %v2493_v60, %v2492_v8 }
 0x2f7   : > { %v2239_v14 = vrot.slane %v2238_v58, 4  ;;  %9249 = vpow2.f32 %v2343_v17 }
 0x2f8   : > { %v11071_v4 = vpop.f32.mrf.mxu0  ;;  %9251 = vpow2.f32 %v2345_v30  ;;  %v2495_v13 = vrot.slane %v2494_v39, 2 }
 0x2f9   : > { %v2240_v59 = vmax.f32 %v2238_v58, %v2239_v14  ;;  %v9248_v7 = vpop.eup %9247 }
 0x2fa   : > { %v1978_v29 = vpop.f32.mrf.mxu3  ;;  %v2496_v50 = vadd.f32 %v2495_v13, %v2494_v39  ;;  %v2587_v12 = vmul.f32 %v9248_v7, %v11022_v22 }
 0x2fb   : > { %v2241_v57 = vrot.slane %v2240_v59, 2  ;;  %v11081_v17 = vsel %vm14099_vm3, %v1978_v29, -1e+30 }
 0x2fc   : > { %v2497_v1 = vrot.slane %v2496_v50, 1  ;;  %8437 = vmatmul.msk.f32.gmra.mxu0 %vm2118_vm5, %v2587_v12  ;;  %v2245_v29 = vsel %vm2118_vm5, %v11081_v17, -inf }
 0x2fd   : > { %v2242_v48 = vmax.f32 %v2240_v59, %v2241_v57  ;;  %v9250_v37 = vpop.eup %9249 }
 0x2fe   : > { %v9252_v8 = vpop.eup %9251  ;;  %v2498_v58 = vadd.f32 %v2497_v1, %v2496_v50  ;;  %v11088_v22 = vmul.f32 %v9250_v37, %v11014_v2  ;;  %v2588_v37 = vmul.f32 %v9248_v7, %v11018_v9  ;;  %v11107_v7 = vpop.permute.xlu2 %1408 }
 0x2ff   : > { %v2243_v20 = vrot.slane %v2242_v48, 1  ;;  %v11091_v60 = vmul.f32 %v9252_v8, %v11024_v52  ;;  %14356 = vst [vmem:[#allocation92_spill] sm:$0xff] %v11107_v7 }
 0x300   : > { %v11084_v28 = vpop.f32.mrf.mxu0  ;;  %v2546_v39 = vmax.f32 %v2498_v58, 1e-20  ;;  %v2499_v57 = vsel %vm2118_vm5, %v11088_v22, 0.0 }
 0x301   : > { %v2244_v30 = vmax.f32 %v2242_v48, %v2243_v20  ;;  %v2500_v59 = vsel %vm2118_vm5, %v11091_v60, 0.0 }
 0x302   : > { %v1981_v14 = vpop.f32.mrf.mxu3  ;;  %9253 = vrcp.f32 %v2546_v39  ;;  %v2501_v58 = vadd.f32 %v2500_v59, %v2499_v57 }
 0x303   : > { %v2115_v13 = vsel %vm14098_vm12, %v1981_v14, -1e+30  ;;  %v2289_v50 = vsub.f32 %v2112_v45, %v2244_v30  ;;  %v2290_v12 = vsub.f32 %v2113_v33, %v2244_v30  ;;  %vm14119_vm12 = vcmp.gt.f32.partialorder %v11107_v7, 0.0 }
 0x304   : > { %v2246_v1 = vsel %vm2118_vm5, %v2115_v13, -inf  ;;  %8438 = vmatmul.msk.f32.gmra.mxu0 %vm2118_vm5, %v2588_v37  ;;  %v2502_v2 = vrot.slane %v2501_v58, 4 }
 0x305   : > { %v2247_v48 = vmax.f32 %v2245_v29, %v2246_v1  ;;  %v2347_v8 = vmul.f32 1.442695, %v2289_v50  ;;  %v2349_v20 = vmul.f32 1.442695, %v2290_v12 }
 0x306   : > { %v2503_v33 = vadd.f32 %v2502_v2, %v2501_v58  ;;  %v11116_v2 = vpop.permute.xlu1 %1414 }
 0x307   : > { %v2248_v52 = vrot.slane %v2247_v48, 4  ;;  %9255 = vpow2.f32 %v2347_v8  ;;  %14357 = vst [vmem:[#allocation93_spill] sm:$0xff] %v11116_v2  ;;  %vm14118_vm3 = vcmp.gt.f32.partialorder %v11116_v2, 0.0 }
 0x308   : > { %9257 = vpow2.f32 %v2349_v20  ;;  %v9254_v43 = vpop.eup %9253  ;;  %v11104_v63 = vpop.f32.mrf.mxu0  ;;  %v2504_v29 = vrot.slane %v2503_v33, 2 }
 0x309   : > { %v2249_v14 = vmax.f32 %v2247_v48, %v2248_v52  ;;  %v2589_v39 = vmul.f32 %v9254_v43, %v11053_v42 }
 0x30a   : > { %v1984_v45 = vpop.f32.mrf.mxu3  ;;  %v2505_v57 = vadd.f32 %v2504_v29, %v2503_v33 }
 0x30b   : > { %v2250_v30 = vrot.slane %v2249_v14, 2 }
 0x30c   : > { %8439 = vmatmul.msk.f32.gmra.mxu0 %vm2118_vm5, %v2589_v39  ;;  %v2506_v42 = vrot.slane %v2505_v57, 1  ;;  %v2116_v39 = vsel %vm14119_vm12, %v1984_v45, -1e+30 }
 0x30d   : > { %v2251_v9 = vmax.f32 %v2249_v14, %v2250_v30  ;;  %v9256_v59 = vpop.eup %9255 }
 0x30e   : > { %v9258_v50 = vpop.eup %9257  ;;  %v11111_v52 = vmul.f32 %v9256_v59, %v11045_v0  ;;  %v2507_v14 = vadd.f32 %v2506_v42, %v2505_v57  ;;  %v2254_v0 = vsel %vm2118_vm5, %v2116_v39, -inf }
 0x30f   : > { %v2252_v12 = vrot.slane %v2251_v9, 1  ;;  %v11114_v1 = vmul.f32 %v9258_v50, %v11050_v18  ;;  %v2590_v18 = vmul.f32 %v9254_v43, %v11048_v56 }
 0x310   : > { %v2508_v37 = vsel %vm2118_vm5, %v11111_v52, 0.0  ;;  %v11123_v20 = vpop.f32.mrf.mxu0 }
 0x311   : > { %v2253_v48 = vmax.f32 %v2251_v9, %v2252_v12  ;;  %v2509_v8 = vsel %vm2118_vm5, %v11114_v1, 0.0  ;;  %v2547_v9 = vmax.f32 %v2507_v14, 1e-20 }
 0x312   : > { %v1987_v58 = vpop.f32.mrf.mxu3  ;;  %v2510_v59 = vadd.f32 %v2509_v8, %v2508_v37 }
 0x313   : > { %v2291_v33 = vsub.f32 %v11081_v17, %v2253_v48  ;;  %v2292_v30 = vsub.f32 %v2115_v13, %v2253_v48  ;;  %v2117_v29 = vsel %vm14118_vm3, %v1987_v58, -1e+30  ;;  %9259 = vrcp.f32 %v2547_v9 }
 0x314   : > { %v2255_v57 = vsel %vm2118_vm5, %v2117_v29, -inf  ;;  %v2511_v17 = vrot.slane %v2510_v59, 4  ;;  %8440 = vmatmul.msk.f32.gmra.mxu0 %vm2118_vm5, %v2590_v18 }
 0x315   : > { %v2351_v50 = vmul.f32 1.442695, %v2291_v33  ;;  %v2353_v12 = vmul.f32 1.442695, %v2292_v30  ;;  %v2256_v13 = vmax.f32 %v2254_v0, %v2255_v57 }
 0x316   : > { %v2512_v45 = vadd.f32 %v2511_v17, %v2510_v59 }
 0x317   : > { %9261 = vpow2.f32 %v2351_v50  ;;  %v2257_v42 = vrot.slane %v2256_v13, 4 }
 0x318   : > { %9263 = vpow2.f32 %v2353_v12  ;;  %v11135_v48 = vpop.f32.mrf.mxu0  ;;  %v2513_v37 = vrot.slane %v2512_v45, 2 }
 0x319   : > { %v2258_v8 = vmax.f32 %v2256_v13, %v2257_v42  ;;  %v9260_v58 = vpop.eup %9259 }
 0x31a   : > { %v2514_v14 = vadd.f32 %v2513_v37, %v2512_v45  ;;  %v2591_v33 = vmul.f32 %v9260_v58, %v11088_v22 }
 0x31b   : > { %v2259_v56 = vrot.slane %v2258_v8, 2 }
 0x31c   : > { %v2515_v9 = vrot.slane %v2514_v14, 1  ;;  %8441 = vmatmul.msk.f32.gmra.mxu0 %vm2118_vm5, %v2591_v33 }
 0x31d   : > { %v9262_v43 = vpop.eup %9261  ;;  %v2260_v0 = vmax.f32 %v2258_v8, %v2259_v56  ;;  %v2592_v8 = vmul.f32 %v9260_v58, %v11091_v60 }
 0x31e   : > { %v9264_v30 = vpop.eup %9263  ;;  %v2387_v18 = vmul.f32 %v9262_v43, %v11073_v19  ;;  %v2516_v59 = vadd.f32 %v2515_v9, %v2514_v14  ;;  %v2813_v19 = vmul.f32 %v11084_v28, %v10502_v26 }
 0x31f   : > { %v2388_v50 = vmul.f32 %v9264_v30, %v11077_v53  ;;  %v2261_v57 = vrot.slane %v2260_v0, 1 }
 0x320   : > { %v2517_v17 = vsel %vm2118_vm5, %v2387_v18, 0.0  ;;  %v11143_v13 = vpop.f32.mrf.mxu0  ;;  %v2548_v45 = vmax.f32 %v2516_v59, 1e-20 }
 0x321   : > { %v2518_v12 = vsel %vm2118_vm5, %v2388_v50, 0.0  ;;  %v2262_v22 = vmax.f32 %v2260_v0, %v2261_v57 }
 0x322   : > { %v2519_v42 = vadd.f32 %v2518_v12, %v2517_v17  ;;  %9265 = vrcp.f32 %v2548_v45 }
 0x323   : > { %v2293_v40 = vsub.f32 %v2116_v39, %v2262_v22  ;;  %v2294_v30 = vsub.f32 %v2117_v29, %v2262_v22 }
 0x324   : > { %v2520_v37 = vrot.slane %v2519_v42, 4  ;;  %8442 = vmatmul.msk.f32.gmra.mxu0 %vm2118_vm5, %v2592_v8 }
 0x325   : > { %v2355_v33 = vmul.f32 1.442695, %v2293_v40  ;;  %v2357_v43 = vmul.f32 1.442695, %v2294_v30 }
 0x326   : > { %v2521_v56 = vadd.f32 %v2520_v37, %v2519_v42 }
 0x327   : > { %9267 = vpow2.f32 %v2355_v33 }
 0x328   : > { %v2522_v14 = vrot.slane %v2521_v56, 2  ;;  %v9266_v9 = vpop.eup %9265  ;;  %9269 = vpow2.f32 %v2357_v43  ;;  %v11147_v53 = vpop.f32.mrf.mxu0 }
 0x329   : > { %v2593_v0 = vmul.f32 %v9266_v9, %v11111_v52  ;;  %v2594_v52 = vmul.f32 %v9266_v9, %v11114_v1 }
 0x32a   : > { %v2523_v59 = vadd.f32 %v2522_v14, %v2521_v56 }
 0x32c   : > { %v2524_v12 = vrot.slane %v2523_v59, 1  ;;  %8443 = vmatmul.msk.f32.gmra.mxu0 %vm2118_vm5, %v2593_v0 }
 0x32d   : > { %v9268_v39 = vpop.eup %9267 }
 0x32e   : > { %v2525_v57 = vadd.f32 %v2524_v12, %v2523_v59  ;;  %v9270_v60 = vpop.eup %9269  ;;  %v2389_v40 = vmul.f32 %v9268_v39, %v11107_v7 }
 0x32f   : > { %v2390_v58 = vmul.f32 %v9270_v60, %v11116_v2 }
 0x330   : > { %v2549_v29 = vmax.f32 %v2525_v57, 1e-20  ;;  %v11153_v17 = vpop.f32.mrf.mxu0  ;;  %v2526_v45 = vsel %vm2118_vm5, %v2389_v40, 0.0 }
 0x331   : > { %v2527_v42 = vsel %vm2118_vm5, %v2390_v58, 0.0 }
 0x332   : > { %9271 = vrcp.f32 %v2549_v29  ;;  %v2528_v22 = vadd.f32 %v2527_v42, %v2526_v45 }
 0x334   : > { %v2529_v37 = vrot.slane %v2528_v22, 4  ;;  %8444 = vmatmul.msk.f32.gmra.mxu0 %vm2118_vm5, %v2594_v52 }
 0x336   : > { %v2530_v8 = vadd.f32 %v2529_v37, %v2528_v22 }
 0x338   : > { %v9272_v30 = vpop.eup %9271  ;;  %v11159_v56 = vpop.f32.mrf.mxu0  ;;  %v2531_v33 = vrot.slane %v2530_v8, 2 }
 0x339   : > { %v2595_v43 = vmul.f32 %v9272_v30, %v2387_v18  ;;  %v2596_v1 = vmul.f32 %v9272_v30, %v2388_v50  ;;  %v2970_v30 = vld [vmem:[%s10324_s5] sm:$0x1] }
 0x33a   : > { %v2532_v14 = vadd.f32 %v2531_v33, %v2530_v8  ;;  %v2971_v33 = vadd.f32 1e-05, %v2970_v30 }
 0x33c   : > { %v2533_v59 = vrot.slane %v2532_v14, 1  ;;  %8445 = vmatmul.msk.f32.gmra.mxu0 %vm2118_vm5, %v2595_v43  ;;  %v2808_v43 = vmul.f32 %v11011_v47, %v10491_v16  ;;  %vm2978_vm3 = vweird.f32 %v2971_v33 }
 0x33e   : > { %v2534_v0 = vadd.f32 %v2533_v59, %v2532_v14 }
 0x340   : > { %v11162_v12 = vpop.f32.mrf.mxu0  ;;  %v2550_v57 = vmax.f32 %v2534_v0, 1e-20 }
 0x342   : > { %9273 = vrcp.f32 %v2550_v57  ;;  %v2811_v57 = vmul.f32 %v11055_v6, %v10502_v26 }
 0x343   : > { %9275 = vrsqrt.f32 %v2971_v33 }
 0x344   : > { %8446 = vmatmul.msk.f32.gmra.mxu0 %vm2118_vm5, %v2596_v1  ;;  %v2810_v1 = vmul.f32 %v11041_v32, %v10491_v16  ;;  %v2812_v32 = vmul.f32 %v11071_v4, %v10491_v16  ;;  %v2814_v4 = vmul.f32 %v11104_v63, %v10491_v16  ;;  %v2817_v63 = vmul.f32 %v11143_v13, %v10502_v26 }
 0x348   : > { %v9274_v9 = vpop.eup %9273  ;;  %v11165_v39 = vpop.f32.mrf.mxu0 }
 0x349   : > { %v2597_v60 = vmul.f32 %v9274_v9, %v2389_v40  ;;  %v2598_v29 = vmul.f32 %v9274_v9, %v2390_v58  ;;  %v2809_v40 = vmul.f32 %v11026_v25, %v10502_v26  ;;  %v11180_v0 = vpop.eup %9275 }
 0x34a   : > { %vm2979_vm12 = vweird.f32 %v11180_v0 }
 0x34b   : > { %v2840_v58 = vadd.f32 %v2809_v40, %v2808_v43  ;;  %vm11199_vm15 = vmor %vm2978_vm3, %vm2979_vm12  ;;  %vm14202_vm12 = vcmask 1042434   ;;  %vm14205_vm3 = vcmask 1043459  }
 0x34c   : > { %8447 = vmatmul.msk.f32.gmra.mxu0 %vm2118_vm5, %v2597_v60  ;;  %v2973_v60 = vmul.f32 %v11180_v0, %v2971_v33 }
 0x34d   : > { %v2841_v59 = vrot.slane %v2840_v58, 4 }
 0x34e   : > { %v2974_v47 = vmul.f32 %v11180_v0, %v2973_v60 }
 0x34f   : > { %v2842_v9 = vadd.f32 %v2841_v59, %v2840_v58  ;;  %v2854_v59 = vadd.f32 %v2813_v19, %v2812_v32 }
 0x350   : > { %v11168_v18 = vpop.f32.mrf.mxu0  ;;  %v2975_v2 = vmul.f32 0.5, %v2974_v47 }
 0x351   : > { %v2843_v30 = vrot.slane %v2842_v9, 2  ;;  %v2855_v33 = vrot.slane %v2854_v59, 4 }
 0x352   : > { %v2976_v3 = vsub.f32 1.5, %v2975_v2 }
 0x353   : > { %v2844_v43 = vadd.f32 %v2843_v30, %v2842_v9  ;;  %v11196_v9 = vld [vmem:[%s10316_s0] ss:$0 sm:$0xff] }
 0x354   : > { %8448 = vmatmul.msk.f32.gmra.mxu0 %vm2118_vm5, %v2598_v29  ;;  %v2847_v29 = vadd.f32 %v2811_v57, %v2810_v1  ;;  %v2815_v57 = vmul.f32 %v11123_v20, %v10502_v26  ;;  %v2977_v60 = vmul.f32 %v11180_v0, %v2976_v3 }
 0x355   : > { %v2845_v27 = vrot.slane %v2844_v43, 1 }
 0x356   : > { %v2848_v40 = vrot.slane %v2847_v29, 4  ;;  %v2861_v30 = vadd.f32 %v2815_v57, %v2814_v4  ;;  %v2981_v3 = vsel %vm11199_vm15, %v11180_v0, %v2977_v60  ;;  %vm14203_vm15 = vcmask 1041409  }
 0x357   : > { %v2846_v1 = vadd.f32 %v2845_v27, %v2844_v43  ;;  %v2856_v43 = vadd.f32 %v2855_v33, %v2854_v59 }
 0x358   : > { %v11171_v45 = vpop.f32.mrf.mxu0  ;;  %v2849_v7 = vadd.f32 %v2848_v40, %v2847_v29  ;;  %v2862_v0 = vrot.slane %v2861_v30, 4 }
 0x359   : > { %v11207_v20 = vadd.f32 %v11196_v9, %v2846_v1 }
 0x35a   : > { %v2850_v58 = vrot.slane %v2849_v7, 2 }
 0x35c   : > { %v2851_v2 = vadd.f32 %v2850_v58, %v2849_v7 }
 0x35e   : > { %v2852_v7 = vrot.slane %v2851_v2, 1 }
 0x360   : > { %v11173_v42 = vpop.f32.mrf.mxu0 }
 0x368   : > { %v2766_v22 = vpop.f32.mrf.mxu0 }
 0x369   : > { %v2826_v27 = vmul.f32 %v2766_v22, %v10491_v16  ;;  %v2816_v22 = vmul.f32 %v11135_v48, %v10491_v16  ;;  %v2825_v48 = vmul.f32 %v11173_v42, %v10502_v26 }
 0x36b   : > { %v2868_v1 = vadd.f32 %v2817_v63, %v2816_v22 }
 0x370   : > { %v2769_v52 = vpop.f32.mrf.mxu0 }
 0x371   : > { %v2827_v29 = vmul.f32 %v2769_v52, %v10502_v26  ;;  %v2819_v52 = vmul.f32 %v11153_v17, %v10502_v26  ;;  %v2821_v17 = vmul.f32 %v11162_v12, %v10502_v26 }
 0x373   : > { %v2903_v32 = vadd.f32 %v2827_v29, %v2826_v27  ;;  %v2863_v27 = vadd.f32 %v2862_v0, %v2861_v30 }
 0x375   : > { %v2904_v12 = vrot.slane %v2903_v32, 4  ;;  %v2864_v49 = vrot.slane %v2863_v27, 2 }
 0x377   : > { %v2905_v22 = vadd.f32 %v2904_v12, %v2903_v32 }
 0x379   : > { %v2772_v50 = vpop.f32.mrf.mxu0 }
 0x37a   : > { %v2828_v58 = vmul.f32 %v2772_v50, %v10491_v16 }
 0x381   : > { %v2775_v37 = vpop.f32.mrf.mxu0 }
 0x382   : > { %v2829_v47 = vmul.f32 %v2775_v37, %v10502_v26  ;;  %v2818_v37 = vmul.f32 %v11147_v53, %v10491_v16  ;;  %v2820_v53 = vmul.f32 %v11159_v56, %v10491_v16  ;;  %v2869_v56 = vrot.slane %v2868_v1, 4 }
 0x384   : > { %v2910_v59 = vadd.f32 %v2829_v47, %v2828_v58  ;;  %v2882_v42 = vadd.f32 %v2821_v17, %v2820_v53 }
 0x386   : > { %v2911_v63 = vrot.slane %v2910_v59, 4 }
 0x388   : > { %v2912_v0 = vadd.f32 %v2911_v63, %v2910_v59  ;;  %v11251_v63 = vld [vmem:[%s10318_s22] ss:$0 sm:$0xff] }
 0x389   : > { %v2778_v8 = vpop.f32.mrf.mxu0 }
 0x38a   : > { %v2830_v13 = vmul.f32 %v2778_v8, %v10491_v16  ;;  %v2822_v8 = vmul.f32 %v11165_v39, %v10491_v16 }
 0x391   : > { %v2781_v14 = vpop.f32.mrf.mxu0 }
 0x392   : > { %v2831_v40 = vmul.f32 %v2781_v14, %v10502_v26  ;;  %v2823_v14 = vmul.f32 %v11168_v18, %v10502_v26  ;;  %v2857_v18 = vrot.slane %v2856_v43, 2 }
 0x394   : > { %v2917_v60 = vadd.f32 %v2831_v40, %v2830_v13  ;;  %v2889_v47 = vadd.f32 %v2823_v14, %v2822_v8  ;;  %v11244_v13 = vperm.slane %v2981_v3, 0  ;;  %v2870_v14 = vadd.f32 %v2869_v56, %v2868_v1 }
 0x396   : > { %v2918_v39 = vrot.slane %v2917_v60, 4  ;;  %v2890_v30 = vrot.slane %v2889_v47, 4 }
 0x398   : > { %v2919_v53 = vadd.f32 %v2918_v39, %v2917_v60 }
 0x399   : > { %v2784_v25 = vpop.f32.mrf.mxu0 }
 0x39a   : > { %v2832_v50 = vmul.f32 %v2784_v25, %v10491_v16  ;;  %v2824_v25 = vmul.f32 %v11171_v45, %v10491_v16  ;;  %v2853_v45 = vadd.f32 %v2852_v7, %v2851_v2  ;;  %v2920_v56 = vrot.slane %v2919_v53, 2 }
 0x39c   : > { %v2896_v40 = vadd.f32 %v2825_v48, %v2824_v25  ;;  %v2906_v25 = vrot.slane %v2905_v22, 2  ;;  %v2955_v2 = vadd.f32 %v11196_v9, %v2853_v45 }
 0x39e   : > { %v2897_v48 = vrot.slane %v2896_v40, 4 }
 0x3a0   : > { %v2898_v1 = vadd.f32 %v2897_v48, %v2896_v40 }
 0x3a1   : > { %v2787_v6 = vpop.f32.mrf.mxu0 }
 0x3a2   : > { %v2833_v57 = vmul.f32 %v2787_v6, %v10502_v26  ;;  %v2875_v6 = vadd.f32 %v2819_v52, %v2818_v37  ;;  %v11242_v52 = vld [vmem:[%s10322_s21] ss:$0 sm:$0xff] }
 0x3a3   : > { %v2984_v17 = vsub.f32 %v11207_v20, %v11242_v52  ;;  %v2871_v20 = vrot.slane %v2870_v14, 2 }
 0x3a4   : > { %v2924_v28 = vadd.f32 %v2833_v57, %v2832_v50  ;;  %v2876_v57 = vrot.slane %v2875_v6, 4  ;;  %v2858_v50 = vadd.f32 %v2857_v18, %v2856_v43  ;;  %v2865_v43 = vadd.f32 %v2864_v49, %v2863_v27 }
 0x3a5   : > { %v3001_v59 = vmul.f32 %v11244_v13, %v2984_v17  ;;  %v2872_v45 = vadd.f32 %v2871_v20, %v2870_v14 }
 0x3a6   : > { %v2925_v37 = vrot.slane %v2924_v28, 4  ;;  %v2877_v8 = vadd.f32 %v2876_v57, %v2875_v6  ;;  %v2859_v7 = vrot.slane %v2858_v50, 1  ;;  %v2907_v6 = vadd.f32 %v2906_v25, %v2905_v22  ;;  %v11256_v25 = vld [vmem:[%s10320_s17] ss:$0 sm:$0xff] }
 0x3a8   : > { %v2926_v32 = vadd.f32 %v2925_v37, %v2924_v28  ;;  %v2878_v60 = vrot.slane %v2877_v8, 2  ;;  %v2860_v57 = vadd.f32 %v2859_v7, %v2858_v50  ;;  %v2866_v37 = vrot.slane %v2865_v43, 1 }
 0x3a9   : > { %v2790_v19 = vpop.f32.mrf.mxu0  ;;  %v2908_v40 = vrot.slane %v2907_v6, 1 }
 0x3aa   : > { %v2834_v33 = vmul.f32 %v2790_v19, %v10491_v16  ;;  %v2927_v39 = vrot.slane %v2926_v32, 2  ;;  %v2867_v14 = vadd.f32 %v2866_v37, %v2865_v43 }
 0x3ac   : > { %v2928_v17 = vadd.f32 %v2927_v39, %v2926_v32  ;;  %v2957_v37 = vadd.f32 %v11196_v9, %v2867_v14 }
 0x3b1   : > { %v2793_v4 = vpop.f32.mrf.mxu0 }
 0x3b2   : > { %v2835_v29 = vmul.f32 %v2793_v4, %v10502_v26  ;;  %v2883_v4 = vrot.slane %v2882_v42, 4 }
 0x3b4   : > { %v2931_v58 = vadd.f32 %v2835_v29, %v2834_v33  ;;  %v2884_v18 = vadd.f32 %v2883_v4, %v2882_v42  ;;  %v2891_v33 = vadd.f32 %v2890_v30, %v2889_v47  ;;  %v2913_v29 = vrot.slane %v2912_v0, 2 }
 0x3b5   : > { %v3019_v47 = vmul.f32 %v11251_v63, %v3001_v59  ;;  %v2921_v4 = vadd.f32 %v2920_v56, %v2919_v53  ;;  %v2879_v30 = vadd.f32 %v2878_v60, %v2877_v8  ;;  %v2873_v59 = vrot.slane %v2872_v45, 1  ;;  %v8913_v56 = vld [vmem:[%s10397_s14 + $0x78] sm:$0xff] }
 0x3b6   : > { %v2932_v19 = vrot.slane %v2931_v58, 4  ;;  %v2885_v49 = vrot.slane %v2884_v18, 2  ;;  %v2892_v27 = vrot.slane %v2891_v33, 2  ;;  %v2914_v42 = vadd.f32 %v2913_v29, %v2912_v0  ;;  %v8921_v60 = vld [vmem:[%s10402_s15 + $0x78] sm:$0xff]  ;;  %3221 = vmatpush.bf16.msra.mxu1 %v8913_v56 }
 0x3b7   : > { %v2880_v39 = vrot.slane %v2879_v30, 1  ;;  %3302 = vmatpush.bf16.msrb.mxu2 %v8921_v60 }
 0x3b8   : > { %v2933_v12 = vadd.f32 %v2932_v19, %v2931_v58  ;;  %v2985_v58 = vsub.f32 %v2955_v2, %v11242_v52  ;;  %v2899_v19 = vrot.slane %v2898_v1, 2  ;;  %v2956_v2 = vadd.f32 %v11196_v9, %v2860_v57 }
 0x3b9   : > { %v2796_v3 = vpop.f32.mrf.mxu0  ;;  %v2886_v29 = vadd.f32 %v2885_v49, %v2884_v18  ;;  %v2893_v53 = vadd.f32 %v2892_v27, %v2891_v33  ;;  %v2915_v8 = vrot.slane %v2914_v42, 1  ;;  %v8912_v33 = vld [vmem:[%s10397_s14 + $0x70] sm:$0xff] }
 0x3ba   : > { %v2934_v28 = vrot.slane %v2933_v12, 2  ;;  %v3002_v50 = vmul.f32 %v11244_v13, %v2985_v58  ;;  %v2836_v0 = vmul.f32 %v2796_v3, %v10491_v16  ;;  %v2900_v32 = vadd.f32 %v2899_v19, %v2898_v1  ;;  %v8920_v1 = vld [vmem:[%s10402_s15 + $0x70] sm:$0xff]  ;;  %3222 = vmatpush.bf16.msra.mxu1 %v8912_v33 }
 0x3bb   : > { %v2929_v58 = vrot.slane %v2928_v17, 1  ;;  %v3037_v3 = vadd.f32 %v11256_v25, %v3019_v47  ;;  %v2986_v43 = vsub.f32 %v2956_v2, %v11242_v52  ;;  %v2887_v49 = vrot.slane %v2886_v29, 1  ;;  %3303 = vmatpush.bf16.msrb.mxu2 %v8920_v1 }
 0x3bc   : > { %v2935_v22 = vadd.f32 %v2934_v28, %v2933_v12  ;;  %v2922_v12 = vrot.slane %v2921_v4, 1  ;;  %v2909_v28 = vadd.f32 %v2908_v40, %v2907_v6  ;;  %v2894_v27 = vrot.slane %v2893_v53, 1 }
 0x3bd   : > { %v2916_v19 = vadd.f32 %v2915_v8, %v2914_v42  ;;  %v2874_v6 = vadd.f32 %v2873_v59, %v2872_v45  ;;  %v2901_v40 = vrot.slane %v2900_v32, 1  ;;  %v2930_v2 = vadd.f32 %v2929_v58, %v2928_v17  ;;  %v8911_v42 = vld [vmem:[%s10397_s14 + $0x68] sm:$0xff] }
 0x3be   : > { %v2936_v57 = vrot.slane %v2935_v22, 1  ;;  %v11271_v60 = vmax.f32 %v3037_v3, 0.0  ;;  %v3003_v14 = vmul.f32 %v11244_v13, %v2986_v43  ;;  %v8919_v45 = vld [vmem:[%s10402_s15 + $0x68] sm:$0xff]  ;;  %v2888_v8 = vadd.f32 %v2887_v49, %v2886_v29  ;;  %3223 = vmatpush.bf16.msra.mxu1 %v8911_v42 }
 0x3bf   : > { %v2964_v17 = vadd.f32 %v11196_v9, %v2916_v19  ;;  %v2902_v59 = vadd.f32 %v2901_v40, %v2900_v32  ;;  %v2966_v58 = vadd.f32 %v11196_v9, %v2930_v2  ;;  %3304 = vmatpush.bf16.msrb.mxu2 %v8919_v45  ;;  %v8918_v32 = vld [vmem:[%s10402_s15 + $0x60] sm:$0xff]  ;;  %v8909_v2 = vld [vmem:[%s10397_s14 + $0x58] sm:$0xff] }
 0x3c0   : > { %v2937_v35 = vadd.f32 %v2936_v57, %v2935_v22  ;;  %v2958_v22 = vadd.f32 %v11196_v9, %v2874_v6 }
 0x3c1   : > { %v2799_v48 = vpop.f32.mrf.mxu0  ;;  %v2962_v1 = vadd.f32 %v11196_v9, %v2902_v59  ;;  %v2996_v6 = vsub.f32 %v2966_v58, %v11242_v52 }
 0x3c2   : > { %v2837_v7 = vmul.f32 %v2799_v48, %v10502_v26  ;;  %v3020_v48 = vmul.f32 %v11251_v63, %v3002_v50  ;;  %v2963_v50 = vadd.f32 %v11196_v9, %v2909_v28  ;;  %v2967_v57 = vadd.f32 %v11196_v9, %v2937_v35 }
 0x3c3   : > { %v2988_v35 = vsub.f32 %v2958_v22, %v11242_v52  ;;  %3305 = vmatpush.bf16.msrb.mxu2 %v8918_v32 }
 0x3c4   : > { %v2938_v20 = vadd.f32 %v2837_v7, %v2836_v0  ;;  %v2923_v0 = vadd.f32 %v2922_v12, %v2921_v4  ;;  %v2881_v7 = vadd.f32 %v2880_v39, %v2879_v30  ;;  %v3038_v5 = vadd.f32 %v11256_v25, %v3020_v48  ;;  %v8910_v48 = vld [vmem:[%s10397_s14 + $0x60] sm:$0xff] }
 0x3c5   : > { %v2987_v4 = vsub.f32 %v2957_v37, %v11242_v52  ;;  %v2895_v30 = vadd.f32 %v2894_v27, %v2893_v53  ;;  %v2993_v28 = vsub.f32 %v2963_v50, %v11242_v52  ;;  %v3021_v53 = vmul.f32 %v11251_v63, %v3003_v14  ;;  %3224 = vmatpush.bf16.msra.mxu1 %v8910_v48  ;;  %v8917_v14 = vld [vmem:[%s10402_s15 + $0x58] sm:$0xff]  ;;  %v8916_v48 = vld [vmem:[%s10402_s15 + $0x50] sm:$0xff] }
 0x3c6   : > { %v2939_v18 = vrot.slane %v2938_v20, 4  ;;  %v2965_v12 = vadd.f32 %v11196_v9, %v2923_v0  ;;  %v2959_v39 = vadd.f32 %v11196_v9, %v2881_v7  ;;  %v11285_v29 = vmax.f32 %v3038_v5, 0.0 }
 0x3c7   : > { %v3004_v43 = vmul.f32 %v11244_v13, %v2987_v4  ;;  %v2961_v33 = vadd.f32 %v11196_v9, %v2895_v30  ;;  %v2994_v5 = vsub.f32 %v2964_v17, %v11242_v52  ;;  %v3010_v19 = vmul.f32 %v11244_v13, %v2993_v28  ;;  %3306 = vmatpush.bf16.msrb.mxu2 %v8917_v14 }
 0x3c8   : > { %v2940_v47 = vadd.f32 %v2939_v18, %v2938_v20  ;;  %v2960_v18 = vadd.f32 %v11196_v9, %v2888_v8  ;;  %v2995_v37 = vsub.f32 %v2965_v12, %v11242_v52  ;;  %v2989_v27 = vsub.f32 %v2959_v39, %v11242_v52 }
 0x3c9   : > { %v2802_v56 = vpop.f32.mrf.mxu0  ;;  %v2997_v40 = vsub.f32 %v2967_v57, %v11242_v52  ;;  %v2991_v4 = vsub.f32 %v2961_v33, %v11242_v52  ;;  %v3011_v8 = vmul.f32 %v11244_v13, %v2994_v5  ;;  %v3070_v30 = vpack.c.bf16 %v11285_v29, %v11285_v29  ;;  %3225 = vmatpush.bf16.msra.mxu1 %v8909_v2 }
 0x3ca   : > { %v2941_v61 = vrot.slane %v2940_v47, 2  ;;  %v2838_v7 = vmul.f32 %v2802_v56, %v10491_v16  ;;  %v2990_v45 = vsub.f32 %v2960_v18, %v11242_v52  ;;  %v2992_v16 = vsub.f32 %v2962_v1, %v11242_v52 }
 0x3cb   : > { %v3039_v22 = vadd.f32 %v11256_v25, %v3021_v53  ;;  %v3022_v59 = vmul.f32 %v11251_v63, %v3004_v43  ;;  %v3005_v12 = vmul.f32 %v11244_v13, %v2988_v35  ;;  %v3006_v39 = vmul.f32 %v11244_v13, %v2989_v27  ;;  %3307 = vmatpush.bf16.msrb.mxu2 %v8916_v48 }
 0x3cc   : > { %v2942_v20 = vadd.f32 %v2941_v61, %v2940_v47  ;;  %v3069_v61 = vpack.c.bf16 %v11271_v60, %v11271_v60  ;;  %v3028_v28 = vmul.f32 %v11251_v63, %v3010_v19  ;;  %v3014_v58 = vmul.f32 %v11244_v13, %v2997_v40  ;;  %v8907_v40 = vld [vmem:[%s10397_s14 + $0x48] sm:$0xff] }
 0x3cd   : > { %v3007_v32 = vmul.f32 %v11244_v13, %v2990_v45  ;;  %v3029_v53 = vmul.f32 %v11251_v63, %v3011_v8  ;;  %v3121_v43 = vunpack.c.l.b16 %v3070_v30  ;;  %v3009_v18 = vmul.f32 %v11244_v13, %v2992_v16 }
 0x3ce   : > { %v2943_v3 = vrot.slane %v2942_v20, 1  ;;  %v11308_v42 = vunpack.c.l.b16 %v3069_v61  ;;  %v3008_v35 = vmul.f32 %v11244_v13, %v2991_v4  ;;  %v11333_v1 = vmax.f32 %v3039_v22, 0.0 }
 0x3cf   : > { %v3040_v27 = vadd.f32 %v11256_v25, %v3022_v59  ;;  %v3046_v19 = vadd.f32 %v11256_v25, %v3028_v28  ;;  %v3025_v2 = vmul.f32 %v11251_v63, %v3007_v32  ;;  %v3136_v45 = vrot.slane %v3121_v43, 7 }
 0x3d0   : > { %v2944_v49 = vadd.f32 %v2943_v3, %v2942_v20  ;;  %v3013_v20 = vmul.f32 %v11244_v13, %v2996_v6  ;;  %v8908_v3 = vld [vmem:[%s10397_s14 + $0x50] sm:$0xff]  ;;  %v3027_v4 = vmul.f32 %v11251_v63, %v3009_v18  ;;  %v3026_v30 = vmul.f32 %v11251_v63, %v3008_v35  ;;  %v8560_v18 = vld [vmem:[%s10458_s11 + $0xf8] sm:$0xff] }
 0x3d1   : > { %v2805_v0 = vpop.f32.mrf.mxu0  ;;  %3226 = vmatpush.bf16.msra.mxu1 %v8908_v3  ;;  %v3071_v22 = vpack.c.bf16 %v11333_v1, %v11333_v1  ;;  %v11355_v59 = vmax.f32 %v3046_v19, 0.0  ;;  %v3043_v3 = vadd.f32 %v11256_v25, %v3025_v2 }
 0x3d2   : > { %v2968_v47 = vadd.f32 %v11196_v9, %v2944_v49  ;;  %v2839_v50 = vmul.f32 %v2805_v0, %v10502_v26  ;;  %v3012_v26 = vmul.f32 %v11244_v13, %v2995_v37  ;;  %v3023_v37 = vmul.f32 %v11251_v63, %v3005_v12  ;;  %v8915_v0 = vld [vmem:[%s10402_s15 + $0x48] sm:$0xff] }
 0x3d3   : > { %v3031_v49 = vmul.f32 %v11251_v63, %v3013_v20  ;;  %3308 = vmatpush.bf16.msrb.mxu2 %v8915_v0  ;;  %v8906_v20 = vld [vmem:[%s10397_s14 + $0x40] sm:$0xff]  ;;  %v3045_v32 = vadd.f32 %v11256_v25, %v3027_v4  ;;  %v11384_v0 = vmax.f32 %v3043_v3, 0.0 }
 0x3d4   : > { %v2998_v56 = vsub.f32 %v2968_v47, %v11242_v52  ;;  %v2945_v17 = vadd.f32 %v2839_v50, %v2838_v7  ;;  %v3030_v33 = vmul.f32 %v11251_v63, %v3012_v26  ;;  %v3024_v47 = vmul.f32 %v11251_v63, %v3006_v39  ;;  %v8914_v39 = vld [vmem:[%s10402_s15 + $0x40] sm:$0xff] }
 0x3d5   : > { %v3032_v7 = vmul.f32 %v11251_v63, %v3014_v58  ;;  %v3047_v50 = vadd.f32 %v11256_v25, %v3029_v53  ;;  %v3041_v26 = vadd.f32 %v11256_v25, %v3023_v37  ;;  %3227 = vmatpush.bf16.msra.mxu1 %v8907_v40  ;;  %v3122_v37 = vunpack.c.l.b16 %v3071_v22  ;;  %v8559_v40 = vld [vmem:[%s10458_s11 + $0xf0] sm:$0xff] }
 0x3d6   : > { %v2946_v57 = vrot.slane %v2945_v17, 4  ;;  %v3015_v61 = vmul.f32 %v11244_v13, %v2998_v56  ;;  %v3048_v16 = vadd.f32 %v11256_v25, %v3030_v33  ;;  %v3049_v56 = vadd.f32 %v11256_v25, %v3031_v49 }
 0x3d7   : > { %v3042_v28 = vadd.f32 %v11256_v25, %v3024_v47  ;;  %v3050_v58 = vadd.f32 %v11256_v25, %v3032_v7  ;;  %v11370_v33 = vmax.f32 %v3041_v26, 0.0  ;;  %3309 = vmatpush.bf16.msrb.mxu2 %v8914_v39  ;;  %v11392_v2 = vmax.f32 %v3045_v32, 0.0 }
 0x3d8   : > { %v2947_v5 = vadd.f32 %v2946_v57, %v2945_v17  ;;  %v3033_v14 = vmul.f32 %v11251_v63, %v3015_v61  ;;  %v11351_v17 = vmax.f32 %v3040_v27, 0.0  ;;  %v11361_v57 = vmax.f32 %v3047_v50, 0.0  ;;  %v9572_v50 = vld [vmem:[#allocation13] sm:$0xff] }
 0x3d9   : > { %v3044_v61 = vadd.f32 %v11256_v25, %v3026_v30  ;;  %v11367_v43 = vmax.f32 %v3048_v16, 0.0  ;;  %3228 = vmatpush.bf16.msra.mxu1 %v8906_v20  ;;  %v11377_v27 = vmax.f32 %v3042_v28, 0.0  ;;  %v11379_v19 = vmax.f32 %v3050_v58, 0.0  ;;  %v8558_v30 = vld [vmem:[%s10458_s11 + $0xe8] sm:$0xff]  ;;  %v8557_v20 = vld [vmem:[%s10458_s11 + $0xe0] sm:$0xff] }
 0x3da   : > { %v2948_v6 = vrot.slane %v2947_v5, 2  ;;  %v3051_v48 = vadd.f32 %v11256_v25, %v3033_v14  ;;  %v3072_v35 = vpack.c.bf16 %v11351_v17, %v11351_v17  ;;  %v3079_v7 = vpack.c.bf16 %v11361_v57, %v11361_v57 }
 0x3db   : > { %4311 = vmatpush.msra.mxu2 %v9572_v50  ;;  %v11395_v4 = vmax.f32 %v3044_v61, 0.0  ;;  %v3073_v16 = vpack.c.bf16 %v11370_v33, %v11370_v33  ;;  %v3139_v26 = vrot.slane %v3122_v37, 6  ;;  %v3082_v22 = vpack.c.bf16 %v11379_v19, %v11379_v19 }
 0x3dc   : > { %v2949_v8 = vadd.f32 %v2948_v6, %v2947_v5  ;;  %v11372_v5 = vmax.f32 %v3049_v56, 0.0  ;;  %v3078_v6 = vpack.c.bf16 %v11355_v59, %v11355_v59  ;;  %v11386_v47 = vmax.f32 %v3051_v48, 0.0 }
 0x3dd   : > { %3575 = vmatpush.msrb.mxu1 %v8560_v18  ;;  %14360 = vst [vmem:[#allocation94_spill] sm:$0xff] %v11395_v4  ;;  %v3075_v39 = vpack.c.bf16 %v11384_v0, %v11384_v0  ;;  %v3130_v58 = vunpack.c.l.b16 %v3079_v7  ;;  %v3076_v3 = vpack.c.bf16 %v11395_v4, %v11395_v4  ;;  %v3077_v48 = vpack.c.bf16 %v11392_v2, %v11392_v2 }
 0x3de   : > { %v2950_v12 = vrot.slane %v2949_v8, 1  ;;  %v3083_v28 = vpack.c.bf16 %v11386_v47, %v11386_v47  ;;  %v3124_v61 = vunpack.c.l.b16 %v3073_v16 }
 0x3df   : > { %3576 = vmatpush.msrb.mxu1 %v8559_v40  ;;  %v3126_v7 = vunpack.c.l.b16 %v3075_v39  ;;  %v3127_v16 = vunpack.c.l.b16 %v3076_v3 }
 0x3e0   : > { %v2951_v53 = vadd.f32 %v2950_v12, %v2949_v8  ;;  %v3080_v8 = vpack.c.bf16 %v11367_v43, %v11367_v43  ;;  %v3129_v12 = vunpack.c.l.b16 %v3078_v6  ;;  %v3133_v6 = vunpack.c.l.b16 %v3082_v22 }
 0x3e1   : > { %3577 = vmatpush.msrb.mxu1 %v8558_v30  ;;  %v3134_v50 = vunpack.c.l.b16 %v3083_v28  ;;  %v3159_v30 = vrot.slane %v3130_v58, 6  ;;  %v3145_v4 = vrot.slane %v3124_v61, 4 }
 0x3e2   : > { %v2969_v49 = vadd.f32 %v11196_v9, %v2951_v53  ;;  %v3138_v9 = vsel %vm14203_vm15, %v3136_v45, %v11308_v42  ;;  %v3081_v42 = vpack.c.bf16 %v11372_v5, %v11372_v5  ;;  %v3123_v45 = vunpack.c.l.b16 %v3072_v35  ;;  %v8556_v53 = vld [vmem:[%s10458_s11 + $0xd8] sm:$0xff] }
 0x3e3   : > { %v3131_v32 = vunpack.c.l.b16 %v3080_v8  ;;  %3578 = vmatpush.msrb.mxu1 %v8557_v20  ;;  %v3157_v40 = vrot.slane %v3129_v12, 7  ;;  %v3151_v12 = vrot.slane %v3126_v7, 2  ;;  %v3167_v28 = vrot.slane %v3134_v50, 2  ;;  %v8551_v7 = vld [vmem:[%s10458_s11 + $0xb0] sm:$0xff]  ;;  %v8550_v50 = vld [vmem:[%s10458_s11 + $0xa8] sm:$0xff] }
 0x3e4   : > { %v2999_v14 = vsub.f32 %v2969_v49, %v11242_v52  ;;  %v3074_v52 = vpack.c.bf16 %v11377_v27, %v11377_v27  ;;  %v3132_v18 = vunpack.c.l.b16 %v3081_v42  ;;  %v3142_v35 = vrot.slane %v3123_v45, 5 }
 0x3e5   : > { %3579 = vmatpush.msrb.mxu1 %v8556_v53  ;;  %v3128_v42 = vunpack.c.l.b16 %v3077_v48  ;;  %v3161_v45 = vrot.slane %v3131_v32, 5 }
 0x3e6   : > { %v3016_v56 = vmul.f32 %v11244_v13, %v2999_v14  ;;  %v3125_v49 = vunpack.c.l.b16 %v3074_v52  ;;  %v3141_v14 = vsel %vm14202_vm12, %v3139_v26, %v3138_v9  ;;  %v3165_v26 = vrot.slane %v3133_v6, 3 }
 0x3e7   : > { %v3144_v20 = vsel %vm14205_vm3, %v3142_v35, %v3141_v14  ;;  %v3158_v9 = vsel %vm14203_vm15, %v3157_v40, %v3128_v42  ;;  %v8553_v40 = vld [vmem:[%s10458_s11 + $0xc0] sm:$0xff]  ;;  %v8546_v42 = vld [vmem:[%s10458_s11 + $0x88] sm:$0xff] }
 0x3e8   : > { %v3034_v13 = vmul.f32 %v11251_v63, %v3016_v56  ;;  %v8555_v63 = vld [vmem:[%s10458_s11 + $0xd0] sm:$0xff]  ;;  %v8554_v56 = vld [vmem:[%s10458_s11 + $0xc8] sm:$0xff]  ;;  %v3148_v22 = vrot.slane %v3125_v49, 3  ;;  %v3160_v39 = vsel %vm14202_vm12, %v3159_v30, %v3158_v9  ;;  %v3147_v48 = vsel %vm14165_vm7, %v3145_v4, %v3144_v20  ;;  %v8549_v14 = vld [vmem:[%s10458_s11 + $0xa0] sm:$0xff] }
 0x3e9   : > { %3580 = vmatpush.msrb.mxu1 %v8555_v63  ;;  %v3162_v3 = vsel %vm14205_vm3, %v3161_v45, %v3160_v39  ;;  %v8552_v63 = vld [vmem:[%s10458_s11 + $0xb8] sm:$0xff]  ;;  %v8545_v45 = vld [vmem:[%s10458_s11 + $0x80] sm:$0xff] }
 0x3ea   : > { %v3052_v37 = vadd.f32 %v11256_v25, %v3034_v13  ;;  %v3163_v25 = vrot.slane %v3132_v18, 4  ;;  %v3154_v13 = vrot.slane %v3127_v16, 1  ;;  %v3150_v53 = vsel %vm14164_vm0, %v3148_v22, %v3147_v48  ;;  %v8548_v30 = vld [vmem:[%s10458_s11 + $0x98] sm:$0xff]  ;;  %v8547_v16 = vld [vmem:[%s10458_s11 + $0x90] sm:$0xff]  ;;  %v9164_v20 = vld [vmem:[%s10445_s3 + $0x1] ss:$0 sm:$0xff] }
 0x3eb   : > { %3581 = vmatpush.msrb.mxu1 %v8554_v56  ;;  %v3153_v35 = vsel %vm14135_vm11, %v3151_v12, %v3150_v53  ;;  %v11452_v22 = vld [vmem:[%s10310_s29 + $0x1] ss:$0 sm:$0xff] }
 0x3ec   : > { %v11423_v8 = vmax.f32 %v3052_v37, 0.0  ;;  %v3164_v32 = vsel %vm14165_vm7, %v3163_v25, %v3162_v3  ;;  %v3156_v49 = vsel %vm14134_vm8, %v3154_v13, %v3153_v35  ;;  %v9151_v25 = vld [vmem:[%s10351_s20 + $0x1] ss:$0 sm:$0xff]  ;;  %v3399_v53 = vmul.f32 %v11452_v22, %v10498_v23 }
 0x3ed   : > { %v3166_v61 = vsel %vm14164_vm0, %v3165_v26, %v3164_v32  ;;  %3582 = vmatpush.msrb.mxu1 %v8553_v40 }
 0x3ee   : > { %v3084_v52 = vpack.c.bf16 %v11423_v8, %v11423_v8  ;;  %v3168_v37 = vsel %vm14135_vm11, %v3167_v28, %v3166_v61 }
 0x3ef   : > { %3583 = vmatpush.msrb.mxu1 %v8552_v63 }
 0x3f0   : > { %v3135_v58 = vunpack.c.l.b16 %v3084_v52 }
 0x3f1   : > { %3584 = vmatpush.msrb.mxu1 %v8551_v7 }
 0x3f2   : > { %v3169_v18 = vrot.slane %v3135_v58, 1  ;;  %v3398_v58 = vmul.f32 %v11452_v22, %v10482_v10 }
 0x3f3   : > { %3585 = vmatpush.msrb.mxu1 %v8550_v50 }
 0x3f4   : > { %v3170_v4 = vsel %vm14134_vm8, %v3169_v18, %v3168_v37 }
 0x3f5   : > { %v3171_v6 = vpack.c.b16 %v3170_v4, %v3156_v49  ;;  %3586 = vmatpush.msrb.mxu1 %v8549_v14  ;;  %v3408_v14 = vmul.f32 %v11452_v22, %v10550_v36 }
 0x3f7   : > { %3229 = vmatmul.bf16.vlgmr.msra.gmra.mxu1 %v3171_v6  ;;  %3310 = vmatmul.bf16.vlgmr.msrb.gmra.mxu2 %v3171_v6 }
 0x3f8   : > { %3587 = vmatpush.msrb.mxu1 %v8548_v30  ;;  %v3400_v30 = vmul.f32 %v11452_v22, %v10505_v31 }
 0x3fa   : > { %3588 = vmatpush.msrb.mxu1 %v8547_v16  ;;  %v3410_v16 = vmul.f32 %v11452_v22, %v10566_v55 }
 0x3fc   : > { %3589 = vmatpush.msrb.mxu1 %v8546_v42 }
 0x3fe   : > { %3590 = vmatpush.msrb.mxu1 %v8545_v45  ;;  %v3409_v45 = vmul.f32 %v11452_v22, %v10556_v44 }
 0x474   : > { %v3230_v56 = vpop.f32.mrf.mxu1 }
 0x475   : > { %v11456_v12 = vadd.f32 %v9151_v25, %v3230_v56 }
 0x47a   : > { %v3311_v52 = vpop.f32.mrf.mxu2 }
 0x47b   : > { %v11454_v9 = vadd.f32 %v9164_v20, %v3311_v52 }
 0x47c   : > { %v3232_v26 = vpop.f32.mrf.mxu1 }
 0x47d   : > { %v11458_v39 = vadd.f32 %v9151_v25, %v3232_v26  ;;  %v3332_v28 = vperm.slane %v11454_v9, 0  ;;  %v3318_v48 = vrot.slane %v11454_v9, 1  ;;  %v3322_v18 = vrot.slane %v11454_v9, 5 }
 0x47e   : > { %v3323_v35 = vrot.slane %v11454_v9, 6 }
 0x47f   : > { %v3364_v13 = vadd.f32 %v3332_v28, %v11456_v12  ;;  %v3365_v3 = vadd.f32 %v3332_v28, %v11458_v39  ;;  %v3333_v49 = vperm.slane %v3318_v48, 0  ;;  %v3337_v40 = vperm.slane %v3322_v18, 0 }
 0x480   : > { %v3338_v63 = vperm.slane %v3323_v35, 0  ;;  %v3319_v18 = vrot.slane %v11454_v9, 2  ;;  %v3401_v35 = vmul.f32 %v11452_v22, %v10510_v38  ;;  %v14364_v38 = vld [vmem:[#allocation59_spill] sm:$0xff] }
 0x481   : > { %v3430_v32 = vadd.f32 %v3398_v58, %v3364_v13  ;;  %v3431_v37 = vadd.f32 %v3399_v53, %v3365_v3  ;;  %v3366_v50 = vadd.f32 %v3333_v49, %v11456_v12  ;;  %v3374_v56 = vadd.f32 %v3337_v40, %v11456_v12 }
 0x482   : > { %v3313_v6 = vpop.f32.mrf.mxu2  ;;  %v3375_v25 = vadd.f32 %v3337_v40, %v11458_v39  ;;  %v3376_v52 = vadd.f32 %v3338_v63, %v11456_v12  ;;  %v3377_v58 = vadd.f32 %v3338_v63, %v11458_v39  ;;  %v3411_v53 = vmul.f32 %v11452_v22, %v10571_v62 }
 0x483   : > { %vm3462_vm8 = vcmp.gt.f32.partialorder %v3430_v32, 0.0  ;;  %v3494_v61 = vmul.f32 0.2, %v3430_v32  ;;  %v3495_v7 = vmul.f32 0.2, %v3431_v37  ;;  %vm3463_vm11 = vcmp.gt.f32.partialorder %v3431_v37, 0.0 }
 0x484   : > { %v11477_v42 = vadd.f32 %v9164_v20, %v3313_v6  ;;  %v3432_v28 = vadd.f32 %v3400_v30, %v3366_v50  ;;  %v11485_v13 = vadd.f32 %v3408_v14, %v3374_v56  ;;  %v11487_v3 = vadd.f32 %v3409_v45, %v3375_v25 }
 0x485   : > { %v3526_v4 = vsel %vm3462_vm8, %v3430_v32, %v3494_v61  ;;  %v3527_v26 = vsel %vm3463_vm11, %v3431_v37, %v3495_v7  ;;  %v11489_v48 = vadd.f32 %v3410_v16, %v3376_v52  ;;  %v3324_v20 = vrot.slane %v11454_v9, 7 }
 0x486   : > { %3591 = vmatmul.f32.vlgmr.msrb.gmra.mxu1 %v3526_v4  ;;  %v3340_v32 = vperm.slane %v11477_v42, 0  ;;  %v3367_v61 = vadd.f32 %v3333_v49, %v11458_v39  ;;  %v3413_v37 = vmul.f32 %v11452_v22, %v10584_v24  ;;  %v3415_v4 = vmul.f32 %v11452_v22, %v10598_v41  ;;  %v14363_v24 = vld [vmem:[#allocation63_spill] sm:$0xff] }
 0x487   : > { %v3496_v6 = vmul.f32 0.2, %v3432_v28  ;;  %v3412_v40 = vmul.f32 %v11452_v22, %v10579_v11  ;;  %vm3464_vm8 = vcmp.gt.f32.partialorder %v3432_v28, 0.0  ;;  %v11505_v63 = vadd.f32 %v3411_v53, %v3377_v58 }
 0x488   : > { %v3339_v7 = vperm.slane %v3324_v20, 0  ;;  %v3414_v49 = vmul.f32 %v11452_v22, %v10593_v34  ;;  %v3380_v50 = vadd.f32 %v3340_v32, %v11456_v12  ;;  %v3381_v14 = vadd.f32 %v3340_v32, %v11458_v39 }
 0x489   : > { %v3325_v30 = vrot.slane %v11477_v42, 1  ;;  %v3433_v16 = vadd.f32 %v3401_v35, %v3367_v61  ;;  %v3334_v45 = vperm.slane %v3319_v18, 0  ;;  %v3528_v52 = vsel %vm3464_vm8, %v3432_v28, %v3496_v6 }
 0x48a   : > { %v3378_v56 = vadd.f32 %v3339_v7, %v11456_v12  ;;  %v3379_v25 = vadd.f32 %v3339_v7, %v11458_v39  ;;  %v11516_v58 = vadd.f32 %v3415_v4, %v3381_v14  ;;  %v3326_v32 = vrot.slane %v11477_v42, 2  ;;  %v14361_v4 = vld [vmem:[#allocation51_spill] sm:$0xff]  ;;  %v14362_v14 = vld [vmem:[#allocation60_spill] sm:$0xff] }
 0x48b   : > { %v3341_v20 = vperm.slane %v3325_v30, 0  ;;  %v3327_v11 = vrot.slane %v11477_v42, 3  ;;  %v3402_v61 = vmul.f32 %v11452_v22, %v10516_v46  ;;  %v3416_v18 = vmul.f32 %v11452_v22, %v10606_v54 }
 0x48c   : > { %v11518_v53 = vadd.f32 %v3412_v40, %v3378_v56  ;;  %v11520_v34 = vadd.f32 %v3413_v37, %v3379_v25  ;;  %v3418_v28 = vmul.f32 %v11452_v22, %v10627_v21  ;;  %v3419_v35 = vmul.f32 %v11452_v22, %v10637_v51 }
 0x48d   : > { %v3420_v37 = vmul.f32 %v11452_v22, %v10658_v15  ;;  %v3417_v6 = vmul.f32 %v11452_v22, %v14361_v4  ;;  %v3497_v40 = vmul.f32 0.2, %v3433_v16  ;;  %v3368_v7 = vadd.f32 %v3334_v45, %v11456_v12 }
 0x48e   : > { %3594 = vmatmul.f32.gmra.mxu1 %v3527_v26  ;;  %v11514_v26 = vadd.f32 %v3414_v49, %v3380_v50  ;;  %v3382_v49 = vadd.f32 %v3341_v20, %v11456_v12  ;;  %v3383_v50 = vadd.f32 %v3341_v20, %v11458_v39  ;;  %v3421_v30 = vmul.f32 %v11452_v22, %v14362_v14 }
 0x48f   : > { %vm3465_vm11 = vcmp.gt.f32.partialorder %v3433_v16, 0.0  ;;  %v3342_v56 = vperm.slane %v3326_v32, 0  ;;  %v3343_v25 = vperm.slane %v3327_v11, 0  ;;  %v3328_v15 = vrot.slane %v11477_v42, 4 }
 0x490   : > { %v11543_v51 = vadd.f32 %v3417_v6, %v3383_v50  ;;  %v3329_v4 = vrot.slane %v11477_v42, 5  ;;  %v3529_v14 = vsel %vm3465_vm11, %v3433_v16, %v3497_v40  ;;  %v3434_v41 = vadd.f32 %v3402_v61, %v3368_v7 }
 0x491   : > { %v3384_v21 = vadd.f32 %v3342_v56, %v11456_v12  ;;  %v3385_v54 = vadd.f32 %v3342_v56, %v11458_v39  ;;  %v3386_v20 = vadd.f32 %v3343_v25, %v11456_v12  ;;  %v3387_v46 = vadd.f32 %v3343_v25, %v11458_v39 }
 0x492   : > { %v11559_v50 = vperm.slane %v3329_v4, 0  ;;  %v3423_v56 = vmul.f32 %v11452_v22, %v14363_v24  ;;  %v3422_v25 = vmul.f32 %v11452_v22, %v14364_v38  ;;  %v3320_v16 = vrot.slane %v11454_v9, 3  ;;  %v14367_v24 = vld [vmem:[#allocation72_spill] sm:$0xff] }
 0x493   : > { %v11551_v32 = vadd.f32 %v3418_v28, %v3384_v21  ;;  %v11553_v11 = vadd.f32 %v3419_v35, %v3385_v54  ;;  %v11557_v6 = vadd.f32 %v3421_v30, %v3387_v46  ;;  %v3498_v21 = vmul.f32 0.2, %v3434_v41  ;;  %v14365_v28 = vld [vmem:[#allocation35_spill] sm:$0xff]  ;;  %v14366_v35 = vld [vmem:[#allocation66_spill] sm:$0xff] }
 0x494   : > { %v3369_v54 = vadd.f32 %v3334_v45, %v11458_v39  ;;  %vm3466_vm8 = vcmp.gt.f32.partialorder %v3434_v41, 0.0  ;;  %v3390_v4 = vadd.f32 %v11559_v50, %v11456_v12  ;;  %v3330_v45 = vrot.slane %v11477_v42, 6 }
 0x495   : > { %vm3473_vm7 = vcmp.gt.f32.partialorder %v11487_v3, 0.0 }
 0x496   : > { %3597 = vmatmul.f32.gmra.mxu1 %v3528_v52  ;;  %v11541_v52 = vadd.f32 %v3416_v18, %v3382_v49  ;;  %v11555_v18 = vadd.f32 %v3420_v37, %v3386_v20  ;;  %v3344_v49 = vperm.slane %v3328_v15, 0  ;;  %v3403_v15 = vmul.f32 %v11452_v22, %v14365_v28 }
 0x497   : > { %v3424_v37 = vmul.f32 %v11452_v22, %v14366_v35  ;;  %v3530_v20 = vsel %vm3466_vm8, %v3434_v41, %v3498_v21  ;;  %v3335_v28 = vperm.slane %v3320_v16, 0  ;;  %v11583_v38 = vperm.slane %v3330_v45, 0  ;;  %v14369_v16 = vld [vmem:[#allocation36_spill] sm:$0xff] }
 0x498   : > { %v3388_v61 = vadd.f32 %v3344_v49, %v11456_v12  ;;  %v3389_v46 = vadd.f32 %v3344_v49, %v11458_v39  ;;  %v3435_v49 = vadd.f32 %v3403_v15, %v3369_v54  ;;  %v3404_v21 = vmul.f32 %v11452_v22, %v14369_v16 }
 0x499   : > { %v11581_v30 = vadd.f32 %v3424_v37, %v3390_v4  ;;  %v3370_v62 = vadd.f32 %v3335_v28, %v11456_v12 }
 0x49a   : > { %v11575_v40 = vadd.f32 %v3422_v25, %v3388_v61  ;;  %v11577_v7 = vadd.f32 %v3423_v56, %v3389_v46  ;;  %v3428_v25 = vmul.f32 %v11452_v22, %v14367_v24  ;;  %v14368_v61 = vld [vmem:[#allocation68_spill] sm:$0xff]  ;;  %v3499_v46 = vmul.f32 0.2, %v3435_v49 }
 0x49b   : > { %v3426_v56 = vmul.f32 %v11452_v22, %v14368_v61  ;;  %vm3467_vm11 = vcmp.gt.f32.partialorder %v3435_v49, 0.0  ;;  %v3436_v4 = vadd.f32 %v3404_v21, %v3370_v62  ;;  %v14370_v61 = vld [vmem:[#allocation37_spill] sm:$0xff] }
 0x49c   : > { %v3531_v37 = vsel %vm3467_vm11, %v3435_v49, %v3499_v46  ;;  %v3405_v24 = vmul.f32 %v11452_v22, %v14370_v61  ;;  %v14371_v49 = vld [vmem:[#allocation38_spill] sm:$0xff] }
 0x49d   : > { %v3500_v45 = vmul.f32 0.2, %v3436_v4  ;;  %vm3468_vm8 = vcmp.gt.f32.partialorder %v3436_v4, 0.0  ;;  %v3406_v62 = vmul.f32 %v11452_v22, %v14371_v49 }
 0x49e   : > { %3600 = vmatmul.f32.gmra.mxu1 %v3529_v14  ;;  %v3331_v14 = vrot.slane %v11477_v42, 7  ;;  %v3392_v42 = vadd.f32 %v11583_v38, %v11456_v12 }
 0x49f   : > { %v3532_v44 = vsel %vm3468_vm8, %v3436_v4, %v3500_v45  ;;  %v3504_v45 = vmul.f32 0.2, %v11485_v13 }
 0x4a0   : > { %v11585_v35 = vperm.slane %v3331_v14, 0  ;;  %v11598_v54 = vadd.f32 %v3426_v56, %v3392_v42  ;;  %v3371_v14 = vadd.f32 %v3335_v28, %v11458_v39 }
 0x4a2   : > { %v3394_v41 = vadd.f32 %v11585_v35, %v11456_v12  ;;  %v3437_v55 = vadd.f32 %v3405_v24, %v3371_v14 }
 0x4a4   : > { %v11600_v15 = vadd.f32 %v3428_v25, %v3394_v41  ;;  %v3501_v56 = vmul.f32 0.2, %v3437_v55  ;;  %vm3469_vm0 = vcmp.gt.f32.partialorder %v3437_v55, 0.0  ;;  %v14372_v41 = vld [vmem:[#allocation39_spill] sm:$0xff] }
 0x4a5   : > { %v3407_v21 = vmul.f32 %v11452_v22, %v14372_v41 }
 0x4a6   : > { %3603 = vmatmul.f32.gmra.mxu1 %v3530_v20  ;;  %v3321_v20 = vrot.slane %v11454_v9, 4  ;;  %v3533_v46 = vsel %vm3469_vm0, %v3437_v55, %v3501_v56  ;;  %vm3472_vm0 = vcmp.gt.f32.partialorder %v11485_v13, 0.0 }
 0x4a7   : > { %v3536_v55 = vsel %vm3472_vm0, %v11485_v13, %v3504_v45  ;;  %vm3476_vm0 = vcmp.gt.f32.partialorder %v11518_v53, 0.0 }
 0x4a8   : > { %v3336_v31 = vperm.slane %v3321_v20, 0  ;;  %v3506_v20 = vmul.f32 0.2, %v11489_v48 }
 0x4aa   : > { %v3372_v25 = vadd.f32 %v3336_v31, %v11456_v12  ;;  %v3373_v9 = vadd.f32 %v3336_v31, %v11458_v39  ;;  %v3505_v31 = vmul.f32 0.2, %v11487_v3 }
 0x4ac   : > { %v3438_v42 = vadd.f32 %v3406_v62, %v3372_v25  ;;  %v3537_v14 = vsel %vm3473_vm7, %v11487_v3, %v3505_v31  ;;  %v3507_v25 = vmul.f32 0.2, %v11505_v63  ;;  %v3508_v62 = vmul.f32 0.2, %v11518_v53 }
 0x4ad   : > { %vm3477_vm7 = vcmp.gt.f32.partialorder %v11520_v34, 0.0  ;;  %v3512_v31 = vmul.f32 0.2, %v11541_v52 }
 0x4ae   : > { %3606 = vmatmul.f32.gmra.mxu1 %v3531_v37  ;;  %v3502_v28 = vmul.f32 0.2, %v3438_v42  ;;  %vm3470_vm11 = vcmp.gt.f32.partialorder %v3438_v42, 0.0  ;;  %v3439_v37 = vadd.f32 %v3407_v21, %v3373_v9  ;;  %v3540_v3 = vsel %vm3476_vm0, %v11518_v53, %v3508_v62  ;;  %v14373_v21 = vld [vmem:[#allocation48_spill] sm:$0xff] }
 0x4af   : > { %v3511_v9 = vmul.f32 0.2, %v11516_v58  ;;  %vm3480_vm0 = vcmp.gt.f32.partialorder %v11541_v52, 0.0 }
 0x4b0   : > { %v3534_v24 = vsel %vm3470_vm11, %v3438_v42, %v3502_v28  ;;  %vm3471_vm8 = vcmp.gt.f32.partialorder %v3439_v37, 0.0  ;;  %vm3474_vm11 = vcmp.gt.f32.partialorder %v11489_v48, 0.0  ;;  %v3510_v42 = vmul.f32 0.2, %v11514_v26 }
 0x4b1   : > { %v3538_v56 = vsel %vm3474_vm11, %v11489_v48, %v3506_v20  ;;  %vm3478_vm11 = vcmp.gt.f32.partialorder %v11514_v26, 0.0 }
 0x4b2   : > { %v3542_v28 = vsel %vm3478_vm11, %v11514_v26, %v3510_v42  ;;  %vm3482_vm11 = vcmp.gt.f32.partialorder %v11551_v32, 0.0 }
 0x4b6   : > { %3609 = vmatmul.f32.gmra.mxu1 %v3532_v44  ;;  %v3503_v44 = vmul.f32 0.2, %v3439_v37 }
 0x4b8   : > { %v3535_v4 = vsel %vm3471_vm8, %v3439_v37, %v3503_v44  ;;  %vm3475_vm8 = vcmp.gt.f32.partialorder %v11505_v63, 0.0  ;;  %v14374_v37 = vld [vmem:[#allocation50_spill] sm:$0xff] }
 0x4b9   : > { %v3539_v13 = vsel %vm3475_vm8, %v11505_v63, %v3507_v25  ;;  %vm3479_vm8 = vcmp.gt.f32.partialorder %v11516_v58, 0.0  ;;  %v3544_v25 = vsel %vm3480_vm0, %v11541_v52, %v3512_v31  ;;  %vm3484_vm0 = vcmp.gt.f32.partialorder %v11555_v18, 0.0 }
 0x4ba   : > { %v3543_v45 = vsel %vm3479_vm8, %v11516_v58, %v3511_v9  ;;  %v14376_v9 = vld [vmem:[#allocation53_spill] sm:$0xff]  ;;  %vm3483_vm8 = vcmp.gt.f32.partialorder %v11553_v11, 0.0 }
 0x4be   : > { %3612 = vmatmul.f32.gmra.mxu1 %v3533_v46  ;;  %v3509_v46 = vmul.f32 0.2, %v11520_v34 }
 0x4c0   : > { %v3541_v48 = vsel %vm3477_vm7, %v11520_v34, %v3509_v46  ;;  %vm3481_vm7 = vcmp.gt.f32.partialorder %v11543_v51, 0.0 }
 0x4c6   : > { %3615 = vmatmul.f32.gmra.mxu1 %v3534_v24 }
 0x4ce   : > { %3618 = vmatmul.f32.gmra.mxu1 %v3535_v4 }
 0x4d6   : > { %3621 = vmatmul.f32.gmra.mxu1 %v3536_v55 }
 0x4de   : > { %3624 = vmatmul.f32.gmra.mxu1 %v3537_v14 }
 0x4e6   : > { %3627 = vmatmul.f32.gmra.mxu1 %v3538_v56 }
 0x4ee   : > { %3630 = vmatmul.f32.gmra.mxu1 %v3539_v13 }
 0x4f6   : > { %3633 = vmatmul.f32.gmra.mxu1 %v3540_v3  ;;  %v3513_v3 = vmul.f32 0.2, %v11543_v51 }
 0x4fe   : > { %3636 = vmatmul.f32.gmra.mxu1 %v3541_v48  ;;  %v14375_v48 = vld [vmem:[#allocation54_spill] sm:$0xff] }
 0x503   : > { %v3592_v63 = vpop.f32.mrf.mxu1 }
 0x504   : > { %v3688_v53 = vsel %vm1990_vm4, %v3592_v63, -1e+30 }
 0x505   : > { %v3720_v44 = vsel %vm2118_vm5, %v3688_v53, -inf }
 0x506   : > { %3639 = vmatmul.f32.gmra.mxu1 %v3542_v28 }
 0x50b   : > { %v3595_v24 = vpop.f32.mrf.mxu1 }
 0x50c   : > { %v3689_v34 = vsel %vm1991_vm6, %v3595_v24, -1e+30 }
 0x50d   : > { %v3721_v4 = vsel %vm2118_vm5, %v3689_v34, -inf }
 0x50e   : > { %v3722_v55 = vmax.f32 %v3720_v44, %v3721_v4  ;;  %3642 = vmatmul.f32.gmra.mxu1 %v3543_v45  ;;  %v3545_v4 = vsel %vm3481_vm7, %v11543_v51, %v3513_v3  ;;  %vm3485_vm7 = vcmp.gt.f32.partialorder %v11557_v6, 0.0 }
 0x510   : > { %v3723_v26 = vrot.slane %v3722_v55, 4 }
 0x512   : > { %v3724_v14 = vmax.f32 %v3722_v55, %v3723_v26 }
 0x513   : > { %v3598_v20 = vpop.f32.mrf.mxu1 }
 0x514   : > { %v3725_v56 = vrot.slane %v3724_v14, 2  ;;  %v3690_v58 = vsel %vm1992_vm9, %v3598_v20, -1e+30 }
 0x515   : > { %v3729_v44 = vsel %vm2118_vm5, %v3690_v58, -inf }
 0x516   : > { %v3726_v13 = vmax.f32 %v3724_v14, %v3725_v56  ;;  %3645 = vmatmul.f32.gmra.mxu1 %v3544_v25  ;;  %v3514_v14 = vmul.f32 0.2, %v11551_v32 }
 0x518   : > { %v3727_v62 = vrot.slane %v3726_v13, 1  ;;  %v3546_v56 = vsel %vm3482_vm11, %v11551_v32, %v3514_v14  ;;  %vm3486_vm11 = vcmp.gt.f32.partialorder %v11575_v40, 0.0 }
 0x51a   : > { %v3728_v46 = vmax.f32 %v3726_v13, %v3727_v62 }
 0x51b   : > { %v3601_v42 = vpop.f32.mrf.mxu1 }
 0x51c   : > { %v3864_v63 = vsub.f32 %v3688_v53, %v3728_v46  ;;  %v3865_v28 = vsub.f32 %v3689_v34, %v3728_v46  ;;  %v3691_v24 = vsel %vm1993_vm10, %v3601_v42, -1e+30 }
 0x51d   : > { %v3730_v52 = vsel %vm2118_vm5, %v3691_v24, -inf }
 0x51e   : > { %v3896_v45 = vmul.f32 1.442695, %v3864_v63  ;;  %v3898_v55 = vmul.f32 1.442695, %v3865_v28  ;;  %v3731_v26 = vmax.f32 %v3729_v44, %v3730_v52  ;;  %3648 = vmatmul.f32.gmra.mxu1 %v3545_v4  ;;  %v3515_v63 = vmul.f32 0.2, %v11553_v11 }
 0x51f   : > { %v14377_v44 = vld [vmem:[#allocation56_spill] sm:$0xff] }
 0x520   : > { %9277 = vpow2.f32 %v3896_v45  ;;  %v3732_v31 = vrot.slane %v3731_v26, 4 }
 0x521   : > { %9279 = vpow2.f32 %v3898_v55 }
 0x522   : > { %v3733_v53 = vmax.f32 %v3731_v26, %v3732_v31  ;;  %v14378_v31 = vld [vmem:[#allocation58_spill] sm:$0xff] }
 0x523   : > { %v3604_v34 = vpop.f32.mrf.mxu1 }
 0x524   : > { %v3734_v20 = vrot.slane %v3733_v53, 2  ;;  %v3692_v52 = vsel %vm1994_vm13, %v3604_v34, -1e+30 }
 0x526   : > { %v9278_v25 = vpop.eup %9277  ;;  %v3735_v13 = vmax.f32 %v3733_v53, %v3734_v20  ;;  %3651 = vmatmul.f32.gmra.mxu1 %v3546_v56  ;;  %v3738_v20 = vsel %vm2118_vm5, %v3692_v52, -inf }
 0x527   : > { %v9280_v51 = vpop.eup %9279  ;;  %v11658_v62 = vmul.f32 %v9278_v25, %v14373_v21  ;;  %v3547_v25 = vsel %vm3483_vm8, %v11553_v11, %v3515_v63  ;;  %vm3487_vm8 = vcmp.gt.f32.partialorder %v11577_v7, 0.0 }
 0x528   : > { %v11661_v3 = vmul.f32 %v9280_v51, %v14374_v37  ;;  %v3736_v46 = vrot.slane %v3735_v13, 1 }
 0x529   : > { %v3992_v42 = vsel %vm2118_vm5, %v11658_v62, 0.0 }
 0x52a   : > { %v3993_v28 = vsel %vm2118_vm5, %v11661_v3, 0.0  ;;  %v3737_v32 = vmax.f32 %v3735_v13, %v3736_v46 }
 0x52b   : > { %v3994_v4 = vadd.f32 %v3993_v28, %v3992_v42  ;;  %v3607_v45 = vpop.f32.mrf.mxu1 }
 0x52c   : > { %v3866_v55 = vsub.f32 %v3690_v58, %v3737_v32  ;;  %v3867_v26 = vsub.f32 %v3691_v24, %v3737_v32  ;;  %v3693_v14 = vsel %vm1995_vm14, %v3607_v45, -1e+30  ;;  %v3516_v58 = vmul.f32 0.2, %v11555_v18 }
 0x52d   : > { %v3995_v53 = vrot.slane %v3994_v4, 4  ;;  %v3739_v56 = vsel %vm2118_vm5, %v3693_v14, -inf }
 0x52e   : > { %v3900_v13 = vmul.f32 1.442695, %v3866_v55  ;;  %v3902_v51 = vmul.f32 1.442695, %v3867_v26  ;;  %v3740_v46 = vmax.f32 %v3738_v20, %v3739_v56  ;;  %3654 = vmatmul.f32.gmra.mxu1 %v3547_v25  ;;  %v3548_v11 = vsel %vm3484_vm0, %v11555_v18, %v3516_v58  ;;  %v14379_v18 = vld [vmem:[#allocation61_spill] sm:$0xff] }
 0x52f   : > { %v3996_v34 = vadd.f32 %v3995_v53, %v3994_v4  ;;  %v3517_v25 = vmul.f32 0.2, %v11557_v6 }
 0x530   : > { %9281 = vpow2.f32 %v3900_v13  ;;  %v3741_v42 = vrot.slane %v3740_v46, 4 }
 0x531   : > { %v3997_v28 = vrot.slane %v3996_v34, 2  ;;  %9283 = vpow2.f32 %v3902_v51 }
 0x532   : > { %v3742_v24 = vmax.f32 %v3740_v46, %v3741_v42 }
 0x533   : > { %v3998_v32 = vadd.f32 %v3997_v28, %v3996_v34  ;;  %v3610_v45 = vpop.f32.mrf.mxu1 }
 0x534   : > { %v3743_v37 = vrot.slane %v3742_v24, 2 }
 0x535   : > { %v3999_v21 = vrot.slane %v3998_v32, 1 }
 0x536   : > { %v9282_v63 = vpop.eup %9281  ;;  %v3744_v55 = vmax.f32 %v3742_v24, %v3743_v37  ;;  %3657 = vmatmul.f32.gmra.mxu1 %v3548_v11  ;;  %v3694_v37 = vsel %vm14239_vm1, %v3610_v45, -1e+30  ;;  %v14380_v24 = vld [vmem:[#allocation62_spill] sm:$0xff] }
 0x537   : > { %v9284_v26 = vpop.eup %9283  ;;  %v4000_v4 = vadd.f32 %v3999_v21, %v3998_v32  ;;  %v11680_v53 = vmul.f32 %v9282_v63, %v14375_v48  ;;  %v3747_v11 = vsel %vm2118_vm5, %v3694_v37, -inf  ;;  %v8931_v48 = vld [vmem:[%s10402_s15 + $0x88] sm:$0xff] }
 0x538   : > { %v11683_v20 = vmul.f32 %v9284_v26, %v14376_v9  ;;  %v3745_v56 = vrot.slane %v3744_v55, 1 }
 0x539   : > { %v4136_v13 = vmax.f32 %v4000_v4, 1e-20  ;;  %v4001_v51 = vsel %vm2118_vm5, %v11680_v53, 0.0 }
 0x53a   : > { %v3746_v46 = vmax.f32 %v3744_v55, %v3745_v56  ;;  %v4002_v21 = vsel %vm2118_vm5, %v11683_v20, 0.0  ;;  %v3549_v55 = vsel %vm3485_vm7, %v11557_v6, %v3517_v25 }
 0x53b   : > { %v3613_v34 = vpop.f32.mrf.mxu1  ;;  %9285 = vrcp.f32 %v4136_v13  ;;  %v4003_v42 = vadd.f32 %v4002_v21, %v4001_v51 }
 0x53c   : > { %v3868_v28 = vsub.f32 %v3692_v52, %v3746_v46  ;;  %v3869_v58 = vsub.f32 %v3693_v14, %v3746_v46  ;;  %v3695_v32 = vsel %vm14204_vm2, %v3613_v34, -1e+30  ;;  %v3518_v52 = vmul.f32 0.2, %v11575_v40 }
 0x53d   : > { %v3748_v63 = vsel %vm2118_vm5, %v3695_v32, -inf  ;;  %v4004_v45 = vrot.slane %v4003_v42, 4  ;;  %vm14441_vm2 = vcmask 1047559  }
 0x53e   : > { %v3904_v26 = vmul.f32 1.442695, %v3868_v28  ;;  %v3906_v4 = vmul.f32 1.442695, %v3869_v58  ;;  %v3749_v56 = vmax.f32 %v3747_v11, %v3748_v63  ;;  %3660 = vmatmul.f32.gmra.mxu1 %v3549_v55  ;;  %v3550_v28 = vsel %vm3486_vm11, %v11575_v40, %v3518_v52 }
 0x53f   : > { %v4005_v9 = vadd.f32 %v4004_v45, %v4003_v42  ;;  %vm3488_vm11 = vcmp.gt.f32.partialorder %v11581_v30, 0.0 }
 0x540   : > { %9287 = vpow2.f32 %v3904_v26  ;;  %v3750_v13 = vrot.slane %v3749_v56, 4 }
 0x541   : > { %v9286_v51 = vpop.eup %9285  ;;  %9289 = vpow2.f32 %v3906_v4  ;;  %v4006_v14 = vrot.slane %v4005_v9, 2 }
 0x542   : > { %v3751_v46 = vmax.f32 %v3749_v56, %v3750_v13  ;;  %v4168_v21 = vmul.f32 %v9286_v51, %v11658_v62  ;;  %v14381_v13 = vld [vmem:[#allocation64_spill] sm:$0xff] }
 0x543   : > { %v3616_v34 = vpop.f32.mrf.mxu1  ;;  %v4007_v6 = vadd.f32 %v4006_v14, %v4005_v9  ;;  %v3519_v9 = vmul.f32 0.2, %v11577_v7  ;;  %vm14382_vm0 = vcmp.gt.f32.partialorder %v14381_v13, 0.0  ;;  %v4169_v14 = vmul.f32 %v9286_v51, %v11661_v3 }
 0x544   : > { %v3752_v25 = vrot.slane %v3751_v46, 2  ;;  %8561 = vmatmul.msk.f32.vlgmr.msra.gmra.mxu2 %vm2118_vm5, %v4168_v21  ;;  %v11715_v52 = vsel %vm14382_vm0, %v3616_v34, -1e+30 }
 0x545   : > { %v4008_v42 = vrot.slane %v4007_v6, 1  ;;  %v3551_v3 = vsel %vm3487_vm8, %v11577_v7, %v3519_v9  ;;  %v14385_v7 = vld [vmem:[#allocation67_spill] sm:$0xff] }
 0x546   : > { %v9288_v58 = vpop.eup %9287  ;;  %v3753_v11 = vmax.f32 %v3751_v46, %v3752_v25  ;;  %3663 = vmatmul.f32.gmra.mxu1 %v3550_v28  ;;  %v3425_v9 = vmul.f32 %v11452_v22, %v14385_v7 }
 0x547   : > { %v9290_v63 = vpop.eup %9289  ;;  %v4009_v55 = vadd.f32 %v4008_v42, %v4007_v6  ;;  %v11704_v45 = vmul.f32 %v9288_v58, %v14377_v44  ;;  %v14383_v42 = vld [vmem:[#allocation65_spill] sm:$0xff] }
 0x548   : > { %v11707_v62 = vmul.f32 %v9290_v63, %v14378_v31  ;;  %v3754_v26 = vrot.slane %v3753_v11, 1  ;;  %vm14384_vm7 = vcmp.gt.f32.partialorder %v14383_v42, 0.0 }
 0x549   : > { %v4137_v4 = vmax.f32 %v4009_v55, 1e-20  ;;  %v4010_v40 = vsel %vm2118_vm5, %v11704_v45, 0.0 }
 0x54a   : > { %v3755_v56 = vmax.f32 %v3753_v11, %v3754_v26  ;;  %v4011_v46 = vsel %vm2118_vm5, %v11707_v62, 0.0  ;;  %v3756_v11 = vsel %vm2118_vm5, %v11715_v52, -inf }
 0x54b   : > { %v3619_v21 = vpop.f32.mrf.mxu1  ;;  %9291 = vrcp.f32 %v4137_v4  ;;  %v4012_v6 = vadd.f32 %v4011_v46, %v4010_v40  ;;  %v3520_v40 = vmul.f32 0.2, %v11581_v30 }
 0x54c   : > { %v3870_v25 = vsub.f32 %v3694_v37, %v3755_v56  ;;  %v3871_v28 = vsub.f32 %v3695_v32, %v3755_v56  ;;  %v3697_v58 = vsel %vm14384_vm7, %v3619_v21, -1e+30  ;;  %8562 = vmatmul.msk.f32.gmra.mxu2 %vm2118_vm5, %v4169_v14  ;;  %v3391_v56 = vadd.f32 %v11559_v50, %v11458_v39 }
 0x54d   : > { %v3757_v34 = vsel %vm2118_vm5, %v3697_v58, -inf  ;;  %v4013_v51 = vrot.slane %v4012_v6, 4 }
 0x54e   : > { %v3908_v63 = vmul.f32 1.442695, %v3870_v25  ;;  %v3910_v55 = vmul.f32 1.442695, %v3871_v28  ;;  %v3758_v26 = vmax.f32 %v3756_v11, %v3757_v34  ;;  %3666 = vmatmul.f32.gmra.mxu1 %v3551_v3  ;;  %v3552_v11 = vsel %vm3488_vm11, %v11581_v30, %v3520_v40 }
 0x54f   : > { %v4014_v37 = vadd.f32 %v4013_v51, %v4012_v6  ;;  %v3457_v34 = vadd.f32 %v3425_v9, %v3391_v56  ;;  %v14386_v56 = vld [vmem:[#allocation69_spill] sm:$0xff]  ;;  %vm3490_vm11 = vcmp.gt.f32.partialorder %v11598_v54, 0.0 }
 0x550   : > { %9293 = vpow2.f32 %v3908_v63  ;;  %v3759_v32 = vrot.slane %v3758_v26, 4  ;;  %vm14387_vm0 = vcmp.gt.f32.partialorder %v14386_v56, 0.0 }
 0x551   : > { %v9292_v4 = vpop.eup %9291  ;;  %9295 = vpow2.f32 %v3910_v55  ;;  %v4015_v14 = vrot.slane %v4014_v37, 2  ;;  %vm3489_vm8 = vcmp.gt.f32.partialorder %v3457_v34, 0.0 }
 0x552   : > { %v3760_v46 = vmax.f32 %v3758_v26, %v3759_v32  ;;  %v4170_v21 = vmul.f32 %v9292_v4, %v11680_v53 }
 0x553   : > { %v3622_v25 = vpop.f32.mrf.mxu1  ;;  %v4016_v6 = vadd.f32 %v4015_v14, %v4014_v37  ;;  %v3521_v37 = vmul.f32 0.2, %v3457_v34 }
 0x554   : > { %v3761_v28 = vrot.slane %v3760_v46, 2  ;;  %8563 = vmatmul.msk.f32.gmra.mxu2 %vm2118_vm5, %v4170_v21  ;;  %v4171_v21 = vmul.f32 %v9292_v4, %v11683_v20 }
 0x555   : > { %v4017_v3 = vrot.slane %v4016_v6, 1  ;;  %v3553_v20 = vsel %vm3489_vm8, %v3457_v34, %v3521_v37  ;;  %v14390_v34 = vld [vmem:[#allocation70_spill] sm:$0xff] }
 0x556   : > { %v9294_v51 = vpop.eup %9293  ;;  %v3762_v50 = vmax.f32 %v3760_v46, %v3761_v28  ;;  %3669 = vmatmul.f32.gmra.mxu1 %v3552_v11  ;;  %v11748_v46 = vsel %vm14387_vm0, %v3622_v25, -1e+30  ;;  %v3427_v37 = vmul.f32 %v11452_v22, %v14390_v34 }
 0x557   : > { %v9296_v63 = vpop.eup %9295  ;;  %v4018_v55 = vadd.f32 %v4017_v3, %v4016_v6  ;;  %v11739_v53 = vmul.f32 %v9294_v51, %v14379_v18  ;;  %v14388_v51 = vld [vmem:[#allocation71_spill] sm:$0xff]  ;;  %v3765_v25 = vsel %vm2118_vm5, %v11748_v46, -inf  ;;  %v12050_v18 = vld [vmem:[%s10316_s0 + $0x1] ss:$0 sm:$0xff] }
 0x558   : > { %v11742_v26 = vmul.f32 %v9296_v63, %v14380_v24  ;;  %v3763_v32 = vrot.slane %v3762_v50, 1  ;;  %vm14389_vm7 = vcmp.gt.f32.partialorder %v14388_v51, 0.0 }
 0x559   : > { %v4138_v14 = vmax.f32 %v4018_v55, 1e-20  ;;  %v4019_v30 = vsel %vm2118_vm5, %v11739_v53, 0.0 }
 0x55a   : > { %v3764_v40 = vmax.f32 %v3762_v50, %v3763_v32  ;;  %v4020_v9 = vsel %vm2118_vm5, %v11742_v26, 0.0 }
 0x55b   : > { %v3625_v6 = vpop.f32.mrf.mxu1  ;;  %9297 = vrcp.f32 %v4138_v14  ;;  %v4021_v28 = vadd.f32 %v4020_v9, %v4019_v30 }
 0x55c   : > { %v3872_v11 = vsub.f32 %v11715_v52, %v3764_v40  ;;  %v3873_v3 = vsub.f32 %v3697_v58, %v3764_v40  ;;  %v3699_v63 = vsel %vm14389_vm7, %v3625_v6, -1e+30  ;;  %8564 = vmatmul.msk.f32.gmra.mxu2 %vm2118_vm5, %v4171_v21  ;;  %v3522_v40 = vmul.f32 0.2, %v11598_v54 }
 0x55d   : > { %v3766_v50 = vsel %vm2118_vm5, %v3699_v63, -inf  ;;  %v4022_v4 = vrot.slane %v4021_v28, 4  ;;  %v3393_v21 = vadd.f32 %v11583_v38, %v11458_v39 }
 0x55e   : > { %v3912_v55 = vmul.f32 1.442695, %v3872_v11  ;;  %v3914_v32 = vmul.f32 1.442695, %v3873_v3  ;;  %v3767_v14 = vmax.f32 %v3765_v25, %v3766_v50  ;;  %3672 = vmatmul.f32.gmra.mxu1 %v3553_v20  ;;  %v3554_v25 = vsel %vm3490_vm11, %v11598_v54, %v3522_v40  ;;  %v14391_v40 = vld [vmem:[#allocation74_spill] sm:$0xff] }
 0x55f   : > { %v4023_v30 = vadd.f32 %v4022_v4, %v4021_v28  ;;  %v3459_v50 = vadd.f32 %v3427_v37, %v3393_v21  ;;  %vm14392_vm0 = vcmp.gt.f32.partialorder %v14391_v40, 0.0  ;;  %vm3492_vm11 = vcmp.gt.f32.partialorder %v11600_v15, 0.0 }
 0x560   : > { %9299 = vpow2.f32 %v3912_v55  ;;  %v3768_v52 = vrot.slane %v3767_v14, 4 }
 0x561   : > { %v9298_v58 = vpop.eup %9297  ;;  %9301 = vpow2.f32 %v3914_v32  ;;  %v4024_v9 = vrot.slane %v4023_v30, 2  ;;  %vm3491_vm8 = vcmp.gt.f32.partialorder %v3459_v50, 0.0 }
 0x562   : > { %v3769_v6 = vmax.f32 %v3767_v14, %v3768_v52  ;;  %v4172_v7 = vmul.f32 %v9298_v58, %v11704_v45 }
 0x563   : > { %v3628_v11 = vpop.f32.mrf.mxu1  ;;  %v4025_v28 = vadd.f32 %v4024_v9, %v4023_v30  ;;  %v4173_v30 = vmul.f32 %v9298_v58, %v11707_v62  ;;  %v14393_v58 = vld [vmem:[#allocation75_spill] sm:$0xff] }
 0x564   : > { %v3770_v3 = vrot.slane %v3769_v6, 2  ;;  %8565 = vmatmul.msk.f32.gmra.mxu2 %vm2118_vm5, %v4172_v7  ;;  %v3523_v7 = vmul.f32 0.2, %v3459_v50  ;;  %v11779_v21 = vsel %vm14392_vm0, %v3628_v11, -1e+30  ;;  %vm14394_vm7 = vcmp.gt.f32.partialorder %v14393_v58, 0.0 }
 0x565   : > { %v4026_v20 = vrot.slane %v4025_v28, 1  ;;  %v3774_v11 = vsel %vm2118_vm5, %v11779_v21, -inf }
 0x566   : > { %v9300_v4 = vpop.eup %9299  ;;  %v3771_v38 = vmax.f32 %v3769_v6, %v3770_v3  ;;  %3675 = vmatmul.f32.gmra.mxu1 %v3554_v25 }
 0x567   : > { %v9302_v55 = vpop.eup %9301  ;;  %v4027_v32 = vadd.f32 %v4026_v20, %v4025_v28  ;;  %v11774_v52 = vmul.f32 %v9300_v4, %v14381_v13  ;;  %v8928_v13 = vld [vmem:[%s10397_s14 + $0xb0] sm:$0xff] }
 0x568   : > { %v11771_v45 = vmul.f32 %v9302_v55, %v14383_v42  ;;  %v3772_v14 = vrot.slane %v3771_v38, 1 }
 0x569   : > { %v4139_v9 = vmax.f32 %v4027_v32, 1e-20  ;;  %v4028_v6 = vsel %vm2118_vm5, %v11774_v52, 0.0 }
 0x56a   : > { %v3773_v54 = vmax.f32 %v3771_v38, %v3772_v14  ;;  %v4029_v37 = vsel %vm2118_vm5, %v11771_v45, 0.0  ;;  %v3555_v38 = vsel %vm3491_vm8, %v3459_v50, %v3523_v7  ;;  %v14395_v50 = vld [vmem:[#allocation73_spill] sm:$0xff] }
 0x56b   : > { %v3631_v28 = vpop.f32.mrf.mxu1  ;;  %9303 = vrcp.f32 %v4139_v9  ;;  %v4030_v3 = vadd.f32 %v4029_v37, %v4028_v6  ;;  %v3429_v7 = vmul.f32 %v11452_v22, %v14395_v50 }
 0x56c   : > { %v3874_v25 = vsub.f32 %v11748_v46, %v3773_v54  ;;  %v3875_v62 = vsub.f32 %v3699_v63, %v3773_v54  ;;  %v3701_v20 = vsel %vm14394_vm7, %v3631_v28, -1e+30  ;;  %8566 = vmatmul.msk.f32.gmra.mxu2 %vm2118_vm5, %v4173_v30  ;;  %v3524_v54 = vmul.f32 0.2, %v11600_v15 }
 0x56d   : > { %v3775_v4 = vsel %vm2118_vm5, %v3701_v20, -inf  ;;  %v4031_v55 = vrot.slane %v4030_v3, 4  ;;  %v3395_v30 = vadd.f32 %v11585_v35, %v11458_v39 }
 0x56e   : > { %v3916_v32 = vmul.f32 1.442695, %v3874_v25  ;;  %v3918_v14 = vmul.f32 1.442695, %v3875_v62  ;;  %v3776_v9 = vmax.f32 %v3774_v11, %v3775_v4  ;;  %3678 = vmatmul.f32.gmra.mxu1 %v3555_v38  ;;  %v3556_v11 = vsel %vm3492_vm11, %v11600_v15, %v3524_v54  ;;  %v14396_v54 = vld [vmem:[#allocation76_spill] sm:$0xff] }
 0x56f   : > { %v4032_v6 = vadd.f32 %v4031_v55, %v4030_v3  ;;  %v3461_v4 = vadd.f32 %v3429_v7, %v3395_v30  ;;  %vm14397_vm0 = vcmp.gt.f32.partialorder %v14396_v54, 0.0 }
 0x570   : > { %9305 = vpow2.f32 %v3916_v32  ;;  %v3777_v46 = vrot.slane %v3776_v9, 4 }
 0x571   : > { %v9304_v63 = vpop.eup %9303  ;;  %9307 = vpow2.f32 %v3918_v14  ;;  %v4033_v37 = vrot.slane %v4032_v6, 2  ;;  %vm3493_vm8 = vcmp.gt.f32.partialorder %v3461_v4, 0.0 }
 0x572   : > { %v3778_v28 = vmax.f32 %v3776_v9, %v3777_v46  ;;  %v4174_v34 = vmul.f32 %v9304_v63, %v11739_v53 }
 0x573   : > { %v3634_v25 = vpop.f32.mrf.mxu1  ;;  %v4034_v3 = vadd.f32 %v4033_v37, %v4032_v6  ;;  %v4175_v6 = vmul.f32 %v9304_v63, %v11742_v26  ;;  %v14398_v26 = vld [vmem:[#allocation77_spill] sm:$0xff] }
 0x574   : > { %v3779_v62 = vrot.slane %v3778_v28, 2  ;;  %8567 = vmatmul.msk.f32.gmra.mxu2 %vm2118_vm5, %v4174_v34  ;;  %v3525_v34 = vmul.f32 0.2, %v3461_v4  ;;  %v3702_v30 = vsel %vm14397_vm0, %v3634_v25, -1e+30  ;;  %vm14399_vm7 = vcmp.gt.f32.partialorder %v14398_v26, 0.0 }
 0x575   : > { %v4035_v38 = vrot.slane %v4034_v3, 1 }
 0x576   : > { %v9306_v55 = vpop.eup %9305  ;;  %v3780_v35 = vmax.f32 %v3778_v28, %v3779_v62  ;;  %3681 = vmatmul.f32.gmra.mxu1 %v3556_v11 }
 0x577   : > { %v9308_v32 = vpop.eup %9307  ;;  %v4036_v14 = vadd.f32 %v4035_v38, %v4034_v3  ;;  %v11806_v22 = vmul.f32 %v9306_v55, %v14386_v56  ;;  %v3783_v38 = vsel %vm2118_vm5, %v3702_v30, -inf  ;;  %v3557_v55 = vsel %vm3493_vm8, %v3461_v4, %v3525_v34 }
 0x578   : > { %v11803_v53 = vmul.f32 %v9308_v32, %v14388_v51  ;;  %v3781_v9 = vrot.slane %v3780_v35, 1 }
 0x579   : > { %v4140_v46 = vmax.f32 %v4036_v14, 1e-20  ;;  %v4037_v37 = vsel %vm2118_vm5, %v11806_v22, 0.0 }
 0x57a   : > { %v3782_v15 = vmax.f32 %v3780_v35, %v3781_v9  ;;  %v4038_v28 = vsel %vm2118_vm5, %v11803_v53, 0.0 }
 0x57b   : > { %v3637_v7 = vpop.f32.mrf.mxu1  ;;  %9309 = vrcp.f32 %v4140_v46  ;;  %v4039_v3 = vadd.f32 %v4038_v28, %v4037_v37 }
 0x57c   : > { %v3876_v62 = vsub.f32 %v11779_v21, %v3782_v15  ;;  %v3877_v11 = vsub.f32 %v3701_v20, %v3782_v15  ;;  %v3703_v63 = vsel %vm14399_vm7, %v3637_v7, -1e+30  ;;  %8568 = vmatmul.msk.f32.gmra.mxu2 %vm2118_vm5, %v4175_v6 }
 0x57d   : > { %v3784_v25 = vsel %vm2118_vm5, %v3703_v63, -inf  ;;  %v4040_v35 = vrot.slane %v4039_v3, 4 }
 0x57e   : > { %v3920_v32 = vmul.f32 1.442695, %v3876_v62  ;;  %v3922_v14 = vmul.f32 1.442695, %v3877_v11  ;;  %v3785_v9 = vmax.f32 %v3783_v38, %v3784_v25  ;;  %3684 = vmatmul.f32.gmra.mxu1 %v3557_v55 }
 0x57f   : > { %v4041_v46 = vadd.f32 %v4040_v35, %v4039_v3 }
 0x580   : > { %9311 = vpow2.f32 %v3920_v32  ;;  %v3786_v21 = vrot.slane %v3785_v9, 4 }
 0x581   : > { %v9310_v20 = vpop.eup %9309  ;;  %9313 = vpow2.f32 %v3922_v14  ;;  %v4042_v15 = vrot.slane %v4041_v46, 2  ;;  %v14400_v14 = vld [vmem:[#allocation78_spill] sm:$0xff] }
 0x582   : > { %v3787_v37 = vmax.f32 %v3785_v9, %v3786_v21  ;;  %v4176_v6 = vmul.f32 %v9310_v20, %v11774_v52  ;;  %v4177_v35 = vmul.f32 %v9310_v20, %v11771_v45  ;;  %vm14401_vm11 = vcmp.gt.f32.partialorder %v14400_v14, 0.0 }
 0x583   : > { %v3640_v28 = vpop.f32.mrf.mxu1  ;;  %v4043_v7 = vadd.f32 %v4042_v15, %v4041_v46 }
 0x584   : > { %v3788_v50 = vrot.slane %v3787_v37, 2  ;;  %8569 = vmatmul.msk.f32.gmra.mxu2 %vm2118_vm5, %v4176_v6  ;;  %v3704_v9 = vsel %vm14401_vm11, %v3640_v28, -1e+30 }
 0x585   : > { %v4044_v4 = vrot.slane %v4043_v7, 1  ;;  %v3792_v45 = vsel %vm2118_vm5, %v3704_v9, -inf }
 0x586   : > { %v9312_v34 = vpop.eup %9311  ;;  %v3789_v62 = vmax.f32 %v3787_v37, %v3788_v50 }
 0x587   : > { %v9314_v11 = vpop.eup %9313  ;;  %v4045_v38 = vadd.f32 %v4044_v4, %v4043_v7  ;;  %v11828_v55 = vmul.f32 %v9312_v34, %v14391_v40  ;;  %v14402_v7 = vld [vmem:[#allocation79_spill] sm:$0xff] }
 0x588   : > { %v11825_v3 = vmul.f32 %v9314_v11, %v14393_v58  ;;  %v3790_v25 = vrot.slane %v3789_v62, 1  ;;  %vm14403_vm8 = vcmp.gt.f32.partialorder %v14402_v7, 0.0 }
 0x589   : > { %v4141_v52 = vmax.f32 %v4045_v38, 1e-20  ;;  %v4046_v46 = vsel %vm2118_vm5, %v11828_v55, 0.0 }
 0x58a   : > { %v3791_v32 = vmax.f32 %v3789_v62, %v3790_v25  ;;  %v4047_v50 = vsel %vm2118_vm5, %v11825_v3, 0.0 }
 0x58b   : > { %v3643_v21 = vpop.f32.mrf.mxu1  ;;  %9315 = vrcp.f32 %v4141_v52  ;;  %v4048_v15 = vadd.f32 %v4047_v50, %v4046_v46 }
 0x58c   : > { %v3878_v37 = vsub.f32 %v3702_v30, %v3791_v32  ;;  %v3879_v6 = vsub.f32 %v3703_v63, %v3791_v32  ;;  %v3705_v4 = vsel %vm14403_vm8, %v3643_v21, -1e+30  ;;  %8570 = vmatmul.msk.f32.gmra.mxu2 %vm2118_vm5, %v4177_v35 }
 0x58d   : > { %v3793_v20 = vsel %vm2118_vm5, %v3705_v4, -inf  ;;  %v4049_v28 = vrot.slane %v4048_v15, 4 }
 0x58e   : > { %v3924_v34 = vmul.f32 1.442695, %v3878_v37  ;;  %v3926_v62 = vmul.f32 1.442695, %v3879_v6  ;;  %v3794_v11 = vmax.f32 %v3792_v45, %v3793_v20 }
 0x58f   : > { %v4050_v38 = vadd.f32 %v4049_v28, %v4048_v15 }
 0x590   : > { %9317 = vpow2.f32 %v3924_v34  ;;  %v3795_v25 = vrot.slane %v3794_v11, 4 }
 0x591   : > { %v9316_v52 = vpop.eup %9315  ;;  %9319 = vpow2.f32 %v3926_v62  ;;  %v4051_v30 = vrot.slane %v4050_v38, 2  ;;  %v14404_v62 = vld [vmem:[#allocation80_spill] sm:$0xff] }
 0x592   : > { %v3796_v63 = vmax.f32 %v3794_v11, %v3795_v25  ;;  %v4178_v32 = vmul.f32 %v9316_v52, %v11806_v22  ;;  %v4179_v28 = vmul.f32 %v9316_v52, %v11803_v53  ;;  %vm14405_vm0 = vcmp.gt.f32.partialorder %v14404_v62, 0.0 }
 0x593   : > { %v3646_v46 = vpop.f32.mrf.mxu1  ;;  %v4052_v50 = vadd.f32 %v4051_v30, %v4050_v38 }
 0x594   : > { %v3797_v35 = vrot.slane %v3796_v63, 2  ;;  %8571 = vmatmul.msk.f32.gmra.mxu2 %vm2118_vm5, %v4178_v32  ;;  %v3706_v11 = vsel %vm14405_vm0, %v3646_v46, -1e+30 }
 0x595   : > { %v4053_v21 = vrot.slane %v4052_v50, 1 }
 0x596   : > { %v9318_v58 = vpop.eup %9317  ;;  %v3798_v40 = vmax.f32 %v3796_v63, %v3797_v35 }
 0x597   : > { %v9320_v37 = vpop.eup %9319  ;;  %v4054_v6 = vadd.f32 %v4053_v21, %v4052_v50  ;;  %v11848_v20 = vmul.f32 %v9318_v58, %v14396_v54  ;;  %v14406_v58 = vld [vmem:[#allocation81_spill] sm:$0xff] }
 0x598   : > { %v11845_v15 = vmul.f32 %v9320_v37, %v14398_v26  ;;  %v3799_v45 = vrot.slane %v3798_v40, 1  ;;  %vm14407_vm7 = vcmp.gt.f32.partialorder %v14406_v58, 0.0 }
 0x599   : > { %v4142_v22 = vmax.f32 %v4054_v6, 1e-20  ;;  %v4055_v38 = vsel %vm2118_vm5, %v11848_v20, 0.0 }
 0x59a   : > { %v3800_v34 = vmax.f32 %v3798_v40, %v3799_v45  ;;  %v4056_v25 = vsel %vm2118_vm5, %v11845_v15, 0.0  ;;  %v3801_v40 = vsel %vm2118_vm5, %v3706_v11, -inf }
 0x59b   : > { %v3649_v30 = vpop.f32.mrf.mxu1  ;;  %9321 = vrcp.f32 %v4142_v22  ;;  %v4057_v63 = vadd.f32 %v4056_v25, %v4055_v38 }
 0x59c   : > { %v3880_v32 = vsub.f32 %v3704_v9, %v3800_v34  ;;  %v3881_v50 = vsub.f32 %v3705_v4, %v3800_v34  ;;  %v3707_v35 = vsel %vm14407_vm7, %v3649_v30, -1e+30  ;;  %8572 = vmatmul.msk.f32.gmra.mxu2 %vm2118_vm5, %v4179_v28 }
 0x59d   : > { %v3802_v53 = vsel %vm2118_vm5, %v3707_v35, -inf  ;;  %v4058_v52 = vrot.slane %v4057_v63, 4 }
 0x59e   : > { %v3928_v46 = vmul.f32 1.442695, %v3880_v32  ;;  %v3930_v21 = vmul.f32 1.442695, %v3881_v50  ;;  %v3803_v37 = vmax.f32 %v3801_v40, %v3802_v53 }
 0x59f   : > { %v4059_v6 = vadd.f32 %v4058_v52, %v4057_v63 }
 0x5a0   : > { %9323 = vpow2.f32 %v3928_v46  ;;  %v3804_v45 = vrot.slane %v3803_v37, 4 }
 0x5a1   : > { %v9322_v22 = vpop.eup %9321  ;;  %9325 = vpow2.f32 %v3930_v21  ;;  %v4060_v9 = vrot.slane %v4059_v6, 2  ;;  %v14408_v21 = vld [vmem:[#allocation82_spill] sm:$0xff] }
 0x5a2   : > { %v3805_v4 = vmax.f32 %v3803_v37, %v3804_v45  ;;  %v4180_v34 = vmul.f32 %v9322_v22, %v11828_v55  ;;  %v4181_v52 = vmul.f32 %v9322_v22, %v11825_v3  ;;  %vm14409_vm11 = vcmp.gt.f32.partialorder %v14408_v21, 0.0 }
 0x5a3   : > { %v3652_v38 = vpop.f32.mrf.mxu1  ;;  %v4061_v25 = vadd.f32 %v4060_v9, %v4059_v6 }
 0x5a4   : > { %v3806_v28 = vrot.slane %v3805_v4, 2  ;;  %8573 = vmatmul.msk.f32.gmra.mxu2 %vm2118_vm5, %v4180_v34  ;;  %v3708_v37 = vsel %vm14409_vm11, %v3652_v38, -1e+30 }
 0x5a5   : > { %v4062_v30 = vrot.slane %v4061_v25, 1 }
 0x5a6   : > { %v9324_v26 = vpop.eup %9323  ;;  %v3807_v54 = vmax.f32 %v3805_v4, %v3806_v28 }
 0x5a7   : > { %v9326_v32 = vpop.eup %9325  ;;  %v4063_v50 = vadd.f32 %v4062_v30, %v4061_v25  ;;  %v11868_v53 = vmul.f32 %v9324_v26, %v14400_v14  ;;  %v14410_v26 = vld [vmem:[#allocation83_spill] sm:$0xff] }
 0x5a8   : > { %v11865_v63 = vmul.f32 %v9326_v32, %v14402_v7  ;;  %v3808_v40 = vrot.slane %v3807_v54, 1  ;;  %vm14411_vm8 = vcmp.gt.f32.partialorder %v14410_v26, 0.0 }
 0x5a9   : > { %v4143_v55 = vmax.f32 %v4063_v50, 1e-20  ;;  %v4064_v6 = vsel %vm2118_vm5, %v11868_v53, 0.0 }
 0x5aa   : > { %v3809_v46 = vmax.f32 %v3807_v54, %v3808_v40  ;;  %v4065_v45 = vsel %vm2118_vm5, %v11865_v63, 0.0  ;;  %v3810_v54 = vsel %vm2118_vm5, %v3708_v37, -inf }
 0x5ab   : > { %v3655_v9 = vpop.f32.mrf.mxu1  ;;  %9327 = vrcp.f32 %v4143_v55  ;;  %v4066_v4 = vadd.f32 %v4065_v45, %v4064_v6 }
 0x5ac   : > { %v3882_v34 = vsub.f32 %v3706_v11, %v3809_v46  ;;  %v3883_v25 = vsub.f32 %v3707_v35, %v3809_v46  ;;  %v3709_v28 = vsel %vm14411_vm8, %v3655_v9, -1e+30  ;;  %8574 = vmatmul.msk.f32.gmra.mxu2 %vm2118_vm5, %v4181_v52 }
 0x5ad   : > { %v3811_v3 = vsel %vm2118_vm5, %v3709_v28, -inf  ;;  %v4067_v22 = vrot.slane %v4066_v4, 4 }
 0x5ae   : > { %v3932_v38 = vmul.f32 1.442695, %v3882_v34  ;;  %v3934_v30 = vmul.f32 1.442695, %v3883_v25  ;;  %v3812_v32 = vmax.f32 %v3810_v54, %v3811_v3 }
 0x5af   : > { %v4068_v50 = vadd.f32 %v4067_v22, %v4066_v4 }
 0x5b0   : > { %9329 = vpow2.f32 %v3932_v38  ;;  %v3813_v40 = vrot.slane %v3812_v32, 4 }
 0x5b1   : > { %v9328_v55 = vpop.eup %9327  ;;  %9331 = vpow2.f32 %v3934_v30  ;;  %v4069_v11 = vrot.slane %v4068_v50, 2  ;;  %v14412_v30 = vld [vmem:[#allocation84_spill] sm:$0xff] }
 0x5b2   : > { %v3814_v35 = vmax.f32 %v3812_v32, %v3813_v40  ;;  %v4182_v46 = vmul.f32 %v9328_v55, %v11848_v20  ;;  %v4183_v22 = vmul.f32 %v9328_v55, %v11845_v15  ;;  %vm14413_vm0 = vcmp.gt.f32.partialorder %v14412_v30, 0.0 }
 0x5b3   : > { %v3658_v6 = vpop.f32.mrf.mxu1  ;;  %v4070_v45 = vadd.f32 %v4069_v11, %v4068_v50 }
 0x5b4   : > { %v3815_v52 = vrot.slane %v3814_v35, 2  ;;  %8575 = vmatmul.msk.f32.gmra.mxu2 %vm2118_vm5, %v4182_v46  ;;  %v3710_v32 = vsel %vm14413_vm0, %v3658_v6, -1e+30 }
 0x5b5   : > { %v4071_v9 = vrot.slane %v4070_v45, 1 }
 0x5b6   : > { %v9330_v7 = vpop.eup %9329  ;;  %v3816_v14 = vmax.f32 %v3814_v35, %v3815_v52 }
 0x5b7   : > { %v9332_v34 = vpop.eup %9331  ;;  %v4072_v25 = vadd.f32 %v4071_v9, %v4070_v45  ;;  %v11888_v3 = vmul.f32 %v9330_v7, %v14404_v62  ;;  %v14414_v7 = vld [vmem:[#allocation85_spill] sm:$0xff] }
 0x5b8   : > { %v11885_v4 = vmul.f32 %v9332_v34, %v14406_v58  ;;  %v3817_v54 = vrot.slane %v3816_v14, 1  ;;  %vm14415_vm7 = vcmp.gt.f32.partialorder %v14414_v7, 0.0 }
 0x5b9   : > { %v4144_v20 = vmax.f32 %v4072_v25, 1e-20  ;;  %v4073_v50 = vsel %vm2118_vm5, %v11888_v3, 0.0 }
 0x5ba   : > { %v3818_v38 = vmax.f32 %v3816_v14, %v3817_v54  ;;  %v4074_v40 = vsel %vm2118_vm5, %v11885_v4, 0.0  ;;  %v3819_v14 = vsel %vm2118_vm5, %v3710_v32, -inf }
 0x5bb   : > { %v3661_v11 = vpop.f32.mrf.mxu1  ;;  %9333 = vrcp.f32 %v4144_v20  ;;  %v4075_v35 = vadd.f32 %v4074_v40, %v4073_v50 }
 0x5bc   : > { %v3884_v46 = vsub.f32 %v3708_v37, %v3818_v38  ;;  %v3885_v45 = vsub.f32 %v3709_v28, %v3818_v38  ;;  %v3711_v52 = vsel %vm14415_vm7, %v3661_v11, -1e+30  ;;  %8576 = vmatmul.msk.f32.gmra.mxu2 %vm2118_vm5, %v4183_v22 }
 0x5bd   : > { %v3820_v15 = vsel %vm2118_vm5, %v3711_v52, -inf  ;;  %v4076_v55 = vrot.slane %v4075_v35, 4 }
 0x5be   : > { %v3936_v6 = vmul.f32 1.442695, %v3884_v46  ;;  %v3938_v9 = vmul.f32 1.442695, %v3885_v45  ;;  %v3821_v34 = vmax.f32 %v3819_v14, %v3820_v15 }
 0x5bf   : > { %v4077_v25 = vadd.f32 %v4076_v55, %v4075_v35 }
 0x5c0   : > { %9335 = vpow2.f32 %v3936_v6  ;;  %v3822_v54 = vrot.slane %v3821_v34, 4 }
 0x5c1   : > { %v9334_v20 = vpop.eup %9333  ;;  %9337 = vpow2.f32 %v3938_v9  ;;  %v4078_v37 = vrot.slane %v4077_v25, 2 }
 0x5c2   : > { %v3823_v28 = vmax.f32 %v3821_v34, %v3822_v54  ;;  %v4184_v38 = vmul.f32 %v9334_v20, %v11868_v53  ;;  %v4185_v53 = vmul.f32 %v9334_v20, %v11865_v63 }
 0x5c3   : > { %v3664_v50 = vpop.f32.mrf.mxu1  ;;  %v4079_v40 = vadd.f32 %v4078_v37, %v4077_v25  ;;  %v14416_v25 = vld [vmem:[#allocation86_spill] sm:$0xff] }
 0x5c4   : > { %v3824_v22 = vrot.slane %v3823_v28, 2  ;;  %8577 = vmatmul.msk.f32.gmra.mxu2 %vm2118_vm5, %v4184_v38  ;;  %vm14417_vm11 = vcmp.gt.f32.partialorder %v14416_v25, 0.0 }
 0x5c5   : > { %v4080_v11 = vrot.slane %v4079_v40, 1  ;;  %v3712_v54 = vsel %vm14417_vm11, %v3664_v50, -1e+30 }
 0x5c6   : > { %v9336_v58 = vpop.eup %9335  ;;  %v3825_v62 = vmax.f32 %v3823_v28, %v3824_v22  ;;  %v3828_v63 = vsel %vm2118_vm5, %v3712_v54, -inf }
 0x5c7   : > { %v9338_v46 = vpop.eup %9337  ;;  %v4313_v45 = vpop.f32.mrf.mxu2  ;;  %v4081_v14 = vadd.f32 %v4080_v11, %v4079_v40  ;;  %v11908_v55 = vmul.f32 %v9336_v58, %v14408_v21  ;;  %v14418_v58 = vld [vmem:[#allocation87_spill] sm:$0xff] }
 0x5c8   : > { %v11905_v35 = vmul.f32 %v9338_v46, %v14410_v26  ;;  %v3826_v15 = vrot.slane %v3825_v62, 1  ;;  %vm14419_vm8 = vcmp.gt.f32.partialorder %v14418_v58, 0.0 }
 0x5c9   : > { %v4145_v6 = vmax.f32 %v4081_v14, 1e-20  ;;  %v4082_v37 = vsel %vm2118_vm5, %v11908_v55, 0.0 }
 0x5ca   : > { %v4083_v9 = vsel %vm2118_vm5, %v11905_v35, 0.0  ;;  %v3827_v34 = vmax.f32 %v3825_v62, %v3826_v15 }
 0x5cb   : > { %v3667_v28 = vpop.f32.mrf.mxu1  ;;  %9339 = vrcp.f32 %v4145_v6  ;;  %v4084_v38 = vadd.f32 %v4083_v9, %v4082_v37  ;;  %v4409_v6 = vmul.f32 %v4313_v45, %v11456_v12 }
 0x5cc   : > { %v3886_v40 = vsub.f32 %v3710_v32, %v3827_v34  ;;  %v3887_v22 = vsub.f32 %v3711_v52, %v3827_v34  ;;  %v3713_v11 = vsel %vm14419_vm8, %v3667_v28, -1e+30  ;;  %8578 = vmatmul.msk.f32.gmra.mxu2 %vm2118_vm5, %v4185_v53 }
 0x5cd   : > { %v3829_v62 = vsel %vm2118_vm5, %v3713_v11, -inf  ;;  %v4085_v20 = vrot.slane %v4084_v38, 4 }
 0x5ce   : > { %v3940_v46 = vmul.f32 1.442695, %v3886_v40  ;;  %v3942_v50 = vmul.f32 1.442695, %v3887_v22  ;;  %v3830_v14 = vmax.f32 %v3828_v63, %v3829_v62 }
 0x5cf   : > { %v4316_v15 = vpop.f32.mrf.mxu2  ;;  %v4086_v26 = vadd.f32 %v4085_v20, %v4084_v38 }
 0x5d0   : > { %9341 = vpow2.f32 %v3940_v46  ;;  %v3831_v32 = vrot.slane %v3830_v14, 4  ;;  %v4410_v52 = vmul.f32 %v4316_v15, %v11458_v39 }
 0x5d1   : > { %v9340_v9 = vpop.eup %9339  ;;  %9343 = vpow2.f32 %v3942_v50  ;;  %v4087_v34 = vrot.slane %v4086_v26, 2 }
 0x5d2   : > { %v3832_v53 = vmax.f32 %v3830_v14, %v3831_v32  ;;  %v11924_v37 = vadd.f32 %v4410_v52, %v4409_v6  ;;  %v4186_v28 = vmul.f32 %v9340_v9, %v11888_v3  ;;  %v4187_v32 = vmul.f32 %v9340_v9, %v11885_v4 }
 0x5d3   : > { %v3670_v21 = vpop.f32.mrf.mxu1  ;;  %v4088_v40 = vadd.f32 %v4087_v34, %v4086_v26 }
 0x5d4   : > { %v3833_v22 = vrot.slane %v3832_v53, 2  ;;  %8579 = vmatmul.msk.f32.gmra.mxu2 %vm2118_vm5, %v4186_v28 }
 0x5d5   : > { %v4089_v38 = vrot.slane %v4088_v40, 1 }
 0x5d6   : > { %v9342_v63 = vpop.eup %9341  ;;  %v3834_v62 = vmax.f32 %v3832_v53, %v3833_v22 }
 0x5d7   : > { %v9344_v45 = vpop.eup %9343  ;;  %v4319_v20 = vpop.f32.mrf.mxu2  ;;  %v4090_v46 = vadd.f32 %v4089_v38, %v4088_v40  ;;  %v11932_v6 = vmul.f32 %v9342_v63, %v14412_v30  ;;  %v14420_v40 = vld [vmem:[#allocation88_spill] sm:$0xff]  ;;  %v14422_v38 = vld [vmem:[#allocation89_spill] sm:$0xff] }
 0x5d8   : > { %v11929_v15 = vmul.f32 %v9344_v45, %v14414_v7  ;;  %v3835_v50 = vrot.slane %v3834_v62, 1  ;;  %vm14421_vm0 = vcmp.gt.f32.partialorder %v14420_v40, 0.0  ;;  %vm14423_vm7 = vcmp.gt.f32.partialorder %v14422_v38, 0.0 }
 0x5d9   : > { %v4146_v14 = vmax.f32 %v4090_v46, 1e-20  ;;  %v4091_v34 = vsel %vm2118_vm5, %v11932_v6, 0.0  ;;  %v3714_v22 = vsel %vm14421_vm0, %v3670_v21, -1e+30 }
 0x5da   : > { %v4092_v26 = vsel %vm2118_vm5, %v11929_v15, 0.0  ;;  %v3836_v3 = vmax.f32 %v3834_v62, %v3835_v50  ;;  %v3837_v4 = vsel %vm2118_vm5, %v3714_v22, -inf }
 0x5db   : > { %v3673_v52 = vpop.f32.mrf.mxu1  ;;  %9345 = vrcp.f32 %v4146_v14  ;;  %v4093_v45 = vadd.f32 %v4092_v26, %v4091_v34 }
 0x5dc   : > { %v3888_v53 = vsub.f32 %v3712_v54, %v3836_v3  ;;  %v3889_v28 = vsub.f32 %v3713_v11, %v3836_v3  ;;  %8580 = vmatmul.msk.f32.gmra.mxu2 %vm2118_vm5, %v4187_v32  ;;  %v3715_v63 = vsel %vm14423_vm7, %v3673_v52, -1e+30  ;;  %v4411_v54 = vmul.f32 %v4319_v20, %v11456_v12 }
 0x5dd   : > { %v3838_v9 = vsel %vm2118_vm5, %v3715_v63, -inf  ;;  %v4094_v14 = vrot.slane %v4093_v45, 4 }
 0x5de   : > { %v3944_v46 = vmul.f32 1.442695, %v3888_v53  ;;  %v3946_v62 = vmul.f32 1.442695, %v3889_v28  ;;  %v3839_v11 = vmax.f32 %v3837_v4, %v3838_v9  ;;  %v8937_v53 = vld [vmem:[%s10402_s15 + $0xb8] sm:$0xff] }
 0x5df   : > { %v4322_v50 = vpop.f32.mrf.mxu2  ;;  %v4095_v32 = vadd.f32 %v4094_v14, %v4093_v45  ;;  %4912 = vmatpush.bf16.msra.mxu3 %v8937_v53 }
 0x5e0   : > { %9347 = vpow2.f32 %v3944_v46  ;;  %v4412_v21 = vmul.f32 %v4322_v50, %v11458_v39  ;;  %v3840_v52 = vrot.slane %v3839_v11, 4 }
 0x5e1   : > { %v9346_v3 = vpop.eup %9345  ;;  %9349 = vpow2.f32 %v3946_v62  ;;  %v4096_v7 = vrot.slane %v4095_v32, 2 }
 0x5e2   : > { %v11948_v26 = vadd.f32 %v4412_v21, %v4411_v54  ;;  %v4188_v34 = vmul.f32 %v9346_v3, %v11908_v55  ;;  %v3841_v30 = vmax.f32 %v3839_v11, %v3840_v52  ;;  %v4189_v21 = vmul.f32 %v9346_v3, %v11905_v35 }
 0x5e3   : > { %v3676_v28 = vpop.f32.mrf.mxu1  ;;  %v4097_v46 = vadd.f32 %v4096_v7, %v4095_v32  ;;  %v14424_v7 = vld [vmem:[#allocation90_spill] sm:$0xff] }
 0x5e4   : > { %8581 = vmatmul.msk.f32.gmra.mxu2 %vm2118_vm5, %v4188_v34  ;;  %v3842_v4 = vrot.slane %v3841_v30, 2  ;;  %vm14425_vm11 = vcmp.gt.f32.partialorder %v14424_v7, 0.0  ;;  %v4449_v31 = vrot.slane %v11948_v26, 4 }
 0x5e5   : > { %v4098_v51 = vrot.slane %v4097_v46, 1  ;;  %v3716_v32 = vsel %vm14425_vm11, %v3676_v28, -1e+30 }
 0x5e6   : > { %v9348_v20 = vpop.eup %9347  ;;  %v3843_v62 = vmax.f32 %v3841_v30, %v3842_v4  ;;  %v14426_v30 = vld [vmem:[#allocation91_spill] sm:$0xff]  ;;  %v3846_v3 = vsel %vm2118_vm5, %v3716_v32, -inf }
 0x5e7   : > { %v9350_v9 = vpop.eup %9349  ;;  %v4325_v50 = vpop.f32.mrf.mxu2  ;;  %v4099_v14 = vadd.f32 %v4098_v51, %v4097_v46  ;;  %v11957_v55 = vmul.f32 %v9348_v20, %v14416_v25  ;;  %vm14427_vm8 = vcmp.gt.f32.partialorder %v14426_v30, 0.0 }
 0x5e8   : > { %v11954_v45 = vmul.f32 %v9350_v9, %v14418_v58  ;;  %v3844_v11 = vrot.slane %v3843_v62, 1 }
 0x5e9   : > { %v4147_v34 = vmax.f32 %v4099_v14, 1e-20  ;;  %v4100_v53 = vsel %vm2118_vm5, %v11957_v55, 0.0 }
 0x5ea   : > { %v4101_v54 = vsel %vm2118_vm5, %v11954_v45, 0.0  ;;  %v3845_v9 = vmax.f32 %v3843_v62, %v3844_v11  ;;  %v4413_v62 = vmul.f32 %v4325_v50, %v11456_v12 }
 0x5eb   : > { %v3679_v52 = vpop.f32.mrf.mxu1  ;;  %9351 = vrcp.f32 %v4147_v34  ;;  %v4102_v20 = vadd.f32 %v4101_v54, %v4100_v53 }
 0x5ec   : > { %v3717_v51 = vsel %vm14427_vm8, %v3679_v52, -1e+30  ;;  %8582 = vmatmul.msk.f32.gmra.mxu2 %vm2118_vm5, %v4189_v21  ;;  %v3890_v4 = vsub.f32 %v3714_v22, %v3845_v9  ;;  %v3891_v35 = vsub.f32 %v3715_v63, %v3845_v9  ;;  %v8929_v63 = vld [vmem:[%s10397_s14 + $0xb8] sm:$0xff] }
 0x5ed   : > { %v3847_v46 = vsel %vm2118_vm5, %v3717_v51, -inf  ;;  %v4103_v58 = vrot.slane %v4102_v20, 4  ;;  %4831 = vmatpush.bf16.msra.mxu0 %v8929_v63 }
 0x5ee   : > { %v3848_v28 = vmax.f32 %v3846_v3, %v3847_v46  ;;  %v3948_v25 = vmul.f32 1.442695, %v3890_v4  ;;  %v3950_v56 = vmul.f32 1.442695, %v3891_v35 }
 0x5ef   : > { %v4328_v14 = vpop.f32.mrf.mxu2  ;;  %v4104_v21 = vadd.f32 %v4103_v58, %v4102_v20 }
 0x5f0   : > { %v3849_v11 = vrot.slane %v3848_v28, 4  ;;  %v4414_v52 = vmul.f32 %v4328_v14, %v11458_v39  ;;  %9353 = vpow2.f32 %v3948_v25 }
 0x5f1   : > { %v9352_v42 = vpop.eup %9351  ;;  %9355 = vpow2.f32 %v3950_v56  ;;  %v4105_v53 = vrot.slane %v4104_v21, 2  ;;  %4832 = vmatpush.bf16.msra.mxu0 %v8928_v13 }
 0x5f2   : > { %v3850_v54 = vmax.f32 %v3848_v28, %v3849_v11  ;;  %v11973_v22 = vadd.f32 %v4414_v52, %v4413_v62  ;;  %v4190_v9 = vmul.f32 %v9352_v42, %v11932_v6  ;;  %v14428_v62 = vld [vmem:[#allocation92_spill] sm:$0xff] }
 0x5f3   : > { %v3682_v34 = vpop.f32.mrf.mxu1  ;;  %v4106_v4 = vadd.f32 %v4105_v53, %v4104_v21  ;;  %vm14429_vm0 = vcmp.gt.f32.partialorder %v14428_v62, 0.0  ;;  %v14430_v53 = vld [vmem:[#allocation93_spill] sm:$0xff] }
 0x5f4   : > { %v3851_v46 = vrot.slane %v3850_v54, 2  ;;  %8583 = vmatmul.msk.f32.gmra.mxu2 %vm2118_vm5, %v4190_v9  ;;  %v3718_v6 = vsel %vm14429_vm0, %v3682_v34, -1e+30  ;;  %vm14431_vm7 = vcmp.gt.f32.partialorder %v14430_v53, 0.0 }
 0x5f5   : > { %v4107_v3 = vrot.slane %v4106_v4, 1 }
 0x5f6   : > { %v3852_v50 = vmax.f32 %v3850_v54, %v3851_v46  ;;  %v9354_v58 = vpop.eup %9353  ;;  %v4191_v46 = vmul.f32 %v9352_v42, %v11929_v15 }
 0x5f7   : > { %v4331_v35 = vpop.f32.mrf.mxu2  ;;  %v9356_v25 = vpop.eup %9355  ;;  %v4108_v56 = vadd.f32 %v4107_v3, %v4106_v4  ;;  %v11979_v28 = vmul.f32 %v9354_v58, %v14420_v40  ;;  %v3855_v58 = vsel %vm2118_vm5, %v3718_v6, -inf }
 0x5f8   : > { %v3853_v20 = vrot.slane %v3852_v50, 1  ;;  %v11982_v14 = vmul.f32 %v9356_v25, %v14422_v38  ;;  %v4415_v40 = vmul.f32 %v4331_v35, %v11456_v12 }
 0x5f9   : > { %v4148_v21 = vmax.f32 %v4108_v56, 1e-20  ;;  %v4109_v54 = vsel %vm2118_vm5, %v11979_v28, 0.0 }
 0x5fa   : > { %v3854_v11 = vmax.f32 %v3852_v50, %v3853_v20  ;;  %v4110_v63 = vsel %vm2118_vm5, %v11982_v14, 0.0 }
 0x5fb   : > { %v3685_v52 = vpop.f32.mrf.mxu1  ;;  %9357 = vrcp.f32 %v4148_v21  ;;  %v4111_v25 = vadd.f32 %v4110_v63, %v4109_v54 }
 0x5fc   : > { %v3719_v9 = vsel %vm14431_vm7, %v3685_v52, -1e+30  ;;  %v3892_v4 = vsub.f32 %v3716_v32, %v3854_v11  ;;  %v3893_v3 = vsub.f32 %v3717_v51, %v3854_v11  ;;  %8584 = vmatmul.msk.f32.gmra.mxu2 %vm2118_vm5, %v4191_v46  ;;  %v8936_v11 = vld [vmem:[%s10402_s15 + $0xb0] sm:$0xff]  ;;  %vm14435_vm7 = vcmask 1044484  }
 0x5fd   : > { %v3856_v34 = vsel %vm2118_vm5, %v3719_v9, -inf  ;;  %v4112_v15 = vrot.slane %v4111_v25, 4  ;;  %4913 = vmatpush.bf16.msra.mxu3 %v8936_v11 }
 0x5fe   : > { %v3857_v50 = vmax.f32 %v3855_v58, %v3856_v34  ;;  %v3952_v20 = vmul.f32 1.442695, %v3892_v4  ;;  %v3954_v56 = vmul.f32 1.442695, %v3893_v3 }
 0x5ff   : > { %v4334_v38 = vpop.f32.mrf.mxu2  ;;  %v4113_v58 = vadd.f32 %v4112_v15, %v4111_v25 }
 0x600   : > { %v3858_v52 = vrot.slane %v3857_v50, 4  ;;  %v4416_v42 = vmul.f32 %v4334_v38, %v11458_v39  ;;  %9359 = vpow2.f32 %v3952_v20 }
 0x601   : > { %9361 = vpow2.f32 %v3954_v56  ;;  %v9358_v34 = vpop.eup %9357  ;;  %v4114_v54 = vrot.slane %v4113_v58, 2 }
 0x602   : > { %v3859_v32 = vmax.f32 %v3857_v50, %v3858_v52  ;;  %v11998_v51 = vadd.f32 %v4416_v42, %v4415_v40  ;;  %v4192_v21 = vmul.f32 %v9358_v34, %v11957_v55 }
 0x603   : > { %v4115_v38 = vadd.f32 %v4114_v54, %v4113_v58 }
 0x604   : > { %v3860_v46 = vrot.slane %v3859_v32, 2  ;;  %8585 = vmatmul.msk.f32.gmra.mxu2 %vm2118_vm5, %v4192_v21 }
 0x605   : > { %v4116_v20 = vrot.slane %v4115_v38, 1 }
 0x606   : > { %v3861_v63 = vmax.f32 %v3859_v32, %v3860_v46  ;;  %v9360_v4 = vpop.eup %9359  ;;  %v4193_v46 = vmul.f32 %v9358_v34, %v11954_v45 }
 0x607   : > { %v12003_v35 = vpop.f32.mrf.mxu2  ;;  %v9362_v3 = vpop.eup %9361  ;;  %v3988_v40 = vmul.f32 %v9360_v4, %v14424_v7  ;;  %v4117_v42 = vadd.f32 %v4116_v20, %v4115_v38 }
 0x608   : > { %v3862_v50 = vrot.slane %v3861_v63, 1  ;;  %v3989_v25 = vmul.f32 %v9362_v3, %v14426_v30 }
 0x609   : > { %v4118_v52 = vsel %vm2118_vm5, %v3988_v40, 0.0  ;;  %v4149_v58 = vmax.f32 %v4117_v42, 1e-20 }
 0x60a   : > { %v3863_v56 = vmax.f32 %v3861_v63, %v3862_v50  ;;  %v4119_v55 = vsel %vm2118_vm5, %v3989_v25, 0.0 }
 0x60b   : > { %v4120_v11 = vadd.f32 %v4119_v55, %v4118_v52  ;;  %9363 = vrcp.f32 %v4149_v58 }
 0x60c   : > { %v3894_v15 = vsub.f32 %v3718_v6, %v3863_v56  ;;  %v3895_v32 = vsub.f32 %v3719_v9, %v3863_v56  ;;  %8586 = vmatmul.msk.f32.gmra.mxu2 %vm2118_vm5, %v4193_v46 }
 0x60d   : > { %v4121_v24 = vrot.slane %v4120_v11, 4 }
 0x60e   : > { %v3956_v21 = vmul.f32 1.442695, %v3894_v15  ;;  %v3958_v54 = vmul.f32 1.442695, %v3895_v32  ;;  %v8935_v15 = vld [vmem:[%s10402_s15 + $0xa8] sm:$0xff] }
 0x60f   : > { %v12012_v4 = vpop.f32.mrf.mxu2  ;;  %v4122_v63 = vadd.f32 %v4121_v24, %v4120_v11  ;;  %4914 = vmatpush.bf16.msra.mxu3 %v8935_v15 }
 0x610   : > { %9365 = vpow2.f32 %v3956_v21 }
 0x611   : > { %9367 = vpow2.f32 %v3958_v54  ;;  %v4123_v6 = vrot.slane %v4122_v63, 2  ;;  %v9364_v38 = vpop.eup %9363 }
 0x612   : > { %v4194_v45 = vmul.f32 %v9364_v38, %v11979_v28  ;;  %v4195_v28 = vmul.f32 %v9364_v38, %v11982_v14  ;;  %v8927_v14 = vld [vmem:[%s10397_s14 + $0xa8] sm:$0xff] }
 0x613   : > { %v4124_v9 = vadd.f32 %v4123_v6, %v4122_v63  ;;  %4833 = vmatpush.bf16.msra.mxu0 %v8927_v14 }
 0x614   : > { %8587 = vmatmul.msk.f32.gmra.mxu2 %vm2118_vm5, %v4194_v45 }
 0x615   : > { %v4125_v20 = vrot.slane %v4124_v9, 1 }
 0x616   : > { %v9366_v3 = vpop.eup %9365 }
 0x617   : > { %v9368_v34 = vpop.eup %9367  ;;  %v12015_v50 = vpop.f32.mrf.mxu2  ;;  %v4126_v52 = vadd.f32 %v4125_v20, %v4124_v9  ;;  %v3990_v13 = vmul.f32 %v9366_v3, %v14428_v62 }
 0x618   : > { %v3991_v56 = vmul.f32 %v9368_v34, %v14430_v53  ;;  %v8924_v53 = vld [vmem:[%s10397_s14 + $0x90] sm:$0xff] }
 0x619   : > { %v4150_v55 = vmax.f32 %v4126_v52, 1e-20  ;;  %v4127_v42 = vsel %vm2118_vm5, %v3990_v13, 0.0 }
 0x61a   : > { %v4128_v24 = vsel %vm2118_vm5, %v3991_v56, 0.0 }
 0x61b   : > { %v4129_v32 = vadd.f32 %v4128_v24, %v4127_v42  ;;  %9369 = vrcp.f32 %v4150_v55  ;;  %v8934_v55 = vld [vmem:[%s10402_s15 + $0xa0] sm:$0xff] }
 0x61c   : > { %8588 = vmatmul.msk.f32.gmra.mxu2 %vm2118_vm5, %v4195_v28  ;;  %4915 = vmatpush.bf16.msra.mxu3 %v8934_v55  ;;  %v8926_v28 = vld [vmem:[%s10397_s14 + $0xa0] sm:$0xff] }
 0x61d   : > { %v4130_v11 = vrot.slane %v4129_v32, 4  ;;  %4834 = vmatpush.bf16.msra.mxu0 %v8926_v28 }
 0x61f   : > { %v12024_v46 = vpop.f32.mrf.mxu2  ;;  %v4131_v58 = vadd.f32 %v4130_v11, %v4129_v32 }
 0x621   : > { %v4132_v21 = vrot.slane %v4131_v58, 2  ;;  %v9370_v54 = vpop.eup %9369 }
 0x622   : > { %v4196_v63 = vmul.f32 %v9370_v54, %v3988_v40  ;;  %v4197_v38 = vmul.f32 %v9370_v54, %v3989_v25 }
 0x623   : > { %v4133_v6 = vadd.f32 %v4132_v21, %v4131_v58  ;;  %v8933_v58 = vld [vmem:[%s10402_s15 + $0x98] sm:$0xff] }
 0x624   : > { %8589 = vmatmul.msk.f32.gmra.mxu2 %vm2118_vm5, %v4196_v63  ;;  %4916 = vmatpush.bf16.msra.mxu3 %v8933_v58  ;;  %v8925_v63 = vld [vmem:[%s10397_s14 + $0x98] sm:$0xff] }
 0x625   : > { %v4134_v3 = vrot.slane %v4133_v6, 1  ;;  %4835 = vmatpush.bf16.msra.mxu0 %v8925_v63 }
 0x627   : > { %v12027_v9 = vpop.f32.mrf.mxu2  ;;  %v4135_v45 = vadd.f32 %v4134_v3, %v4133_v6  ;;  %v4571_v6 = vld [vmem:[%s10324_s5 + $0x1] sm:$0x1] }
 0x628   : > { %v4572_v3 = vadd.f32 1e-05, %v4571_v6 }
 0x629   : > { %v4151_v34 = vmax.f32 %v4135_v45, 1e-20  ;;  %4836 = vmatpush.bf16.msra.mxu0 %v8924_v53 }
 0x62a   : > { %vm4579_vm11 = vweird.f32 %v4572_v3 }
 0x62b   : > { %9371 = vrcp.f32 %v4151_v34  ;;  %v4442_v34 = vrot.slane %v11924_v37, 4 }
 0x62c   : > { %8590 = vmatmul.msk.f32.gmra.mxu2 %vm2118_vm5, %v4197_v38  ;;  %9373 = vrsqrt.f32 %v4572_v3  ;;  %v8932_v38 = vld [vmem:[%s10402_s15 + $0x90] sm:$0xff] }
 0x62d   : > { %4917 = vmatpush.bf16.msra.mxu3 %v8932_v38 }
 0x62f   : > { %v12031_v20 = vpop.f32.mrf.mxu2 }
 0x631   : > { %v9372_v40 = vpop.eup %9371  ;;  %4918 = vmatpush.bf16.msra.mxu3 %v8931_v48  ;;  %v12102_v48 = vld [vmem:[%s10318_s22 + $0x1] ss:$0 sm:$0xff] }
 0x632   : > { %v4198_v52 = vmul.f32 %v9372_v40, %v3990_v13  ;;  %v4199_v42 = vmul.f32 %v9372_v40, %v3991_v56  ;;  %v9374_v14 = vpop.eup %9373  ;;  %v4443_v40 = vadd.f32 %v4442_v34, %v11924_v37 }
 0x633   : > { %vm4580_vm8 = vweird.f32 %v9374_v14 }
 0x634   : > { %8591 = vmatmul.msk.f32.gmra.mxu2 %vm2118_vm5, %v4198_v52  ;;  %v4574_v52 = vmul.f32 %v9374_v14, %v4572_v3  ;;  %vm12053_vm0 = vmor %vm4579_vm11, %vm4580_vm8  ;;  %v4450_v3 = vadd.f32 %v4449_v31, %v11948_v26  ;;  %vm14437_vm8 = vcmask 1045509  }
 0x635   : > { %vm14436_vm11 = vmmov %vm14435_vm7 }
 0x636   : > { %v4575_v28 = vmul.f32 %v9374_v14, %v4574_v52 }
 0x637   : > { %v12034_v24 = vpop.f32.mrf.mxu2 }
 0x638   : > { %v4576_v63 = vmul.f32 0.5, %v4575_v28  ;;  %v4420_v28 = vmul.f32 %v12024_v46, %v11458_v39  ;;  %v4422_v46 = vmul.f32 %v12031_v20, %v11458_v39  ;;  %v4423_v20 = vmul.f32 %v12034_v24, %v11456_v12 }
 0x63a   : > { %v4577_v6 = vsub.f32 1.5, %v4576_v63 }
 0x63c   : > { %8592 = vmatmul.msk.f32.gmra.mxu2 %vm2118_vm5, %v4199_v42  ;;  %v4444_v42 = vrot.slane %v4443_v40, 2  ;;  %v4578_v38 = vmul.f32 %v9374_v14, %v4577_v6 }
 0x63e   : > { %v4445_v58 = vadd.f32 %v4444_v42, %v4443_v40  ;;  %v4582_v53 = vsel %vm12053_vm0, %v9374_v14, %v4578_v38  ;;  %v4418_v42 = vmul.f32 %v12012_v4, %v11458_v39  ;;  %v4417_v14 = vmul.f32 %v12003_v35, %v11456_v12  ;;  %vm14438_vm0 = vmmov %vm14437_vm8 }
 0x63f   : > { %v4358_v15 = vpop.f32.mrf.mxu2  ;;  %v4419_v4 = vmul.f32 %v12015_v50, %v11456_v12  ;;  %v4421_v50 = vmul.f32 %v12027_v9, %v11456_v12 }
 0x640   : > { %v4446_v30 = vrot.slane %v4445_v58, 1  ;;  %v4424_v63 = vmul.f32 %v4358_v15, %v11458_v39  ;;  %v4469_v38 = vadd.f32 %v4418_v42, %v4417_v14 }
 0x641   : > { %v4476_v37 = vadd.f32 %v4420_v28, %v4419_v4  ;;  %v4483_v42 = vadd.f32 %v4422_v46, %v4421_v50 }
 0x642   : > { %v4447_v7 = vadd.f32 %v4446_v30, %v4445_v58  ;;  %v4490_v28 = vadd.f32 %v4424_v63, %v4423_v20 }
 0x644   : > { %v4555_v40 = vadd.f32 %v12050_v18, %v4447_v7  ;;  %v4456_v7 = vrot.slane %v11973_v22, 4 }
 0x646   : > { %v4457_v14 = vadd.f32 %v4456_v7, %v11973_v22  ;;  %v4491_v22 = vrot.slane %v4490_v28, 4 }
 0x647   : > { %v12039_v25 = vpop.f32.mrf.mxu2 }
 0x648   : > { %v4425_v15 = vmul.f32 %v12039_v25, %v11456_v12 }
 0x64f   : > { %v4364_v32 = vpop.f32.mrf.mxu2 }
 0x650   : > { %v4426_v35 = vmul.f32 %v4364_v32, %v11458_v39 }
 0x657   : > { %v4367_v11 = vpop.f32.mrf.mxu2 }
 0x658   : > { %v4427_v58 = vmul.f32 %v4367_v11, %v11456_v12 }
 0x65f   : > { %v4370_v13 = vpop.f32.mrf.mxu2 }
 0x660   : > { %v4428_v34 = vmul.f32 %v4370_v13, %v11458_v39 }
 0x662   : > { %v4504_v11 = vadd.f32 %v4428_v34, %v4427_v58  ;;  %v12094_v34 = vperm.slane %v4582_v53, 0  ;;  %v4497_v58 = vadd.f32 %v4426_v35, %v4425_v15  ;;  %v4470_v53 = vrot.slane %v4469_v38, 4 }
 0x664   : > { %v4498_v7 = vrot.slane %v4497_v58, 4 }
 0x667   : > { %v4373_v21 = vpop.f32.mrf.mxu2 }
 0x668   : > { %v4429_v31 = vmul.f32 %v4373_v21, %v11456_v12 }
 0x66f   : > { %v4376_v54 = vpop.f32.mrf.mxu2 }
 0x670   : > { %v4430_v30 = vmul.f32 %v4376_v54, %v11458_v39  ;;  %v12075_v54 = vld [vmem:[%s10322_s21 + $0x1] ss:$0 sm:$0xff] }
 0x671   : > { %v4585_v32 = vsub.f32 %v4555_v40, %v12075_v54 }
 0x672   : > { %v4511_v6 = vadd.f32 %v4430_v30, %v4429_v31  ;;  %v4505_v30 = vrot.slane %v4504_v11, 4 }
 0x674   : > { %v4506_v63 = vadd.f32 %v4505_v30, %v4504_v11  ;;  %v4499_v30 = vadd.f32 %v4498_v7, %v4497_v58 }
 0x676   : > { %v4507_v16 = vrot.slane %v4506_v63, 2 }
 0x677   : > { %v4379_v56 = vpop.f32.mrf.mxu2 }
 0x67f   : > { %v4382_v45 = vpop.f32.mrf.mxu2 }
 0x680   : > { %v4432_v13 = vmul.f32 %v4382_v45, %v11458_v39  ;;  %v4431_v45 = vmul.f32 %v4379_v56, %v11456_v12 }
 0x682   : > { %v4518_v44 = vadd.f32 %v4432_v13, %v4431_v45  ;;  %v4512_v13 = vrot.slane %v4511_v6, 4  ;;  %v4602_v45 = vmul.f32 %v12094_v34, %v4585_v32  ;;  %v12106_v32 = vld [vmem:[%s10320_s17 + $0x1] ss:$0 sm:$0xff] }
 0x684   : > { %v4519_v24 = vrot.slane %v4518_v44, 4  ;;  %v4513_v50 = vadd.f32 %v4512_v13, %v4511_v6  ;;  %v4620_v49 = vmul.f32 %v12102_v48, %v4602_v45 }
 0x686   : > { %v4520_v20 = vadd.f32 %v4519_v24, %v4518_v44 }
 0x687   : > { %v4385_v55 = vpop.f32.mrf.mxu2 }
 0x688   : > { %v4433_v21 = vmul.f32 %v4385_v55, %v11456_v12  ;;  %v4451_v55 = vrot.slane %v4450_v3, 2  ;;  %v4521_v44 = vrot.slane %v4520_v20, 2 }
 0x68a   : > { %v4452_v46 = vadd.f32 %v4451_v55, %v4450_v3  ;;  %v4492_v55 = vadd.f32 %v4491_v22, %v4490_v28  ;;  %v4522_v58 = vadd.f32 %v4521_v44, %v4520_v20 }
 0x68c   : > { %v4453_v61 = vrot.slane %v4452_v46, 1  ;;  %v4493_v36 = vrot.slane %v4492_v55, 2 }
 0x68f   : > { %v4388_v62 = vpop.f32.mrf.mxu2 }
 0x690   : > { %v4434_v26 = vmul.f32 %v4388_v62, %v11458_v39  ;;  %v4463_v62 = vrot.slane %v11998_v51, 4 }
 0x692   : > { %v4525_v56 = vadd.f32 %v4434_v26, %v4433_v21  ;;  %v4464_v40 = vadd.f32 %v4463_v62, %v11998_v51  ;;  %v4477_v26 = vrot.slane %v4476_v37, 4  ;;  %v4484_v21 = vrot.slane %v4483_v42, 4 }
 0x693   : > { %v4471_v51 = vadd.f32 %v4470_v53, %v4469_v38  ;;  %v4454_v53 = vadd.f32 %v4453_v61, %v4452_v46 }
 0x694   : > { %v4526_v4 = vrot.slane %v4525_v56, 4  ;;  %v4478_v62 = vadd.f32 %v4477_v26, %v4476_v37  ;;  %v4485_v11 = vadd.f32 %v4484_v21, %v4483_v42  ;;  %v4508_v26 = vadd.f32 %v4507_v16, %v4506_v63  ;;  %v8923_v21 = vld [vmem:[%s10397_s14 + $0x88] sm:$0xff] }
 0x695   : > { %v4472_v24 = vrot.slane %v4471_v51, 2  ;;  %4837 = vmatpush.bf16.msra.mxu0 %v8923_v21  ;;  %v4494_v16 = vadd.f32 %v4493_v36, %v4492_v55 }
 0x696   : > { %v4527_v41 = vadd.f32 %v4526_v4, %v4525_v56  ;;  %v4479_v38 = vrot.slane %v4478_v62, 2  ;;  %v4638_v56 = vadd.f32 %v12106_v32, %v4620_v49  ;;  %v4486_v45 = vrot.slane %v4485_v11, 2 }
 0x697   : > { %v4391_v52 = vpop.f32.mrf.mxu2  ;;  %v4495_v36 = vrot.slane %v4494_v16, 1 }
 0x698   : > { %v4435_v31 = vmul.f32 %v4391_v52, %v11456_v12  ;;  %v4458_v52 = vrot.slane %v4457_v14, 2  ;;  %v4528_v37 = vrot.slane %v4527_v41, 2  ;;  %v4480_v7 = vadd.f32 %v4479_v38, %v4478_v62 }
 0x699   : > { %v4487_v61 = vadd.f32 %v4486_v45, %v4485_v11 }
 0x69a   : > { %v4459_v6 = vadd.f32 %v4458_v52, %v4457_v14  ;;  %v4473_v14 = vadd.f32 %v4472_v24, %v4471_v51  ;;  %v4529_v52 = vadd.f32 %v4528_v37, %v4527_v41  ;;  %v4481_v44 = vrot.slane %v4480_v7, 1 }
 0x69b   : > { %v4488_v11 = vrot.slane %v4487_v61, 1 }
 0x69c   : > { %v4460_v28 = vrot.slane %v4459_v6, 1  ;;  %v4474_v41 = vrot.slane %v4473_v14, 1 }
 0x69d   : > { %v4489_v21 = vadd.f32 %v4488_v11, %v4487_v61 }
 0x69f   : > { %v4394_v9 = vpop.f32.mrf.mxu2 }
 0x6a0   : > { %v4436_v25 = vmul.f32 %v4394_v9, %v11458_v39  ;;  %v4465_v9 = vrot.slane %v4464_v40, 2 }
 0x6a2   : > { %v4532_v35 = vadd.f32 %v4436_v25, %v4435_v31  ;;  %v4514_v31 = vrot.slane %v4513_v50, 2  ;;  %v4466_v13 = vadd.f32 %v4465_v9, %v4464_v40  ;;  %v4654_v40 = vadd.f32 %v4638_v56, %v11271_v60 }
 0x6a3   : > { %v4509_v9 = vrot.slane %v4508_v26, 1  ;;  %v4530_v60 = vrot.slane %v4529_v52, 1 }
 0x6a4   : > { %v4533_v15 = vrot.slane %v4532_v35, 4  ;;  %v4515_v42 = vadd.f32 %v4514_v31, %v4513_v50  ;;  %v4467_v22 = vrot.slane %v4466_v13, 1  ;;  %v4461_v50 = vadd.f32 %v4460_v28, %v4459_v6 }
 0x6a5   : > { %v4523_v31 = vrot.slane %v4522_v58, 1  ;;  %v12114_v24 = vmax.f32 %v4654_v40, 0.0  ;;  %v4510_v38 = vadd.f32 %v4509_v9, %v4508_v26  ;;  %v4531_v45 = vadd.f32 %v4530_v60, %v4529_v52 }
 0x6a6   : > { %v4534_v3 = vadd.f32 %v4533_v15, %v4532_v35  ;;  %v4500_v35 = vrot.slane %v4499_v30, 2  ;;  %v4556_v15 = vadd.f32 %v12050_v18, %v4454_v53  ;;  %v4516_v63 = vrot.slane %v4515_v42, 1 }
 0x6a7   : > { %v4397_v25 = vpop.f32.mrf.mxu2  ;;  %v4468_v62 = vadd.f32 %v4467_v22, %v4466_v13  ;;  %v4557_v56 = vadd.f32 %v12050_v18, %v4461_v50  ;;  %v4475_v13 = vadd.f32 %v4474_v41, %v4473_v14  ;;  %v4686_v26 = vpack.c.bf16 %v12114_v24, %v12114_v24  ;;  %v8922_v50 = vld [vmem:[%s10397_s14 + $0x80] sm:$0xff] }
 0x6a8   : > { %v4535_v4 = vrot.slane %v4534_v3, 2  ;;  %v4501_v46 = vadd.f32 %v4500_v35, %v4499_v30  ;;  %v4437_v20 = vmul.f32 %v4397_v25, %v11456_v12  ;;  %v4517_v30 = vadd.f32 %v4516_v63, %v4515_v42  ;;  %v8930_v63 = vld [vmem:[%s10402_s15 + $0x80] sm:$0xff]  ;;  %4838 = vmatpush.bf16.msra.mxu0 %v8922_v50 }
 0x6a9   : > { %v4586_v6 = vsub.f32 %v4556_v15, %v12075_v54  ;;  %v4524_v25 = vadd.f32 %v4523_v31, %v4522_v58  ;;  %v4564_v35 = vadd.f32 %v12050_v18, %v4510_v38  ;;  %v4496_v22 = vadd.f32 %v4495_v36, %v4494_v16  ;;  %4919 = vmatpush.bf16.msra.mxu3 %v8930_v63  ;;  %v9573_v38 = vld [vmem:[#allocation13] sm:$0xff] }
 0x6aa   : > { %v4536_v49 = vadd.f32 %v4535_v4, %v4534_v3  ;;  %v4502_v55 = vrot.slane %v4501_v46, 1  ;;  %v4482_v4 = vadd.f32 %v4481_v44, %v4480_v7  ;;  %v4565_v58 = vadd.f32 %v12050_v18, %v4517_v30 }
 0x6ab   : > { %v4603_v9 = vmul.f32 %v12094_v34, %v4586_v6  ;;  %v4587_v14 = vsub.f32 %v4557_v56, %v12075_v54  ;;  %v4566_v7 = vadd.f32 %v12050_v18, %v4524_v25  ;;  %v4567_v16 = vadd.f32 %v12050_v18, %v4531_v45 }
 0x6ac   : > { %v4537_v3 = vrot.slane %v4536_v49, 1  ;;  %v4503_v40 = vadd.f32 %v4502_v55, %v4501_v46  ;;  %v4560_v61 = vadd.f32 %v12050_v18, %v4482_v4  ;;  %v4594_v46 = vsub.f32 %v4564_v35, %v12075_v54 }
 0x6ad   : > { %v4562_v41 = vadd.f32 %v12050_v18, %v4496_v22  ;;  %v4595_v60 = vsub.f32 %v4565_v58, %v12075_v54  ;;  %5921 = vmatpush.msrb.mxu3 %v9573_v38  ;;  %v4596_v11 = vsub.f32 %v4566_v7, %v12075_v54  ;;  %v4604_v55 = vmul.f32 %v12094_v34, %v4587_v14 }
 0x6ae   : > { %v4538_v28 = vadd.f32 %v4537_v3, %v4536_v49  ;;  %v4559_v49 = vadd.f32 %v12050_v18, %v4475_v13  ;;  %v4563_v44 = vadd.f32 %v12050_v18, %v4503_v40  ;;  %v12138_v3 = vunpack.c.l.b16 %v4686_v26 }
 0x6af   : > { %v4400_v23 = vpop.f32.mrf.mxu2  ;;  %v4590_v6 = vsub.f32 %v4560_v61, %v12075_v54  ;;  %v4597_v56 = vsub.f32 %v4567_v16, %v12075_v54  ;;  %v4592_v45 = vsub.f32 %v4562_v41, %v12075_v54  ;;  %v4612_v35 = vmul.f32 %v12094_v34, %v4595_v60 }
 0x6b0   : > { %v4438_v51 = vmul.f32 %v4400_v23, %v11458_v39  ;;  %v4558_v23 = vadd.f32 %v12050_v18, %v4468_v62  ;;  %v4561_v62 = vadd.f32 %v12050_v18, %v4489_v21  ;;  %v4589_v30 = vsub.f32 %v4559_v49, %v12075_v54 }
 0x6b1   : > { %v4593_v26 = vsub.f32 %v4563_v44, %v12075_v54  ;;  %v4622_v58 = vmul.f32 %v12102_v48, %v4604_v55  ;;  %v4607_v14 = vmul.f32 %v12094_v34, %v4590_v6  ;;  %v4614_v7 = vmul.f32 %v12094_v34, %v4597_v56  ;;  %v8704_v56 = vld [vmem:[%s10458_s11 + $0x178] sm:$0xff] }
 0x6b2   : > { %v4539_v37 = vadd.f32 %v4438_v51, %v4437_v20  ;;  %v4588_v31 = vsub.f32 %v4558_v23, %v12075_v54  ;;  %v4568_v20 = vadd.f32 %v12050_v18, %v4538_v28  ;;  %v4591_v4 = vsub.f32 %v4561_v62, %v12075_v54  ;;  %5185 = vmatpush.msrb.mxu0 %v8704_v56 }
 0x6b3   : > { %v4610_v61 = vmul.f32 %v12094_v34, %v4593_v26  ;;  %v4640_v62 = vadd.f32 %v12106_v32, %v4622_v58  ;;  %v4632_v44 = vmul.f32 %v12102_v48, %v4614_v7  ;;  %v4625_v60 = vmul.f32 %v12102_v48, %v4607_v14  ;;  %v8701_v7 = vld [vmem:[%s10458_s11 + $0x160] sm:$0xff] }
 0x6b4   : > { %v4540_v53 = vrot.slane %v4539_v37, 4  ;;  %v4605_v25 = vmul.f32 %v12094_v34, %v4588_v31  ;;  %v4598_v23 = vsub.f32 %v4568_v20, %v12075_v54 }
 0x6b5   : > { %v4656_v26 = vadd.f32 %v4640_v62, %v11333_v1 }
 0x6b6   : > { %v4541_v42 = vadd.f32 %v4540_v53, %v4539_v37  ;;  %v4621_v37 = vmul.f32 %v12102_v48, %v4603_v9  ;;  %v4611_v53 = vmul.f32 %v12094_v34, %v4594_v46  ;;  %v4606_v9 = vmul.f32 %v12094_v34, %v4589_v30 }
 0x6b7   : > { %v4403_v15 = vpop.f32.mrf.mxu2  ;;  %v4615_v63 = vmul.f32 %v12094_v34, %v4598_v23  ;;  %v4623_v49 = vmul.f32 %v12102_v48, %v4605_v25  ;;  %v8703_v25 = vld [vmem:[%s10458_s11 + $0x170] sm:$0xff]  ;;  %v4628_v23 = vmul.f32 %v12102_v48, %v4610_v61 }
 0x6b8   : > { %v4542_v52 = vrot.slane %v4541_v42, 2  ;;  %v4439_v22 = vmul.f32 %v4403_v15, %v11456_v12  ;;  %v4608_v12 = vmul.f32 %v12094_v34, %v4591_v4  ;;  %v4630_v15 = vmul.f32 %v12102_v48, %v4612_v35  ;;  %5186 = vmatpush.msrb.mxu0 %v8703_v25 }
 0x6b9   : > { %v4624_v41 = vmul.f32 %v12102_v48, %v4606_v9  ;;  %v4641_v55 = vadd.f32 %v12106_v32, %v4623_v49  ;;  %v12205_v49 = vmax.f32 %v4656_v26, 0.0 }
 0x6ba   : > { %v4543_v51 = vadd.f32 %v4542_v52, %v4541_v42  ;;  %v4613_v42 = vmul.f32 %v12094_v34, %v4596_v11  ;;  %v4629_v52 = vmul.f32 %v12102_v48, %v4611_v53  ;;  %v4633_v11 = vmul.f32 %v12102_v48, %v4615_v63 }
 0x6bb   : > { %v4626_v30 = vmul.f32 %v12102_v48, %v4608_v12  ;;  %v4642_v35 = vadd.f32 %v12106_v32, %v4624_v41  ;;  %v4657_v9 = vadd.f32 %v4641_v55, %v11351_v17  ;;  %v4646_v63 = vadd.f32 %v12106_v32, %v4628_v23  ;;  %v8700_v12 = vld [vmem:[%s10458_s11 + $0x158] sm:$0xff] }
 0x6bc   : > { %v4544_v36 = vrot.slane %v4543_v51, 1  ;;  %v4631_v16 = vmul.f32 %v12102_v48, %v4613_v42  ;;  %v4647_v38 = vadd.f32 %v12106_v32, %v4629_v52  ;;  %v8702_v42 = vld [vmem:[%s10458_s11 + $0x168] sm:$0xff]  ;;  %v14434_v41 = vld [vmem:[#allocation94_spill] sm:$0xff] }
 0x6bd   : > { %5187 = vmatpush.msrb.mxu0 %v8702_v42  ;;  %v4658_v17 = vadd.f32 %v4642_v35, %v11370_v33 }
 0x6be   : > { %v4545_v13 = vadd.f32 %v4544_v36, %v4543_v51  ;;  %v4639_v51 = vadd.f32 %v12106_v32, %v4621_v37  ;;  %v4648_v37 = vadd.f32 %v12106_v32, %v4630_v15 }
 0x6bf   : > { %v4406_v28 = vpop.f32.mrf.mxu2  ;;  %5188 = vmatpush.msrb.mxu0 %v8701_v7 }
 0x6c0   : > { %v4569_v21 = vadd.f32 %v12050_v18, %v4545_v13  ;;  %v4440_v40 = vmul.f32 %v4406_v28, %v11458_v39  ;;  %v4609_v39 = vmul.f32 %v12094_v34, %v4592_v45  ;;  %v4649_v13 = vadd.f32 %v12106_v32, %v4631_v16 }
 0x6c1   : > { %v4655_v45 = vadd.f32 %v4639_v51, %v11285_v29  ;;  %v4650_v28 = vadd.f32 %v12106_v32, %v4632_v44  ;;  %v4644_v29 = vadd.f32 %v12106_v32, %v4626_v30  ;;  %v4664_v1 = vadd.f32 %v4648_v37, %v11361_v57  ;;  %v8699_v51 = vld [vmem:[%s10458_s11 + $0x150] sm:$0xff]  ;;  %5189 = vmatpush.msrb.mxu0 %v8700_v12 }
 0x6c2   : > { %v4599_v50 = vsub.f32 %v4569_v21, %v12075_v54  ;;  %v4546_v31 = vadd.f32 %v4440_v40, %v4439_v22  ;;  %v4627_v53 = vmul.f32 %v12102_v48, %v4609_v39  ;;  %v4643_v21 = vadd.f32 %v12106_v32, %v4625_v60 }
 0x6c3   : > { %v4663_v22 = vadd.f32 %v4647_v38, %v11355_v59  ;;  %v4651_v40 = vadd.f32 %v12106_v32, %v4633_v11  ;;  %v4665_v59 = vadd.f32 %v4649_v13, %v11367_v43  ;;  %v4666_v57 = vadd.f32 %v4650_v28, %v11372_v5  ;;  %5190 = vmatpush.msrb.mxu0 %v8699_v51 }
 0x6c4   : > { %v4616_v46 = vmul.f32 %v12094_v34, %v4599_v50  ;;  %v4547_v20 = vrot.slane %v4546_v31, 4  ;;  %v4645_v52 = vadd.f32 %v12106_v32, %v4627_v53  ;;  %v4659_v39 = vadd.f32 %v4643_v21, %v11377_v27 }
 0x6c5   : > { %v12211_v15 = vmax.f32 %v4663_v22, 0.0  ;;  %v4667_v61 = vadd.f32 %v4651_v40, %v11379_v19  ;;  %v12214_v43 = vmax.f32 %v4657_v9, 0.0  ;;  %v4662_v5 = vadd.f32 %v4646_v63, %v11392_v2 }
 0x6c6   : > { %v4548_v36 = vadd.f32 %v4547_v20, %v4546_v31  ;;  %v4634_v6 = vmul.f32 %v12102_v48, %v4616_v46  ;;  %v12203_v31 = vmax.f32 %v4655_v45, 0.0  ;;  %v4660_v46 = vadd.f32 %v4644_v29, %v11384_v0 }
 0x6c7   : > { %v12217_v20 = vmax.f32 %v4664_v1, 0.0  ;;  %v12222_v62 = vmax.f32 %v4665_v59, 0.0  ;;  %v4661_v19 = vadd.f32 %v4645_v52, %v14434_v41  ;;  %v4688_v0 = vpack.c.bf16 %v12205_v49, %v12205_v49 }
 0x6c8   : > { %v4549_v4 = vrot.slane %v4548_v36, 2  ;;  %v4652_v14 = vadd.f32 %v12106_v32, %v4634_v6  ;;  %v4687_v44 = vpack.c.bf16 %v12203_v31, %v12203_v31  ;;  %v12230_v60 = vmax.f32 %v4658_v17, 0.0 }
 0x6c9   : > { %v12232_v38 = vmax.f32 %v4666_v57, 0.0  ;;  %v12235_v11 = vmax.f32 %v4659_v39, 0.0  ;;  %v4695_v2 = vpack.c.bf16 %v12211_v15, %v12211_v15  ;;  %v4689_v55 = vpack.c.bf16 %v12214_v43, %v12214_v43 }
 0x6ca   : > { %v4550_v58 = vadd.f32 %v4549_v4, %v4548_v36  ;;  %v4668_v33 = vadd.f32 %v4652_v14, %v11386_v47  ;;  %v8698_v47 = vld [vmem:[%s10458_s11 + $0x148] sm:$0xff]  ;;  %v12244_v30 = vmax.f32 %v4660_v46, 0.0  ;;  %v4696_v37 = vpack.c.bf16 %v12217_v20, %v12217_v20 }
 0x6cb   : > { %v12250_v56 = vmax.f32 %v4662_v5, 0.0  ;;  %v4697_v25 = vpack.c.bf16 %v12222_v62, %v12222_v62  ;;  %v12255_v23 = vmax.f32 %v4661_v19, 0.0  ;;  %5191 = vmatpush.msrb.mxu0 %v8698_v47  ;;  %v4739_v13 = vunpack.c.l.b16 %v4688_v0 }
 0x6cc   : > { %v4551_v50 = vrot.slane %v4550_v58, 1  ;;  %v12248_v6 = vmax.f32 %v4668_v33, 0.0  ;;  %v4690_v4 = vpack.c.bf16 %v12230_v60, %v12230_v60  ;;  %v4698_v45 = vpack.c.bf16 %v12232_v38, %v12232_v38 }
 0x6cd   : > { %v4746_v26 = vunpack.c.l.b16 %v4695_v2  ;;  %v4691_v28 = vpack.c.bf16 %v12235_v11, %v12235_v11  ;;  %v4740_v42 = vunpack.c.l.b16 %v4689_v55  ;;  %v4747_v21 = vunpack.c.l.b16 %v4696_v37 }
 0x6ce   : > { %v4552_v16 = vadd.f32 %v4551_v50, %v4550_v58  ;;  %v4692_v22 = vpack.c.bf16 %v12244_v30, %v12244_v30  ;;  %v4700_v40 = vpack.c.bf16 %v12248_v6, %v12248_v6  ;;  %v4694_v58 = vpack.c.bf16 %v12250_v56, %v12250_v56 }
 0x6cf   : > { %v4748_v9 = vunpack.c.l.b16 %v4697_v25  ;;  %v4693_v29 = vpack.c.bf16 %v12255_v23, %v12255_v23  ;;  %v4755_v14 = vrot.slane %v4739_v13, 6  ;;  %v4741_v7 = vunpack.c.l.b16 %v4690_v4 }
 0x6d0   : > { %v4570_v27 = vadd.f32 %v12050_v18, %v4552_v16  ;;  %v12239_v18 = vmax.f32 %v4667_v61, 0.0  ;;  %v4749_v52 = vunpack.c.l.b16 %v4698_v45  ;;  %v4767_v63 = vrot.slane %v4746_v26, 7 }
 0x6d1   : > { %v4742_v50 = vunpack.c.l.b16 %v4691_v28  ;;  %v4757_v57 = vrot.slane %v4740_v42, 5  ;;  %v4769_v12 = vrot.slane %v4747_v21, 6  ;;  %v4743_v39 = vunpack.c.l.b16 %v4692_v22  ;;  %v8697_v21 = vld [vmem:[%s10458_s11 + $0x140] sm:$0xff]  ;;  %v8696_v22 = vld [vmem:[%s10458_s11 + $0x138] sm:$0xff] }
 0x6d2   : > { %v4600_v36 = vsub.f32 %v4570_v27, %v12075_v54  ;;  %v4738_v54 = vunpack.c.l.b16 %v4687_v44  ;;  %v4751_v61 = vunpack.c.l.b16 %v4700_v40  ;;  %v4745_v16 = vunpack.c.l.b16 %v4694_v58  ;;  %5192 = vmatpush.msrb.mxu0 %v8697_v21  ;;  %v8695_v40 = vld [vmem:[%s10458_s11 + $0x130] sm:$0xff]  ;;  %v8694_v58 = vld [vmem:[%s10458_s11 + $0x128] sm:$0xff] }
 0x6d3   : > { %v4771_v46 = vrot.slane %v4748_v9, 5  ;;  %v4759_v5 = vrot.slane %v4741_v7, 4  ;;  %v4773_v27 = vrot.slane %v4749_v52, 4  ;;  %v4763_v47 = vrot.slane %v4743_v39, 2  ;;  %v8693_v9 = vld [vmem:[%s10458_s11 + $0x120] sm:$0xff] }
 0x6d4   : > { %v4617_v53 = vmul.f32 %v12094_v34, %v4600_v36  ;;  %v4699_v34 = vpack.c.bf16 %v12239_v18, %v12239_v18  ;;  %v4753_v1 = vrot.slane %v4738_v54, 7  ;;  %v4768_v19 = vsel %vm14203_vm15, %v4767_v63, %v4745_v16  ;;  %5193 = vmatpush.msrb.mxu0 %v8696_v22  ;;  %v9169_v52 = vld [vmem:[%s10445_s3 + $0x2] ss:$0 sm:$0xff] }
 0x6d5   : > { %v4770_v2 = vsel %vm14202_vm12, %v4769_v12, %v4768_v19  ;;  %v4777_v36 = vrot.slane %v4751_v61, 2  ;;  %v9152_v63 = vld [vmem:[%s10351_s20 + $0x2] ss:$0 sm:$0xff] }
 0x6d6   : > { %v4635_v35 = vmul.f32 %v12102_v48, %v4617_v53  ;;  %v4750_v17 = vunpack.c.l.b16 %v4699_v34  ;;  %v4754_v51 = vsel %vm14203_vm15, %v4753_v1, %v12138_v3  ;;  %v4772_v25 = vsel %vm14205_vm3, %v4771_v46, %v4770_v2  ;;  %5194 = vmatpush.msrb.mxu0 %v8695_v40  ;;  %v8690_v1 = vld [vmem:[%s10458_s11 + $0x108] sm:$0xff] }
 0x6d7   : > { %v4756_v0 = vsel %vm14202_vm12, %v4755_v14, %v4754_v51  ;;  %v4774_v54 = vsel %vm14436_vm11, %v4773_v27, %v4772_v25  ;;  %vm14439_vm12 = vcmask 1046534   ;;  %v8689_v14 = vld [vmem:[%s10458_s11 + $0x100] sm:$0xff] }
 0x6d8   : > { %v4653_v48 = vadd.f32 %v12106_v32, %v4635_v35  ;;  %v4744_v32 = vunpack.c.l.b16 %v4693_v29  ;;  %v4775_v44 = vrot.slane %v4750_v17, 3  ;;  %v4758_v37 = vsel %vm14205_vm3, %v4757_v57, %v4756_v0  ;;  %vm14440_vm15 = vmmov %vm14439_vm12  ;;  %5195 = vmatpush.msrb.mxu0 %v8694_v58  ;;  %v8691_v29 = vld [vmem:[%s10458_s11 + $0x110] sm:$0xff]  ;;  %v14443_v27 = vld [vmem:[#allocation31_spill] sm:$0xff] }
 0x6d9   : > { %v4760_v53 = vsel %vm14435_vm7, %v4759_v5, %v4758_v37  ;;  %vm14442_vm3 = vmmov %vm14441_vm2 }
 0x6da   : > { %v4669_v59 = vadd.f32 %v4653_v48, %v11423_v8  ;;  %v4761_v8 = vrot.slane %v4742_v50, 3  ;;  %v4765_v3 = vrot.slane %v4744_v32, 1  ;;  %v4776_v4 = vsel %vm14438_vm0, %v4775_v44, %v4774_v54  ;;  %v8692_v48 = vld [vmem:[%s10458_s11 + $0x118] sm:$0xff]  ;;  %5196 = vmatpush.msrb.mxu0 %v8693_v9  ;;  %v12307_v50 = vld [vmem:[%s10310_s29 + $0x2] ss:$0 sm:$0xff] }
 0x6db   : > { %v4778_v35 = vsel %vm14440_vm15, %v4777_v36, %v4776_v4  ;;  %v5008_v16 = vmul.f32 %v12307_v50, %v10482_v10 }
 0x6dc   : > { %v12276_v33 = vmax.f32 %v4669_v59, 0.0  ;;  %v4762_v13 = vsel %vm14437_vm8, %v4761_v8, %v4760_v53  ;;  %5197 = vmatpush.msrb.mxu0 %v8692_v48  ;;  %v14444_v53 = vld [vmem:[#allocation40_spill] sm:$0xff] }
 0x6dd   : > { %v4764_v26 = vsel %vm14439_vm12, %v4763_v47, %v4762_v13  ;;  %v5018_v54 = vmul.f32 %v12307_v50, %v14444_v53  ;;  %v14445_v13 = vld [vmem:[#allocation32_spill] sm:$0xff] }
 0x6de   : > { %v4701_v41 = vpack.c.bf16 %v12276_v33, %v12276_v33  ;;  %v4766_v28 = vsel %vm14441_vm2, %v4765_v3, %v4764_v26  ;;  %5198 = vmatpush.msrb.mxu0 %v8691_v29  ;;  %v5010_v4 = vmul.f32 %v12307_v50, %v14445_v13 }
 0x6e0   : > { %v4752_v55 = vunpack.c.l.b16 %v4701_v41  ;;  %5199 = vmatpush.msrb.mxu0 %v8690_v1  ;;  %v5009_v41 = vmul.f32 %v12307_v50, %v14443_v27 }
 0x6e2   : > { %v4779_v45 = vrot.slane %v4752_v55, 1  ;;  %5200 = vmatpush.msrb.mxu0 %v8689_v14 }
 0x6e4   : > { %v4780_v34 = vsel %vm14442_vm3, %v4779_v45, %v4778_v35  ;;  %v14446_v45 = vld [vmem:[#allocation42_spill] sm:$0xff] }
 0x6e5   : > { %v4781_v42 = vpack.c.b16 %v4780_v34, %v4766_v28  ;;  %v5020_v26 = vmul.f32 %v12307_v50, %v14446_v45  ;;  %v14447_v28 = vld [vmem:[#allocation41_spill] sm:$0xff] }
 0x6e6   : > { %v5019_v34 = vmul.f32 %v12307_v50, %v14447_v28 }
 0x6e7   : > { %4839 = vmatmul.bf16.vlgmr.msra.gmra.mxu0 %v4781_v42  ;;  %4920 = vmatmul.bf16.vlgmr.msra.gmra.mxu3 %v4781_v42 }
 0x764   : > { %v4840_v7 = vpop.f32.mrf.mxu0 }
 0x765   : > { %v12311_v12 = vadd.f32 %v9152_v63, %v4840_v7 }
 0x76a   : > { %v4921_v59 = vpop.f32.mrf.mxu3 }
 0x76b   : > { %v12309_v17 = vadd.f32 %v9169_v52, %v4921_v59 }
 0x76c   : > { %v4842_v57 = vpop.f32.mrf.mxu0 }
 0x76d   : > { %v12313_v39 = vadd.f32 %v9152_v63, %v4842_v57  ;;  %v4942_v61 = vperm.slane %v12309_v17, 0  ;;  %v4928_v51 = vrot.slane %v12309_v17, 1  ;;  %v4932_v19 = vrot.slane %v12309_v17, 5 }
 0x76e   : > { %v4933_v44 = vrot.slane %v12309_v17, 6  ;;  %v4934_v14 = vrot.slane %v12309_v17, 7  ;;  %v4929_v57 = vrot.slane %v12309_v17, 2 }
 0x76f   : > { %v4974_v46 = vadd.f32 %v4942_v61, %v12311_v12  ;;  %v4975_v32 = vadd.f32 %v4942_v61, %v12313_v39  ;;  %v4943_v47 = vperm.slane %v4928_v51, 0  ;;  %v4947_v55 = vperm.slane %v4932_v19, 0  ;;  %v14449_v61 = vld [vmem:[#allocation33_spill] sm:$0xff]  ;;  %v14451_v51 = vld [vmem:[#allocation47_spill] sm:$0xff] }
 0x770   : > { %v4948_v37 = vperm.slane %v4933_v44, 0 }
 0x771   : > { %v5040_v5 = vadd.f32 %v5008_v16, %v4974_v46  ;;  %v5041_v0 = vadd.f32 %v5009_v41, %v4975_v32  ;;  %v4976_v25 = vadd.f32 %v4943_v47, %v12311_v12  ;;  %v4984_v42 = vadd.f32 %v4947_v55, %v12311_v12  ;;  %v14450_v46 = vld [vmem:[#allocation45_spill] sm:$0xff] }
 0x772   : > { %v4923_v36 = vpop.f32.mrf.mxu3  ;;  %v4985_v21 = vadd.f32 %v4947_v55, %v12313_v39  ;;  %v4986_v22 = vadd.f32 %v4948_v37, %v12311_v12  ;;  %v4987_v9 = vadd.f32 %v4948_v37, %v12313_v39  ;;  %v4977_v59 = vadd.f32 %v4943_v47, %v12313_v39  ;;  %v14453_v47 = vld [vmem:[#allocation46_spill] sm:$0xff] }
 0x773   : > { %vm5072_vm2 = vcmp.gt.f32.partialorder %v5040_v5, 0.0  ;;  %v5104_v8 = vmul.f32 0.2, %v5040_v5  ;;  %v5105_v3 = vmul.f32 0.2, %v5041_v0  ;;  %vm5073_vm15 = vcmp.gt.f32.partialorder %v5041_v0, 0.0 }
 0x774   : > { %v12332_v35 = vadd.f32 %v9169_v52, %v4923_v36  ;;  %v5042_v58 = vadd.f32 %v5010_v4, %v4976_v25  ;;  %v12340_v48 = vadd.f32 %v5018_v54, %v4984_v42  ;;  %v12342_v29 = vadd.f32 %v5019_v34, %v4985_v21  ;;  %v14448_v52 = vld [vmem:[#allocation43_spill] sm:$0xff] }
 0x775   : > { %v5136_v2 = vsel %vm5072_vm2, %v5040_v5, %v5104_v8  ;;  %v5137_v40 = vsel %vm5073_vm15, %v5041_v0, %v5105_v3  ;;  %v12344_v1 = vadd.f32 %v5020_v26, %v4986_v22  ;;  %v5021_v63 = vmul.f32 %v12307_v50, %v14448_v52  ;;  %v14452_v8 = vld [vmem:[#allocation44_spill] sm:$0xff]  ;;  %v14461_v52 = vld [vmem:[#allocation63_spill] sm:$0xff] }
 0x776   : > { %5201 = vmatmul.f32.vlgmr.msrb.gmra.mxu0 %v5136_v2  ;;  %v4950_v7 = vperm.slane %v12332_v35, 0  ;;  %v5011_v16 = vmul.f32 %v12307_v50, %v14449_v61  ;;  %v5023_v32 = vmul.f32 %v12307_v50, %v14450_v46  ;;  %v5025_v5 = vmul.f32 %v12307_v50, %v14451_v51 }
 0x777   : > { %v5106_v41 = vmul.f32 0.2, %v5042_v58  ;;  %v5022_v19 = vmul.f32 %v12307_v50, %v14452_v8  ;;  %vm5074_vm12 = vcmp.gt.f32.partialorder %v5042_v58, 0.0  ;;  %v12360_v44 = vadd.f32 %v5021_v63, %v4987_v9  ;;  %v14462_v8 = vld [vmem:[#allocation59_spill] sm:$0xff] }
 0x778   : > { %v4949_v0 = vperm.slane %v4934_v14, 0  ;;  %v5024_v2 = vmul.f32 %v12307_v50, %v14453_v47  ;;  %v4990_v36 = vadd.f32 %v4950_v7, %v12311_v12  ;;  %v4991_v55 = vadd.f32 %v4950_v7, %v12313_v39  ;;  %v14454_v7 = vld [vmem:[#allocation34_spill] sm:$0xff] }
 0x779   : > { %v4935_v37 = vrot.slane %v12332_v35, 1  ;;  %v5043_v3 = vadd.f32 %v5011_v16, %v4977_v59  ;;  %v4944_v25 = vperm.slane %v4929_v57, 0  ;;  %v5138_v26 = vsel %vm5074_vm12, %v5042_v58, %v5106_v41  ;;  %v14455_v59 = vld [vmem:[#allocation49_spill] sm:$0xff]  ;;  %v14456_v58 = vld [vmem:[#allocation52_spill] sm:$0xff] }
 0x77a   : > { %v4988_v54 = vadd.f32 %v4949_v0, %v12311_v12  ;;  %v4989_v4 = vadd.f32 %v4949_v0, %v12313_v39  ;;  %v12369_v34 = vadd.f32 %v5024_v2, %v4990_v36  ;;  %v12371_v42 = vadd.f32 %v5025_v5, %v4991_v55  ;;  %v14457_v5 = vld [vmem:[#allocation55_spill] sm:$0xff] }
 0x77b   : > { %v4951_v21 = vperm.slane %v4935_v37, 0  ;;  %v4936_v9 = vrot.slane %v12332_v35, 2  ;;  %v4937_v14 = vrot.slane %v12332_v35, 3  ;;  %v5012_v63 = vmul.f32 %v12307_v50, %v14454_v7  ;;  %v14459_v0 = vld [vmem:[#allocation51_spill] sm:$0xff] }
 0x77c   : > { %v12373_v22 = vadd.f32 %v5022_v19, %v4988_v54  ;;  %v5026_v57 = vmul.f32 %v12307_v50, %v14455_v59  ;;  %v5028_v16 = vmul.f32 %v12307_v50, %v14456_v58  ;;  %v5029_v41 = vmul.f32 %v12307_v50, %v14457_v5  ;;  %v14458_v19 = vld [vmem:[#allocation57_spill] sm:$0xff] }
 0x77d   : > { %v5027_v2 = vmul.f32 %v12307_v50, %v14459_v0  ;;  %v5107_v36 = vmul.f32 0.2, %v5043_v3  ;;  %v4978_v55 = vadd.f32 %v4944_v25, %v12311_v12  ;;  %v4992_v37 = vadd.f32 %v4951_v21, %v12311_v12 }
 0x77e   : > { %5204 = vmatmul.f32.gmra.mxu0 %v5137_v40  ;;  %v12375_v40 = vadd.f32 %v5023_v32, %v4989_v4  ;;  %v5030_v32 = vmul.f32 %v12307_v50, %v14458_v19  ;;  %v4993_v54 = vadd.f32 %v4951_v21, %v12313_v39  ;;  %v14460_v4 = vld [vmem:[#allocation60_spill] sm:$0xff]  ;;  %vm5075_vm3 = vcmp.gt.f32.partialorder %v5043_v3, 0.0 }
 0x77f   : > { %v4952_v7 = vperm.slane %v4936_v9, 0  ;;  %v4953_v58 = vperm.slane %v4937_v14, 0  ;;  %v12396_v5 = vadd.f32 %v5026_v57, %v4992_v37  ;;  %v4938_v19 = vrot.slane %v12332_v35, 4 }
 0x780   : > { %v12398_v59 = vadd.f32 %v5027_v2, %v4993_v54  ;;  %v4939_v0 = vrot.slane %v12332_v35, 5  ;;  %v5044_v61 = vadd.f32 %v5012_v63, %v4978_v55  ;;  %vm5082_vm12 = vcmp.gt.f32.partialorder %v12340_v48, 0.0 }
 0x781   : > { %v4994_v47 = vadd.f32 %v4952_v7, %v12311_v12  ;;  %v4995_v51 = vadd.f32 %v4952_v7, %v12313_v39  ;;  %v4996_v21 = vadd.f32 %v4953_v58, %v12311_v12  ;;  %v4997_v46 = vadd.f32 %v4953_v58, %v12313_v39 }
 0x782   : > { %v4954_v37 = vperm.slane %v4938_v19, 0  ;;  %v12414_v54 = vperm.slane %v4939_v0, 0  ;;  %v5033_v7 = vmul.f32 %v12307_v50, %v14461_v52  ;;  %v5032_v58 = vmul.f32 %v12307_v50, %v14462_v8  ;;  %v14464_v19 = vld [vmem:[#allocation66_spill] sm:$0xff]  ;;  %v14465_v52 = vld [vmem:[#allocation72_spill] sm:$0xff] }
 0x783   : > { %v12406_v9 = vadd.f32 %v5028_v16, %v4994_v47  ;;  %v12408_v14 = vadd.f32 %v5029_v41, %v4995_v51  ;;  %v12410_v57 = vadd.f32 %v5030_v32, %v4996_v21  ;;  %v5108_v47 = vmul.f32 0.2, %v5044_v61  ;;  %v14463_v16 = vld [vmem:[#allocation35_spill] sm:$0xff] }
 0x784   : > { %v4979_v51 = vadd.f32 %v4944_v25, %v12313_v39  ;;  %v4998_v63 = vadd.f32 %v4954_v37, %v12311_v12  ;;  %v5013_v41 = vmul.f32 %v12307_v50, %v14463_v16  ;;  %v5034_v32 = vmul.f32 %v12307_v50, %v14464_v19 }
 0x785   : > { %vm5076_vm7 = vcmp.gt.f32.partialorder %v5044_v61, 0.0  ;;  %v5000_v0 = vadd.f32 %v12414_v54, %v12311_v12  ;;  %v4940_v25 = vrot.slane %v12332_v35, 6 }
 0x786   : > { %5207 = vmatmul.f32.gmra.mxu0 %v5138_v26  ;;  %v5031_v26 = vmul.f32 %v12307_v50, %v14460_v4  ;;  %v5139_v4 = vsel %vm5075_vm3, %v5043_v3, %v5107_v36  ;;  %v4930_v3 = vrot.slane %v12309_v17, 3  ;;  %v12430_v36 = vadd.f32 %v5032_v58, %v4998_v63  ;;  %v14466_v63 = vld [vmem:[#allocation68_spill] sm:$0xff] }
 0x787   : > { %v5140_v21 = vsel %vm5076_vm7, %v5044_v61, %v5108_v47  ;;  %v12438_v8 = vperm.slane %v4940_v25, 0  ;;  %v5038_v58 = vmul.f32 %v12307_v50, %v14465_v52  ;;  %vm5083_vm3 = vcmp.gt.f32.partialorder %v12342_v29, 0.0 }
 0x788   : > { %v12412_v2 = vadd.f32 %v5031_v26, %v4997_v46  ;;  %v4999_v46 = vadd.f32 %v4954_v37, %v12313_v39  ;;  %v12436_v26 = vadd.f32 %v5034_v32, %v5000_v0  ;;  %v5045_v37 = vadd.f32 %v5013_v41, %v4979_v51 }
 0x789   : > { %v4945_v16 = vperm.slane %v4930_v3, 0  ;;  %v14467_v3 = vld [vmem:[#allocation36_spill] sm:$0xff]  ;;  %vm5084_vm7 = vcmp.gt.f32.partialorder %v12344_v1, 0.0 }
 0x78a   : > { %v12432_v55 = vadd.f32 %v5033_v7, %v4999_v46  ;;  %v5036_v7 = vmul.f32 %v12307_v50, %v14466_v63  ;;  %v5109_v46 = vmul.f32 0.2, %v5045_v37  ;;  %vm5077_vm11 = vcmp.gt.f32.partialorder %v5045_v37, 0.0  ;;  %v14468_v63 = vld [vmem:[#allocation37_spill] sm:$0xff] }
 0x78b   : > { %v4980_v28 = vadd.f32 %v4945_v16, %v12311_v12  ;;  %v5014_v47 = vmul.f32 %v12307_v50, %v14467_v3  ;;  %v5015_v52 = vmul.f32 %v12307_v50, %v14468_v63 }
 0x78c   : > { %v5141_v32 = vsel %vm5077_vm11, %v5045_v37, %v5109_v46  ;;  %v14469_v37 = vld [vmem:[#allocation38_spill] sm:$0xff]  ;;  %vm5085_vm11 = vcmp.gt.f32.partialorder %v12360_v44, 0.0 }
 0x78d   : > { %v5046_v0 = vadd.f32 %v5014_v47, %v4980_v28  ;;  %v5016_v28 = vmul.f32 %v12307_v50, %v14469_v37 }
 0x78e   : > { %5210 = vmatmul.f32.gmra.mxu0 %v5139_v4  ;;  %v4941_v4 = vrot.slane %v12332_v35, 7  ;;  %v5002_v35 = vadd.f32 %v12438_v8, %v12311_v12 }
 0x78f   : > { %v5110_v25 = vmul.f32 0.2, %v5046_v0  ;;  %vm5078_vm8 = vcmp.gt.f32.partialorder %v5046_v0, 0.0 }
 0x790   : > { %v12440_v19 = vperm.slane %v4941_v4, 0  ;;  %v12453_v51 = vadd.f32 %v5036_v7, %v5002_v35  ;;  %v4981_v4 = vadd.f32 %v4945_v16, %v12313_v39 }
 0x791   : > { %v5142_v45 = vsel %vm5078_vm8, %v5046_v0, %v5110_v25  ;;  %v5114_v25 = vmul.f32 0.2, %v12340_v48  ;;  %vm5086_vm8 = vcmp.gt.f32.partialorder %v12373_v22, 0.0 }
 0x792   : > { %v5004_v61 = vadd.f32 %v12440_v19, %v12311_v12  ;;  %v5047_v53 = vadd.f32 %v5015_v52, %v4981_v4 }
 0x794   : > { %v12455_v41 = vadd.f32 %v5038_v58, %v5004_v61  ;;  %v5111_v7 = vmul.f32 0.2, %v5047_v53  ;;  %vm5079_vm0 = vcmp.gt.f32.partialorder %v5047_v53, 0.0  ;;  %v14470_v61 = vld [vmem:[#allocation39_spill] sm:$0xff] }
 0x795   : > { %v5017_v47 = vmul.f32 %v12307_v50, %v14470_v61 }
 0x796   : > { %5213 = vmatmul.f32.gmra.mxu0 %v5140_v21  ;;  %v4931_v21 = vrot.slane %v12309_v17, 4  ;;  %v5143_v46 = vsel %vm5079_vm0, %v5047_v53, %v5111_v7  ;;  %v5146_v53 = vsel %vm5082_vm12, %v12340_v48, %v5114_v25  ;;  %vm5087_vm0 = vcmp.gt.f32.partialorder %v12375_v40, 0.0 }
 0x797   : > { %vm5090_vm12 = vcmp.gt.f32.partialorder %v12396_v5, 0.0 }
 0x798   : > { %v4946_v13 = vperm.slane %v4931_v21, 0  ;;  %v5116_v21 = vmul.f32 0.2, %v12344_v1 }
 0x79a   : > { %v4982_v58 = vadd.f32 %v4946_v13, %v12311_v12  ;;  %v4983_v17 = vadd.f32 %v4946_v13, %v12313_v39  ;;  %v5115_v13 = vmul.f32 0.2, %v12342_v29  ;;  %v5148_v7 = vsel %vm5084_vm7, %v12344_v1, %v5116_v21 }
 0x79b   : > { %vm5092_vm7 = vcmp.gt.f32.partialorder %v12406_v9, 0.0 }
 0x79c   : > { %v5048_v35 = vadd.f32 %v5016_v28, %v4982_v58  ;;  %v5147_v4 = vsel %vm5083_vm3, %v12342_v29, %v5115_v13  ;;  %v5117_v58 = vmul.f32 0.2, %v12360_v44  ;;  %v5118_v28 = vmul.f32 0.2, %v12373_v22 }
 0x79d   : > { %v5122_v13 = vmul.f32 0.2, %v12396_v5  ;;  %vm5091_vm3 = vcmp.gt.f32.partialorder %v12398_v59, 0.0 }
 0x79e   : > { %5216 = vmatmul.f32.gmra.mxu0 %v5141_v32  ;;  %v5112_v16 = vmul.f32 0.2, %v5048_v35  ;;  %vm5080_vm2 = vcmp.gt.f32.partialorder %v5048_v35, 0.0  ;;  %v5049_v32 = vadd.f32 %v5017_v47, %v4983_v17  ;;  %v5149_v48 = vsel %vm5085_vm11, %v12360_v44, %v5117_v58  ;;  %v14471_v47 = vld [vmem:[#allocation48_spill] sm:$0xff] }
 0x79f   : > { %v5150_v29 = vsel %vm5086_vm8, %v12373_v22, %v5118_v28  ;;  %v5121_v17 = vmul.f32 0.2, %v12371_v42  ;;  %v5154_v58 = vsel %vm5090_vm12, %v12396_v5, %v5122_v13  ;;  %vm5093_vm11 = vcmp.gt.f32.partialorder %v12408_v14, 0.0 }
 0x7a0   : > { %v5144_v52 = vsel %vm5080_vm2, %v5048_v35, %v5112_v16  ;;  %vm5081_vm15 = vcmp.gt.f32.partialorder %v5049_v32, 0.0  ;;  %v5120_v35 = vmul.f32 0.2, %v12369_v34  ;;  %vm5088_vm2 = vcmp.gt.f32.partialorder %v12369_v34, 0.0 }
 0x7a1   : > { %vm5094_vm8 = vcmp.gt.f32.partialorder %v12410_v57, 0.0  ;;  %vm5097_vm12 = vcmp.gt.f32.partialorder %v12432_v55, 0.0 }
 0x7a2   : > { %v5152_v16 = vsel %vm5088_vm2, %v12369_v34, %v5120_v35 }
 0x7a6   : > { %5219 = vmatmul.f32.gmra.mxu0 %v5142_v45  ;;  %v5113_v45 = vmul.f32 0.2, %v5049_v32 }
 0x7a8   : > { %v5145_v0 = vsel %vm5081_vm15, %v5049_v32, %v5113_v45  ;;  %vm5089_vm15 = vcmp.gt.f32.partialorder %v12371_v42, 0.0  ;;  %v14472_v32 = vld [vmem:[#allocation50_spill] sm:$0xff] }
 0x7a9   : > { %v5153_v25 = vsel %vm5089_vm15, %v12371_v42, %v5121_v17  ;;  %v14474_v17 = vld [vmem:[#allocation53_spill] sm:$0xff]  ;;  %vm5096_vm15 = vcmp.gt.f32.partialorder %v12430_v36, 0.0 }
 0x7ae   : > { %5222 = vmatmul.f32.gmra.mxu0 %v5143_v46  ;;  %v5119_v46 = vmul.f32 0.2, %v12375_v40 }
 0x7b0   : > { %v5151_v1 = vsel %vm5087_vm0, %v12375_v40, %v5119_v46  ;;  %vm5095_vm0 = vcmp.gt.f32.partialorder %v12412_v2, 0.0 }
 0x7b6   : > { %5225 = vmatmul.f32.gmra.mxu0 %v5144_v52 }
 0x7be   : > { %5228 = vmatmul.f32.gmra.mxu0 %v5145_v0 }
 0x7c6   : > { %5231 = vmatmul.f32.gmra.mxu0 %v5146_v53 }
 0x7ce   : > { %5234 = vmatmul.f32.gmra.mxu0 %v5147_v4 }
 0x7d6   : > { %5237 = vmatmul.f32.gmra.mxu0 %v5148_v7 }
 0x7de   : > { %5240 = vmatmul.f32.gmra.mxu0 %v5149_v48 }
 0x7e6   : > { %5243 = vmatmul.f32.gmra.mxu0 %v5150_v29  ;;  %v5123_v29 = vmul.f32 0.2, %v12398_v59 }
 0x7ee   : > { %5246 = vmatmul.f32.gmra.mxu0 %v5151_v1  ;;  %v14473_v1 = vld [vmem:[#allocation54_spill] sm:$0xff] }
 0x7f3   : > { %v5202_v44 = vpop.f32.mrf.mxu0 }
 0x7f4   : > { %v5298_v22 = vsel %vm1990_vm4, %v5202_v44, -1e+30 }
 0x7f5   : > { %v5330_v45 = vsel %vm2118_vm5, %v5298_v22, -inf }
 0x7f6   : > { %5249 = vmatmul.f32.gmra.mxu0 %v5152_v16 }
 0x7fb   : > { %v5205_v52 = vpop.f32.mrf.mxu0 }
 0x7fc   : > { %v5299_v40 = vsel %vm1991_vm6, %v5205_v52, -1e+30 }
 0x7fd   : > { %v5331_v0 = vsel %vm2118_vm5, %v5299_v40, -inf }
 0x7fe   : > { %v5332_v53 = vmax.f32 %v5330_v45, %v5331_v0  ;;  %5252 = vmatmul.f32.gmra.mxu0 %v5153_v25  ;;  %v5155_v0 = vsel %vm5091_vm3, %v12398_v59, %v5123_v29 }
 0x800   : > { %v5333_v34 = vrot.slane %v5332_v53, 4 }
 0x802   : > { %v5334_v4 = vmax.f32 %v5332_v53, %v5333_v34 }
 0x803   : > { %v5208_v21 = vpop.f32.mrf.mxu0 }
 0x804   : > { %v5335_v7 = vrot.slane %v5334_v4, 2  ;;  %v5300_v42 = vsel %vm1992_vm9, %v5208_v21, -1e+30 }
 0x805   : > { %v5339_v45 = vsel %vm2118_vm5, %v5300_v42, -inf }
 0x806   : > { %v5336_v48 = vmax.f32 %v5334_v4, %v5335_v7  ;;  %5255 = vmatmul.f32.gmra.mxu0 %v5154_v58  ;;  %v5124_v4 = vmul.f32 0.2, %v12406_v9 }
 0x808   : > { %v5337_v28 = vrot.slane %v5336_v48, 1  ;;  %v5156_v7 = vsel %vm5092_vm7, %v12406_v9, %v5124_v4 }
 0x80a   : > { %v5338_v46 = vmax.f32 %v5336_v48, %v5337_v28 }
 0x80b   : > { %v5211_v35 = vpop.f32.mrf.mxu0 }
 0x80c   : > { %v5474_v44 = vsub.f32 %v5298_v22, %v5338_v46  ;;  %v5475_v16 = vsub.f32 %v5299_v40, %v5338_v46  ;;  %v5301_v52 = vsel %vm1993_vm10, %v5211_v35, -1e+30 }
 0x80d   : > { %v5340_v5 = vsel %vm2118_vm5, %v5301_v52, -inf }
 0x80e   : > { %v5506_v25 = vmul.f32 1.442695, %v5474_v44  ;;  %v5508_v53 = vmul.f32 1.442695, %v5475_v16  ;;  %v5341_v34 = vmax.f32 %v5339_v45, %v5340_v5  ;;  %5258 = vmatmul.f32.gmra.mxu0 %v5155_v0  ;;  %v5125_v44 = vmul.f32 0.2, %v12408_v14 }
 0x80f   : > { %v14475_v45 = vld [vmem:[#allocation56_spill] sm:$0xff] }
 0x810   : > { %9375 = vpow2.f32 %v5506_v25  ;;  %v5342_v13 = vrot.slane %v5341_v34, 4 }
 0x811   : > { %9377 = vpow2.f32 %v5508_v53 }
 0x812   : > { %v5343_v22 = vmax.f32 %v5341_v34, %v5342_v13  ;;  %v14476_v13 = vld [vmem:[#allocation58_spill] sm:$0xff] }
 0x813   : > { %v5214_v40 = vpop.f32.mrf.mxu0 }
 0x814   : > { %v5344_v21 = vrot.slane %v5343_v22, 2  ;;  %v5302_v5 = vsel %vm1994_vm13, %v5214_v40, -1e+30 }
 0x816   : > { %v9376_v58 = vpop.eup %9375  ;;  %v5345_v48 = vmax.f32 %v5343_v22, %v5344_v21  ;;  %5261 = vmatmul.f32.gmra.mxu0 %v5156_v7  ;;  %v5348_v21 = vsel %vm2118_vm5, %v5302_v5, -inf }
 0x817   : > { %v9378_v59 = vpop.eup %9377  ;;  %v12513_v28 = vmul.f32 %v9376_v58, %v14471_v47  ;;  %v5157_v58 = vsel %vm5093_vm11, %v12408_v14, %v5125_v44  ;;  %vm5098_vm11 = vcmp.gt.f32.partialorder %v12436_v26, 0.0 }
 0x818   : > { %v12516_v29 = vmul.f32 %v9378_v59, %v14472_v32  ;;  %v5346_v46 = vrot.slane %v5345_v48, 1 }
 0x819   : > { %v5602_v35 = vsel %vm2118_vm5, %v12513_v28, 0.0 }
 0x81a   : > { %v5603_v16 = vsel %vm2118_vm5, %v12516_v29, 0.0  ;;  %v5347_v9 = vmax.f32 %v5345_v48, %v5346_v46 }
 0x81b   : > { %v5604_v0 = vadd.f32 %v5603_v16, %v5602_v35  ;;  %v5217_v25 = vpop.f32.mrf.mxu0 }
 0x81c   : > { %v5476_v53 = vsub.f32 %v5300_v42, %v5347_v9  ;;  %v5477_v34 = vsub.f32 %v5301_v52, %v5347_v9  ;;  %v5303_v4 = vsel %vm1995_vm14, %v5217_v25, -1e+30  ;;  %v5126_v42 = vmul.f32 0.2, %v12410_v57 }
 0x81d   : > { %v5605_v22 = vrot.slane %v5604_v0, 4  ;;  %v5349_v7 = vsel %vm2118_vm5, %v5303_v4, -inf }
 0x81e   : > { %v5510_v48 = vmul.f32 1.442695, %v5476_v53  ;;  %v5512_v59 = vmul.f32 1.442695, %v5477_v34  ;;  %v5350_v46 = vmax.f32 %v5348_v21, %v5349_v7  ;;  %5264 = vmatmul.f32.gmra.mxu0 %v5157_v58  ;;  %v5158_v14 = vsel %vm5094_vm8, %v12410_v57, %v5126_v42 }
 0x81f   : > { %v5606_v40 = vadd.f32 %v5605_v22, %v5604_v0 }
 0x820   : > { %9379 = vpow2.f32 %v5510_v48  ;;  %v5351_v35 = vrot.slane %v5350_v46, 4  ;;  %v5127_v48 = vmul.f32 0.2, %v12412_v2 }
 0x821   : > { %v5607_v16 = vrot.slane %v5606_v40, 2  ;;  %9381 = vpow2.f32 %v5512_v59 }
 0x822   : > { %v5352_v52 = vmax.f32 %v5350_v46, %v5351_v35  ;;  %v14477_v46 = vld [vmem:[#allocation61_spill] sm:$0xff] }
 0x823   : > { %v5608_v9 = vadd.f32 %v5607_v16, %v5606_v40  ;;  %v5220_v25 = vpop.f32.mrf.mxu0 }
 0x824   : > { %v5353_v32 = vrot.slane %v5352_v52, 2 }
 0x825   : > { %v5609_v47 = vrot.slane %v5608_v9, 1 }
 0x826   : > { %v9380_v44 = vpop.eup %9379  ;;  %v5354_v53 = vmax.f32 %v5352_v52, %v5353_v32  ;;  %5267 = vmatmul.f32.gmra.mxu0 %v5158_v14  ;;  %v14478_v52 = vld [vmem:[#allocation62_spill] sm:$0xff] }
 0x827   : > { %v9382_v34 = vpop.eup %9381  ;;  %v5610_v0 = vadd.f32 %v5609_v47, %v5608_v9  ;;  %v12535_v22 = vmul.f32 %v9380_v44, %v14473_v1  ;;  %v5304_v47 = vsel %vm14239_vm1, %v5220_v25, -1e+30  ;;  %vm14479_vm2 = vcmp.gt.f32.partialorder %v14478_v52, 0.0 }
 0x828   : > { %v12538_v21 = vmul.f32 %v9382_v34, %v14474_v17  ;;  %v5355_v7 = vrot.slane %v5354_v53, 1  ;;  %v5357_v14 = vsel %vm2118_vm5, %v5304_v47, -inf  ;;  %v5159_v34 = vsel %vm5095_vm0, %v12412_v2, %v5127_v48 }
 0x829   : > { %v5746_v58 = vmax.f32 %v5610_v0, 1e-20  ;;  %v5611_v59 = vsel %vm2118_vm5, %v12535_v22, 0.0  ;;  %vm14545_vm1 = vcmask 1047559  }
 0x82a   : > { %v5612_v57 = vsel %vm2118_vm5, %v12538_v21, 0.0  ;;  %v5356_v32 = vmax.f32 %v5354_v53, %v5355_v7 }
 0x82b   : > { %9383 = vrcp.f32 %v5746_v58  ;;  %v5223_v40 = vpop.f32.mrf.mxu0  ;;  %v5613_v35 = vadd.f32 %v5612_v57, %v5611_v59 }
 0x82c   : > { %v5478_v16 = vsub.f32 %v5302_v5, %v5356_v32  ;;  %v5479_v42 = vsub.f32 %v5303_v4, %v5356_v32  ;;  %v5305_v9 = vsel %vm14479_vm2, %v5223_v40, -1e+30  ;;  %v5128_v5 = vmul.f32 0.2, %v12430_v36 }
 0x82d   : > { %v5358_v44 = vsel %vm2118_vm5, %v5305_v9, -inf  ;;  %v5614_v53 = vrot.slane %v5613_v35, 4 }
 0x82e   : > { %v5514_v0 = vmul.f32 1.442695, %v5478_v16  ;;  %v5516_v7 = vmul.f32 1.442695, %v5479_v42  ;;  %v5359_v25 = vmax.f32 %v5357_v14, %v5358_v44  ;;  %5270 = vmatmul.f32.gmra.mxu0 %v5159_v34  ;;  %v5160_v16 = vsel %vm5096_vm15, %v12430_v36, %v5128_v5  ;;  %v14480_v5 = vld [vmem:[#allocation64_spill] sm:$0xff] }
 0x82f   : > { %v5615_v17 = vadd.f32 %v5614_v53, %v5613_v35  ;;  %vm14481_vm3 = vcmp.gt.f32.partialorder %v14480_v5, 0.0  ;;  %vm5100_vm15 = vcmp.gt.f32.partialorder %v12453_v51, 0.0 }
 0x830   : > { %9385 = vpow2.f32 %v5514_v0  ;;  %v5360_v58 = vrot.slane %v5359_v25, 4 }
 0x831   : > { %v9384_v59 = vpop.eup %9383  ;;  %9387 = vpow2.f32 %v5516_v7  ;;  %v5616_v4 = vrot.slane %v5615_v17, 2 }
 0x832   : > { %v5778_v57 = vmul.f32 %v9384_v59, %v12513_v28  ;;  %v5361_v32 = vmax.f32 %v5359_v25, %v5360_v58 }
 0x833   : > { %v5226_v40 = vpop.f32.mrf.mxu0  ;;  %v5617_v2 = vadd.f32 %v5616_v4, %v5615_v17  ;;  %v5129_v17 = vmul.f32 0.2, %v12432_v55 }
 0x834   : > { %v5362_v48 = vrot.slane %v5361_v32, 2  ;;  %8705 = vmatmul.msk.f32.vlgmr.msrb.gmra.mxu3 %vm2118_vm5, %v5778_v57  ;;  %v12572_v4 = vsel %vm14481_vm3, %v5226_v40, -1e+30  ;;  %v5779_v57 = vmul.f32 %v9384_v59, %v12516_v29 }
 0x835   : > { %v5618_v35 = vrot.slane %v5617_v2, 1  ;;  %v5161_v40 = vsel %vm5097_vm12, %v12432_v55, %v5129_v17  ;;  %v14484_v55 = vld [vmem:[#allocation67_spill] sm:$0xff] }
 0x836   : > { %v9386_v42 = vpop.eup %9385  ;;  %v5363_v14 = vmax.f32 %v5361_v32, %v5362_v48  ;;  %5273 = vmatmul.f32.gmra.mxu0 %v5160_v16  ;;  %v5035_v17 = vmul.f32 %v12307_v50, %v14484_v55 }
 0x837   : > { %v9388_v44 = vpop.eup %9387  ;;  %v5619_v34 = vadd.f32 %v5618_v35, %v5617_v2  ;;  %v12559_v53 = vmul.f32 %v9386_v42, %v14475_v45  ;;  %v14482_v35 = vld [vmem:[#allocation65_spill] sm:$0xff] }
 0x838   : > { %v12562_v28 = vmul.f32 %v9388_v44, %v14476_v13  ;;  %v5364_v0 = vrot.slane %v5363_v14, 1  ;;  %vm14483_vm7 = vcmp.gt.f32.partialorder %v14482_v35, 0.0  ;;  %v5366_v44 = vsel %vm2118_vm5, %v12572_v4, -inf  ;;  %v12961_v45 = vld [vmem:[%s10318_s22 + $0x2] ss:$0 sm:$0xff] }
 0x839   : > { %v5747_v7 = vmax.f32 %v5619_v34, 1e-20  ;;  %v5620_v36 = vsel %vm2118_vm5, %v12559_v53, 0.0 }
 0x83a   : > { %v5621_v25 = vsel %vm2118_vm5, %v12562_v28, 0.0  ;;  %v5365_v58 = vmax.f32 %v5363_v14, %v5364_v0 }
 0x83b   : > { %v5229_v32 = vpop.f32.mrf.mxu0  ;;  %9389 = vrcp.f32 %v5747_v7  ;;  %v5622_v2 = vadd.f32 %v5621_v25, %v5620_v36  ;;  %v5130_v36 = vmul.f32 0.2, %v12436_v26  ;;  %v5001_v25 = vadd.f32 %v12414_v54, %v12313_v39 }
 0x83c   : > { %v5480_v48 = vsub.f32 %v5304_v47, %v5365_v58  ;;  %v5481_v16 = vsub.f32 %v5305_v9, %v5365_v58  ;;  %v5307_v42 = vsel %vm14483_vm7, %v5229_v32, -1e+30  ;;  %8706 = vmatmul.msk.f32.gmra.mxu3 %vm2118_vm5, %v5779_v57 }
 0x83d   : > { %v5367_v14 = vsel %vm2118_vm5, %v5307_v42, -inf  ;;  %v5623_v29 = vrot.slane %v5622_v2, 4 }
 0x83e   : > { %v5518_v59 = vmul.f32 1.442695, %v5480_v48  ;;  %v5520_v34 = vmul.f32 1.442695, %v5481_v16  ;;  %v5368_v0 = vmax.f32 %v5366_v44, %v5367_v14  ;;  %5276 = vmatmul.f32.gmra.mxu0 %v5161_v40  ;;  %v5162_v44 = vsel %vm5098_vm11, %v12436_v26, %v5130_v36 }
 0x83f   : > { %v5624_v47 = vadd.f32 %v5623_v29, %v5622_v2  ;;  %v5067_v14 = vadd.f32 %v5035_v17, %v5001_v25  ;;  %vm5102_vm11 = vcmp.gt.f32.partialorder %v12455_v41, 0.0 }
 0x840   : > { %9391 = vpow2.f32 %v5518_v59  ;;  %v5369_v9 = vrot.slane %v5368_v0, 4 }
 0x841   : > { %v9390_v7 = vpop.eup %9389  ;;  %9393 = vpow2.f32 %v5520_v34  ;;  %v5625_v58 = vrot.slane %v5624_v47, 2  ;;  %vm5099_vm8 = vcmp.gt.f32.partialorder %v5067_v14, 0.0 }
 0x842   : > { %v5370_v57 = vmax.f32 %v5368_v0, %v5369_v9  ;;  %v5780_v32 = vmul.f32 %v9390_v7, %v12535_v22  ;;  %v5781_v17 = vmul.f32 %v9390_v7, %v12538_v21 }
 0x843   : > { %v5232_v48 = vpop.f32.mrf.mxu0  ;;  %v5626_v2 = vadd.f32 %v5625_v58, %v5624_v47  ;;  %v5131_v47 = vmul.f32 0.2, %v5067_v14 }
 0x844   : > { %v5371_v16 = vrot.slane %v5370_v57, 2  ;;  %8707 = vmatmul.msk.f32.gmra.mxu3 %vm2118_vm5, %v5780_v32 }
 0x845   : > { %v5627_v40 = vrot.slane %v5626_v2, 1 }
 0x846   : > { %v9392_v29 = vpop.eup %9391  ;;  %v5372_v54 = vmax.f32 %v5370_v57, %v5371_v16  ;;  %5279 = vmatmul.f32.gmra.mxu0 %v5162_v44  ;;  %v14485_v57 = vld [vmem:[#allocation69_spill] sm:$0xff] }
 0x847   : > { %v9394_v59 = vpop.eup %9393  ;;  %v5628_v34 = vadd.f32 %v5627_v40, %v5626_v2  ;;  %v12594_v22 = vmul.f32 %v9392_v29, %v14477_v46  ;;  %vm14486_vm0 = vcmp.gt.f32.partialorder %v14485_v57, 0.0  ;;  %v14487_v29 = vld [vmem:[#allocation71_spill] sm:$0xff] }
 0x848   : > { %v12597_v0 = vmul.f32 %v9394_v59, %v14478_v52  ;;  %v5373_v9 = vrot.slane %v5372_v54, 1  ;;  %v12605_v32 = vsel %vm14486_vm0, %v5232_v48, -1e+30  ;;  %vm14488_vm2 = vcmp.gt.f32.partialorder %v14487_v29, 0.0 }
 0x849   : > { %v5748_v58 = vmax.f32 %v5628_v34, 1e-20  ;;  %v5629_v26 = vsel %vm2118_vm5, %v12594_v22, 0.0  ;;  %v5163_v48 = vsel %vm5099_vm8, %v5067_v14, %v5131_v47  ;;  %v14489_v14 = vld [vmem:[#allocation70_spill] sm:$0xff] }
 0x84a   : > { %v5630_v36 = vsel %vm2118_vm5, %v12597_v0, 0.0  ;;  %v5374_v25 = vmax.f32 %v5372_v54, %v5373_v9  ;;  %v5375_v54 = vsel %vm2118_vm5, %v12605_v32, -inf  ;;  %v5037_v47 = vmul.f32 %v12307_v50, %v14489_v14 }
 0x84b   : > { %v5235_v2 = vpop.f32.mrf.mxu0  ;;  %9395 = vrcp.f32 %v5748_v58  ;;  %v5631_v16 = vadd.f32 %v5630_v36, %v5629_v26  ;;  %v5132_v36 = vmul.f32 0.2, %v12453_v51 }
 0x84c   : > { %v5482_v44 = vsub.f32 %v12572_v4, %v5374_v25  ;;  %v5483_v40 = vsub.f32 %v5307_v42, %v5374_v25  ;;  %v5309_v59 = vsel %vm14488_vm2, %v5235_v2, -1e+30  ;;  %8708 = vmatmul.msk.f32.gmra.mxu3 %vm2118_vm5, %v5781_v17  ;;  %v5003_v25 = vadd.f32 %v12438_v8, %v12313_v39 }
 0x84d   : > { %v5376_v34 = vsel %vm2118_vm5, %v5309_v59, -inf  ;;  %v5632_v9 = vrot.slane %v5631_v16, 4 }
 0x84e   : > { %v5522_v21 = vmul.f32 1.442695, %v5482_v44  ;;  %v5524_v7 = vmul.f32 1.442695, %v5483_v40  ;;  %v5377_v58 = vmax.f32 %v5375_v54, %v5376_v34  ;;  %5282 = vmatmul.f32.gmra.mxu0 %v5163_v48  ;;  %v5164_v54 = vsel %vm5100_vm15, %v12453_v51, %v5132_v36 }
 0x84f   : > { %v5633_v26 = vadd.f32 %v5632_v9, %v5631_v16  ;;  %v5069_v34 = vadd.f32 %v5037_v47, %v5003_v25  ;;  %v14490_v25 = vld [vmem:[#allocation74_spill] sm:$0xff] }
 0x850   : > { %9397 = vpow2.f32 %v5522_v21  ;;  %v5378_v4 = vrot.slane %v5377_v58, 4  ;;  %vm14491_vm3 = vcmp.gt.f32.partialorder %v14490_v25, 0.0 }
 0x851   : > { %v9396_v42 = vpop.eup %9395  ;;  %9399 = vpow2.f32 %v5524_v7  ;;  %v5634_v17 = vrot.slane %v5633_v26, 2  ;;  %vm5101_vm12 = vcmp.gt.f32.partialorder %v5069_v34, 0.0 }
 0x852   : > { %v5379_v2 = vmax.f32 %v5377_v58, %v5378_v4  ;;  %v5782_v55 = vmul.f32 %v9396_v42, %v12559_v53 }
 0x853   : > { %v5238_v44 = vpop.f32.mrf.mxu0  ;;  %v5635_v16 = vadd.f32 %v5634_v17, %v5633_v26  ;;  %v5783_v26 = vmul.f32 %v9396_v42, %v12562_v28  ;;  %v14492_v42 = vld [vmem:[#allocation75_spill] sm:$0xff] }
 0x854   : > { %v5380_v40 = vrot.slane %v5379_v2, 2  ;;  %8709 = vmatmul.msk.f32.gmra.mxu3 %vm2118_vm5, %v5782_v55  ;;  %v5133_v55 = vmul.f32 0.2, %v5069_v34  ;;  %vm14493_vm7 = vcmp.gt.f32.partialorder %v14492_v42, 0.0 }
 0x855   : > { %v5636_v48 = vrot.slane %v5635_v16, 1 }
 0x856   : > { %v9398_v9 = vpop.eup %9397  ;;  %v5381_v8 = vmax.f32 %v5379_v2, %v5380_v40  ;;  %5285 = vmatmul.f32.gmra.mxu0 %v5164_v54  ;;  %v12636_v2 = vsel %vm14491_vm3, %v5238_v44, -1e+30 }
 0x857   : > { %v9400_v21 = vpop.eup %9399  ;;  %v5637_v7 = vadd.f32 %v5636_v48, %v5635_v16  ;;  %v12629_v4 = vmul.f32 %v9398_v9, %v14480_v5  ;;  %v5384_v9 = vsel %vm2118_vm5, %v12636_v2, -inf }
 0x858   : > { %v12626_v53 = vmul.f32 %v9400_v21, %v14482_v35  ;;  %v5382_v58 = vrot.slane %v5381_v8, 1 }
 0x859   : > { %v5749_v17 = vmax.f32 %v5637_v7, 1e-20  ;;  %v5638_v47 = vsel %vm2118_vm5, %v12629_v4, 0.0 }
 0x85a   : > { %v5639_v51 = vsel %vm2118_vm5, %v12626_v53, 0.0  ;;  %v5383_v36 = vmax.f32 %v5381_v8, %v5382_v58  ;;  %v5165_v8 = vsel %vm5101_vm12, %v5069_v34, %v5133_v55  ;;  %v14494_v34 = vld [vmem:[#allocation73_spill] sm:$0xff] }
 0x85b   : > { %v5241_v16 = vpop.f32.mrf.mxu0  ;;  %9401 = vrcp.f32 %v5749_v17  ;;  %v5640_v40 = vadd.f32 %v5639_v51, %v5638_v47  ;;  %v5039_v55 = vmul.f32 %v12307_v50, %v14494_v34 }
 0x85c   : > { %v5484_v54 = vsub.f32 %v12605_v32, %v5383_v36  ;;  %v5485_v28 = vsub.f32 %v5309_v59, %v5383_v36  ;;  %v5311_v48 = vsel %vm14493_vm7, %v5241_v16, -1e+30  ;;  %8710 = vmatmul.msk.f32.gmra.mxu3 %vm2118_vm5, %v5783_v26  ;;  %v5134_v36 = vmul.f32 0.2, %v12455_v41 }
 0x85d   : > { %v5385_v44 = vsel %vm2118_vm5, %v5311_v48, -inf  ;;  %v5641_v21 = vrot.slane %v5640_v40, 4  ;;  %v5005_v26 = vadd.f32 %v12440_v19, %v12313_v39 }
 0x85e   : > { %v5526_v7 = vmul.f32 1.442695, %v5484_v54  ;;  %v5528_v58 = vmul.f32 1.442695, %v5485_v28  ;;  %v5386_v17 = vmax.f32 %v5384_v9, %v5385_v44  ;;  %5288 = vmatmul.f32.gmra.mxu0 %v5165_v8  ;;  %v5166_v9 = vsel %vm5102_vm11, %v12455_v41, %v5134_v36 }
 0x85f   : > { %v5642_v51 = vadd.f32 %v5641_v21, %v5640_v40  ;;  %v5071_v44 = vadd.f32 %v5039_v55, %v5005_v26  ;;  %v14495_v26 = vld [vmem:[#allocation76_spill] sm:$0xff] }
 0x860   : > { %9403 = vpow2.f32 %v5526_v7  ;;  %v5387_v32 = vrot.slane %v5386_v17, 4  ;;  %vm14496_vm0 = vcmp.gt.f32.partialorder %v14495_v26, 0.0 }
 0x861   : > { %v9402_v59 = vpop.eup %9401  ;;  %9405 = vpow2.f32 %v5528_v58  ;;  %v5643_v47 = vrot.slane %v5642_v51, 2  ;;  %vm5103_vm8 = vcmp.gt.f32.partialorder %v5071_v44, 0.0 }
 0x862   : > { %v5388_v16 = vmax.f32 %v5386_v17, %v5387_v32  ;;  %v5784_v14 = vmul.f32 %v9402_v59, %v12594_v22 }
 0x863   : > { %v5244_v54 = vpop.f32.mrf.mxu0  ;;  %v5644_v40 = vadd.f32 %v5643_v47, %v5642_v51  ;;  %v5785_v51 = vmul.f32 %v9402_v59, %v12597_v0  ;;  %v14497_v0 = vld [vmem:[#allocation77_spill] sm:$0xff] }
 0x864   : > { %v5389_v28 = vrot.slane %v5388_v16, 2  ;;  %8711 = vmatmul.msk.f32.gmra.mxu3 %vm2118_vm5, %v5784_v14  ;;  %v5135_v14 = vmul.f32 0.2, %v5071_v44  ;;  %v5312_v47 = vsel %vm14496_vm0, %v5244_v54, -1e+30  ;;  %vm14498_vm2 = vcmp.gt.f32.partialorder %v14497_v0, 0.0 }
 0x865   : > { %v5645_v8 = vrot.slane %v5644_v40, 1 }
 0x866   : > { %v9404_v21 = vpop.eup %9403  ;;  %v5390_v19 = vmax.f32 %v5388_v16, %v5389_v28  ;;  %5291 = vmatmul.f32.gmra.mxu0 %v5166_v9  ;;  %v5167_v54 = vsel %vm5103_vm8, %v5071_v44, %v5135_v14 }
 0x867   : > { %v9406_v7 = vpop.eup %9405  ;;  %v5646_v58 = vadd.f32 %v5645_v8, %v5644_v40  ;;  %v12661_v50 = vmul.f32 %v9404_v21, %v14485_v57  ;;  %v5393_v8 = vsel %vm2118_vm5, %v5312_v47, -inf }
 0x868   : > { %v12658_v22 = vmul.f32 %v9406_v7, %v14487_v29  ;;  %v5391_v17 = vrot.slane %v5390_v19, 1 }
 0x869   : > { %v5750_v32 = vmax.f32 %v5646_v58, 1e-20  ;;  %v5647_v16 = vsel %vm2118_vm5, %v12661_v50, 0.0 }
 0x86a   : > { %v5648_v41 = vsel %vm2118_vm5, %v12658_v22, 0.0  ;;  %v5392_v36 = vmax.f32 %v5390_v19, %v5391_v17 }
 0x86b   : > { %v5247_v55 = vpop.f32.mrf.mxu0  ;;  %9407 = vrcp.f32 %v5750_v32  ;;  %v5649_v40 = vadd.f32 %v5648_v41, %v5647_v16 }
 0x86c   : > { %v5486_v28 = vsub.f32 %v12636_v2, %v5392_v36  ;;  %v5487_v9 = vsub.f32 %v5311_v48, %v5392_v36  ;;  %v5313_v59 = vsel %vm14498_vm2, %v5247_v55, -1e+30  ;;  %8712 = vmatmul.msk.f32.gmra.mxu3 %vm2118_vm5, %v5785_v51 }
 0x86d   : > { %v5394_v21 = vsel %vm2118_vm5, %v5313_v59, -inf  ;;  %v5650_v19 = vrot.slane %v5649_v40, 4 }
 0x86e   : > { %v5530_v7 = vmul.f32 1.442695, %v5486_v28  ;;  %v5532_v58 = vmul.f32 1.442695, %v5487_v9  ;;  %v5395_v17 = vmax.f32 %v5393_v8, %v5394_v21  ;;  %5294 = vmatmul.f32.gmra.mxu0 %v5167_v54 }
 0x86f   : > { %v5651_v32 = vadd.f32 %v5650_v19, %v5649_v40 }
 0x870   : > { %9409 = vpow2.f32 %v5530_v7  ;;  %v5396_v2 = vrot.slane %v5395_v17, 4 }
 0x871   : > { %v9408_v48 = vpop.eup %9407  ;;  %9411 = vpow2.f32 %v5532_v58  ;;  %v5652_v41 = vrot.slane %v5651_v32, 2 }
 0x872   : > { %v5397_v36 = vmax.f32 %v5395_v17, %v5396_v2  ;;  %v5786_v51 = vmul.f32 %v9408_v48, %v12629_v4  ;;  %v5787_v19 = vmul.f32 %v9408_v48, %v12626_v53  ;;  %v14499_v17 = vld [vmem:[#allocation78_spill] sm:$0xff] }
 0x873   : > { %v5250_v16 = vpop.f32.mrf.mxu0  ;;  %v5653_v55 = vadd.f32 %v5652_v41, %v5651_v32  ;;  %vm14500_vm15 = vcmp.gt.f32.partialorder %v14499_v17, 0.0 }
 0x874   : > { %v5398_v34 = vrot.slane %v5397_v36, 2  ;;  %8713 = vmatmul.msk.f32.gmra.mxu3 %vm2118_vm5, %v5786_v51  ;;  %v5314_v32 = vsel %vm14500_vm15, %v5250_v16, -1e+30 }
 0x875   : > { %v5654_v44 = vrot.slane %v5653_v55, 1  ;;  %v5402_v53 = vsel %vm2118_vm5, %v5314_v32, -inf }
 0x876   : > { %v9410_v14 = vpop.eup %9409  ;;  %v5399_v28 = vmax.f32 %v5397_v36, %v5398_v34 }
 0x877   : > { %v9412_v9 = vpop.eup %9411  ;;  %v5655_v8 = vadd.f32 %v5654_v44, %v5653_v55  ;;  %v12683_v54 = vmul.f32 %v9410_v14, %v14490_v25  ;;  %v14501_v55 = vld [vmem:[#allocation79_spill] sm:$0xff] }
 0x878   : > { %v12680_v40 = vmul.f32 %v9412_v9, %v14492_v42  ;;  %v5400_v21 = vrot.slane %v5399_v28, 1  ;;  %vm14502_vm12 = vcmp.gt.f32.partialorder %v14501_v55, 0.0 }
 0x879   : > { %v5751_v4 = vmax.f32 %v5655_v8, 1e-20  ;;  %v5656_v34 = vsel %vm2118_vm5, %v12683_v54, 0.0 }
 0x87a   : > { %v5657_v7 = vsel %vm2118_vm5, %v12680_v40, 0.0  ;;  %v5401_v58 = vmax.f32 %v5399_v28, %v5400_v21 }
 0x87b   : > { %v5253_v2 = vpop.f32.mrf.mxu0  ;;  %9413 = vrcp.f32 %v5751_v4  ;;  %v5658_v41 = vadd.f32 %v5657_v7, %v5656_v34 }
 0x87c   : > { %v5488_v36 = vsub.f32 %v5312_v47, %v5401_v58  ;;  %v5489_v51 = vsub.f32 %v5313_v59, %v5401_v58  ;;  %v5315_v44 = vsel %vm14502_vm12, %v5253_v2, -1e+30  ;;  %8714 = vmatmul.msk.f32.gmra.mxu3 %vm2118_vm5, %v5787_v19 }
 0x87d   : > { %v5403_v48 = vsel %vm2118_vm5, %v5315_v44, -inf  ;;  %v5659_v14 = vrot.slane %v5658_v41, 4 }
 0x87e   : > { %v5534_v28 = vmul.f32 1.442695, %v5488_v36  ;;  %v5536_v16 = vmul.f32 1.442695, %v5489_v51  ;;  %v5404_v9 = vmax.f32 %v5402_v53, %v5403_v48 }
 0x87f   : > { %v5660_v8 = vadd.f32 %v5659_v14, %v5658_v41 }
 0x880   : > { %9415 = vpow2.f32 %v5534_v28  ;;  %v5405_v21 = vrot.slane %v5404_v9, 4 }
 0x881   : > { %v9414_v4 = vpop.eup %9413  ;;  %9417 = vpow2.f32 %v5536_v16  ;;  %v5661_v47 = vrot.slane %v5660_v8, 2 }
 0x882   : > { %v5406_v59 = vmax.f32 %v5404_v9, %v5405_v21  ;;  %v5788_v7 = vmul.f32 %v9414_v4, %v12661_v50  ;;  %v5789_v14 = vmul.f32 %v9414_v4, %v12658_v22  ;;  %v14503_v9 = vld [vmem:[#allocation80_spill] sm:$0xff] }
 0x883   : > { %v5256_v58 = vpop.f32.mrf.mxu0  ;;  %v5662_v34 = vadd.f32 %v5661_v47, %v5660_v8  ;;  %vm14504_vm3 = vcmp.gt.f32.partialorder %v14503_v9, 0.0 }
 0x884   : > { %v5407_v19 = vrot.slane %v5406_v59, 2  ;;  %8715 = vmatmul.msk.f32.gmra.mxu3 %vm2118_vm5, %v5788_v7  ;;  %v5316_v8 = vsel %vm14504_vm3, %v5256_v58, -1e+30 }
 0x885   : > { %v5663_v2 = vrot.slane %v5662_v34, 1  ;;  %v5411_v22 = vsel %vm2118_vm5, %v5316_v8, -inf }
 0x886   : > { %v9416_v42 = vpop.eup %9415  ;;  %v5408_v25 = vmax.f32 %v5406_v59, %v5407_v19 }
 0x887   : > { %v9418_v36 = vpop.eup %9417  ;;  %v5664_v51 = vadd.f32 %v5663_v2, %v5662_v34  ;;  %v12703_v48 = vmul.f32 %v9416_v42, %v14495_v26  ;;  %v14505_v42 = vld [vmem:[#allocation81_spill] sm:$0xff] }
 0x888   : > { %v12700_v41 = vmul.f32 %v9418_v36, %v14497_v0  ;;  %v5409_v53 = vrot.slane %v5408_v25, 1  ;;  %vm14506_vm7 = vcmp.gt.f32.partialorder %v14505_v42, 0.0 }
 0x889   : > { %v5752_v50 = vmax.f32 %v5664_v51, 1e-20  ;;  %v5665_v21 = vsel %vm2118_vm5, %v12703_v48, 0.0 }
 0x88a   : > { %v5666_v28 = vsel %vm2118_vm5, %v12700_v41, 0.0  ;;  %v5410_v16 = vmax.f32 %v5408_v25, %v5409_v53 }
 0x88b   : > { %v5259_v47 = vpop.f32.mrf.mxu0  ;;  %9419 = vrcp.f32 %v5752_v50  ;;  %v5667_v59 = vadd.f32 %v5666_v28, %v5665_v21 }
 0x88c   : > { %v5490_v7 = vsub.f32 %v5314_v32, %v5410_v16  ;;  %v5491_v34 = vsub.f32 %v5315_v44, %v5410_v16  ;;  %v5317_v19 = vsel %vm14506_vm7, %v5259_v47, -1e+30  ;;  %8716 = vmatmul.msk.f32.gmra.mxu3 %vm2118_vm5, %v5789_v14 }
 0x88d   : > { %v5412_v25 = vsel %vm2118_vm5, %v5317_v19, -inf  ;;  %v5668_v4 = vrot.slane %v5667_v59, 4 }
 0x88e   : > { %v5538_v2 = vmul.f32 1.442695, %v5490_v7  ;;  %v5540_v58 = vmul.f32 1.442695, %v5491_v34  ;;  %v5413_v36 = vmax.f32 %v5411_v22, %v5412_v25 }
 0x88f   : > { %v5669_v51 = vadd.f32 %v5668_v4, %v5667_v59 }
 0x890   : > { %9421 = vpow2.f32 %v5538_v2  ;;  %v5414_v53 = vrot.slane %v5413_v36, 4 }
 0x891   : > { %v9420_v50 = vpop.eup %9419  ;;  %9423 = vpow2.f32 %v5540_v58  ;;  %v5670_v32 = vrot.slane %v5669_v51, 2 }
 0x892   : > { %v5415_v44 = vmax.f32 %v5413_v36, %v5414_v53  ;;  %v5790_v28 = vmul.f32 %v9420_v50, %v12683_v54  ;;  %v5791_v4 = vmul.f32 %v9420_v50, %v12680_v40  ;;  %v14507_v36 = vld [vmem:[#allocation82_spill] sm:$0xff] }
 0x893   : > { %v5262_v16 = vpop.f32.mrf.mxu0  ;;  %v5671_v21 = vadd.f32 %v5670_v32, %v5669_v51  ;;  %vm14508_vm11 = vcmp.gt.f32.partialorder %v14507_v36, 0.0 }
 0x894   : > { %v5416_v14 = vrot.slane %v5415_v44, 2  ;;  %8717 = vmatmul.msk.f32.gmra.mxu3 %vm2118_vm5, %v5790_v28  ;;  %v5318_v51 = vsel %vm14508_vm11, %v5262_v16, -1e+30 }
 0x895   : > { %v5672_v47 = vrot.slane %v5671_v21, 1  ;;  %v5420_v40 = vsel %vm2118_vm5, %v5318_v51, -inf }
 0x896   : > { %v9422_v0 = vpop.eup %9421  ;;  %v5417_v26 = vmax.f32 %v5415_v44, %v5416_v14 }
 0x897   : > { %v9424_v7 = vpop.eup %9423  ;;  %v5673_v34 = vadd.f32 %v5672_v47, %v5671_v21  ;;  %v12723_v25 = vmul.f32 %v9422_v0, %v14499_v17  ;;  %v14509_v0 = vld [vmem:[#allocation83_spill] sm:$0xff] }
 0x898   : > { %v12720_v59 = vmul.f32 %v9424_v7, %v14501_v55  ;;  %v5418_v22 = vrot.slane %v5417_v26, 1  ;;  %vm14510_vm8 = vcmp.gt.f32.partialorder %v14509_v0, 0.0 }
 0x899   : > { %v5753_v54 = vmax.f32 %v5673_v34, 1e-20  ;;  %v5674_v53 = vsel %vm2118_vm5, %v12723_v25, 0.0 }
 0x89a   : > { %v5675_v2 = vsel %vm2118_vm5, %v12720_v59, 0.0  ;;  %v5419_v58 = vmax.f32 %v5417_v26, %v5418_v22 }
 0x89b   : > { %v5265_v32 = vpop.f32.mrf.mxu0  ;;  %9425 = vrcp.f32 %v5753_v54  ;;  %v5676_v44 = vadd.f32 %v5675_v2, %v5674_v53 }
 0x89c   : > { %v5492_v28 = vsub.f32 %v5316_v8, %v5419_v58  ;;  %v5493_v21 = vsub.f32 %v5317_v19, %v5419_v58  ;;  %v5319_v14 = vsel %vm14510_vm8, %v5265_v32, -1e+30  ;;  %8718 = vmatmul.msk.f32.gmra.mxu3 %vm2118_vm5, %v5791_v4 }
 0x89d   : > { %v5421_v26 = vsel %vm2118_vm5, %v5319_v14, -inf  ;;  %v5677_v50 = vrot.slane %v5676_v44, 4 }
 0x89e   : > { %v5542_v47 = vmul.f32 1.442695, %v5492_v28  ;;  %v5544_v16 = vmul.f32 1.442695, %v5493_v21  ;;  %v5422_v7 = vmax.f32 %v5420_v40, %v5421_v26 }
 0x89f   : > { %v5678_v34 = vadd.f32 %v5677_v50, %v5676_v44 }
 0x8a0   : > { %9427 = vpow2.f32 %v5542_v47  ;;  %v5423_v22 = vrot.slane %v5422_v7, 4 }
 0x8a1   : > { %v9426_v54 = vpop.eup %9425  ;;  %9429 = vpow2.f32 %v5544_v16  ;;  %v5679_v8 = vrot.slane %v5678_v34, 2 }
 0x8a2   : > { %v5424_v19 = vmax.f32 %v5422_v7, %v5423_v22  ;;  %v5792_v2 = vmul.f32 %v9426_v54, %v12703_v48  ;;  %v5793_v50 = vmul.f32 %v9426_v54, %v12700_v41  ;;  %v14511_v7 = vld [vmem:[#allocation84_spill] sm:$0xff] }
 0x8a3   : > { %v5268_v58 = vpop.f32.mrf.mxu0  ;;  %v5680_v53 = vadd.f32 %v5679_v8, %v5678_v34  ;;  %vm14512_vm0 = vcmp.gt.f32.partialorder %v14511_v7, 0.0 }
 0x8a4   : > { %v5425_v4 = vrot.slane %v5424_v19, 2  ;;  %8719 = vmatmul.msk.f32.gmra.mxu3 %vm2118_vm5, %v5792_v2  ;;  %v5320_v34 = vsel %vm14512_vm0, %v5268_v58, -1e+30 }
 0x8a5   : > { %v5681_v32 = vrot.slane %v5680_v53, 1  ;;  %v5429_v41 = vsel %vm2118_vm5, %v5320_v34, -inf }
 0x8a6   : > { %v9428_v55 = vpop.eup %9427  ;;  %v5426_v17 = vmax.f32 %v5424_v19, %v5425_v4 }
 0x8a7   : > { %v9430_v28 = vpop.eup %9429  ;;  %v5682_v21 = vadd.f32 %v5681_v32, %v5680_v53  ;;  %v12743_v26 = vmul.f32 %v9428_v55, %v14503_v9  ;;  %v14513_v55 = vld [vmem:[#allocation85_spill] sm:$0xff] }
 0x8a8   : > { %v12740_v44 = vmul.f32 %v9430_v28, %v14505_v42  ;;  %v5427_v40 = vrot.slane %v5426_v17, 1  ;;  %vm14514_vm2 = vcmp.gt.f32.partialorder %v14513_v55, 0.0 }
 0x8a9   : > { %v5754_v48 = vmax.f32 %v5682_v21, 1e-20  ;;  %v5683_v22 = vsel %vm2118_vm5, %v12743_v26, 0.0 }
 0x8aa   : > { %v5684_v47 = vsel %vm2118_vm5, %v12740_v44, 0.0  ;;  %v5428_v16 = vmax.f32 %v5426_v17, %v5427_v40 }
 0x8ab   : > { %v5271_v8 = vpop.f32.mrf.mxu0  ;;  %9431 = vrcp.f32 %v5754_v48  ;;  %v5685_v19 = vadd.f32 %v5684_v47, %v5683_v22 }
 0x8ac   : > { %v5494_v2 = vsub.f32 %v5318_v51, %v5428_v16  ;;  %v5495_v53 = vsub.f32 %v5319_v14, %v5428_v16  ;;  %v5321_v4 = vsel %vm14514_vm2, %v5271_v8, -1e+30  ;;  %8720 = vmatmul.msk.f32.gmra.mxu3 %vm2118_vm5, %v5793_v50 }
 0x8ad   : > { %v5430_v17 = vsel %vm2118_vm5, %v5321_v4, -inf  ;;  %v5686_v54 = vrot.slane %v5685_v19, 4 }
 0x8ae   : > { %v5546_v32 = vmul.f32 1.442695, %v5494_v2  ;;  %v5548_v58 = vmul.f32 1.442695, %v5495_v53  ;;  %v5431_v28 = vmax.f32 %v5429_v41, %v5430_v17 }
 0x8af   : > { %v5687_v21 = vadd.f32 %v5686_v54, %v5685_v19 }
 0x8b0   : > { %9433 = vpow2.f32 %v5546_v32  ;;  %v5432_v40 = vrot.slane %v5431_v28, 4 }
 0x8b1   : > { %v9432_v48 = vpop.eup %9431  ;;  %9435 = vpow2.f32 %v5548_v58  ;;  %v5688_v51 = vrot.slane %v5687_v21, 2 }
 0x8b2   : > { %v5433_v14 = vmax.f32 %v5431_v28, %v5432_v40  ;;  %v5794_v47 = vmul.f32 %v9432_v48, %v12723_v25  ;;  %v5795_v25 = vmul.f32 %v9432_v48, %v12720_v59 }
 0x8b3   : > { %v5274_v16 = vpop.f32.mrf.mxu0  ;;  %v5689_v22 = vadd.f32 %v5688_v51, %v5687_v21  ;;  %v14515_v21 = vld [vmem:[#allocation86_spill] sm:$0xff] }
 0x8b4   : > { %v5434_v50 = vrot.slane %v5433_v14, 2  ;;  %8721 = vmatmul.msk.f32.gmra.mxu3 %vm2118_vm5, %v5794_v47  ;;  %vm14516_vm15 = vcmp.gt.f32.partialorder %v14515_v21, 0.0 }
 0x8b5   : > { %v5690_v8 = vrot.slane %v5689_v22, 1  ;;  %v5322_v40 = vsel %vm14516_vm15, %v5274_v16, -1e+30 }
 0x8b6   : > { %v9434_v42 = vpop.eup %9433  ;;  %v5435_v9 = vmax.f32 %v5433_v14, %v5434_v50  ;;  %v5438_v59 = vsel %vm2118_vm5, %v5322_v40, -inf }
 0x8b7   : > { %v9436_v2 = vpop.eup %9435  ;;  %v5923_v53 = vpop.f32.mrf.mxu3  ;;  %v5691_v41 = vadd.f32 %v5690_v8, %v5689_v22  ;;  %v12763_v54 = vmul.f32 %v9434_v42, %v14507_v36  ;;  %v14517_v42 = vld [vmem:[#allocation87_spill] sm:$0xff] }
 0x8b8   : > { %v12760_v19 = vmul.f32 %v9436_v2, %v14509_v0  ;;  %v5436_v17 = vrot.slane %v5435_v9, 1  ;;  %vm14518_vm12 = vcmp.gt.f32.partialorder %v14517_v42, 0.0 }
 0x8b9   : > { %v5755_v32 = vmax.f32 %v5691_v41, 1e-20  ;;  %v5692_v51 = vsel %vm2118_vm5, %v12763_v54, 0.0 }
 0x8ba   : > { %v5693_v58 = vsel %vm2118_vm5, %v12760_v19, 0.0  ;;  %v5437_v28 = vmax.f32 %v5435_v9, %v5436_v17 }
 0x8bb   : > { %v5277_v14 = vpop.f32.mrf.mxu0  ;;  %9437 = vrcp.f32 %v5755_v32  ;;  %v5694_v47 = vadd.f32 %v5693_v58, %v5692_v51  ;;  %v6019_v32 = vmul.f32 %v5923_v53, %v12311_v12 }
 0x8bc   : > { %v5496_v22 = vsub.f32 %v5320_v34, %v5437_v28  ;;  %v5497_v50 = vsub.f32 %v5321_v4, %v5437_v28  ;;  %v5323_v8 = vsel %vm14518_vm12, %v5277_v14, -1e+30  ;;  %8722 = vmatmul.msk.f32.gmra.mxu3 %vm2118_vm5, %v5795_v25 }
 0x8bd   : > { %v5439_v9 = vsel %vm2118_vm5, %v5323_v8, -inf  ;;  %v5695_v48 = vrot.slane %v5694_v47, 4 }
 0x8be   : > { %v5550_v2 = vmul.f32 1.442695, %v5496_v22  ;;  %v5552_v16 = vmul.f32 1.442695, %v5497_v50  ;;  %v5440_v41 = vmax.f32 %v5438_v59, %v5439_v9 }
 0x8bf   : > { %v5926_v17 = vpop.f32.mrf.mxu3  ;;  %v5696_v0 = vadd.f32 %v5695_v48, %v5694_v47 }
 0x8c0   : > { %9439 = vpow2.f32 %v5550_v2  ;;  %v5441_v34 = vrot.slane %v5440_v41, 4  ;;  %v6020_v4 = vmul.f32 %v5926_v17, %v12313_v39 }
 0x8c1   : > { %v9438_v58 = vpop.eup %9437  ;;  %9441 = vpow2.f32 %v5552_v16  ;;  %v5697_v28 = vrot.slane %v5696_v0, 2 }
 0x8c2   : > { %v5442_v25 = vmax.f32 %v5440_v41, %v5441_v34  ;;  %v12779_v51 = vadd.f32 %v6020_v4, %v6019_v32  ;;  %v5796_v14 = vmul.f32 %v9438_v58, %v12743_v26  ;;  %v5797_v34 = vmul.f32 %v9438_v58, %v12740_v44 }
 0x8c3   : > { %v5280_v36 = vpop.f32.mrf.mxu0  ;;  %v5698_v22 = vadd.f32 %v5697_v28, %v5696_v0 }
 0x8c4   : > { %v5443_v50 = vrot.slane %v5442_v25, 2  ;;  %8723 = vmatmul.msk.f32.gmra.mxu3 %vm2118_vm5, %v5796_v14 }
 0x8c5   : > { %v5699_v47 = vrot.slane %v5698_v22, 1 }
 0x8c6   : > { %v9440_v59 = vpop.eup %9439  ;;  %v5444_v9 = vmax.f32 %v5442_v25, %v5443_v50 }
 0x8c7   : > { %v9442_v53 = vpop.eup %9441  ;;  %v5929_v48 = vpop.f32.mrf.mxu3  ;;  %v5700_v2 = vadd.f32 %v5699_v47, %v5698_v22  ;;  %v12787_v32 = vmul.f32 %v9440_v59, %v14511_v7  ;;  %v14519_v22 = vld [vmem:[#allocation88_spill] sm:$0xff]  ;;  %v14521_v47 = vld [vmem:[#allocation89_spill] sm:$0xff] }
 0x8c8   : > { %v12784_v17 = vmul.f32 %v9442_v53, %v14513_v55  ;;  %v5445_v16 = vrot.slane %v5444_v9, 1  ;;  %vm14520_vm3 = vcmp.gt.f32.partialorder %v14519_v22, 0.0  ;;  %vm14522_vm7 = vcmp.gt.f32.partialorder %v14521_v47, 0.0 }
 0x8c9   : > { %v5756_v41 = vmax.f32 %v5700_v2, 1e-20  ;;  %v5701_v28 = vsel %vm2118_vm5, %v12787_v32, 0.0  ;;  %v5324_v50 = vsel %vm14520_vm3, %v5280_v36, -1e+30 }
 0x8ca   : > { %v5702_v0 = vsel %vm2118_vm5, %v12784_v17, 0.0  ;;  %v5446_v26 = vmax.f32 %v5444_v9, %v5445_v16  ;;  %v5447_v44 = vsel %vm2118_vm5, %v5324_v50, -inf }
 0x8cb   : > { %v5283_v4 = vpop.f32.mrf.mxu0  ;;  %9443 = vrcp.f32 %v5756_v41  ;;  %v5703_v53 = vadd.f32 %v5702_v0, %v5701_v28 }
 0x8cc   : > { %v5498_v25 = vsub.f32 %v5322_v40, %v5446_v26  ;;  %v5499_v14 = vsub.f32 %v5323_v8, %v5446_v26  ;;  %8724 = vmatmul.msk.f32.gmra.mxu3 %vm2118_vm5, %v5797_v34  ;;  %v5325_v59 = vsel %vm14522_vm7, %v5283_v4, -1e+30  ;;  %v6021_v8 = vmul.f32 %v5929_v48, %v12311_v12 }
 0x8cd   : > { %v5448_v58 = vsel %vm2118_vm5, %v5325_v59, -inf  ;;  %v5704_v40 = vrot.slane %v5703_v53, 4  ;;  %vm14533_vm7 = vcmask 1041409  }
 0x8ce   : > { %v5554_v2 = vmul.f32 1.442695, %v5498_v25  ;;  %v5556_v9 = vmul.f32 1.442695, %v5499_v14  ;;  %v5449_v36 = vmax.f32 %v5447_v44, %v5448_v58  ;;  %v8953_v25 = vld [vmem:[%s10402_s15 + $0xf8] sm:$0xff] }
 0x8cf   : > { %v5932_v16 = vpop.f32.mrf.mxu3  ;;  %v5705_v34 = vadd.f32 %v5704_v40, %v5703_v53  ;;  %v8945_v14 = vld [vmem:[%s10397_s14 + $0xf8] sm:$0xff]  ;;  %6522 = vmatpush.bf16.msra.mxu1 %v8953_v25 }
 0x8d0   : > { %9445 = vpow2.f32 %v5554_v2  ;;  %v6022_v41 = vmul.f32 %v5932_v16, %v12313_v39  ;;  %v5450_v0 = vrot.slane %v5449_v36, 4  ;;  %6441 = vmatpush.bf16.msra.mxu0 %v8945_v14 }
 0x8d1   : > { %v9444_v26 = vpop.eup %9443  ;;  %9447 = vpow2.f32 %v5556_v9  ;;  %v5706_v7 = vrot.slane %v5705_v34, 2 }
 0x8d2   : > { %v12803_v4 = vadd.f32 %v6022_v41, %v6021_v8  ;;  %v5798_v28 = vmul.f32 %v9444_v26, %v12763_v54  ;;  %v5451_v29 = vmax.f32 %v5449_v36, %v5450_v0  ;;  %v5799_v0 = vmul.f32 %v9444_v26, %v12760_v19 }
 0x8d3   : > { %v5286_v55 = vpop.f32.mrf.mxu0  ;;  %v5707_v48 = vadd.f32 %v5706_v7, %v5705_v34  ;;  %v14523_v7 = vld [vmem:[#allocation90_spill] sm:$0xff] }
 0x8d4   : > { %8725 = vmatmul.msk.f32.gmra.mxu3 %vm2118_vm5, %v5798_v28  ;;  %v5452_v44 = vrot.slane %v5451_v29, 2  ;;  %vm14524_vm11 = vcmp.gt.f32.partialorder %v14523_v7, 0.0 }
 0x8d5   : > { %v5708_v53 = vrot.slane %v5707_v48, 1  ;;  %v5326_v34 = vsel %vm14524_vm11, %v5286_v55, -1e+30  ;;  %vm14534_vm11 = vmmov %vm14533_vm7 }
 0x8d6   : > { %v9446_v2 = vpop.eup %9445  ;;  %v5453_v40 = vmax.f32 %v5451_v29, %v5452_v44  ;;  %v14525_v29 = vld [vmem:[#allocation91_spill] sm:$0xff]  ;;  %v5456_v26 = vsel %vm2118_vm5, %v5326_v34, -inf }
 0x8d7   : > { %v9448_v58 = vpop.eup %9447  ;;  %v5935_v9 = vpop.f32.mrf.mxu3  ;;  %v5709_v54 = vadd.f32 %v5708_v53, %v5707_v48  ;;  %v12813_v8 = vmul.f32 %v9446_v2, %v14515_v21  ;;  %vm14526_vm8 = vcmp.gt.f32.partialorder %v14525_v29, 0.0 }
 0x8d8   : > { %v12810_v16 = vmul.f32 %v9448_v58, %v14517_v42  ;;  %v5454_v41 = vrot.slane %v5453_v40, 1 }
 0x8d9   : > { %v5757_v25 = vmax.f32 %v5709_v54, 1e-20  ;;  %v5710_v14 = vsel %vm2118_vm5, %v12813_v8, 0.0 }
 0x8da   : > { %v5711_v36 = vsel %vm2118_vm5, %v12810_v16, 0.0  ;;  %v5455_v58 = vmax.f32 %v5453_v40, %v5454_v41  ;;  %v6023_v40 = vmul.f32 %v5935_v9, %v12311_v12 }
 0x8db   : > { %v5289_v28 = vpop.f32.mrf.mxu0  ;;  %9449 = vrcp.f32 %v5757_v25  ;;  %v5712_v44 = vadd.f32 %v5711_v36, %v5710_v14 }
 0x8dc   : > { %v5327_v48 = vsel %vm14526_vm8, %v5289_v28, -1e+30  ;;  %8726 = vmatmul.msk.f32.gmra.mxu3 %vm2118_vm5, %v5799_v0  ;;  %v5500_v53 = vsub.f32 %v5324_v50, %v5455_v58  ;;  %v5501_v19 = vsub.f32 %v5325_v59, %v5455_v58  ;;  %vm14535_vm8 = vcmask 1042434  }
 0x8dd   : > { %v5457_v2 = vsel %vm2118_vm5, %v5327_v48, -inf  ;;  %v5713_v54 = vrot.slane %v5712_v44, 4 }
 0x8de   : > { %v5458_v55 = vmax.f32 %v5456_v26, %v5457_v2  ;;  %v5558_v21 = vmul.f32 1.442695, %v5500_v53  ;;  %v5560_v57 = vmul.f32 1.442695, %v5501_v19 }
 0x8df   : > { %v5938_v42 = vpop.f32.mrf.mxu3  ;;  %v5714_v35 = vadd.f32 %v5713_v54, %v5712_v44  ;;  %v14527_v54 = vld [vmem:[#allocation92_spill] sm:$0xff] }
 0x8e0   : > { %v5459_v41 = vrot.slane %v5458_v55, 4  ;;  %v6024_v28 = vmul.f32 %v5938_v42, %v12313_v39  ;;  %9451 = vpow2.f32 %v5558_v21  ;;  %vm14528_vm0 = vcmp.gt.f32.partialorder %v14527_v54, 0.0 }
 0x8e1   : > { %v9450_v0 = vpop.eup %9449  ;;  %9453 = vpow2.f32 %v5560_v57  ;;  %v5715_v59 = vrot.slane %v5714_v35, 2 }
 0x8e2   : > { %v5460_v25 = vmax.f32 %v5458_v55, %v5459_v41  ;;  %v12829_v36 = vadd.f32 %v6024_v28, %v6023_v40  ;;  %v5800_v14 = vmul.f32 %v9450_v0, %v12787_v32 }
 0x8e3   : > { %v5292_v50 = vpop.f32.mrf.mxu0  ;;  %v5716_v2 = vadd.f32 %v5715_v59, %v5714_v35  ;;  %v14529_v59 = vld [vmem:[#allocation93_spill] sm:$0xff] }
 0x8e4   : > { %v5461_v58 = vrot.slane %v5460_v25, 2  ;;  %8727 = vmatmul.msk.f32.gmra.mxu3 %vm2118_vm5, %v5800_v14  ;;  %v5328_v32 = vsel %vm14528_vm0, %v5292_v50, -1e+30  ;;  %vm14530_vm2 = vcmp.gt.f32.partialorder %v14529_v59, 0.0  ;;  %vm14536_vm0 = vmmov %vm14535_vm8 }
 0x8e5   : > { %v5717_v19 = vrot.slane %v5716_v2, 1 }
 0x8e6   : > { %v5462_v53 = vmax.f32 %v5460_v25, %v5461_v58  ;;  %v9452_v26 = vpop.eup %9451  ;;  %v5801_v58 = vmul.f32 %v9450_v0, %v12784_v17 }
 0x8e7   : > { %v5941_v9 = vpop.f32.mrf.mxu3  ;;  %v9454_v42 = vpop.eup %9453  ;;  %v5718_v21 = vadd.f32 %v5717_v19, %v5716_v2  ;;  %v12834_v57 = vmul.f32 %v9452_v26, %v14519_v22  ;;  %v5465_v26 = vsel %vm2118_vm5, %v5328_v32, -inf }
 0x8e8   : > { %v5463_v44 = vrot.slane %v5462_v53, 1  ;;  %v12837_v55 = vmul.f32 %v9454_v42, %v14521_v47 }
 0x8e9   : > { %v5758_v41 = vmax.f32 %v5718_v21, 1e-20  ;;  %v5719_v28 = vsel %vm2118_vm5, %v12834_v57, 0.0 }
 0x8ea   : > { %v5464_v40 = vmax.f32 %v5462_v53, %v5463_v44  ;;  %v5720_v25 = vsel %vm2118_vm5, %v12837_v55, 0.0 }
 0x8eb   : > { %v5295_v35 = vpop.f32.mrf.mxu0  ;;  %9455 = vrcp.f32 %v5758_v41  ;;  %v5721_v42 = vadd.f32 %v5720_v25, %v5719_v28 }
 0x8ec   : > { %v5329_v14 = vsel %vm14530_vm2, %v5295_v35, -1e+30  ;;  %v5502_v2 = vsub.f32 %v5326_v34, %v5464_v40  ;;  %v5503_v19 = vsub.f32 %v5327_v48, %v5464_v40  ;;  %8728 = vmatmul.msk.f32.gmra.mxu3 %vm2118_vm5, %v5801_v58  ;;  %v6025_v35 = vmul.f32 %v5941_v9, %v12311_v12  ;;  %v8952_v40 = vld [vmem:[%s10402_s15 + $0xf0] sm:$0xff] }
 0x8ed   : > { %v5466_v50 = vsel %vm2118_vm5, %v5329_v14, -inf  ;;  %v5722_v34 = vrot.slane %v5721_v42, 4  ;;  %6523 = vmatpush.bf16.msra.mxu1 %v8952_v40  ;;  %vm14537_vm2 = vcmask 1043459  }
 0x8ee   : > { %v5467_v53 = vmax.f32 %v5465_v26, %v5466_v50  ;;  %v5562_v44 = vmul.f32 1.442695, %v5502_v2  ;;  %v5564_v21 = vmul.f32 1.442695, %v5503_v19  ;;  %v8944_v26 = vld [vmem:[%s10397_s14 + $0xf0] sm:$0xff] }
 0x8ef   : > { %v5944_v47 = vpop.f32.mrf.mxu3  ;;  %v5723_v50 = vadd.f32 %v5722_v34, %v5721_v42  ;;  %6442 = vmatpush.bf16.msra.mxu0 %v8944_v26 }
 0x8f0   : > { %v5468_v22 = vrot.slane %v5467_v53, 4  ;;  %v6026_v17 = vmul.f32 %v5944_v47, %v12313_v39  ;;  %9457 = vpow2.f32 %v5562_v44 }
 0x8f1   : > { %9459 = vpow2.f32 %v5564_v21  ;;  %v9456_v58 = vpop.eup %9455  ;;  %v5724_v25 = vrot.slane %v5723_v50, 2 }
 0x8f2   : > { %v5469_v48 = vmax.f32 %v5467_v53, %v5468_v22  ;;  %v12853_v0 = vadd.f32 %v6026_v17, %v6025_v35  ;;  %v5802_v28 = vmul.f32 %v9456_v58, %v12813_v8 }
 0x8f3   : > { %v5725_v19 = vadd.f32 %v5724_v25, %v5723_v50 }
 0x8f4   : > { %v5470_v41 = vrot.slane %v5469_v48, 2  ;;  %8729 = vmatmul.msk.f32.gmra.mxu3 %vm2118_vm5, %v5802_v28 }
 0x8f5   : > { %v5726_v42 = vrot.slane %v5725_v19, 1 }
 0x8f6   : > { %v5471_v9 = vmax.f32 %v5469_v48, %v5470_v41  ;;  %v9458_v2 = vpop.eup %9457  ;;  %v5803_v41 = vmul.f32 %v9456_v58, %v12810_v16 }
 0x8f7   : > { %v5947_v47 = vpop.f32.mrf.mxu3  ;;  %v9460_v44 = vpop.eup %9459  ;;  %v5598_v53 = vmul.f32 %v9458_v2, %v14523_v7  ;;  %v5727_v8 = vadd.f32 %v5726_v42, %v5725_v19 }
 0x8f8   : > { %v5472_v22 = vrot.slane %v5471_v9, 1  ;;  %v5599_v21 = vmul.f32 %v9460_v44, %v14525_v29 }
 0x8f9   : > { %v5728_v17 = vsel %vm2118_vm5, %v5598_v53, 0.0  ;;  %v5759_v28 = vmax.f32 %v5727_v8, 1e-20 }
 0x8fa   : > { %v5473_v35 = vmax.f32 %v5471_v9, %v5472_v22  ;;  %v5729_v34 = vsel %vm2118_vm5, %v5599_v21, 0.0  ;;  %v6027_v9 = vmul.f32 %v5947_v47, %v12311_v12 }
 0x8fb   : > { %v5730_v26 = vadd.f32 %v5729_v34, %v5728_v17  ;;  %9461 = vrcp.f32 %v5759_v28  ;;  %v8943_v28 = vld [vmem:[%s10397_s14 + $0xe8] sm:$0xff] }
 0x8fc   : > { %v5504_v40 = vsub.f32 %v5328_v32, %v5473_v35  ;;  %v5505_v48 = vsub.f32 %v5329_v14, %v5473_v35  ;;  %8730 = vmatmul.msk.f32.gmra.mxu3 %vm2118_vm5, %v5803_v41  ;;  %v8951_v41 = vld [vmem:[%s10402_s15 + $0xe8] sm:$0xff]  ;;  %6443 = vmatpush.bf16.msra.mxu0 %v8943_v28 }
 0x8fd   : > { %v5731_v5 = vrot.slane %v5730_v26, 4  ;;  %6524 = vmatpush.bf16.msra.mxu1 %v8951_v41 }
 0x8fe   : > { %v5566_v50 = vmul.f32 1.442695, %v5504_v40  ;;  %v5568_v25 = vmul.f32 1.442695, %v5505_v48 }
 0x8ff   : > { %v5950_v2 = vpop.f32.mrf.mxu3  ;;  %v5732_v22 = vadd.f32 %v5731_v5, %v5730_v26 }
 0x900   : > { %9463 = vpow2.f32 %v5566_v50  ;;  %v6028_v44 = vmul.f32 %v5950_v2, %v12313_v39 }
 0x901   : > { %9465 = vpow2.f32 %v5568_v25  ;;  %v5733_v14 = vrot.slane %v5732_v22, 2  ;;  %v9462_v58 = vpop.eup %9461 }
 0x902   : > { %v12867_v32 = vadd.f32 %v6028_v44, %v6027_v9  ;;  %v5804_v42 = vmul.f32 %v9462_v58, %v12834_v57  ;;  %v5805_v57 = vmul.f32 %v9462_v58, %v12837_v55 }
 0x903   : > { %v5734_v16 = vadd.f32 %v5733_v14, %v5732_v22 }
 0x904   : > { %8731 = vmatmul.msk.f32.gmra.mxu3 %vm2118_vm5, %v5804_v42 }
 0x905   : > { %v5735_v34 = vrot.slane %v5734_v16, 1 }
 0x906   : > { %v9464_v19 = vpop.eup %9463 }
 0x907   : > { %v9466_v35 = vpop.eup %9465  ;;  %v5953_v17 = vpop.f32.mrf.mxu3  ;;  %v5736_v47 = vadd.f32 %v5735_v34, %v5734_v16  ;;  %v5600_v5 = vmul.f32 %v9464_v19, %v14527_v54  ;;  %v12940_v54 = vld [vmem:[%s10322_s21 + $0x2] ss:$0 sm:$0xff] }
 0x908   : > { %v5601_v8 = vmul.f32 %v9466_v35, %v14529_v59  ;;  %v6029_v9 = vmul.f32 %v5953_v17, %v12311_v12 }
 0x909   : > { %v5760_v48 = vmax.f32 %v5736_v47, 1e-20  ;;  %v5737_v26 = vsel %vm2118_vm5, %v5600_v5, 0.0 }
 0x90a   : > { %v5738_v40 = vsel %vm2118_vm5, %v5601_v8, 0.0 }
 0x90b   : > { %v5739_v50 = vadd.f32 %v5738_v40, %v5737_v26  ;;  %9467 = vrcp.f32 %v5760_v48 }
 0x90c   : > { %8732 = vmatmul.msk.f32.gmra.mxu3 %vm2118_vm5, %v5805_v57  ;;  %v8950_v57 = vld [vmem:[%s10402_s15 + $0xe0] sm:$0xff] }
 0x90d   : > { %v5740_v25 = vrot.slane %v5739_v50, 4  ;;  %6525 = vmatpush.bf16.msra.mxu1 %v8950_v57  ;;  %v8848_v57 = vld [vmem:[%s10458_s11 + $0x1f8] sm:$0xff] }
 0x90e   : > { %6795 = vmatpush.msrb.mxu2 %v8848_v57 }
 0x90f   : > { %v5956_v2 = vpop.f32.mrf.mxu3  ;;  %v5741_v22 = vadd.f32 %v5740_v25, %v5739_v50  ;;  %v8942_v25 = vld [vmem:[%s10397_s14 + $0xe0] sm:$0xff] }
 0x910   : > { %v6030_v44 = vmul.f32 %v5956_v2, %v12313_v39  ;;  %6444 = vmatpush.bf16.msra.mxu0 %v8942_v25 }
 0x911   : > { %v5742_v16 = vrot.slane %v5741_v22, 2  ;;  %v9468_v19 = vpop.eup %9467 }
 0x912   : > { %v12881_v14 = vadd.f32 %v6030_v44, %v6029_v9  ;;  %v5806_v42 = vmul.f32 %v9468_v19, %v5598_v53  ;;  %v5807_v17 = vmul.f32 %v9468_v19, %v5599_v21 }
 0x913   : > { %v5743_v35 = vadd.f32 %v5742_v16, %v5741_v22 }
 0x914   : > { %8733 = vmatmul.msk.f32.gmra.mxu3 %vm2118_vm5, %v5806_v42 }
 0x915   : > { %v5744_v55 = vrot.slane %v5743_v35, 1 }
 0x917   : > { %v5959_v34 = vpop.f32.mrf.mxu3  ;;  %v5745_v58 = vadd.f32 %v5744_v55, %v5743_v35 }
 0x918   : > { %v6031_v48 = vmul.f32 %v5959_v34, %v12311_v12 }
 0x919   : > { %v5761_v47 = vmax.f32 %v5745_v58, 1e-20 }
 0x91b   : > { %9469 = vrcp.f32 %v5761_v47 }
 0x91c   : > { %8734 = vmatmul.msk.f32.gmra.mxu3 %vm2118_vm5, %v5807_v17  ;;  %v8949_v17 = vld [vmem:[%s10402_s15 + $0xd8] sm:$0xff] }
 0x91d   : > { %6526 = vmatpush.bf16.msra.mxu1 %v8949_v17 }
 0x91f   : > { %v5962_v40 = vpop.f32.mrf.mxu3 }
 0x920   : > { %v6032_v26 = vmul.f32 %v5962_v40, %v12313_v39  ;;  %v8941_v40 = vld [vmem:[%s10397_s14 + $0xd8] sm:$0xff] }
 0x921   : > { %v9470_v53 = vpop.eup %9469  ;;  %6445 = vmatpush.bf16.msra.mxu0 %v8941_v40 }
 0x922   : > { %v12887_v41 = vadd.f32 %v6032_v26, %v6031_v48  ;;  %v5808_v28 = vmul.f32 %v9470_v53, %v5600_v5  ;;  %v5809_v2 = vmul.f32 %v9470_v53, %v5601_v8 }
 0x924   : > { %8735 = vmatmul.msk.f32.gmra.mxu3 %vm2118_vm5, %v5808_v28 }
 0x927   : > { %v5965_v50 = vpop.f32.mrf.mxu3 }
 0x928   : > { %v6033_v9 = vmul.f32 %v5965_v50, %v12311_v12 }
 0x92c   : > { %8736 = vmatmul.msk.f32.gmra.mxu3 %vm2118_vm5, %v5809_v2  ;;  %v6181_v2 = vld [vmem:[%s10324_s5 + $0x2] sm:$0x1] }
 0x92f   : > { %v5968_v21 = vpop.f32.mrf.mxu3 }
 0x930   : > { %v6034_v44 = vmul.f32 %v5968_v21, %v12313_v39  ;;  %v6182_v21 = vadd.f32 1e-05, %v6181_v2  ;;  %v6059_v2 = vrot.slane %v12803_v4, 4 }
 0x932   : > { %v12895_v22 = vadd.f32 %v6034_v44, %v6033_v9  ;;  %9471 = vrsqrt.f32 %v6182_v21  ;;  %v8847_v44 = vld [vmem:[%s10458_s11 + $0x1f0] sm:$0xff]  ;;  %vm6189_vm15 = vweird.f32 %v6182_v21 }
 0x933   : > { %6796 = vmatpush.msrb.mxu2 %v8847_v44 }
 0x937   : > { %v5971_v5 = vpop.f32.mrf.mxu3 }
 0x938   : > { %v6035_v19 = vmul.f32 %v5971_v5, %v12311_v12  ;;  %v8948_v5 = vld [vmem:[%s10402_s15 + $0xd0] sm:$0xff] }
 0x939   : > { %6527 = vmatpush.bf16.msra.mxu1 %v8948_v5 }
 0x93f   : > { %v5974_v16 = vpop.f32.mrf.mxu3 }
 0x940   : > { %v6036_v42 = vmul.f32 %v5974_v16, %v12313_v39  ;;  %v8940_v16 = vld [vmem:[%s10397_s14 + $0xd0] sm:$0xff] }
 0x941   : > { %6446 = vmatpush.bf16.msra.mxu0 %v8940_v16 }
 0x942   : > { %v12899_v35 = vadd.f32 %v6036_v42, %v6035_v19  ;;  %v9472_v19 = vpop.eup %9471  ;;  %v6052_v42 = vrot.slane %v12779_v51, 4 }
 0x943   : > { %vm6190_vm12 = vweird.f32 %v9472_v19 }
 0x944   : > { %vm12924_vm3 = vmor %vm6189_vm15, %vm6190_vm12  ;;  %vm14539_vm12 = vcmask 1044484  }
 0x945   : > { %vm14538_vm15 = vmmov %vm14537_vm2 }
 0x947   : > { %v5977_v8 = vpop.f32.mrf.mxu3 }
 0x948   : > { %v6037_v55 = vmul.f32 %v5977_v8, %v12311_v12 }
 0x94f   : > { %v5980_v34 = vpop.f32.mrf.mxu3 }
 0x950   : > { %v6038_v58 = vmul.f32 %v5980_v34, %v12313_v39  ;;  %v6184_v34 = vmul.f32 %v9472_v19, %v6182_v21 }
 0x952   : > { %v12903_v47 = vadd.f32 %v6038_v58, %v6037_v55  ;;  %v6053_v55 = vadd.f32 %v6052_v42, %v12779_v51  ;;  %v6185_v58 = vmul.f32 %v9472_v19, %v6184_v34  ;;  %v12922_v42 = vld [vmem:[%s10316_s0 + $0x2] ss:$0 sm:$0xff] }
 0x954   : > { %v6054_v17 = vrot.slane %v6053_v55, 2 }
 0x957   : > { %v5983_v48 = vpop.f32.mrf.mxu3 }
 0x958   : > { %v6039_v53 = vmul.f32 %v5983_v48, %v12311_v12  ;;  %v6186_v48 = vmul.f32 0.5, %v6185_v58 }
 0x95f   : > { %v5986_v26 = vpop.f32.mrf.mxu3 }
 0x960   : > { %v6040_v28 = vmul.f32 %v5986_v26, %v12313_v39  ;;  %v6055_v26 = vadd.f32 %v6054_v17, %v6053_v55  ;;  %v6060_v55 = vadd.f32 %v6059_v2, %v12803_v4 }
 0x962   : > { %v12909_v50 = vadd.f32 %v6040_v28, %v6039_v53  ;;  %v8846_v53 = vld [vmem:[%s10458_s11 + $0x1e8] sm:$0xff]  ;;  %v6187_v28 = vsub.f32 1.5, %v6186_v48  ;;  %v6056_v57 = vrot.slane %v6055_v26, 1  ;;  %v6061_v4 = vrot.slane %v6060_v55, 2 }
 0x963   : > { %6797 = vmatpush.msrb.mxu2 %v8846_v53  ;;  %v8845_v53 = vld [vmem:[%s10458_s11 + $0x1e0] sm:$0xff] }
 0x964   : > { %v6188_v5 = vmul.f32 %v9472_v19, %v6187_v28  ;;  %v6057_v16 = vadd.f32 %v6056_v57, %v6055_v26  ;;  %v8947_v28 = vld [vmem:[%s10402_s15 + $0xc8] sm:$0xff]  ;;  %v6122_v2 = vrot.slane %v12909_v50, 4 }
 0x965   : > { %v8939_v57 = vld [vmem:[%s10397_s14 + $0xc8] sm:$0xff]  ;;  %6798 = vmatpush.msrb.mxu2 %v8845_v53  ;;  %6528 = vmatpush.bf16.msra.mxu1 %v8947_v28  ;;  %v6087_v53 = vrot.slane %v12881_v14, 4 }
 0x966   : > { %v6192_v48 = vsel %vm12924_vm3, %v9472_v19, %v6188_v5  ;;  %v6165_v59 = vadd.f32 %v12922_v42, %v6057_v16  ;;  %6447 = vmatpush.bf16.msra.mxu0 %v8939_v57  ;;  %vm14540_vm3 = vmmov %vm14539_vm12 }
 0x967   : > { %v5989_v25 = vpop.f32.mrf.mxu3  ;;  %v12944_v19 = vperm.slane %v6192_v48, 0  ;;  %v6062_v48 = vadd.f32 %v6061_v4, %v6060_v55 }
 0x968   : > { %v6041_v58 = vmul.f32 %v5989_v25, %v12311_v12  ;;  %v6073_v25 = vrot.slane %v12853_v0, 4 }
 0x969   : > { %v6063_v4 = vrot.slane %v6062_v48, 1 }
 0x96a   : > { %v6074_v57 = vadd.f32 %v6073_v25, %v12853_v0 }
 0x96c   : > { %v6075_v25 = vrot.slane %v6074_v57, 2 }
 0x96f   : > { %v5992_v9 = vpop.f32.mrf.mxu3 }
 0x970   : > { %v6042_v51 = vmul.f32 %v5992_v9, %v12313_v39  ;;  %v6066_v9 = vrot.slane %v12829_v36, 4 }
 0x972   : > { %v6128_v26 = vadd.f32 %v6042_v51, %v6041_v58  ;;  %v6067_v51 = vadd.f32 %v6066_v9, %v12829_v36  ;;  %v6195_v58 = vsub.f32 %v6165_v59, %v12940_v54  ;;  %v6094_v36 = vrot.slane %v12887_v41, 4 }
 0x973   : > { %v6108_v9 = vrot.slane %v12899_v35, 4  ;;  %v6123_v59 = vadd.f32 %v6122_v2, %v12909_v50 }
 0x974   : > { %v6129_v34 = vrot.slane %v6128_v26, 4  ;;  %v6212_v13 = vmul.f32 %v12944_v19, %v6195_v58 }
 0x975   : > { %v6124_v2 = vrot.slane %v6123_v59, 2 }
 0x976   : > { %v6130_v52 = vadd.f32 %v6129_v34, %v6128_v26  ;;  %v6109_v26 = vadd.f32 %v6108_v9, %v12899_v35 }
 0x977   : > { %v5995_v8 = vpop.f32.mrf.mxu3  ;;  %v6125_v35 = vadd.f32 %v6124_v2, %v6123_v59 }
 0x978   : > { %v6043_v17 = vmul.f32 %v5995_v8, %v12311_v12  ;;  %v6115_v8 = vrot.slane %v12903_v47, 4  ;;  %v6131_v1 = vrot.slane %v6130_v52, 2 }
 0x97a   : > { %v6116_v29 = vadd.f32 %v6115_v8, %v12903_v47  ;;  %v6088_v47 = vadd.f32 %v6087_v53, %v12881_v14  ;;  %v6132_v61 = vadd.f32 %v6131_v1, %v6130_v52 }
 0x97c   : > { %v6117_v8 = vrot.slane %v6116_v29, 2  ;;  %v6133_v2 = vrot.slane %v6132_v61, 1 }
 0x97f   : > { %v5998_v40 = vpop.f32.mrf.mxu3 }
 0x980   : > { %v6044_v21 = vmul.f32 %v5998_v40, %v12313_v39 }
 0x982   : > { %v6135_v40 = vadd.f32 %v6044_v21, %v6043_v17  ;;  %v6080_v17 = vrot.slane %v12867_v32, 4 }
 0x984   : > { %v6136_v28 = vrot.slane %v6135_v40, 4  ;;  %v6081_v0 = vadd.f32 %v6080_v17, %v12867_v32  ;;  %v6230_v32 = vmul.f32 %v12961_v45, %v6212_v13  ;;  %v12970_v17 = vld [vmem:[%s10320_s17 + $0x2] ss:$0 sm:$0xff] }
 0x986   : > { %v6137_v55 = vadd.f32 %v6136_v28, %v6135_v40  ;;  %v6082_v14 = vrot.slane %v6081_v0, 2  ;;  %v6089_v40 = vrot.slane %v6088_v47, 2  ;;  %v6064_v28 = vadd.f32 %v6063_v4, %v6062_v48 }
 0x987   : > { %v6001_v44 = vpop.f32.mrf.mxu3 }
 0x988   : > { %v6045_v16 = vmul.f32 %v6001_v44, %v12311_v12  ;;  %v6101_v44 = vrot.slane %v12895_v22, 4  ;;  %v6138_v53 = vrot.slane %v6137_v55, 2  ;;  %v6083_v37 = vadd.f32 %v6082_v14, %v6081_v0 }
 0x989   : > { %v6090_v13 = vadd.f32 %v6089_v40, %v6088_v47  ;;  %v6166_v3 = vadd.f32 %v12922_v42, %v6064_v28 }
 0x98a   : > { %v6102_v50 = vadd.f32 %v6101_v44, %v12895_v22  ;;  %v6110_v44 = vrot.slane %v6109_v26, 2  ;;  %v6139_v63 = vadd.f32 %v6138_v53, %v6137_v55  ;;  %v6084_v47 = vrot.slane %v6083_v37, 1 }
 0x98b   : > { %v6091_v55 = vrot.slane %v6090_v13, 1 }
 0x98c   : > { %v6103_v22 = vrot.slane %v6102_v50, 2 }
 0x98e   : > { %v6104_v4 = vadd.f32 %v6103_v22, %v6102_v50  ;;  %v6092_v22 = vadd.f32 %v6091_v55, %v6090_v13 }
 0x98f   : > { %v6004_v5 = vpop.f32.mrf.mxu3 }
 0x990   : > { %v6046_v21 = vmul.f32 %v6004_v5, %v12313_v39  ;;  %v6068_v5 = vrot.slane %v6067_v51, 2  ;;  %v6105_v50 = vrot.slane %v6104_v4, 1 }
 0x992   : > { %v6142_v7 = vadd.f32 %v6046_v21, %v6045_v16  ;;  %v6095_v21 = vadd.f32 %v6094_v36, %v12887_v41  ;;  %v6069_v58 = vadd.f32 %v6068_v5, %v6067_v51  ;;  %v8844_v51 = vld [vmem:[%s10458_s11 + $0x1d8] sm:$0xff]  ;;  %v6248_v5 = vadd.f32 %v12970_v17, %v6230_v32 }
 0x993   : > { %6799 = vmatpush.msrb.mxu2 %v8844_v51  ;;  %v6140_v32 = vrot.slane %v6139_v63, 1 }
 0x994   : > { %v6143_v46 = vrot.slane %v6142_v7, 4  ;;  %v6096_v36 = vrot.slane %v6095_v21, 2  ;;  %v6070_v9 = vrot.slane %v6069_v58, 1  ;;  %v6264_v0 = vadd.f32 %v6248_v5, %v12114_v24 }
 0x995   : > { %v6085_v24 = vadd.f32 %v6084_v47, %v6083_v37  ;;  %v6106_v5 = vadd.f32 %v6105_v50, %v6104_v4  ;;  %v6170_v4 = vadd.f32 %v12922_v42, %v6092_v22  ;;  %v8938_v47 = vld [vmem:[%s10397_s14 + $0xc0] sm:$0xff]  ;;  %s7955_s14 = scalar_lea.sflag [#allocation4], %s14654_s2 }
 0x996   : > { %v6144_v16 = vadd.f32 %v6143_v46, %v6142_v7  ;;  %v6076_v46 = vadd.f32 %v6075_v25, %v6074_v57  ;;  %v6118_v7 = vadd.f32 %v6117_v8, %v6116_v29  ;;  %v6097_v29 = vadd.f32 %v6096_v36, %v6095_v21  ;;  %6448 = vmatpush.bf16.msra.mxu0 %v8938_v47 }
 0x997   : > { %v6007_v34 = vpop.f32.mrf.mxu3  ;;  %v6111_v25 = vadd.f32 %v6110_v44, %v6109_v26  ;;  %v6126_v8 = vrot.slane %v6125_v35, 1  ;;  %v6071_v59 = vadd.f32 %v6070_v9, %v6069_v58  ;;  %v6196_v58 = vsub.f32 %v6166_v3, %v12940_v54 }
 0x998   : > { %v6145_v41 = vrot.slane %v6144_v16, 2  ;;  %v6077_v27 = vrot.slane %v6076_v46, 1  ;;  %v6119_v48 = vrot.slane %v6118_v7, 1  ;;  %v6047_v1 = vmul.f32 %v6007_v34, %v12311_v12 }
 0x999   : > { %v6098_v21 = vrot.slane %v6097_v29, 1  ;;  %v6112_v26 = vrot.slane %v6111_v25, 1  ;;  %v6127_v28 = vadd.f32 %v6126_v8, %v6125_v35  ;;  %v6134_v34 = vadd.f32 %v6133_v2, %v6132_v61 }
 0x99a   : > { %v6146_v57 = vadd.f32 %v6145_v41, %v6144_v16  ;;  %v6078_v14 = vadd.f32 %v6077_v27, %v6076_v46  ;;  %v6120_v40 = vadd.f32 %v6119_v48, %v6118_v7  ;;  %v6167_v41 = vadd.f32 %v12922_v42, %v6071_v59 }
 0x99b   : > { %v6141_v44 = vadd.f32 %v6140_v32, %v6139_v63  ;;  %v6099_v51 = vadd.f32 %v6098_v21, %v6097_v29  ;;  %v6113_v35 = vadd.f32 %v6112_v26, %v6111_v25  ;;  %v6175_v3 = vadd.f32 %v12922_v42, %v6127_v28  ;;  %v8841_v28 = vld [vmem:[%s10458_s11 + $0x1c0] sm:$0xff] }
 0x99c   : > { %v6147_v53 = vrot.slane %v6146_v57, 1  ;;  %v6168_v27 = vadd.f32 %v12922_v42, %v6078_v14  ;;  %v6174_v46 = vadd.f32 %v12922_v42, %v6120_v40  ;;  %v6213_v48 = vmul.f32 %v12944_v19, %v6196_v58 }
 0x99d   : > { %v6197_v37 = vsub.f32 %v6167_v41, %v12940_v54  ;;  %v6176_v63 = vadd.f32 %v12922_v42, %v6134_v34  ;;  %v6169_v29 = vadd.f32 %v12922_v42, %v6085_v24  ;;  %v6177_v25 = vadd.f32 %v12922_v42, %v6141_v44  ;;  %v9574_v24 = vld [vmem:[#allocation13] sm:$0xff] }
 0x99e   : > { %v6148_v7 = vadd.f32 %v6147_v53, %v6146_v57  ;;  %v6198_v8 = vsub.f32 %v6168_v27, %v12940_v54  ;;  %v6204_v59 = vsub.f32 %v6174_v46, %v12940_v54  ;;  %v6171_v55 = vadd.f32 %v12922_v42, %v6099_v51  ;;  %v8842_v53 = vld [vmem:[%s10458_s11 + $0x1c8] sm:$0xff] }
 0x99f   : > { %v6010_v10 = vpop.f32.mrf.mxu3  ;;  %v6172_v32 = vadd.f32 %v12922_v42, %v6106_v5  ;;  %v6173_v14 = vadd.f32 %v12922_v42, %v6113_v35  ;;  %v6205_v40 = vsub.f32 %v6175_v3, %v12940_v54  ;;  %v6214_v21 = vmul.f32 %v12944_v19, %v6197_v37 }
 0x9a0   : > { %v6048_v52 = vmul.f32 %v6010_v10, %v12313_v39  ;;  %v12980_v10 = vmax.f32 %v6264_v0, 0.0  ;;  %v6178_v2 = vadd.f32 %v12922_v42, %v6148_v7  ;;  %v8946_v0 = vld [vmem:[%s10402_s15 + $0xc0] sm:$0xff]  ;;  %v6206_v50 = vsub.f32 %v6176_v63, %v12940_v54 }
 0x9a1   : > { %6529 = vmatpush.bf16.msra.mxu1 %v8946_v0  ;;  %v6199_v41 = vsub.f32 %v6169_v29, %v12940_v54  ;;  %v6200_v34 = vsub.f32 %v6170_v4, %v12940_v54  ;;  %v6215_v22 = vmul.f32 %v12944_v19, %v6198_v8  ;;  %v6221_v44 = vmul.f32 %v12944_v19, %v6204_v59 }
 0x9a2   : > { %v6149_v16 = vadd.f32 %v6048_v52, %v6047_v1  ;;  %v6296_v57 = vpack.c.bf16 %v12980_v10, %v12980_v10  ;;  %v8843_v52 = vld [vmem:[%s10458_s11 + $0x1d0] sm:$0xff]  ;;  %v6208_v27 = vsub.f32 %v6178_v2, %v12940_v54  ;;  %v6201_v7 = vsub.f32 %v6171_v55, %v12940_v54 }
 0x9a3   : > { %6800 = vmatpush.msrb.mxu2 %v8843_v52  ;;  %v6203_v51 = vsub.f32 %v6173_v14, %v12940_v54  ;;  %v6222_v5 = vmul.f32 %v12944_v19, %v6205_v40  ;;  %v6223_v3 = vmul.f32 %v12944_v19, %v6206_v50  ;;  %v6217_v29 = vmul.f32 %v12944_v19, %v6200_v34 }
 0x9a4   : > { %v6150_v36 = vrot.slane %v6149_v16, 4  ;;  %v13008_v58 = vunpack.c.l.b16 %v6296_v57  ;;  %v6216_v57 = vmul.f32 %v12944_v19, %v6199_v41  ;;  %v6225_v8 = vmul.f32 %v12944_v19, %v6208_v27 }
 0x9a5   : > { %6801 = vmatpush.msrb.mxu2 %v8842_v53  ;;  %7531 = vmatpush.msrb.mxu1 %v9574_v24  ;;  %v6220_v52 = vmul.f32 %v12944_v19, %v6203_v51  ;;  %v6241_v0 = vmul.f32 %v12961_v45, %v6223_v3  ;;  %v8840_v24 = vld [vmem:[%s10458_s11 + $0x1b8] sm:$0xff]  ;;  %v8838_v3 = vld [vmem:[%s10458_s11 + $0x1a8] sm:$0xff] }
 0x9a6   : > { %v6151_v9 = vadd.f32 %v6150_v36, %v6149_v16  ;;  %v6231_v16 = vmul.f32 %v12961_v45, %v6213_v48  ;;  %v6207_v36 = vsub.f32 %v6177_v25, %v12940_v54  ;;  %v6239_v25 = vmul.f32 %v12961_v45, %v6221_v44 }
 0x9a7   : > { %v6013_v61 = vpop.f32.mrf.mxu3  ;;  %6802 = vmatpush.msrb.mxu2 %v8841_v28  ;;  %v6234_v40 = vmul.f32 %v12961_v45, %v6216_v57  ;;  %v6238_v27 = vmul.f32 %v12961_v45, %v6220_v52 }
 0x9a8   : > { %v6152_v13 = vrot.slane %v6151_v9, 2  ;;  %v6049_v37 = vmul.f32 %v6013_v61, %v12311_v12  ;;  %v6224_v4 = vmul.f32 %v12944_v19, %v6207_v36  ;;  %v6218_v12 = vmul.f32 %v12944_v19, %v6201_v7 }
 0x9a9   : > { %v6240_v61 = vmul.f32 %v12961_v45, %v6222_v5  ;;  %v6257_v50 = vadd.f32 %v12970_v17, %v6239_v25  ;;  %6803 = vmatpush.msrb.mxu2 %v8840_v24  ;;  %v6252_v5 = vadd.f32 %v12970_v17, %v6234_v40 }
 0x9aa   : > { %v6153_v1 = vadd.f32 %v6152_v13, %v6151_v9  ;;  %v6202_v9 = vsub.f32 %v6172_v32, %v12940_v54  ;;  %v6232_v13 = vmul.f32 %v12961_v45, %v6214_v21  ;;  %v6249_v32 = vadd.f32 %v12970_v17, %v6231_v16 }
 0x9ab   : > { %v6242_v53 = vmul.f32 %v12961_v45, %v6224_v4  ;;  %v6235_v21 = vmul.f32 %v12961_v45, %v6217_v29  ;;  %v6236_v34 = vmul.f32 %v12961_v45, %v6218_v12  ;;  %v6258_v16 = vadd.f32 %v12970_v17, %v6240_v61  ;;  %v8837_v4 = vld [vmem:[%s10458_s11 + $0x1a0] sm:$0xff]  ;;  %v8836_v12 = vld [vmem:[%s10458_s11 + $0x198] sm:$0xff] }
 0x9ac   : > { %v6154_v26 = vrot.slane %v6153_v1, 1  ;;  %v6250_v14 = vadd.f32 %v12970_v17, %v6232_v13 }
 0x9ae   : > { %v6155_v46 = vadd.f32 %v6154_v26, %v6153_v1  ;;  %v6233_v1 = vmul.f32 %v12961_v45, %v6215_v22  ;;  %v6243_v26 = vmul.f32 %v12961_v45, %v6225_v8  ;;  %v8839_v22 = vld [vmem:[%s10458_s11 + $0x1b0] sm:$0xff]  ;;  %v6266_v51 = vadd.f32 %v6250_v14, %v12205_v49 }
 0x9af   : > { %v6016_v35 = vpop.f32.mrf.mxu3  ;;  %6804 = vmatpush.msrb.mxu2 %v8839_v22  ;;  %v6274_v49 = vadd.f32 %v6258_v16, %v12217_v20  ;;  %v6256_v8 = vadd.f32 %v12970_v17, %v6238_v27  ;;  %v8833_v16 = vld [vmem:[%s10458_s11 + $0x180] sm:$0xff] }
 0x9b0   : > { %v6179_v48 = vadd.f32 %v12922_v42, %v6155_v46  ;;  %v6050_v63 = vmul.f32 %v6016_v35, %v12313_v39  ;;  %v6219_v39 = vmul.f32 %v12944_v19, %v6202_v9  ;;  %v6251_v41 = vadd.f32 %v12970_v17, %v6233_v1 }
 0x9b1   : > { %v6259_v46 = vadd.f32 %v12970_v17, %v6241_v0  ;;  %v6265_v9 = vadd.f32 %v6249_v32, %v12203_v31  ;;  %v6260_v35 = vadd.f32 %v12970_v17, %v6242_v53  ;;  %v6254_v31 = vadd.f32 %v12970_v17, %v6236_v34  ;;  %6805 = vmatpush.msrb.mxu2 %v8838_v3  ;;  %v8835_v32 = vld [vmem:[%s10458_s11 + $0x190] sm:$0xff] }
 0x9b2   : > { %v6209_v59 = vsub.f32 %v6179_v48, %v12940_v54  ;;  %v6156_v2 = vadd.f32 %v6050_v63, %v6049_v37  ;;  %v6237_v44 = vmul.f32 %v12961_v45, %v6219_v39  ;;  %v6253_v48 = vadd.f32 %v12970_v17, %v6235_v21  ;;  %v8834_v21 = vld [vmem:[%s10458_s11 + $0x188] sm:$0xff] }
 0x9b3   : > { %v6273_v37 = vadd.f32 %v6257_v50, %v12211_v15  ;;  %v6261_v63 = vadd.f32 %v12970_v17, %v6243_v26  ;;  %v6267_v57 = vadd.f32 %v6251_v41, %v12214_v43  ;;  %v6275_v15 = vadd.f32 %v6259_v46, %v12222_v62  ;;  %6806 = vmatpush.msrb.mxu2 %v8837_v4 }
 0x9b4   : > { %v6226_v47 = vmul.f32 %v12944_v19, %v6209_v59  ;;  %v6157_v55 = vrot.slane %v6156_v2, 4  ;;  %v6255_v25 = vadd.f32 %v12970_v17, %v6237_v44  ;;  %v13072_v1 = vmax.f32 %v6266_v51, 0.0 }
 0x9b5   : > { %v6268_v43 = vadd.f32 %v6252_v5, %v12230_v60  ;;  %v6276_v20 = vadd.f32 %v6260_v35, %v12232_v38  ;;  %v6269_v39 = vadd.f32 %v6253_v48, %v12235_v11  ;;  %v13078_v61 = vmax.f32 %v6273_v37, 0.0  ;;  %6807 = vmatpush.msrb.mxu2 %v8836_v12 }
 0x9b6   : > { %v6158_v28 = vadd.f32 %v6157_v55, %v6156_v2  ;;  %v6244_v36 = vmul.f32 %v12961_v45, %v6226_v47  ;;  %v13070_v2 = vmax.f32 %v6265_v9, 0.0  ;;  %v6277_v52 = vadd.f32 %v6261_v63, %v12239_v18 }
 0x9b7   : > { %v13081_v62 = vmax.f32 %v6267_v57, 0.0  ;;  %v6270_v47 = vadd.f32 %v6254_v31, %v12244_v30  ;;  %v13084_v55 = vmax.f32 %v6274_v49, 0.0  ;;  %v6271_v38 = vadd.f32 %v6255_v25, %v12255_v23  ;;  %6808 = vmatpush.msrb.mxu2 %v8835_v32 }
 0x9b8   : > { %v6159_v7 = vrot.slane %v6158_v28, 2  ;;  %v6262_v29 = vadd.f32 %v12970_v17, %v6244_v36  ;;  %v6272_v11 = vadd.f32 %v6256_v8, %v12250_v56  ;;  %v13090_v14 = vmax.f32 %v6275_v15, 0.0 }
 0x9b9   : > { %v6297_v40 = vpack.c.bf16 %v13070_v2, %v13070_v2  ;;  %v6298_v30 = vpack.c.bf16 %v13072_v1, %v13072_v1  ;;  %v13097_v53 = vmax.f32 %v6268_v43, 0.0  ;;  %v13102_v23 = vmax.f32 %v6269_v39, 0.0  ;;  %6809 = vmatpush.msrb.mxu2 %v8834_v21 }
 0x9ba   : > { %v6160_v13 = vadd.f32 %v6159_v7, %v6158_v28  ;;  %v6278_v60 = vadd.f32 %v6262_v29, %v12248_v6  ;;  %v13099_v6 = vmax.f32 %v6276_v20, 0.0  ;;  %v6305_v56 = vpack.c.bf16 %v13078_v61, %v13078_v61 }
 0x9bb   : > { %v13106_v50 = vmax.f32 %v6277_v52, 0.0  ;;  %v6299_v26 = vpack.c.bf16 %v13081_v62, %v13081_v62  ;;  %v13111_v28 = vmax.f32 %v6270_v47, 0.0  ;;  %v6306_v41 = vpack.c.bf16 %v13084_v55, %v13084_v55  ;;  %6810 = vmatpush.msrb.mxu2 %v8833_v16 }
 0x9bc   : > { %v6161_v59 = vrot.slane %v6160_v13, 1  ;;  %v13115_v34 = vmax.f32 %v6278_v60, 0.0  ;;  %v13118_v36 = vmax.f32 %v6272_v11, 0.0  ;;  %v6307_v24 = vpack.c.bf16 %v13090_v14, %v13090_v14 }
 0x9bd   : > { %v6348_v44 = vunpack.c.l.b16 %v6297_v40  ;;  %v6349_v27 = vunpack.c.l.b16 %v6298_v30  ;;  %v6300_v46 = vpack.c.bf16 %v13097_v53, %v13097_v53  ;;  %v6308_v7 = vpack.c.bf16 %v13099_v6, %v13099_v6 }
 0x9be   : > { %v6162_v0 = vadd.f32 %v6161_v59, %v6160_v13  ;;  %v6356_v9 = vunpack.c.l.b16 %v6305_v56  ;;  %v6301_v5 = vpack.c.bf16 %v13102_v23, %v13102_v23  ;;  %v6350_v35 = vunpack.c.l.b16 %v6299_v26 }
 0x9bf   : > { %v6357_v3 = vunpack.c.l.b16 %v6306_v41  ;;  %v6302_v48 = vpack.c.bf16 %v13111_v28, %v13111_v28  ;;  %v6310_v37 = vpack.c.bf16 %v13115_v34, %v13115_v34  ;;  %v6304_v63 = vpack.c.bf16 %v13118_v36, %v13118_v36 }
 0x9c0   : > { %v6180_v18 = vadd.f32 %v12922_v42, %v6162_v0  ;;  %v6358_v13 = vunpack.c.l.b16 %v6307_v24  ;;  %v6363_v31 = vrot.slane %v6348_v44, 7  ;;  %v6365_v49 = vrot.slane %v6349_v27, 6 }
 0x9c1   : > { %v6351_v29 = vunpack.c.l.b16 %v6300_v46  ;;  %v6359_v4 = vunpack.c.l.b16 %v6308_v7  ;;  %v6377_v25 = vrot.slane %v6356_v9, 7  ;;  %v6352_v15 = vunpack.c.l.b16 %v6301_v5 }
 0x9c2   : > { %v6210_v42 = vsub.f32 %v6180_v18, %v12940_v54  ;;  %v13123_v54 = vmax.f32 %v6271_v38, 0.0  ;;  %v6367_v43 = vrot.slane %v6350_v35, 5  ;;  %v6379_v20 = vrot.slane %v6357_v3, 6  ;;  %v9174_v35 = vld [vmem:[%s10445_s3 + $0x3] ss:$0 sm:$0xff] }
 0x9c3   : > { %v6353_v12 = vunpack.c.l.b16 %v6302_v48  ;;  %v6361_v39 = vunpack.c.l.b16 %v6310_v37  ;;  %v6355_v52 = vunpack.c.l.b16 %v6304_v63  ;;  %v6381_v0 = vrot.slane %v6358_v13, 5  ;;  %v9153_v3 = vld [vmem:[%s10351_s20 + $0x3] ss:$0 sm:$0xff]  ;;  %v13166_v63 = vld [vmem:[%s10310_s29 + $0x3] ss:$0 sm:$0xff]  ;;  %s13858_s29 = scalar_lea.vmem [#allocation14], %s10298_s12 }
 0x9c4   : > { %v6227_v22 = vmul.f32 %v12944_v19, %v6210_v42  ;;  %v6309_v19 = vpack.c.bf16 %v13106_v50, %v13106_v50  ;;  %v6303_v57 = vpack.c.bf16 %v13123_v54, %v13123_v54  ;;  %v6369_v60 = vrot.slane %v6351_v29, 4  ;;  %s8882_s12 = sshll.u32 %s14285_s18, 1  ;;  %s7969_s8 = sshll.u32 %s13858_s29, 4  ;;  %s7970_s8 = int_to_ptr.vmem [resolvable:$true] %s7969_s8 }
 0x9c5   : > { %v6383_v32 = vrot.slane %v6359_v4, 4  ;;  %v6364_v38 = vsel %vm14533_vm7, %v6363_v31, %v13008_v58  ;;  %v6378_v18 = vsel %vm14534_vm11, %v6377_v25, %v6355_v52  ;;  %v6373_v21 = vrot.slane %v6353_v12, 2  ;;  %v14547_v31 = vld [vmem:[#allocation30_spill] sm:$0xff] }
 0x9c6   : > { %v6245_v51 = vmul.f32 %v12961_v45, %v6227_v22  ;;  %v6360_v59 = vunpack.c.l.b16 %v6309_v19  ;;  %v6366_v30 = vsel %vm14535_vm8, %v6365_v49, %v6364_v38  ;;  %v6380_v56 = vsel %vm14536_vm0, %v6379_v20, %v6378_v18 }
 0x9c7   : > { %v6387_v42 = vrot.slane %v6361_v39, 2  ;;  %v6368_v41 = vsel %vm14537_vm2, %v6367_v43, %v6366_v30  ;;  %v6382_v58 = vsel %vm14538_vm15, %v6381_v0, %v6380_v56  ;;  %vm14541_vm7 = vcmask 1045509   ;;  %vm14546_vm2 = vmmov %vm14545_vm1  ;;  %v14548_v39 = vld [vmem:[#allocation31_spill] sm:$0xff]  ;;  %v14549_v56 = vld [vmem:[#allocation32_spill] sm:$0xff] }
 0x9c8   : > { %v6263_v45 = vadd.f32 %v12970_v17, %v6245_v51  ;;  %v6354_v17 = vunpack.c.l.b16 %v6303_v57  ;;  %v6385_v40 = vrot.slane %v6360_v59, 3  ;;  %v6370_v24 = vsel %vm14539_vm12, %v6369_v60, %v6368_v41  ;;  %vm14542_vm11 = vmmov %vm14541_vm7  ;;  %v14550_v41 = vld [vmem:[#allocation40_spill] sm:$0xff] }
 0x9c9   : > { %v6384_v22 = vsel %vm14540_vm3, %v6383_v32, %v6382_v58  ;;  %vm14543_vm8 = vcmask 1046534   ;;  %v6618_v49 = vmul.f32 %v13166_v63, %v14547_v31  ;;  %v6619_v52 = vmul.f32 %v13166_v63, %v14548_v39  ;;  %v14551_v58 = vld [vmem:[#allocation42_spill] sm:$0xff] }
 0x9ca   : > { %v6279_v8 = vadd.f32 %v6263_v45, %v12276_v33  ;;  %v6371_v33 = vrot.slane %v6352_v15, 3  ;;  %v6375_v16 = vrot.slane %v6354_v17, 1  ;;  %v6386_v27 = vsel %vm14542_vm11, %v6385_v40, %v6384_v22  ;;  %vm14544_vm0 = vmmov %vm14543_vm8  ;;  %v14552_v22 = vld [vmem:[#allocation41_spill] sm:$0xff] }
 0x9cb   : > { %v6388_v9 = vsel %vm14544_vm0, %v6387_v42, %v6386_v27  ;;  %v6620_v42 = vmul.f32 %v13166_v63, %v14549_v56  ;;  %v14553_v27 = vld [vmem:[#allocation44_spill] sm:$0xff] }
 0x9cc   : > { %v13144_v47 = vmax.f32 %v6279_v8, 0.0  ;;  %v6372_v44 = vsel %vm14541_vm7, %v6371_v33, %v6370_v24  ;;  %v6630_v24 = vmul.f32 %v13166_v63, %v14551_v58 }
 0x9cd   : > { %v6374_v7 = vsel %vm14543_vm8, %v6373_v21, %v6372_v44  ;;  %v6629_v44 = vmul.f32 %v13166_v63, %v14552_v22 }
 0x9ce   : > { %v6311_v11 = vpack.c.bf16 %v13144_v47, %v13144_v47  ;;  %v6376_v51 = vsel %vm14545_vm1, %v6375_v16, %v6374_v7  ;;  %v6628_v16 = vmul.f32 %v13166_v63, %v14550_v41  ;;  %v14559_v41 = vld [vmem:[#allocation49_spill] sm:$0xff] }
 0x9d0   : > { %v6362_v26 = vunpack.c.l.b16 %v6311_v11 }
 0x9d2   : > { %v6389_v46 = vrot.slane %v6362_v26, 1 }
 0x9d4   : > { %v6390_v5 = vsel %vm14546_vm2, %v6389_v46, %v6388_v9  ;;  %v6632_v46 = vmul.f32 %v13166_v63, %v14553_v27 }
 0x9d5   : > { %v6391_v19 = vpack.c.b16 %v6390_v5, %v6376_v51 }
 0x9d7   : > { %6449 = vmatmul.bf16.vlgmr.msra.gmra.mxu0 %v6391_v19  ;;  %6530 = vmatmul.bf16.vlgmr.msra.gmra.mxu1 %v6391_v19 }
 0xa54   : > { %v6450_v48 = vpop.f32.mrf.mxu0  ;;  %v6531_v37 = vpop.f32.mrf.mxu1 }
 0xa55   : > { %v13168_v13 = vadd.f32 %v9174_v35, %v6531_v37  ;;  %v13170_v45 = vadd.f32 %v9153_v3, %v6450_v48  ;;  %v14554_v48 = vld [vmem:[#allocation43_spill] sm:$0xff] }
 0xa56   : > { %v6631_v37 = vmul.f32 %v13166_v63, %v14554_v48 }
 0xa57   : > { %v6552_v57 = vperm.slane %v13168_v13, 0  ;;  %v6538_v4 = vrot.slane %v13168_v13, 1  ;;  %v6542_v8 = vrot.slane %v13168_v13, 5  ;;  %v6543_v15 = vrot.slane %v13168_v13, 6 }
 0xa58   : > { %v6544_v43 = vrot.slane %v13168_v13, 7 }
 0xa59   : > { %v6584_v29 = vadd.f32 %v6552_v57, %v13170_v45  ;;  %v6553_v0 = vperm.slane %v6538_v4, 0  ;;  %v6557_v32 = vperm.slane %v6542_v8, 0  ;;  %v6558_v38 = vperm.slane %v6543_v15, 0 }
 0xa5a   : > { %v6559_v11 = vperm.slane %v6544_v43, 0 }
 0xa5b   : > { %v6650_v25 = vadd.f32 %v6618_v49, %v6584_v29  ;;  %v6586_v18 = vadd.f32 %v6553_v0, %v13170_v45  ;;  %v6594_v30 = vadd.f32 %v6557_v32, %v13170_v45  ;;  %v6596_v21 = vadd.f32 %v6558_v38, %v13170_v45 }
 0xa5c   : > { %v6452_v59 = vpop.f32.mrf.mxu0  ;;  %v6598_v26 = vadd.f32 %v6559_v11, %v13170_v45  ;;  %v6533_v7 = vpop.f32.mrf.mxu1  ;;  %v6539_v29 = vrot.slane %v13168_v13, 2 }
 0xa5d   : > { %v13180_v20 = vadd.f32 %v9153_v3, %v6452_v59  ;;  %vm6682_vm1 = vcmp.gt.f32.partialorder %v6650_v25, 0.0  ;;  %v6714_v12 = vmul.f32 0.2, %v6650_v25  ;;  %v6652_v9 = vadd.f32 %v6620_v42, %v6586_v18  ;;  %v14555_v59 = vld [vmem:[#allocation33_spill] sm:$0xff] }
 0xa5e   : > { %v13199_v5 = vadd.f32 %v6628_v16, %v6594_v30  ;;  %v13202_v3 = vadd.f32 %v6630_v24, %v6596_v21  ;;  %v13207_v31 = vadd.f32 %v6632_v46, %v6598_v26  ;;  %v13209_v49 = vadd.f32 %v9174_v35, %v6533_v7  ;;  %v14558_v35 = vld [vmem:[#allocation46_spill] sm:$0xff] }
 0xa5f   : > { %v6746_v17 = vsel %vm6682_vm1, %v6650_v25, %v6714_v12  ;;  %v6585_v60 = vadd.f32 %v6552_v57, %v13180_v20  ;;  %v6595_v19 = vadd.f32 %v6557_v32, %v13180_v20  ;;  %v6597_v57 = vadd.f32 %v6558_v38, %v13180_v20  ;;  %v14556_v12 = vld [vmem:[#allocation45_spill] sm:$0xff] }
 0xa60   : > { %6811 = vmatmul.f32.vlgmr.msrb.gmra.mxu2 %v6746_v17  ;;  %v6587_v25 = vadd.f32 %v6553_v0, %v13180_v20  ;;  %v6716_v15 = vmul.f32 0.2, %v6652_v9  ;;  %v6621_v43 = vmul.f32 %v13166_v63, %v14555_v59  ;;  %v6633_v39 = vmul.f32 %v13166_v63, %v14556_v12 }
 0xa61   : > { %v6651_v33 = vadd.f32 %v6619_v52, %v6585_v60  ;;  %v13212_v4 = vadd.f32 %v6629_v44, %v6595_v19  ;;  %v13215_v8 = vadd.f32 %v6631_v37, %v6597_v57  ;;  %v14557_v52 = vld [vmem:[#allocation47_spill] sm:$0xff]  ;;  %vm6684_vm12 = vcmp.gt.f32.partialorder %v6652_v9, 0.0  ;;  %v14562_v57 = vld [vmem:[#allocation34_spill] sm:$0xff] }
 0xa62   : > { %v6635_v17 = vmul.f32 %v13166_v63, %v14557_v52  ;;  %v6634_v60 = vmul.f32 %v13166_v63, %v14558_v35  ;;  %v6554_v32 = vperm.slane %v6539_v29, 0  ;;  %v6599_v38 = vadd.f32 %v6559_v11, %v13180_v20  ;;  %v14560_v11 = vld [vmem:[#allocation52_spill] sm:$0xff]  ;;  %v14561_v44 = vld [vmem:[#allocation51_spill] sm:$0xff] }
 0xa63   : > { %v6715_v40 = vmul.f32 0.2, %v6651_v33  ;;  %vm6683_vm15 = vcmp.gt.f32.partialorder %v6651_v33, 0.0  ;;  %v6560_v0 = vperm.slane %v13209_v49, 0  ;;  %v6545_v18 = vrot.slane %v13209_v49, 1 }
 0xa64   : > { %v6547_v30 = vrot.slane %v13209_v49, 3  ;;  %v6748_v21 = vsel %vm6684_vm12, %v6652_v9, %v6716_v15  ;;  %v13230_v56 = vadd.f32 %v6633_v39, %v6599_v38  ;;  %v6636_v16 = vmul.f32 %v13166_v63, %v14559_v41 }
 0xa65   : > { %v6747_v51 = vsel %vm6683_vm15, %v6651_v33, %v6715_v40  ;;  %v6653_v33 = vadd.f32 %v6621_v43, %v6587_v25  ;;  %v6546_v40 = vrot.slane %v13209_v49, 2  ;;  %v6600_v42 = vadd.f32 %v6560_v0, %v13170_v45  ;;  %v14563_v25 = vld [vmem:[#allocation55_spill] sm:$0xff] }
 0xa66   : > { %v6601_v26 = vadd.f32 %v6560_v0, %v13180_v20  ;;  %v6638_v58 = vmul.f32 %v13166_v63, %v14560_v11  ;;  %v6561_v24 = vperm.slane %v6545_v18, 0  ;;  %v6637_v27 = vmul.f32 %v13166_v63, %v14561_v44  ;;  %v14564_v0 = vld [vmem:[#allocation57_spill] sm:$0xff] }
 0xa67   : > { %v6562_v22 = vperm.slane %v6546_v40, 0  ;;  %v13240_v46 = vadd.f32 %v6634_v60, %v6600_v42  ;;  %v6563_v9 = vperm.slane %v6547_v30, 0  ;;  %v6622_v29 = vmul.f32 %v13166_v63, %v14562_v57  ;;  %v14565_v40 = vld [vmem:[#allocation60_spill] sm:$0xff] }
 0xa68   : > { %6814 = vmatmul.f32.gmra.mxu2 %v6747_v51  ;;  %v13242_v7 = vadd.f32 %v6635_v17, %v6601_v26  ;;  %v6602_v51 = vadd.f32 %v6561_v24, %v13170_v45  ;;  %v6603_v19 = vadd.f32 %v6561_v24, %v13180_v20  ;;  %v6639_v15 = vmul.f32 %v13166_v63, %v14563_v25 }
 0xa69   : > { %v6604_v48 = vadd.f32 %v6562_v22, %v13170_v45  ;;  %v6605_v37 = vadd.f32 %v6562_v22, %v13180_v20  ;;  %v6717_v59 = vmul.f32 0.2, %v6653_v33  ;;  %v6588_v43 = vadd.f32 %v6554_v32, %v13170_v45  ;;  %v14567_v22 = vld [vmem:[#allocation59_spill] sm:$0xff] }
 0xa6a   : > { %vm6685_vm3 = vcmp.gt.f32.partialorder %v6653_v33, 0.0  ;;  %v13253_v12 = vadd.f32 %v6636_v16, %v6602_v51  ;;  %v13255_v39 = vadd.f32 %v6637_v27, %v6603_v19  ;;  %v6606_v35 = vadd.f32 %v6563_v9, %v13170_v45 }
 0xa6b   : > { %v13257_v52 = vadd.f32 %v6638_v58, %v6604_v48  ;;  %v13259_v17 = vadd.f32 %v6639_v15, %v6605_v37  ;;  %v6607_v60 = vadd.f32 %v6563_v9, %v13180_v20  ;;  %v6548_v38 = vrot.slane %v13209_v49, 4  ;;  %v14566_v58 = vld [vmem:[#allocation63_spill] sm:$0xff] }
 0xa6c   : > { %v6640_v18 = vmul.f32 %v13166_v63, %v14564_v0  ;;  %v6641_v30 = vmul.f32 %v13166_v63, %v14565_v40  ;;  %v6654_v42 = vadd.f32 %v6622_v29, %v6588_v43  ;;  %v6549_v11 = vrot.slane %v13209_v49, 5  ;;  %v14568_v29 = vld [vmem:[#allocation35_spill] sm:$0xff]  ;;  %v14569_v43 = vld [vmem:[#allocation66_spill] sm:$0xff] }
 0xa6d   : > { %v6564_v16 = vperm.slane %v6548_v38, 0  ;;  %v6643_v24 = vmul.f32 %v13166_v63, %v14566_v58  ;;  %v6642_v44 = vmul.f32 %v13166_v63, %v14567_v22  ;;  %v6589_v27 = vadd.f32 %v6554_v32, %v13180_v20 }
 0xa6e   : > { %v13268_v26 = vadd.f32 %v6640_v18, %v6606_v35  ;;  %v13270_v41 = vadd.f32 %v6641_v30, %v6607_v60  ;;  %v6540_v9 = vrot.slane %v13168_v13, 3  ;;  %v13281_v48 = vperm.slane %v6549_v11, 0  ;;  %v14571_v11 = vld [vmem:[#allocation68_spill] sm:$0xff] }
 0xa6f   : > { %v6608_v51 = vadd.f32 %v6564_v16, %v13170_v45  ;;  %v6609_v19 = vadd.f32 %v6564_v16, %v13180_v20  ;;  %vm6686_vm7 = vcmp.gt.f32.partialorder %v6654_v42, 0.0  ;;  %v6550_v37 = vrot.slane %v13209_v49, 6 }
 0xa70   : > { %6817 = vmatmul.f32.gmra.mxu2 %v6748_v21  ;;  %v6749_v21 = vsel %vm6685_vm3, %v6653_v33, %v6717_v59  ;;  %v6718_v33 = vmul.f32 0.2, %v6654_v42  ;;  %v6551_v57 = vrot.slane %v13209_v49, 7  ;;  %v6623_v25 = vmul.f32 %v13166_v63, %v14568_v29 }
 0xa71   : > { %v13287_v15 = vadd.f32 %v6642_v44, %v6608_v51  ;;  %v13289_v32 = vadd.f32 %v6643_v24, %v6609_v19  ;;  %v6610_v59 = vadd.f32 %v13281_v48, %v13170_v45  ;;  %v6644_v35 = vmul.f32 %v13166_v63, %v14569_v43 }
 0xa72   : > { %v13295_v60 = vperm.slane %v6550_v37, 0  ;;  %v13297_v38 = vperm.slane %v6551_v57, 0  ;;  %v6750_v0 = vsel %vm6686_vm7, %v6654_v42, %v6718_v33  ;;  %v6655_v18 = vadd.f32 %v6623_v25, %v6589_v27  ;;  %v14573_v25 = vld [vmem:[#allocation37_spill] sm:$0xff] }
 0xa73   : > { %v6555_v49 = vperm.slane %v6540_v9, 0  ;;  %v13299_v40 = vadd.f32 %v6644_v35, %v6610_v59  ;;  %v6646_v58 = vmul.f32 %v13166_v63, %v14571_v11  ;;  %v14572_v9 = vld [vmem:[#allocation36_spill] sm:$0xff]  ;;  %v6541_v29 = vrot.slane %v13168_v13, 4 }
 0xa74   : > { %v6612_v30 = vadd.f32 %v13295_v60, %v13170_v45  ;;  %v6614_v24 = vadd.f32 %v13297_v38, %v13170_v45  ;;  %v6719_v22 = vmul.f32 0.2, %v6655_v18  ;;  %vm6687_vm11 = vcmp.gt.f32.partialorder %v6655_v18, 0.0 }
 0xa75   : > { %v6590_v42 = vadd.f32 %v6555_v49, %v13170_v45  ;;  %v6624_v33 = vmul.f32 %v13166_v63, %v14572_v9  ;;  %v6591_v57 = vadd.f32 %v6555_v49, %v13180_v20  ;;  %v6625_v59 = vmul.f32 %v13166_v63, %v14573_v25 }
 0xa76   : > { %v13310_v44 = vadd.f32 %v6646_v58, %v6612_v30  ;;  %v6751_v51 = vsel %vm6687_vm11, %v6655_v18, %v6719_v22  ;;  %v14574_v18 = vld [vmem:[#allocation38_spill] sm:$0xff]  ;;  %vm6692_vm15 = vcmp.gt.f32.partialorder %v13199_v5, 0.0  ;;  %vm6693_vm12 = vcmp.gt.f32.partialorder %v13212_v4, 0.0 }
 0xa77   : > { %v6656_v19 = vadd.f32 %v6624_v33, %v6590_v42  ;;  %v6657_v35 = vadd.f32 %v6625_v59, %v6591_v57  ;;  %v6725_v57 = vmul.f32 0.2, %v13212_v4  ;;  %v6726_v25 = vmul.f32 0.2, %v13202_v3 }
 0xa78   : > { %6820 = vmatmul.f32.gmra.mxu2 %v6749_v21  ;;  %v14570_v21 = vld [vmem:[#allocation72_spill] sm:$0xff]  ;;  %vm6694_vm3 = vcmp.gt.f32.partialorder %v13202_v3, 0.0  ;;  %vm6695_vm7 = vcmp.gt.f32.partialorder %v13215_v8, 0.0  ;;  %vm6696_vm11 = vcmp.gt.f32.partialorder %v13207_v31, 0.0 }
 0xa79   : > { %v6648_v16 = vmul.f32 %v13166_v63, %v14570_v21  ;;  %v6720_v37 = vmul.f32 0.2, %v6656_v19  ;;  %vm6688_vm8 = vcmp.gt.f32.partialorder %v6656_v19, 0.0  ;;  %v6721_v30 = vmul.f32 0.2, %v6657_v35 }
 0xa7a   : > { %vm6689_vm0 = vcmp.gt.f32.partialorder %v6657_v35, 0.0  ;;  %v6758_v59 = vsel %vm6694_vm3, %v13202_v3, %v6726_v25  ;;  %vm6707_vm3 = vcmp.gt.f32.partialorder %v13289_v32, 0.0 }
 0xa7b   : > { %v13312_v27 = vadd.f32 %v6648_v16, %v6614_v24  ;;  %v6752_v43 = vsel %vm6688_vm8, %v6656_v19, %v6720_v37  ;;  %v6626_v16 = vmul.f32 %v13166_v63, %v14574_v18  ;;  %v6753_v11 = vsel %vm6689_vm0, %v6657_v35, %v6721_v30  ;;  %v14575_v24 = vld [vmem:[#allocation39_spill] sm:$0xff] }
 0xa7c   : > { %v6627_v22 = vmul.f32 %v13166_v63, %v14575_v24  ;;  %v6724_v19 = vmul.f32 0.2, %v13199_v5  ;;  %v6728_v35 = vmul.f32 0.2, %v13207_v31  ;;  %vm6697_vm8 = vcmp.gt.f32.partialorder %v13230_v56, 0.0 }
 0xa7d   : > { %v6730_v30 = vmul.f32 0.2, %v13240_v46  ;;  %vm6698_vm0 = vcmp.gt.f32.partialorder %v13240_v46, 0.0  ;;  %v6731_v18 = vmul.f32 0.2, %v13242_v7 }
 0xa7e   : > { %v6756_v37 = vsel %vm6692_vm15, %v13199_v5, %v6724_v19 }
 0xa80   : > { %6823 = vmatmul.f32.gmra.mxu2 %v6750_v0  ;;  %v6556_v0 = vperm.slane %v6541_v29, 0  ;;  %v6757_v29 = vsel %vm6693_vm12, %v13212_v4, %v6725_v57  ;;  %v6760_v4 = vsel %vm6696_vm11, %v13207_v31, %v6728_v35  ;;  %vm6706_vm12 = vcmp.gt.f32.partialorder %v13287_v15, 0.0 }
 0xa82   : > { %v6592_v21 = vadd.f32 %v6556_v0, %v13170_v45  ;;  %v6593_v13 = vadd.f32 %v6556_v0, %v13180_v20  ;;  %v6729_v0 = vmul.f32 0.2, %v13230_v56 }
 0xa84   : > { %v6658_v58 = vadd.f32 %v6626_v16, %v6592_v21  ;;  %v6659_v9 = vadd.f32 %v6627_v22, %v6593_v13  ;;  %v6761_v3 = vsel %vm6697_vm8, %v13230_v56, %v6729_v0  ;;  %v14576_v16 = vld [vmem:[#allocation48_spill] sm:$0xff]  ;;  %v14579_v0 = vld [vmem:[#allocation53_spill] sm:$0xff]  ;;  %vm6708_vm8 = vcmp.gt.f32.partialorder %v13299_v40, 0.0 }
 0xa86   : > { %v6722_v49 = vmul.f32 0.2, %v6658_v58  ;;  %vm6690_vm2 = vcmp.gt.f32.partialorder %v6658_v58, 0.0  ;;  %v6723_v33 = vmul.f32 0.2, %v6659_v9  ;;  %vm6691_vm1 = vcmp.gt.f32.partialorder %v6659_v9, 0.0 }
 0xa88   : > { %6826 = vmatmul.f32.gmra.mxu2 %v6751_v51  ;;  %v6754_v42 = vsel %vm6690_vm2, %v6658_v58, %v6722_v49  ;;  %v6755_v51 = vsel %vm6691_vm1, %v6659_v9, %v6723_v33  ;;  %vm6699_vm2 = vcmp.gt.f32.partialorder %v13242_v7, 0.0  ;;  %v6732_v58 = vmul.f32 0.2, %v13253_v12  ;;  %v14577_v49 = vld [vmem:[#allocation50_spill] sm:$0xff] }
 0xa89   : > { %v6763_v31 = vsel %vm6699_vm2, %v13242_v7, %v6731_v18  ;;  %vm6700_vm1 = vcmp.gt.f32.partialorder %v13253_v12, 0.0 }
 0xa90   : > { %6829 = vmatmul.f32.gmra.mxu2 %v6752_v43  ;;  %v6727_v43 = vmul.f32 0.2, %v13215_v8 }
 0xa92   : > { %v6759_v5 = vsel %vm6695_vm7, %v13215_v8, %v6727_v43  ;;  %v6762_v8 = vsel %vm6698_vm0, %v13240_v46, %v6730_v30 }
 0xa98   : > { %6832 = vmatmul.f32.gmra.mxu2 %v6753_v11 }
 0xaa0   : > { %6835 = vmatmul.f32.gmra.mxu2 %v6754_v42  ;;  %v6764_v42 = vsel %vm6700_vm1, %v13253_v12, %v6732_v58  ;;  %v6734_v12 = vmul.f32 0.2, %v13257_v52 }
 0xaa8   : > { %6838 = vmatmul.f32.gmra.mxu2 %v6755_v51  ;;  %v6733_v51 = vmul.f32 0.2, %v13255_v39 }
 0xab0   : > { %6841 = vmatmul.f32.gmra.mxu2 %v6756_v37 }
 0xab8   : > { %6844 = vmatmul.f32.gmra.mxu2 %v6757_v29 }
 0xac0   : > { %6847 = vmatmul.f32.gmra.mxu2 %v6758_v59  ;;  %v14578_v59 = vld [vmem:[#allocation54_spill] sm:$0xff] }
 0xac8   : > { %6850 = vmatmul.f32.gmra.mxu2 %v6759_v5 }
 0xad0   : > { %6853 = vmatmul.f32.gmra.mxu2 %v6760_v4 }
 0xad8   : > { %6856 = vmatmul.f32.gmra.mxu2 %v6761_v3 }
 0xae0   : > { %6859 = vmatmul.f32.gmra.mxu2 %v6762_v8 }
 0xae3   : > { %v6812_v21 = vpop.f32.mrf.mxu2 }
 0xae4   : > { %v6908_v11 = vsel %vm1990_vm4, %v6812_v21, -1e+30  ;;  %vm6701_vm4 = vcmp.gt.f32.partialorder %v13255_v39, 0.0 }
 0xae5   : > { %v6940_v46 = vsel %vm2118_vm5, %v6908_v11, -inf  ;;  %v6765_v57 = vsel %vm6701_vm4, %v13255_v39, %v6733_v51  ;;  %vm6710_vm4 = vcmp.gt.f32.partialorder %v13310_v44, 0.0 }
 0xae8   : > { %6862 = vmatmul.f32.gmra.mxu2 %v6763_v31 }
 0xaeb   : > { %v6815_v56 = vpop.f32.mrf.mxu2 }
 0xaec   : > { %v6909_v13 = vsel %vm1991_vm6, %v6815_v56, -1e+30  ;;  %vm6702_vm6 = vcmp.gt.f32.partialorder %v13257_v52, 0.0 }
 0xaed   : > { %v6941_v24 = vsel %vm2118_vm5, %v6909_v13, -inf  ;;  %v6766_v31 = vsel %vm6702_vm6, %v13257_v52, %v6734_v12 }
 0xaee   : > { %v6942_v22 = vmax.f32 %v6940_v46, %v6941_v24 }
 0xaf0   : > { %v6943_v7 = vrot.slane %v6942_v22, 4  ;;  %6865 = vmatmul.f32.gmra.mxu2 %v6764_v42 }
 0xaf2   : > { %v6944_v9 = vmax.f32 %v6942_v22, %v6943_v7 }
 0xaf3   : > { %v6818_v33 = vpop.f32.mrf.mxu2 }
 0xaf4   : > { %v6945_v19 = vrot.slane %v6944_v9, 2  ;;  %v6910_v43 = vsel %vm1992_vm9, %v6818_v33, -1e+30  ;;  %vm6703_vm9 = vcmp.gt.f32.partialorder %v13259_v17, 0.0 }
 0xaf5   : > { %v6949_v30 = vsel %vm2118_vm5, %v6910_v43, -inf }
 0xaf6   : > { %v6946_v37 = vmax.f32 %v6944_v9, %v6945_v19 }
 0xaf8   : > { %v6947_v29 = vrot.slane %v6946_v37, 1  ;;  %6868 = vmatmul.f32.gmra.mxu2 %v6765_v57  ;;  %v14580_v57 = vld [vmem:[#allocation56_spill] sm:$0xff] }
 0xafa   : > { %v6948_v25 = vmax.f32 %v6946_v37, %v6947_v29 }
 0xafb   : > { %v6821_v5 = vpop.f32.mrf.mxu2 }
 0xafc   : > { %v7084_v35 = vsub.f32 %v6908_v11, %v6948_v25  ;;  %v7085_v4 = vsub.f32 %v6909_v13, %v6948_v25  ;;  %v6911_v3 = vsel %vm1993_vm10, %v6821_v5, -1e+30  ;;  %v6735_v13 = vmul.f32 0.2, %v13259_v17 }
 0xafd   : > { %v6950_v39 = vsel %vm2118_vm5, %v6911_v3, -inf  ;;  %v6736_v5 = vmul.f32 0.2, %v13268_v26  ;;  %vm6704_vm10 = vcmp.gt.f32.partialorder %v13268_v26, 0.0 }
 0xafe   : > { %v7116_v8 = vmul.f32 1.442695, %v7084_v35  ;;  %v7118_v21 = vmul.f32 1.442695, %v7085_v4  ;;  %v6951_v18 = vmax.f32 %v6949_v30, %v6950_v39  ;;  %v6767_v9 = vsel %vm6703_vm9, %v13259_v17, %v6735_v13 }
 0xb00   : > { %9473 = vpow2.f32 %v7116_v8  ;;  %v6952_v56 = vrot.slane %v6951_v18, 4  ;;  %6871 = vmatmul.f32.gmra.mxu2 %v6766_v31 }
 0xb01   : > { %9475 = vpow2.f32 %v7118_v21 }
 0xb02   : > { %v6953_v11 = vmax.f32 %v6951_v18, %v6952_v56  ;;  %v6768_v56 = vsel %vm6704_vm10, %v13268_v26, %v6736_v5 }
 0xb03   : > { %v6824_v58 = vpop.f32.mrf.mxu2 }
 0xb04   : > { %v6954_v46 = vrot.slane %v6953_v11, 2  ;;  %v6912_v29 = vsel %vm1994_vm13, %v6824_v58, -1e+30  ;;  %vm6705_vm13 = vcmp.gt.f32.partialorder %v13270_v41, 0.0 }
 0xb05   : > { %v6958_v30 = vsel %vm2118_vm5, %v6912_v29, -inf }
 0xb06   : > { %v9474_v24 = vpop.eup %9473  ;;  %v6955_v22 = vmax.f32 %v6953_v11, %v6954_v46  ;;  %v6737_v46 = vmul.f32 0.2, %v13270_v41 }
 0xb07   : > { %v9476_v42 = vpop.eup %9475  ;;  %v13374_v7 = vmul.f32 %v9474_v24, %v14576_v16 }
 0xb08   : > { %v13378_v52 = vmul.f32 %v9476_v42, %v14577_v49  ;;  %v6956_v33 = vrot.slane %v6955_v22, 1  ;;  %6874 = vmatmul.f32.gmra.mxu2 %v6767_v9  ;;  %v14581_v49 = vld [vmem:[#allocation58_spill] sm:$0xff]  ;;  %v6769_v26 = vsel %vm6705_vm13, %v13270_v41, %v6737_v46  ;;  %vm6712_vm13 = vcmp.gt.f32.partialorder %v13312_v27, 0.0 }
 0xb09   : > { %v7212_v51 = vsel %vm2118_vm5, %v13374_v7, 0.0 }
 0xb0a   : > { %v7213_v19 = vsel %vm2118_vm5, %v13378_v52, 0.0  ;;  %v6957_v37 = vmax.f32 %v6955_v22, %v6956_v33 }
 0xb0b   : > { %v7214_v25 = vadd.f32 %v7213_v19, %v7212_v51  ;;  %v6827_v16 = vpop.f32.mrf.mxu2 }
 0xb0c   : > { %v7086_v17 = vsub.f32 %v6910_v43, %v6957_v37  ;;  %v7087_v12 = vsub.f32 %v6911_v3, %v6957_v37  ;;  %v6913_v35 = vsel %vm1995_vm14, %v6827_v16, -1e+30 }
 0xb0d   : > { %v7215_v4 = vrot.slane %v7214_v25, 4  ;;  %v6959_v39 = vsel %vm2118_vm5, %v6913_v35, -inf }
 0xb0e   : > { %v7120_v8 = vmul.f32 1.442695, %v7086_v17  ;;  %v7122_v21 = vmul.f32 1.442695, %v7087_v12  ;;  %v6960_v18 = vmax.f32 %v6958_v30, %v6959_v39 }
 0xb0f   : > { %v7216_v31 = vadd.f32 %v7215_v4, %v7214_v25  ;;  %v14582_v4 = vld [vmem:[#allocation61_spill] sm:$0xff] }
 0xb10   : > { %9477 = vpow2.f32 %v7120_v8  ;;  %v6961_v11 = vrot.slane %v6960_v18, 4  ;;  %6877 = vmatmul.f32.gmra.mxu2 %v6768_v56  ;;  %vm14583_vm14 = vcmp.gt.f32.partialorder %v14582_v4, 0.0 }
 0xb11   : > { %v7217_v43 = vrot.slane %v7216_v31, 2  ;;  %9479 = vpow2.f32 %v7122_v21  ;;  %v14584_v21 = vld [vmem:[#allocation62_spill] sm:$0xff] }
 0xb12   : > { %v6962_v3 = vmax.f32 %v6960_v18, %v6961_v11  ;;  %vm14585_vm15 = vcmp.gt.f32.partialorder %v14584_v21, 0.0 }
 0xb13   : > { %v7218_v58 = vadd.f32 %v7217_v43, %v7216_v31  ;;  %v6830_v13 = vpop.f32.mrf.mxu2 }
 0xb14   : > { %v6963_v24 = vrot.slane %v6962_v3, 2  ;;  %v6914_v30 = vsel %vm14583_vm14, %v6830_v13, -1e+30 }
 0xb15   : > { %v7219_v22 = vrot.slane %v7218_v58, 1  ;;  %v6967_v31 = vsel %vm2118_vm5, %v6914_v30, -inf }
 0xb16   : > { %v9478_v42 = vpop.eup %9477  ;;  %v6964_v9 = vmax.f32 %v6962_v3, %v6963_v24 }
 0xb17   : > { %v9480_v33 = vpop.eup %9479  ;;  %v7220_v51 = vadd.f32 %v7219_v22, %v7218_v58  ;;  %v13397_v19 = vmul.f32 %v9478_v42, %v14578_v59  ;;  %v6738_v59 = vmul.f32 0.2, %v13287_v15 }
 0xb18   : > { %v13400_v37 = vmul.f32 %v9480_v33, %v14579_v0  ;;  %v6965_v25 = vrot.slane %v6964_v9, 1  ;;  %6880 = vmatmul.f32.gmra.mxu2 %v6769_v26  ;;  %v6739_v33 = vmul.f32 0.2, %v13289_v32 }
 0xb19   : > { %v7356_v16 = vmax.f32 %v7220_v51, 1e-20  ;;  %v7221_v5 = vsel %vm2118_vm5, %v13397_v19, 0.0  ;;  %v6770_v13 = vsel %vm6706_vm12, %v13287_v15, %v6738_v59 }
 0xb1a   : > { %v7222_v17 = vsel %vm2118_vm5, %v13400_v37, 0.0  ;;  %v6966_v12 = vmax.f32 %v6964_v9, %v6965_v25 }
 0xb1b   : > { %9481 = vrcp.f32 %v7356_v16  ;;  %v6833_v41 = vpop.f32.mrf.mxu2  ;;  %v7223_v39 = vadd.f32 %v7222_v17, %v7221_v5  ;;  %v6771_v17 = vsel %vm6707_vm3, %v13289_v32, %v6739_v33 }
 0xb1c   : > { %v7088_v0 = vsub.f32 %v6912_v29, %v6966_v12  ;;  %v7089_v8 = vsub.f32 %v6913_v35, %v6966_v12  ;;  %v6915_v18 = vsel %vm14585_vm15, %v6833_v41, -1e+30 }
 0xb1d   : > { %v6968_v56 = vsel %vm2118_vm5, %v6915_v18, -inf  ;;  %v7224_v11 = vrot.slane %v7223_v39, 4 }
 0xb1e   : > { %v7124_v43 = vmul.f32 1.442695, %v7088_v0  ;;  %v7126_v3 = vmul.f32 1.442695, %v7089_v8  ;;  %v6969_v58 = vmax.f32 %v6967_v31, %v6968_v56  ;;  %v14586_v56 = vld [vmem:[#allocation64_spill] sm:$0xff] }
 0xb1f   : > { %v7225_v46 = vadd.f32 %v7224_v11, %v7223_v39  ;;  %vm14587_vm7 = vcmp.gt.f32.partialorder %v14586_v56, 0.0 }
 0xb20   : > { %9483 = vpow2.f32 %v7124_v43  ;;  %v6970_v24 = vrot.slane %v6969_v58, 4  ;;  %6883 = vmatmul.f32.gmra.mxu2 %v6770_v13  ;;  %v6611_v43 = vadd.f32 %v13281_v48, %v13180_v20 }
 0xb21   : > { %v9482_v29 = vpop.eup %9481  ;;  %9485 = vpow2.f32 %v7126_v3  ;;  %v7226_v35 = vrot.slane %v7225_v46, 2 }
 0xb22   : > { %v7388_v22 = vmul.f32 %v9482_v29, %v13374_v7  ;;  %v6971_v42 = vmax.f32 %v6969_v58, %v6970_v24 }
 0xb23   : > { %v6836_v9 = vpop.f32.mrf.mxu2  ;;  %v7227_v51 = vadd.f32 %v7226_v35, %v7225_v46  ;;  %v14588_v46 = vld [vmem:[#allocation65_spill] sm:$0xff]  ;;  %v14590_v35 = vld [vmem:[#allocation67_spill] sm:$0xff] }
 0xb24   : > { %v6972_v26 = vrot.slane %v6971_v42, 2  ;;  %8849 = vmatmul.msk.f32.vlgmr.msrb.gmra.mxu1 %vm2118_vm5, %v7388_v22  ;;  %v13432_v32 = vsel %vm14587_vm7, %v6836_v9, -1e+30  ;;  %vm14589_vm11 = vcmp.gt.f32.partialorder %v14588_v46, 0.0 }
 0xb25   : > { %v7228_v15 = vrot.slane %v7227_v51, 1 }
 0xb26   : > { %v9484_v25 = vpop.eup %9483  ;;  %v6973_v16 = vmax.f32 %v6971_v42, %v6972_v26 }
 0xb27   : > { %v9486_v5 = vpop.eup %9485  ;;  %v7229_v12 = vadd.f32 %v7228_v15, %v7227_v51  ;;  %v13421_v41 = vmul.f32 %v9484_v25, %v14580_v57  ;;  %v7389_v57 = vmul.f32 %v9482_v29, %v13378_v52  ;;  %v6645_v52 = vmul.f32 %v13166_v63, %v14590_v35 }
 0xb28   : > { %v13424_v7 = vmul.f32 %v9486_v5, %v14581_v49  ;;  %v6974_v59 = vrot.slane %v6973_v16, 1  ;;  %6886 = vmatmul.f32.gmra.mxu2 %v6771_v17  ;;  %v6740_v49 = vmul.f32 0.2, %v13299_v40  ;;  %v6976_v29 = vsel %vm2118_vm5, %v13432_v32, -inf }
 0xb29   : > { %v7357_v39 = vmax.f32 %v7229_v12, 1e-20  ;;  %v7230_v0 = vsel %vm2118_vm5, %v13421_v41, 0.0  ;;  %v6677_v33 = vadd.f32 %v6645_v52, %v6611_v43  ;;  %v14591_v52 = vld [vmem:[#allocation69_spill] sm:$0xff] }
 0xb2a   : > { %v7231_v8 = vsel %vm2118_vm5, %v13424_v7, 0.0  ;;  %v6975_v31 = vmax.f32 %v6973_v16, %v6974_v59  ;;  %vm14592_vm2 = vcmp.gt.f32.partialorder %v14591_v52, 0.0 }
 0xb2b   : > { %v6839_v11 = vpop.f32.mrf.mxu2  ;;  %9487 = vrcp.f32 %v7357_v39  ;;  %v7232_v3 = vadd.f32 %v7231_v8, %v7230_v0  ;;  %v6741_v12 = vmul.f32 0.2, %v6677_v33  ;;  %vm6709_vm0 = vcmp.gt.f32.partialorder %v6677_v33, 0.0 }
 0xb2c   : > { %v7090_v58 = vsub.f32 %v6914_v30, %v6975_v31  ;;  %v7091_v13 = vsub.f32 %v6915_v18, %v6975_v31  ;;  %v6917_v24 = vsel %vm14589_vm11, %v6839_v11, -1e+30  ;;  %8850 = vmatmul.msk.f32.gmra.mxu1 %vm2118_vm5, %v7389_v57  ;;  %v6772_v18 = vsel %vm6708_vm8, %v13299_v40, %v6740_v49 }
 0xb2d   : > { %v6977_v22 = vsel %vm2118_vm5, %v6917_v24, -inf  ;;  %v7233_v42 = vrot.slane %v7232_v3, 4  ;;  %v6773_v57 = vsel %vm6709_vm0, %v6677_v33, %v6741_v12 }
 0xb2e   : > { %v7128_v48 = vmul.f32 1.442695, %v7090_v58  ;;  %v7130_v9 = vmul.f32 1.442695, %v7091_v13  ;;  %v6978_v30 = vmax.f32 %v6976_v29, %v6977_v22 }
 0xb2f   : > { %v7234_v51 = vadd.f32 %v7233_v42, %v7232_v3  ;;  %v6613_v42 = vadd.f32 %v13295_v60, %v13180_v20 }
 0xb30   : > { %9489 = vpow2.f32 %v7128_v48  ;;  %v6979_v26 = vrot.slane %v6978_v30, 4  ;;  %6889 = vmatmul.f32.gmra.mxu2 %v6772_v18  ;;  %v14593_v18 = vld [vmem:[#allocation71_spill] sm:$0xff] }
 0xb31   : > { %v9488_v15 = vpop.eup %9487  ;;  %9491 = vpow2.f32 %v7130_v9  ;;  %v7235_v25 = vrot.slane %v7234_v51, 2  ;;  %vm14594_vm1 = vcmp.gt.f32.partialorder %v14593_v18, 0.0 }
 0xb32   : > { %v6980_v16 = vmax.f32 %v6978_v30, %v6979_v26  ;;  %v7390_v5 = vmul.f32 %v9488_v15, %v13397_v19 }
 0xb33   : > { %v6842_v17 = vpop.f32.mrf.mxu2  ;;  %v7236_v59 = vadd.f32 %v7235_v25, %v7234_v51  ;;  %v14595_v51 = vld [vmem:[#allocation70_spill] sm:$0xff] }
 0xb34   : > { %v6981_v39 = vrot.slane %v6980_v16, 2  ;;  %8851 = vmatmul.msk.f32.gmra.mxu1 %vm2118_vm5, %v7390_v5  ;;  %v13462_v29 = vsel %vm14592_vm2, %v6842_v17, -1e+30 }
 0xb35   : > { %v7237_v0 = vrot.slane %v7236_v59, 1  ;;  %v6985_v26 = vsel %vm2118_vm5, %v13462_v29, -inf }
 0xb36   : > { %v9490_v40 = vpop.eup %9489  ;;  %v6982_v8 = vmax.f32 %v6980_v16, %v6981_v39 }
 0xb37   : > { %v9492_v31 = vpop.eup %9491  ;;  %v7238_v11 = vadd.f32 %v7237_v0, %v7236_v59  ;;  %v13451_v49 = vmul.f32 %v9490_v40, %v14582_v4  ;;  %v7391_v4 = vmul.f32 %v9488_v15, %v13400_v37  ;;  %v6647_v37 = vmul.f32 %v13166_v63, %v14595_v51 }
 0xb38   : > { %v13454_v43 = vmul.f32 %v9492_v31, %v14584_v21  ;;  %v6983_v19 = vrot.slane %v6982_v8, 1  ;;  %6892 = vmatmul.f32.gmra.mxu2 %v6773_v57  ;;  %v6742_v21 = vmul.f32 0.2, %v13310_v44 }
 0xb39   : > { %v7358_v3 = vmax.f32 %v7238_v11, 1e-20  ;;  %v7239_v58 = vsel %vm2118_vm5, %v13451_v49, 0.0  ;;  %v6679_v5 = vadd.f32 %v6647_v37, %v6613_v42 }
 0xb3a   : > { %v7240_v13 = vsel %vm2118_vm5, %v13454_v43, 0.0  ;;  %v6984_v35 = vmax.f32 %v6982_v8, %v6983_v19 }
 0xb3b   : > { %v6845_v22 = vpop.f32.mrf.mxu2  ;;  %9493 = vrcp.f32 %v7358_v3  ;;  %v7241_v48 = vadd.f32 %v7240_v13, %v7239_v58  ;;  %v6743_v31 = vmul.f32 0.2, %v6679_v5  ;;  %vm6711_vm6 = vcmp.gt.f32.partialorder %v6679_v5, 0.0 }
 0xb3c   : > { %v7092_v9 = vsub.f32 %v13432_v32, %v6984_v35  ;;  %v7093_v30 = vsub.f32 %v6917_v24, %v6984_v35  ;;  %v6919_v33 = vsel %vm14594_vm1, %v6845_v22, -1e+30  ;;  %8852 = vmatmul.msk.f32.gmra.mxu1 %vm2118_vm5, %v7391_v4  ;;  %v6774_v24 = vsel %vm6710_vm4, %v13310_v44, %v6742_v21 }
 0xb3d   : > { %v6986_v15 = vsel %vm2118_vm5, %v6919_v33, -inf  ;;  %v7242_v60 = vrot.slane %v7241_v48, 4  ;;  %v6775_v13 = vsel %vm6711_vm6, %v6679_v5, %v6743_v31 }
 0xb3e   : > { %v7132_v25 = vmul.f32 1.442695, %v7092_v9  ;;  %v7134_v16 = vmul.f32 1.442695, %v7093_v30  ;;  %v6987_v32 = vmax.f32 %v6985_v26, %v6986_v15  ;;  %v14596_v30 = vld [vmem:[#allocation74_spill] sm:$0xff] }
 0xb3f   : > { %v7243_v17 = vadd.f32 %v7242_v60, %v7241_v48  ;;  %vm14597_vm9 = vcmp.gt.f32.partialorder %v14596_v30, 0.0  ;;  %v6744_v26 = vmul.f32 0.2, %v13312_v27 }
 0xb40   : > { %9495 = vpow2.f32 %v7132_v25  ;;  %v6988_v12 = vrot.slane %v6987_v32, 4  ;;  %6895 = vmatmul.f32.gmra.mxu2 %v6774_v24  ;;  %v14600_v24 = vld [vmem:[#allocation73_spill] sm:$0xff] }
 0xb41   : > { %v9494_v59 = vpop.eup %9493  ;;  %9497 = vpow2.f32 %v7134_v16  ;;  %v7244_v39 = vrot.slane %v7243_v17, 2  ;;  %v14598_v16 = vld [vmem:[#allocation75_spill] sm:$0xff] }
 0xb42   : > { %v6989_v0 = vmax.f32 %v6987_v32, %v6988_v12  ;;  %v7392_v40 = vmul.f32 %v9494_v59, %v13421_v41  ;;  %v7393_v37 = vmul.f32 %v9494_v59, %v13424_v7  ;;  %vm14599_vm10 = vcmp.gt.f32.partialorder %v14598_v16, 0.0 }
 0xb43   : > { %v6848_v8 = vpop.f32.mrf.mxu2  ;;  %v7245_v57 = vadd.f32 %v7244_v39, %v7243_v17  ;;  %v6649_v7 = vmul.f32 %v13166_v63, %v14600_v24 }
 0xb44   : > { %v6990_v11 = vrot.slane %v6989_v0, 2  ;;  %8853 = vmatmul.msk.f32.gmra.mxu1 %vm2118_vm5, %v7392_v40  ;;  %v6920_v51 = vsel %vm14597_vm9, %v6848_v8, -1e+30 }
 0xb45   : > { %v7246_v19 = vrot.slane %v7245_v57, 1  ;;  %v6994_v5 = vsel %vm2118_vm5, %v6920_v51, -inf }
 0xb46   : > { %v9496_v44 = vpop.eup %9495  ;;  %v6991_v3 = vmax.f32 %v6989_v0, %v6990_v11 }
 0xb47   : > { %v9498_v58 = vpop.eup %9497  ;;  %v7247_v35 = vadd.f32 %v7246_v19, %v7245_v57  ;;  %v13482_v4 = vmul.f32 %v9496_v44, %v14586_v56 }
 0xb48   : > { %v13485_v22 = vmul.f32 %v9498_v58, %v14588_v46  ;;  %v6992_v41 = vrot.slane %v6991_v3, 1  ;;  %6898 = vmatmul.f32.gmra.mxu2 %v6775_v13  ;;  %v6615_v46 = vadd.f32 %v13297_v38, %v13180_v20 }
 0xb49   : > { %v7359_v21 = vmax.f32 %v7247_v35, 1e-20  ;;  %v7248_v42 = vsel %vm2118_vm5, %v13482_v4, 0.0 }
 0xb4a   : > { %v7249_v48 = vsel %vm2118_vm5, %v13485_v22, 0.0  ;;  %v6993_v9 = vmax.f32 %v6991_v3, %v6992_v41 }
 0xb4b   : > { %v6851_v56 = vpop.f32.mrf.mxu2  ;;  %9499 = vrcp.f32 %v7359_v21  ;;  %v7250_v15 = vadd.f32 %v7249_v48, %v7248_v42 }
 0xb4c   : > { %v7094_v60 = vsub.f32 %v13462_v29, %v6993_v9  ;;  %v7095_v25 = vsub.f32 %v6919_v33, %v6993_v9  ;;  %v6921_v32 = vsel %vm14599_vm10, %v6851_v56, -1e+30  ;;  %8854 = vmatmul.msk.f32.gmra.mxu1 %vm2118_vm5, %v7393_v37  ;;  %v6776_v29 = vsel %vm6712_vm13, %v13312_v27, %v6744_v26 }
 0xb4d   : > { %v6995_v17 = vsel %vm2118_vm5, %v6921_v32, -inf  ;;  %v7251_v12 = vrot.slane %v7250_v15, 4  ;;  %v6681_v33 = vadd.f32 %v6649_v7, %v6615_v46  ;;  %v14601_v46 = vld [vmem:[#allocation76_spill] sm:$0xff]  ;;  %v14603_v7 = vld [vmem:[#allocation77_spill] sm:$0xff] }
 0xb4e   : > { %v7136_v38 = vmul.f32 1.442695, %v7094_v60  ;;  %v7138_v59 = vmul.f32 1.442695, %v7095_v25  ;;  %v6996_v39 = vmax.f32 %v6994_v5, %v6995_v17  ;;  %vm14602_vm15 = vcmp.gt.f32.partialorder %v14601_v46, 0.0 }
 0xb4f   : > { %v7252_v0 = vadd.f32 %v7251_v12, %v7250_v15  ;;  %v6745_v19 = vmul.f32 0.2, %v6681_v33  ;;  %vm6713_vm14 = vcmp.gt.f32.partialorder %v6681_v33, 0.0  ;;  %vm14604_vm12 = vcmp.gt.f32.partialorder %v14603_v7, 0.0 }
 0xb50   : > { %9501 = vpow2.f32 %v7136_v38  ;;  %v6997_v40 = vrot.slane %v6996_v39, 4  ;;  %6901 = vmatmul.f32.gmra.mxu2 %v6776_v29 }
 0xb51   : > { %v9500_v8 = vpop.eup %9499  ;;  %9503 = vpow2.f32 %v7138_v59  ;;  %v7253_v31 = vrot.slane %v7252_v0, 2  ;;  %v6777_v41 = vsel %vm6713_vm14, %v6681_v33, %v6745_v19 }
 0xb52   : > { %v6998_v57 = vmax.f32 %v6996_v39, %v6997_v40  ;;  %v7394_v63 = vmul.f32 %v9500_v8, %v13451_v49  ;;  %v7395_v60 = vmul.f32 %v9500_v8, %v13454_v43 }
 0xb53   : > { %v6854_v11 = vpop.f32.mrf.mxu2  ;;  %v7254_v44 = vadd.f32 %v7253_v31, %v7252_v0 }
 0xb54   : > { %v6999_v3 = vrot.slane %v6998_v57, 2  ;;  %8855 = vmatmul.msk.f32.gmra.mxu1 %vm2118_vm5, %v7394_v63  ;;  %v6922_v15 = vsel %vm14602_vm15, %v6854_v11, -1e+30 }
 0xb55   : > { %v7255_v58 = vrot.slane %v7254_v44, 1  ;;  %v7003_v17 = vsel %vm2118_vm5, %v6922_v15, -inf }
 0xb56   : > { %v9502_v27 = vpop.eup %9501  ;;  %v7000_v13 = vmax.f32 %v6998_v57, %v6999_v3 }
 0xb57   : > { %v9504_v35 = vpop.eup %9503  ;;  %v7256_v21 = vadd.f32 %v7255_v58, %v7254_v44  ;;  %v13510_v42 = vmul.f32 %v9502_v27, %v14591_v52 }
 0xb58   : > { %v13513_v48 = vmul.f32 %v9504_v35, %v14593_v18  ;;  %v7001_v49 = vrot.slane %v7000_v13, 1  ;;  %6904 = vmatmul.f32.gmra.mxu2 %v6777_v41 }
 0xb59   : > { %v7360_v9 = vmax.f32 %v7256_v21, 1e-20  ;;  %v7257_v37 = vsel %vm2118_vm5, %v13510_v42, 0.0 }
 0xb5a   : > { %v7258_v56 = vsel %vm2118_vm5, %v13513_v48, 0.0  ;;  %v7002_v26 = vmax.f32 %v7000_v13, %v7001_v49  ;;  %v14605_v49 = vld [vmem:[#allocation78_spill] sm:$0xff] }
 0xb5b   : > { %v6857_v52 = vpop.f32.mrf.mxu2  ;;  %9505 = vrcp.f32 %v7360_v9  ;;  %v7259_v25 = vadd.f32 %v7258_v56, %v7257_v37  ;;  %vm14606_vm3 = vcmp.gt.f32.partialorder %v14605_v49, 0.0 }
 0xb5c   : > { %v7096_v18 = vsub.f32 %v6920_v51, %v7002_v26  ;;  %v7097_v24 = vsub.f32 %v6921_v32, %v7002_v26  ;;  %v6923_v5 = vsel %vm14604_vm12, %v6857_v52, -1e+30  ;;  %8856 = vmatmul.msk.f32.gmra.mxu1 %vm2118_vm5, %v7395_v60  ;;  %v14607_v60 = vld [vmem:[#allocation79_spill] sm:$0xff] }
 0xb5d   : > { %v7004_v12 = vsel %vm2118_vm5, %v6923_v5, -inf  ;;  %v7260_v38 = vrot.slane %v7259_v25, 4  ;;  %vm14608_vm7 = vcmp.gt.f32.partialorder %v14607_v60, 0.0 }
 0xb5e   : > { %v7140_v59 = vmul.f32 1.442695, %v7096_v18  ;;  %v7142_v39 = vmul.f32 1.442695, %v7097_v24  ;;  %v7005_v29 = vmax.f32 %v7003_v17, %v7004_v12 }
 0xb5f   : > { %v7261_v33 = vadd.f32 %v7260_v38, %v7259_v25 }
 0xb60   : > { %9507 = vpow2.f32 %v7140_v59  ;;  %v7006_v43 = vrot.slane %v7005_v29, 4 }
 0xb61   : > { %v9506_v0 = vpop.eup %9505  ;;  %9509 = vpow2.f32 %v7142_v39  ;;  %v7262_v51 = vrot.slane %v7261_v33, 2 }
 0xb62   : > { %v7007_v32 = vmax.f32 %v7005_v29, %v7006_v43  ;;  %v7396_v40 = vmul.f32 %v9506_v0, %v13482_v4  ;;  %v7397_v37 = vmul.f32 %v9506_v0, %v13485_v22 }
 0xb63   : > { %v6860_v8 = vpop.f32.mrf.mxu2  ;;  %v7263_v31 = vadd.f32 %v7262_v51, %v7261_v33 }
 0xb64   : > { %v7008_v57 = vrot.slane %v7007_v32, 2  ;;  %8857 = vmatmul.msk.f32.gmra.mxu1 %vm2118_vm5, %v7396_v40  ;;  %v6924_v9 = vsel %vm14606_vm3, %v6860_v8, -1e+30 }
 0xb65   : > { %v7264_v63 = vrot.slane %v7263_v31, 1  ;;  %v7012_v25 = vsel %vm2118_vm5, %v6924_v9, -inf }
 0xb66   : > { %v9508_v11 = vpop.eup %9507  ;;  %v7009_v19 = vmax.f32 %v7007_v32, %v7008_v57 }
 0xb67   : > { %v9510_v44 = vpop.eup %9509  ;;  %v7265_v3 = vadd.f32 %v7264_v63, %v7263_v31  ;;  %v13530_v58 = vmul.f32 %v9508_v11, %v14596_v30 }
 0xb68   : > { %v13533_v27 = vmul.f32 %v9510_v44, %v14598_v16  ;;  %v7010_v13 = vrot.slane %v7009_v19, 1 }
 0xb69   : > { %v7361_v35 = vmax.f32 %v7265_v3, 1e-20  ;;  %v7266_v4 = vsel %vm2118_vm5, %v13530_v58, 0.0 }
 0xb6a   : > { %v7267_v41 = vsel %vm2118_vm5, %v13533_v27, 0.0  ;;  %v7011_v21 = vmax.f32 %v7009_v19, %v7010_v13  ;;  %v14609_v13 = vld [vmem:[#allocation80_spill] sm:$0xff] }
 0xb6b   : > { %v6863_v56 = vpop.f32.mrf.mxu2  ;;  %9511 = vrcp.f32 %v7361_v35  ;;  %v7268_v30 = vadd.f32 %v7267_v41, %v7266_v4  ;;  %vm14610_vm11 = vcmp.gt.f32.partialorder %v14609_v13, 0.0 }
 0xb6c   : > { %v7098_v26 = vsub.f32 %v6922_v15, %v7011_v21  ;;  %v7099_v16 = vsub.f32 %v6923_v5, %v7011_v21  ;;  %v6925_v52 = vsel %vm14608_vm7, %v6863_v56, -1e+30  ;;  %8858 = vmatmul.msk.f32.gmra.mxu1 %vm2118_vm5, %v7397_v37  ;;  %v14611_v37 = vld [vmem:[#allocation81_spill] sm:$0xff] }
 0xb6d   : > { %v7013_v18 = vsel %vm2118_vm5, %v6925_v52, -inf  ;;  %v7269_v24 = vrot.slane %v7268_v30, 4  ;;  %vm14612_vm8 = vcmp.gt.f32.partialorder %v14611_v37, 0.0 }
 0xb6e   : > { %v7144_v17 = vmul.f32 1.442695, %v7098_v26  ;;  %v7146_v12 = vmul.f32 1.442695, %v7099_v16  ;;  %v7014_v38 = vmax.f32 %v7012_v25, %v7013_v18 }
 0xb6f   : > { %v7270_v59 = vadd.f32 %v7269_v24, %v7268_v30 }
 0xb70   : > { %9513 = vpow2.f32 %v7144_v17  ;;  %v7015_v22 = vrot.slane %v7014_v38, 4 }
 0xb71   : > { %v9512_v39 = vpop.eup %9511  ;;  %9515 = vpow2.f32 %v7146_v12  ;;  %v7271_v15 = vrot.slane %v7270_v59, 2 }
 0xb72   : > { %v7016_v5 = vmax.f32 %v7014_v38, %v7015_v22  ;;  %v7398_v29 = vmul.f32 %v9512_v39, %v13510_v42  ;;  %v7399_v4 = vmul.f32 %v9512_v39, %v13513_v48 }
 0xb73   : > { %v6866_v33 = vpop.f32.mrf.mxu2  ;;  %v7272_v43 = vadd.f32 %v7271_v15, %v7270_v59 }
 0xb74   : > { %v7017_v0 = vrot.slane %v7016_v5, 2  ;;  %8859 = vmatmul.msk.f32.gmra.mxu1 %vm2118_vm5, %v7398_v29  ;;  %v6926_v35 = vsel %vm14610_vm11, %v6866_v33, -1e+30 }
 0xb75   : > { %v7273_v51 = vrot.slane %v7272_v43, 1  ;;  %v7021_v30 = vsel %vm2118_vm5, %v6926_v35, -inf }
 0xb76   : > { %v9514_v32 = vpop.eup %9513  ;;  %v7018_v40 = vmax.f32 %v7016_v5, %v7017_v0 }
 0xb77   : > { %v9516_v8 = vpop.eup %9515  ;;  %v7274_v31 = vadd.f32 %v7273_v51, %v7272_v43  ;;  %v13550_v57 = vmul.f32 %v9514_v32, %v14601_v46 }
 0xb78   : > { %v13553_v63 = vmul.f32 %v9516_v8, %v14603_v7  ;;  %v7019_v11 = vrot.slane %v7018_v40, 1 }
 0xb79   : > { %v7362_v19 = vmax.f32 %v7274_v31, 1e-20  ;;  %v7275_v42 = vsel %vm2118_vm5, %v13550_v57, 0.0 }
 0xb7a   : > { %v7276_v44 = vsel %vm2118_vm5, %v13553_v63, 0.0  ;;  %v7020_v3 = vmax.f32 %v7018_v40, %v7019_v11  ;;  %v14613_v11 = vld [vmem:[#allocation82_spill] sm:$0xff] }
 0xb7b   : > { %v6869_v41 = vpop.f32.mrf.mxu2  ;;  %9517 = vrcp.f32 %v7362_v19  ;;  %v7277_v46 = vadd.f32 %v7276_v44, %v7275_v42  ;;  %vm14614_vm0 = vcmp.gt.f32.partialorder %v14613_v11, 0.0 }
 0xb7c   : > { %v7100_v21 = vsub.f32 %v6924_v9, %v7020_v3  ;;  %v7101_v7 = vsub.f32 %v6925_v52, %v7020_v3  ;;  %v6927_v56 = vsel %vm14612_vm8, %v6869_v41, -1e+30  ;;  %8860 = vmatmul.msk.f32.gmra.mxu1 %vm2118_vm5, %v7399_v4  ;;  %v14615_v4 = vld [vmem:[#allocation83_spill] sm:$0xff] }
 0xb7d   : > { %v7022_v26 = vsel %vm2118_vm5, %v6927_v56, -inf  ;;  %v7278_v16 = vrot.slane %v7277_v46, 4  ;;  %vm14616_vm2 = vcmp.gt.f32.partialorder %v14615_v4, 0.0 }
 0xb7e   : > { %v7148_v25 = vmul.f32 1.442695, %v7100_v21  ;;  %v7150_v18 = vmul.f32 1.442695, %v7101_v7  ;;  %v7023_v24 = vmax.f32 %v7021_v30, %v7022_v26 }
 0xb7f   : > { %v7279_v17 = vadd.f32 %v7278_v16, %v7277_v46 }
 0xb80   : > { %9519 = vpow2.f32 %v7148_v25  ;;  %v7024_v48 = vrot.slane %v7023_v24, 4 }
 0xb81   : > { %v9518_v12 = vpop.eup %9517  ;;  %9521 = vpow2.f32 %v7150_v18  ;;  %v7280_v9 = vrot.slane %v7279_v17, 2 }
 0xb82   : > { %v7025_v52 = vmax.f32 %v7023_v24, %v7024_v48  ;;  %v7400_v38 = vmul.f32 %v9518_v12, %v13530_v58  ;;  %v7401_v42 = vmul.f32 %v9518_v12, %v13533_v27 }
 0xb83   : > { %v6872_v59 = vpop.f32.mrf.mxu2  ;;  %v7281_v22 = vadd.f32 %v7280_v9, %v7279_v17 }
 0xb84   : > { %v7026_v39 = vrot.slane %v7025_v52, 2  ;;  %8861 = vmatmul.msk.f32.gmra.mxu1 %vm2118_vm5, %v7400_v38  ;;  %v6928_v19 = vsel %vm14614_vm0, %v6872_v59, -1e+30  ;;  %vm14640_vm0 = vcmask 1042434  }
 0xb85   : > { %v7282_v15 = vrot.slane %v7281_v22, 1  ;;  %v7030_v46 = vsel %vm2118_vm5, %v6928_v19, -inf }
 0xb86   : > { %v9520_v5 = vpop.eup %9519  ;;  %v7027_v29 = vmax.f32 %v7025_v52, %v7026_v39 }
 0xb87   : > { %v9522_v33 = vpop.eup %9521  ;;  %v7283_v43 = vadd.f32 %v7282_v15, %v7281_v22  ;;  %v13570_v0 = vmul.f32 %v9520_v5, %v14605_v49 }
 0xb88   : > { %v13573_v51 = vmul.f32 %v9522_v33, %v14607_v60  ;;  %v7028_v32 = vrot.slane %v7027_v29, 1 }
 0xb89   : > { %v7363_v40 = vmax.f32 %v7283_v43, 1e-20  ;;  %v7284_v58 = vsel %vm2118_vm5, %v13570_v0, 0.0 }
 0xb8a   : > { %v7285_v8 = vsel %vm2118_vm5, %v13573_v51, 0.0  ;;  %v7029_v31 = vmax.f32 %v7027_v29, %v7028_v32  ;;  %v14617_v32 = vld [vmem:[#allocation84_spill] sm:$0xff] }
 0xb8b   : > { %v6875_v44 = vpop.f32.mrf.mxu2  ;;  %9523 = vrcp.f32 %v7363_v40  ;;  %v7286_v49 = vadd.f32 %v7285_v8, %v7284_v58  ;;  %vm14618_vm1 = vcmp.gt.f32.partialorder %v14617_v32, 0.0 }
 0xb8c   : > { %v7102_v3 = vsub.f32 %v6926_v35, %v7029_v31  ;;  %v7103_v60 = vsub.f32 %v6927_v56, %v7029_v31  ;;  %v6929_v41 = vsel %vm14616_vm2, %v6875_v44, -1e+30  ;;  %8862 = vmatmul.msk.f32.gmra.mxu1 %vm2118_vm5, %v7401_v42  ;;  %v14619_v42 = vld [vmem:[#allocation85_spill] sm:$0xff]  ;;  %vm14641_vm2 = vcmask 1043459  }
 0xb8d   : > { %v7031_v21 = vsel %vm2118_vm5, %v6929_v41, -inf  ;;  %v7287_v7 = vrot.slane %v7286_v49, 4  ;;  %vm14620_vm4 = vcmp.gt.f32.partialorder %v14619_v42, 0.0 }
 0xb8e   : > { %v7152_v30 = vmul.f32 1.442695, %v7102_v3  ;;  %v7154_v26 = vmul.f32 1.442695, %v7103_v60  ;;  %v7032_v16 = vmax.f32 %v7030_v46, %v7031_v21 }
 0xb8f   : > { %v7288_v25 = vadd.f32 %v7287_v7, %v7286_v49 }
 0xb90   : > { %9525 = vpow2.f32 %v7152_v30  ;;  %v7033_v27 = vrot.slane %v7032_v16, 4 }
 0xb91   : > { %v9524_v18 = vpop.eup %9523  ;;  %9527 = vpow2.f32 %v7154_v26  ;;  %v7289_v35 = vrot.slane %v7288_v25, 2 }
 0xb92   : > { %v7034_v56 = vmax.f32 %v7032_v16, %v7033_v27  ;;  %v7402_v24 = vmul.f32 %v9524_v18, %v13550_v57  ;;  %v7403_v58 = vmul.f32 %v9524_v18, %v13553_v63 }
 0xb93   : > { %v6878_v17 = vpop.f32.mrf.mxu2  ;;  %v7290_v48 = vadd.f32 %v7289_v35, %v7288_v25 }
 0xb94   : > { %v7035_v12 = vrot.slane %v7034_v56, 2  ;;  %8863 = vmatmul.msk.f32.gmra.mxu1 %vm2118_vm5, %v7402_v24  ;;  %v6930_v40 = vsel %vm14618_vm1, %v6878_v17, -1e+30  ;;  %vm14642_vm1 = vcmask 1044484  }
 0xb95   : > { %v7291_v9 = vrot.slane %v7290_v48, 1  ;;  %v7039_v49 = vsel %vm2118_vm5, %v6930_v40, -inf }
 0xb96   : > { %v9526_v52 = vpop.eup %9525  ;;  %v7036_v38 = vmax.f32 %v7034_v56, %v7035_v12 }
 0xb97   : > { %v9528_v59 = vpop.eup %9527  ;;  %v7292_v22 = vadd.f32 %v7291_v9, %v7290_v48  ;;  %v13590_v39 = vmul.f32 %v9526_v52, %v14609_v13 }
 0xb98   : > { %v13593_v15 = vmul.f32 %v9528_v59, %v14611_v37  ;;  %v7037_v5 = vrot.slane %v7036_v38, 1 }
 0xb99   : > { %v7364_v29 = vmax.f32 %v7292_v22, 1e-20  ;;  %v7293_v57 = vsel %vm2118_vm5, %v13590_v39, 0.0 }
 0xb9a   : > { %v7294_v33 = vsel %vm2118_vm5, %v13593_v15, 0.0  ;;  %v7038_v43 = vmax.f32 %v7036_v38, %v7037_v5 }
 0xb9b   : > { %v6881_v8 = vpop.f32.mrf.mxu2  ;;  %9529 = vrcp.f32 %v7364_v29  ;;  %v7295_v13 = vadd.f32 %v7294_v33, %v7293_v57 }
 0xb9c   : > { %v7104_v31 = vsub.f32 %v6928_v19, %v7038_v43  ;;  %v7105_v37 = vsub.f32 %v6929_v41, %v7038_v43  ;;  %v6931_v44 = vsel %vm14620_vm4, %v6881_v8, -1e+30  ;;  %8864 = vmatmul.msk.f32.gmra.mxu1 %vm2118_vm5, %v7403_v58  ;;  %vm14643_vm4 = vcmask 1045509  }
 0xb9d   : > { %v7040_v3 = vsel %vm2118_vm5, %v6931_v44, -inf  ;;  %v7296_v60 = vrot.slane %v7295_v13, 4 }
 0xb9e   : > { %v7156_v46 = vmul.f32 1.442695, %v7104_v31  ;;  %v7158_v21 = vmul.f32 1.442695, %v7105_v37  ;;  %v7041_v7 = vmax.f32 %v7039_v49, %v7040_v3 }
 0xb9f   : > { %v7297_v30 = vadd.f32 %v7296_v60, %v7295_v13  ;;  %v14623_v13 = vld [vmem:[#allocation87_spill] sm:$0xff] }
 0xba0   : > { %9531 = vpow2.f32 %v7156_v46  ;;  %v7042_v63 = vrot.slane %v7041_v7, 4  ;;  %vm14624_vm9 = vcmp.gt.f32.partialorder %v14623_v13, 0.0 }
 0xba1   : > { %v9530_v26 = vpop.eup %9529  ;;  %9533 = vpow2.f32 %v7158_v21  ;;  %v13607_v19 = vpop.f32.mrf.mxu1  ;;  %v7298_v41 = vrot.slane %v7297_v30, 2 }
 0xba2   : > { %v7043_v16 = vmax.f32 %v7041_v7, %v7042_v63  ;;  %v7404_v25 = vmul.f32 %v9530_v26, %v13570_v0  ;;  %v7405_v57 = vmul.f32 %v9530_v26, %v13573_v51 }
 0xba3   : > { %v6884_v27 = vpop.f32.mrf.mxu2  ;;  %v7299_v18 = vadd.f32 %v7298_v41, %v7297_v30 }
 0xba4   : > { %v7044_v35 = vrot.slane %v7043_v16, 2  ;;  %8865 = vmatmul.msk.f32.gmra.mxu1 %vm2118_vm5, %v7404_v25 }
 0xba5   : > { %v7300_v56 = vrot.slane %v7299_v18, 1 }
 0xba6   : > { %v9532_v24 = vpop.eup %9531  ;;  %v7045_v17 = vmax.f32 %v7043_v16, %v7044_v35 }
 0xba7   : > { %v9534_v48 = vpop.eup %9533  ;;  %v7301_v12 = vadd.f32 %v7300_v56, %v7299_v18  ;;  %v13612_v9 = vmul.f32 %v9532_v24, %v14613_v11 }
 0xba8   : > { %v13615_v52 = vmul.f32 %v9534_v48, %v14615_v4  ;;  %v7046_v38 = vrot.slane %v7045_v17, 1  ;;  %v14621_v4 = vld [vmem:[#allocation86_spill] sm:$0xff] }
 0xba9   : > { %v13617_v59 = vpop.f32.mrf.mxu1  ;;  %v7365_v0 = vmax.f32 %v7301_v12, 1e-20  ;;  %v7302_v22 = vsel %vm2118_vm5, %v13612_v9, 0.0  ;;  %vm14622_vm6 = vcmp.gt.f32.partialorder %v14621_v4, 0.0 }
 0xbaa   : > { %v7303_v5 = vsel %vm2118_vm5, %v13615_v52, 0.0  ;;  %v7047_v29 = vmax.f32 %v7045_v17, %v7046_v38  ;;  %v6932_v8 = vsel %vm14622_vm6, %v6884_v27, -1e+30  ;;  %vm14644_vm6 = vcmask 1046534  }
 0xbab   : > { %v6887_v33 = vpop.f32.mrf.mxu2  ;;  %9535 = vrcp.f32 %v7365_v0  ;;  %v7304_v11 = vadd.f32 %v7303_v5, %v7302_v22  ;;  %v7048_v60 = vsel %vm2118_vm5, %v6932_v8, -inf }
 0xbac   : > { %v7106_v43 = vsub.f32 %v6930_v40, %v7047_v29  ;;  %v7107_v58 = vsub.f32 %v6931_v44, %v7047_v29  ;;  %8866 = vmatmul.msk.f32.gmra.mxu1 %vm2118_vm5, %v7405_v57  ;;  %v6933_v31 = vsel %vm14624_vm9, %v6887_v33, -1e+30  ;;  %v14625_v29 = vld [vmem:[#allocation88_spill] sm:$0xff]  ;;  %vm14645_vm9 = vcmask 1047559  }
 0xbad   : > { %v7305_v37 = vrot.slane %v7304_v11, 4  ;;  %v7049_v51 = vsel %vm2118_vm5, %v6933_v31, -inf  ;;  %vm14626_vm10 = vcmp.gt.f32.partialorder %v14625_v29, 0.0 }
 0xbae   : > { %v7160_v49 = vmul.f32 1.442695, %v7106_v43  ;;  %v7162_v3 = vmul.f32 1.442695, %v7107_v58  ;;  %v7050_v21 = vmax.f32 %v7048_v60, %v7049_v51 }
 0xbaf   : > { %v7306_v46 = vadd.f32 %v7305_v37, %v7304_v11  ;;  %v14627_v11 = vld [vmem:[#allocation89_spill] sm:$0xff] }
 0xbb0   : > { %9537 = vpow2.f32 %v7160_v49  ;;  %v7051_v30 = vrot.slane %v7050_v21, 4  ;;  %vm14628_vm13 = vcmp.gt.f32.partialorder %v14627_v11, 0.0 }
 0xbb1   : > { %v9536_v40 = vpop.eup %9535  ;;  %9539 = vpow2.f32 %v7162_v3  ;;  %v13631_v44 = vpop.f32.mrf.mxu1  ;;  %v7307_v7 = vrot.slane %v7306_v46, 2 }
 0xbb2   : > { %v7406_v63 = vmul.f32 %v9536_v40, %v13590_v39  ;;  %v7052_v16 = vmax.f32 %v7050_v21, %v7051_v30  ;;  %v7407_v5 = vmul.f32 %v9536_v40, %v13593_v15 }
 0xbb3   : > { %v6890_v26 = vpop.f32.mrf.mxu2  ;;  %v7308_v41 = vadd.f32 %v7307_v7, %v7306_v46 }
 0xbb4   : > { %8867 = vmatmul.msk.f32.gmra.mxu1 %vm2118_vm5, %v7406_v63  ;;  %v7053_v18 = vrot.slane %v7052_v16, 2 }
 0xbb5   : > { %v7309_v25 = vrot.slane %v7308_v41, 1 }
 0xbb6   : > { %v9538_v27 = vpop.eup %9537  ;;  %v7054_v48 = vmax.f32 %v7052_v16, %v7053_v18 }
 0xbb7   : > { %v9540_v35 = vpop.eup %9539  ;;  %v7310_v56 = vadd.f32 %v7309_v25, %v7308_v41  ;;  %v13636_v24 = vmul.f32 %v9538_v27, %v14617_v32  ;;  %v6934_v32 = vsel %vm14626_vm10, %v6890_v26, -1e+30 }
 0xbb8   : > { %v13639_v17 = vmul.f32 %v9540_v35, %v14619_v42  ;;  %v7055_v22 = vrot.slane %v7054_v48, 1  ;;  %v7057_v60 = vsel %vm2118_vm5, %v6934_v32, -inf }
 0xbb9   : > { %v13641_v12 = vpop.f32.mrf.mxu1  ;;  %v7366_v39 = vmax.f32 %v7310_v56, 1e-20  ;;  %v7311_v38 = vsel %vm2118_vm5, %v13636_v24, 0.0 }
 0xbba   : > { %v7312_v0 = vsel %vm2118_vm5, %v13639_v17, 0.0  ;;  %v7056_v33 = vmax.f32 %v7054_v48, %v7055_v22 }
 0xbbb   : > { %v6893_v57 = vpop.f32.mrf.mxu2  ;;  %9541 = vrcp.f32 %v7366_v39  ;;  %v7313_v42 = vadd.f32 %v7312_v0, %v7311_v38  ;;  %v14629_v39 = vld [vmem:[#allocation90_spill] sm:$0xff] }
 0xbbc   : > { %v6935_v43 = vsel %vm14628_vm13, %v6893_v57, -1e+30  ;;  %8868 = vmatmul.msk.f32.gmra.mxu1 %vm2118_vm5, %v7407_v5  ;;  %v7108_v49 = vsub.f32 %v6932_v8, %v7056_v33  ;;  %v7109_v3 = vsub.f32 %v6933_v31, %v7056_v33  ;;  %vm14630_vm14 = vcmp.gt.f32.partialorder %v14629_v39, 0.0  ;;  %vm14647_vm13 = vmmov %vm14640_vm0 }
 0xbbd   : > { %v7058_v58 = vsel %vm2118_vm5, %v6935_v43, -inf  ;;  %v7314_v37 = vrot.slane %v7313_v42, 4 }
 0xbbe   : > { %v7059_v15 = vmax.f32 %v7057_v60, %v7058_v58  ;;  %v7164_v46 = vmul.f32 1.442695, %v7108_v49  ;;  %v7166_v21 = vmul.f32 1.442695, %v7109_v3  ;;  %v14631_v3 = vld [vmem:[#allocation91_spill] sm:$0xff] }
 0xbbf   : > { %v7315_v51 = vadd.f32 %v7314_v37, %v7313_v42  ;;  %vm14632_vm15 = vcmp.gt.f32.partialorder %v14631_v3, 0.0 }
 0xbc0   : > { %v7060_v7 = vrot.slane %v7059_v15, 4  ;;  %9543 = vpow2.f32 %v7164_v46 }
 0xbc1   : > { %v9542_v40 = vpop.eup %9541  ;;  %v13655_v30 = vpop.f32.mrf.mxu1  ;;  %v7316_v63 = vrot.slane %v7315_v51, 2  ;;  %9545 = vpow2.f32 %v7166_v21 }
 0xbc2   : > { %v7061_v26 = vmax.f32 %v7059_v15, %v7060_v7  ;;  %v7408_v16 = vmul.f32 %v9542_v40, %v13612_v9  ;;  %v7409_v33 = vmul.f32 %v9542_v40, %v13615_v52 }
 0xbc3   : > { %v6896_v41 = vpop.f32.mrf.mxu2  ;;  %v7317_v25 = vadd.f32 %v7316_v63, %v7315_v51 }
 0xbc4   : > { %v7062_v8 = vrot.slane %v7061_v26, 2  ;;  %8869 = vmatmul.msk.f32.gmra.mxu1 %vm2118_vm5, %v7408_v16  ;;  %v6936_v38 = vsel %vm14630_vm14, %v6896_v41, -1e+30  ;;  %vm14648_vm14 = vmmov %vm14641_vm2 }
 0xbc5   : > { %v7318_v31 = vrot.slane %v7317_v25, 1  ;;  %v7066_v49 = vsel %vm2118_vm5, %v6936_v38, -inf }
 0xbc6   : > { %v7063_v27 = vmax.f32 %v7061_v26, %v7062_v8  ;;  %v9544_v18 = vpop.eup %9543 }
 0xbc7   : > { %v7319_v35 = vadd.f32 %v7318_v31, %v7317_v25  ;;  %v9546_v56 = vpop.eup %9545  ;;  %v13664_v22 = vmul.f32 %v9544_v18, %v14621_v4 }
 0xbc8   : > { %v7064_v48 = vrot.slane %v7063_v27, 1  ;;  %v13667_v9 = vmul.f32 %v9546_v56, %v14623_v13 }
 0xbc9   : > { %v13661_v0 = vpop.f32.mrf.mxu1  ;;  %v7367_v5 = vmax.f32 %v7319_v35, 1e-20  ;;  %v7320_v58 = vsel %vm2118_vm5, %v13664_v22, 0.0 }
 0xbca   : > { %v7065_v57 = vmax.f32 %v7063_v27, %v7064_v48  ;;  %v7321_v37 = vsel %vm2118_vm5, %v13667_v9, 0.0 }
 0xbcb   : > { %v6899_v42 = vpop.f32.mrf.mxu2  ;;  %9547 = vrcp.f32 %v7367_v5  ;;  %v7322_v52 = vadd.f32 %v7321_v37, %v7320_v58 }
 0xbcc   : > { %v6937_v4 = vsel %vm14632_vm15, %v6899_v42, -1e+30  ;;  %v7110_v60 = vsub.f32 %v6934_v32, %v7065_v57  ;;  %v7111_v15 = vsub.f32 %v6935_v43, %v7065_v57  ;;  %8870 = vmatmul.msk.f32.gmra.mxu1 %vm2118_vm5, %v7409_v33  ;;  %vm14650_vm15 = vmmov %vm14642_vm1 }
 0xbcd   : > { %v7067_v13 = vsel %vm2118_vm5, %v6937_v4, -inf  ;;  %v7323_v7 = vrot.slane %v7322_v52, 4 }
 0xbce   : > { %v7068_v51 = vmax.f32 %v7066_v49, %v7067_v13  ;;  %v7168_v46 = vmul.f32 1.442695, %v7110_v60  ;;  %v7170_v21 = vmul.f32 1.442695, %v7111_v15  ;;  %v14633_v13 = vld [vmem:[#allocation92_spill] sm:$0xff] }
 0xbcf   : > { %v7324_v32 = vadd.f32 %v7323_v7, %v7322_v52  ;;  %vm14634_vm12 = vcmp.gt.f32.partialorder %v14633_v13, 0.0 }
 0xbd0   : > { %v7069_v40 = vrot.slane %v7068_v51, 4  ;;  %9549 = vpow2.f32 %v7168_v46 }
 0xbd1   : > { %v13679_v63 = vpop.f32.mrf.mxu1  ;;  %9551 = vpow2.f32 %v7170_v21  ;;  %v9548_v41 = vpop.eup %9547  ;;  %v7325_v8 = vrot.slane %v7324_v32, 2 }
 0xbd2   : > { %v7070_v26 = vmax.f32 %v7068_v51, %v7069_v40  ;;  %v7410_v25 = vmul.f32 %v9548_v41, %v13636_v24  ;;  %v14635_v51 = vld [vmem:[#allocation93_spill] sm:$0xff]  ;;  %v7411_v52 = vmul.f32 %v9548_v41, %v13639_v17 }
 0xbd3   : > { %v6902_v16 = vpop.f32.mrf.mxu2  ;;  %v7326_v18 = vadd.f32 %v7325_v8, %v7324_v32  ;;  %vm14636_vm3 = vcmp.gt.f32.partialorder %v14635_v51, 0.0 }
 0xbd4   : > { %v7071_v43 = vrot.slane %v7070_v26, 2  ;;  %8871 = vmatmul.msk.f32.gmra.mxu1 %vm2118_vm5, %v7410_v25 }
 0xbd5   : > { %v7327_v42 = vrot.slane %v7326_v18, 1 }
 0xbd6   : > { %v7072_v31 = vmax.f32 %v7070_v26, %v7071_v43  ;;  %v9550_v27 = vpop.eup %9549 }
 0xbd7   : > { %v9552_v35 = vpop.eup %9551  ;;  %v13684_v48 = vmul.f32 %v9550_v27, %v14625_v29  ;;  %v7328_v37 = vadd.f32 %v7327_v42, %v7326_v18  ;;  %v6938_v29 = vsel %vm14634_vm12, %v6902_v16, -1e+30  ;;  %vm14651_vm12 = vmmov %vm14643_vm4 }
 0xbd8   : > { %v7073_v56 = vrot.slane %v7072_v31, 1  ;;  %v13687_v5 = vmul.f32 %v9552_v35, %v14627_v11  ;;  %v7075_v26 = vsel %vm2118_vm5, %v6938_v29, -inf }
 0xbd9   : > { %v13689_v57 = vpop.f32.mrf.mxu1  ;;  %v7329_v49 = vsel %vm2118_vm5, %v13684_v48, 0.0  ;;  %v7368_v46 = vmax.f32 %v7328_v37, 1e-20 }
 0xbda   : > { %v7074_v33 = vmax.f32 %v7072_v31, %v7073_v56  ;;  %v7330_v24 = vsel %vm2118_vm5, %v13687_v5, 0.0 }
 0xbdb   : > { %v6905_v58 = vpop.f32.mrf.mxu2  ;;  %v7331_v21 = vadd.f32 %v7330_v24, %v7329_v49  ;;  %9553 = vrcp.f32 %v7368_v46 }
 0xbdc   : > { %v7112_v60 = vsub.f32 %v6936_v38, %v7074_v33  ;;  %v7113_v15 = vsub.f32 %v6937_v4, %v7074_v33  ;;  %v6939_v11 = vsel %vm14636_vm3, %v6905_v58, -1e+30  ;;  %8872 = vmatmul.msk.f32.gmra.mxu1 %vm2118_vm5, %v7411_v52  ;;  %vm14652_vm3 = vmmov %vm14644_vm6 }
 0xbdd   : > { %v7076_v32 = vsel %vm2118_vm5, %v6939_v11, -inf  ;;  %v7332_v38 = vrot.slane %v7331_v21, 4 }
 0xbde   : > { %v7172_v40 = vmul.f32 1.442695, %v7112_v60  ;;  %v7174_v7 = vmul.f32 1.442695, %v7113_v15  ;;  %v7077_v4 = vmax.f32 %v7075_v26, %v7076_v32 }
 0xbdf   : > { %v7333_v43 = vadd.f32 %v7332_v38, %v7331_v21 }
 0xbe0   : > { %9555 = vpow2.f32 %v7172_v40  ;;  %v7078_v25 = vrot.slane %v7077_v4, 4 }
 0xbe1   : > { %9557 = vpow2.f32 %v7174_v7  ;;  %v7557_v16 = vpop.f32.mrf.mxu1  ;;  %v7334_v8 = vrot.slane %v7333_v43, 2  ;;  %v9554_v41 = vpop.eup %9553 }
 0xbe2   : > { %v7079_v17 = vmax.f32 %v7077_v4, %v7078_v25  ;;  %v7412_v35 = vmul.f32 %v9554_v41, %v13664_v22  ;;  %v7413_v7 = vmul.f32 %v9554_v41, %v13667_v9  ;;  %v7791_v4 = vld [vmem:[%s10324_s5 + $0x3] sm:$0x1]  ;;  %v7634_v9 = vmul.f32 %v13661_v0, %v13180_v20 }
 0xbe3   : > { %v7335_v31 = vadd.f32 %v7334_v8, %v7333_v43 }
 0xbe4   : > { %v7080_v18 = vrot.slane %v7079_v17, 2  ;;  %8873 = vmatmul.msk.f32.gmra.mxu1 %vm2118_vm5, %v7412_v35  ;;  %v7633_v35 = vmul.f32 %v13655_v30, %v13170_v45 }
 0xbe5   : > { %v7336_v42 = vrot.slane %v7335_v31, 1 }
 0xbe6   : > { %v9556_v27 = vpop.eup %9555  ;;  %v7081_v58 = vmax.f32 %v7079_v17, %v7080_v18  ;;  %v7636_v18 = vmul.f32 %v13689_v57, %v13180_v20  ;;  %v7675_v57 = vadd.f32 %v7634_v9, %v7633_v35 }
 0xbe7   : > { %v9558_v56 = vpop.eup %9557  ;;  %v13705_v33 = vmul.f32 %v9556_v27, %v14629_v39  ;;  %v7337_v49 = vadd.f32 %v7336_v42, %v7335_v31  ;;  %v13718_v31 = vadd.f32 1e-05, %v7791_v4  ;;  %v7631_v27 = vmul.f32 %v13631_v44, %v13170_v45 }
 0xbe8   : > { %v13708_v24 = vmul.f32 %v9558_v56, %v14631_v3  ;;  %v7082_v15 = vrot.slane %v7081_v58, 1 }
 0xbe9   : > { %v7560_v37 = vpop.f32.mrf.mxu1  ;;  %v7338_v60 = vsel %vm2118_vm5, %v13705_v33, 0.0  ;;  %v7369_v52 = vmax.f32 %v7337_v49, 1e-20  ;;  %v7637_v49 = vmul.f32 %v7557_v16, %v13170_v45  ;;  %vm7799_vm7 = vweird.f32 %v13718_v31 }
 0xbea   : > { %v7339_v22 = vsel %vm2118_vm5, %v13708_v24, 0.0  ;;  %v7083_v39 = vmax.f32 %v7081_v58, %v7082_v15  ;;  %v7638_v56 = vmul.f32 %v7560_v37, %v13180_v20 }
 0xbeb   : > { %v7340_v46 = vadd.f32 %v7339_v22, %v7338_v60  ;;  %9559 = vrcp.f32 %v7369_v52 }
 0xbec   : > { %v7114_v3 = vsub.f32 %v6938_v29, %v7083_v39  ;;  %v7115_v40 = vsub.f32 %v6939_v11, %v7083_v39  ;;  %8874 = vmatmul.msk.f32.gmra.mxu1 %vm2118_vm5, %v7413_v7  ;;  %v7632_v29 = vmul.f32 %v13641_v12, %v13180_v20  ;;  %v7630_v12 = vmul.f32 %v13617_v59, %v13180_v20 }
 0xbed   : > { %v7341_v21 = vrot.slane %v7340_v46, 4 }
 0xbee   : > { %v7176_v32 = vmul.f32 1.442695, %v7114_v3  ;;  %v7178_v38 = vmul.f32 1.442695, %v7115_v40  ;;  %v7668_v0 = vadd.f32 %v7632_v29, %v7631_v27 }
 0xbef   : > { %v7342_v26 = vadd.f32 %v7341_v21, %v7340_v46  ;;  %v7689_v46 = vadd.f32 %v7638_v56, %v7637_v49 }
 0xbf0   : > { %9561 = vpow2.f32 %v7176_v32  ;;  %v7669_v39 = vrot.slane %v7668_v0, 4 }
 0xbf1   : > { %v7563_v43 = vpop.f32.mrf.mxu1  ;;  %v7343_v25 = vrot.slane %v7342_v26, 2  ;;  %v9560_v8 = vpop.eup %9559  ;;  %9563 = vpow2.f32 %v7178_v38  ;;  %v7690_v38 = vrot.slane %v7689_v46, 4 }
 0xbf2   : > { %v7414_v11 = vmul.f32 %v9560_v8, %v13684_v48  ;;  %9565 = vrsqrt.f32 %v13718_v31  ;;  %v7635_v48 = vmul.f32 %v13679_v63, %v13170_v45  ;;  %v7639_v15 = vmul.f32 %v7563_v43, %v13170_v45 }
 0xbf3   : > { %v7344_v17 = vadd.f32 %v7343_v25, %v7342_v26  ;;  %v7629_v63 = vmul.f32 %v13607_v19, %v13170_v45  ;;  %v7415_v32 = vmul.f32 %v9560_v8, %v13687_v5  ;;  %v7670_v4 = vadd.f32 %v7669_v39, %v7668_v0 }
 0xbf4   : > { %8875 = vmatmul.msk.f32.gmra.mxu1 %vm2118_vm5, %v7414_v11  ;;  %v7682_v22 = vadd.f32 %v7636_v18, %v7635_v48  ;;  %v7691_v18 = vadd.f32 %v7690_v38, %v7689_v46 }
 0xbf5   : > { %v7345_v41 = vrot.slane %v7344_v17, 1  ;;  %v7661_v3 = vadd.f32 %v7630_v12, %v7629_v63  ;;  %v7671_v56 = vrot.slane %v7670_v4, 2 }
 0xbf6   : > { %v9562_v58 = vpop.eup %9561  ;;  %v7683_v26 = vrot.slane %v7682_v22, 4 }
 0xbf7   : > { %v7346_v42 = vadd.f32 %v7345_v41, %v7344_v17  ;;  %v9564_v44 = vpop.eup %9563  ;;  %v13740_v37 = vmul.f32 %v9562_v58, %v14633_v13  ;;  %v7662_v17 = vrot.slane %v7661_v3, 4  ;;  %v7672_v49 = vadd.f32 %v7671_v56, %v7670_v4 }
 0xbf8   : > { %v13743_v59 = vmul.f32 %v9564_v44, %v14635_v51  ;;  %v7676_v51 = vrot.slane %v7675_v57, 4  ;;  %v13753_v7 = vpop.eup %9565  ;;  %v7684_v27 = vadd.f32 %v7683_v26, %v7682_v22  ;;  %v7692_v44 = vrot.slane %v7691_v18, 2 }
 0xbf9   : > { %v7566_v30 = vpop.f32.mrf.mxu1  ;;  %v7370_v60 = vmax.f32 %v7346_v42, 1e-20  ;;  %v7347_v16 = vsel %vm2118_vm5, %v13740_v37, 0.0  ;;  %v7794_v41 = vmul.f32 %v13753_v7, %v13718_v31  ;;  %v7663_v8 = vadd.f32 %v7662_v17, %v7661_v3 }
 0xbfa   : > { %v7640_v52 = vmul.f32 %v7566_v30, %v13180_v20  ;;  %v7348_v13 = vsel %vm2118_vm5, %v13743_v59, 0.0  ;;  %v7677_v29 = vadd.f32 %v7676_v51, %v7675_v57  ;;  %v7685_v48 = vrot.slane %v7684_v27, 2 }
 0xbfb   : > { %9567 = vrcp.f32 %v7370_v60  ;;  %v7349_v40 = vadd.f32 %v7348_v13, %v7347_v16  ;;  %v7795_v0 = vmul.f32 %v13753_v7, %v7794_v41  ;;  %v7664_v60 = vrot.slane %v7663_v8, 2 }
 0xbfc   : > { %v7696_v21 = vadd.f32 %v7640_v52, %v7639_v15  ;;  %8876 = vmatmul.msk.f32.gmra.mxu1 %vm2118_vm5, %v7415_v32  ;;  %v7678_v58 = vrot.slane %v7677_v29, 2  ;;  %v7686_v46 = vadd.f32 %v7685_v48, %v7684_v27  ;;  %v7693_v39 = vadd.f32 %v7692_v44, %v7691_v18  ;;  %v13769_v18 = vld [vmem:[%s10316_s0 + $0x3] ss:$0 sm:$0xff]  ;;  %s8883_s0 = sshll.u32 %s14284_s4, 2  ;;  %s14649_s4 = sld [smem:[#allocation112_spill]] }
 0xbfd   : > { %v7350_v19 = vrot.slane %v7349_v40, 4  ;;  %v7796_v63 = vmul.f32 0.5, %v7795_v0  ;;  %vm7800_vm11 = vweird.f32 %v13753_v7 }
 0xbfe   : > { %v7697_v43 = vrot.slane %v7696_v21, 4  ;;  %v7679_v22 = vadd.f32 %v7678_v58, %v7677_v29  ;;  %v7687_v38 = vrot.slane %v7686_v46, 1  ;;  %vm13774_vm8 = vmor %vm7799_vm7, %vm7800_vm11 }
 0xbff   : > { %v7351_v9 = vadd.f32 %v7350_v19, %v7349_v40  ;;  %v7665_v40 = vadd.f32 %v7664_v60, %v7663_v8  ;;  %v7797_v32 = vsub.f32 1.5, %v7796_v63  ;;  %vm14653_vm7 = vmmov %vm14645_vm9 }
 0xc00   : > { %v7698_v42 = vadd.f32 %v7697_v43, %v7696_v21  ;;  %v7673_v21 = vrot.slane %v7672_v49, 1  ;;  %v7680_v26 = vrot.slane %v7679_v22, 1  ;;  %v7694_v43 = vrot.slane %v7693_v39, 1 }
 0xc01   : > { %v9568_v25 = vpop.eup %9567  ;;  %v7569_v11 = vpop.f32.mrf.mxu1  ;;  %v7352_v35 = vrot.slane %v7351_v9, 2  ;;  %v7688_v56 = vadd.f32 %v7687_v38, %v7686_v46 }
 0xc02   : > { %v7416_v5 = vmul.f32 %v9568_v25, %v13705_v33  ;;  %v7699_v30 = vrot.slane %v7698_v42, 2  ;;  %v7641_v33 = vmul.f32 %v7569_v11, %v13170_v45  ;;  %v7417_v4 = vmul.f32 %v9568_v25, %v13708_v24  ;;  %s9865_s16 = scalar_lea.hbm %s14649_s4, 64 }
 0xc03   : > { %v7353_v12 = vadd.f32 %v7352_v35, %v7351_v9  ;;  %v7674_v17 = vadd.f32 %v7673_v21, %v7672_v49  ;;  %v7666_v9 = vrot.slane %v7665_v40, 1  ;;  %v7681_v41 = vadd.f32 %v7680_v26, %v7679_v22  ;;  %v13785_v49 = vld [vmem:[%s10322_s21 + $0x3] ss:$0 sm:$0xff] }
 0xc04   : > { %8877 = vmatmul.msk.f32.gmra.mxu1 %vm2118_vm5, %v7416_v5  ;;  %v7700_v3 = vadd.f32 %v7699_v30, %v7698_v42  ;;  %v7798_v35 = vmul.f32 %v13753_v7, %v7797_v32  ;;  %v7695_v5 = vadd.f32 %v7694_v43, %v7693_v39  ;;  %v7778_v31 = vadd.f32 %v13769_v18, %v7688_v56  ;;  %v13819_v42 = vld [vmem:[%s10320_s17 + $0x3] ss:$0 sm:$0xff] }
 0xc05   : > { %v7354_v57 = vrot.slane %v7353_v12, 1  ;;  %v7776_v8 = vadd.f32 %v13769_v18, %v7674_v17  ;;  %v7667_v48 = vadd.f32 %v7666_v9, %v7665_v40  ;;  %v7777_v44 = vadd.f32 %v13769_v18, %v7681_v41 }
 0xc06   : > { %v7701_v29 = vrot.slane %v7700_v3, 1  ;;  %v7779_v60 = vadd.f32 %v13769_v18, %v7695_v5 }
 0xc07   : > { %v7355_v52 = vadd.f32 %v7354_v57, %v7353_v12  ;;  %v7802_v57 = vsel %vm13774_vm8, %v13753_v7, %v7798_v35  ;;  %v7806_v22 = vsub.f32 %v7776_v8, %v13785_v49  ;;  %v7807_v7 = vsub.f32 %v7777_v44, %v13785_v49 }
 0xc08   : > { %v7702_v58 = vadd.f32 %v7701_v29, %v7700_v3  ;;  %v13793_v63 = vperm.slane %v7802_v57, 0  ;;  %v7809_v21 = vsub.f32 %v7779_v60, %v13785_v49 }
 0xc09   : > { %v7572_v15 = vpop.f32.mrf.mxu1  ;;  %v7371_v13 = vmax.f32 %v7355_v52, 1e-20 }
 0xc0a   : > { %v7642_v16 = vmul.f32 %v7572_v15, %v13180_v20  ;;  %v7780_v15 = vadd.f32 %v13769_v18, %v7702_v58  ;;  %v7823_v3 = vmul.f32 %v13793_v63, %v7806_v22  ;;  %v7824_v32 = vmul.f32 %v13793_v63, %v7807_v7 }
 0xc0b   : > { %9569 = vrcp.f32 %v7371_v13  ;;  %v7826_v29 = vmul.f32 %v13793_v63, %v7809_v21 }
 0xc0c   : > { %v7703_v51 = vadd.f32 %v7642_v16, %v7641_v33  ;;  %8878 = vmatmul.msk.f32.gmra.mxu1 %vm2118_vm5, %v7417_v4  ;;  %v7808_v33 = vsub.f32 %v7778_v31, %v13785_v49 }
 0xc0e   : > { %v7704_v19 = vrot.slane %v7703_v51, 4  ;;  %v7825_v4 = vmul.f32 %v13793_v63, %v7808_v33 }
 0xc10   : > { %v7705_v11 = vadd.f32 %v7704_v19, %v7703_v51  ;;  %v7810_v51 = vsub.f32 %v7780_v15, %v13785_v49  ;;  %v13807_v19 = vld [vmem:[%s10318_s22 + $0x3] ss:$0 sm:$0xff]  ;;  %s7966_s22 = sadd.s32 %s8883_s0, %s8882_s12 }
 0xc11   : > { %v7575_v27 = vpop.f32.mrf.mxu1  ;;  %v9570_v25 = vpop.eup %9569  ;;  %v7842_v35 = vmul.f32 %v13807_v19, %v7824_v32  ;;  %v7844_v5 = vmul.f32 %v13807_v19, %v7826_v29  ;;  %s8884_s17 = sshll.u32 %s7966_s22, 3 }
 0xc12   : > { %v7706_v24 = vrot.slane %v7705_v11, 2  ;;  %v7418_v0 = vmul.f32 %v9570_v25, %v13740_v37  ;;  %v7775_v37 = vadd.f32 %v13769_v18, %v7667_v48  ;;  %v7643_v39 = vmul.f32 %v7575_v27, %v13170_v45  ;;  %s7968_s18 = scalar_lea.hbm %s14649_s4, %s8884_s17 }
 0xc13   : > { %v7419_v17 = vmul.f32 %v9570_v25, %v13743_v59  ;;  %v7827_v9 = vmul.f32 %v13793_v63, %v7810_v51  ;;  %v7843_v59 = vmul.f32 %v13807_v19, %v7825_v4  ;;  %v7860_v48 = vadd.f32 %v13819_v42, %v7842_v35  ;;  %s7971_s20 = sshll.u32 %s7968_s18, 4  ;;  %s7972_s20 = int_to_ptr.hbm [resolvable:$true] %s7971_s20 }
 0xc14   : > { %v7707_v12 = vadd.f32 %v7706_v24, %v7705_v11  ;;  %8879 = vmatmul.msk.f32.gmra.mxu1 %vm2118_vm5, %v7418_v0  ;;  %v7805_v26 = vsub.f32 %v7775_v37, %v13785_v49  ;;  %v7841_v11 = vmul.f32 %v13807_v19, %v7823_v3  ;;  %s9859_s15 = sshra.s32 %s7972_s20, 4  ;;  %s9860_s15 = int_to_ptr.hbm [resolvable:$true] %s9859_s15 }
 0xc15   : > { %v7845_v58 = vmul.f32 %v13807_v19, %v7827_v9  ;;  %v7861_v57 = vadd.f32 %v13819_v42, %v7843_v59  ;;  %v7876_v37 = vadd.f32 %v7860_v48, %v13072_v1  ;;  %s9861_s9 = scalar_lea.hbm %s9860_s15, 16  ;;  %p9866_p4 = scmp.lt.s32.totalorder %s9860_s15, %s14649_s4 }
 0xc16   : > { %v7708_v30 = vrot.slane %v7707_v12, 1  ;;  %v7822_v27 = vmul.f32 %v13793_v63, %v7805_v26  ;;  %v7859_v8 = vadd.f32 %v13819_v42, %v7841_v11  ;;  %p9862_p13 = scmp.ne.s32.totalorder %s9860_s15, %s9861_s9  ;;  %p9867_p5 = scmp.lt.s32.totalorder %s9865_s16, %s9861_s9 }
 0xc17   : > { %v7863_v22 = vadd.f32 %v13819_v42, %v7845_v58  ;;  %v7877_v33 = vadd.f32 %v7861_v57, %v13081_v62  ;;  %v7892_v1 = vmax.f32 %v7876_v37, 0.0 }
 0xc18   : > { %v7709_v52 = vadd.f32 %v7708_v30, %v7707_v12  ;;  %v7840_v0 = vmul.f32 %v13807_v19, %v7822_v27  ;;  %v7862_v30 = vadd.f32 %v13819_v42, %v7844_v5  ;;  %v7875_v60 = vadd.f32 %v7859_v8, %v13070_v2  ;;  %p9863_p2 = pnand %p9862_p13, %p10252_p6  ;;  %p9868_p8 = por %p9867_p5, %p9866_p4 }
 0xc19   : > { %v7578_v46 = vpop.f32.mrf.mxu1  ;;  %v7879_v3 = vadd.f32 %v7863_v22, %v13102_v23  ;;  %v7893_v62 = vmax.f32 %v7877_v33, 0.0  ;;  %v7924_v9 = vrot.slane %v7892_v1, 6 }
 0xc1a   : > { %v7781_v16 = vadd.f32 %v13769_v18, %v7709_v52  ;;  %v7644_v13 = vmul.f32 %v7578_v46, %v13180_v20  ;;  %v7858_v52 = vadd.f32 %v13819_v42, %v7840_v0  ;;  %v7878_v2 = vadd.f32 %v7862_v30, %v13097_v53  ;;  %p9864_p3 = pneg %p9863_p2 }
 0xc1b   : > { %v7891_v21 = vmax.f32 %v7875_v60, 0.0  ;;  %v7895_v29 = vmax.f32 %v7879_v3, 0.0  ;;  %v7926_v35 = vrot.slane %v7893_v62, 5 }
 0xc1c   : > { %v7710_v40 = vadd.f32 %v7644_v13, %v7643_v39  ;;  %v7811_v38 = vsub.f32 %v7781_v16, %v13785_v49  ;;  %8880 = vmatmul.msk.f32.gmra.mxu1 %vm2118_vm5, %v7419_v17  ;;  %v7874_v32 = vadd.f32 %v7858_v52, %v12980_v10  ;;  %vm14639_vm5 = vcmask 1041409   ;;  %p9869_p9 = pnand %p9868_p8, %p9864_p3 }
 0xc1d   : > { %v7922_v17 = vrot.slane %v7891_v21, 7  ;;  %v7930_v59 = vrot.slane %v7895_v29, 3  ;;  %vm14646_vm10 = vmmov %vm14639_vm5 }
 0xc1e   : > { %v7711_v43 = vrot.slane %v7710_v40, 4  ;;  %v7828_v56 = vmul.f32 %v13793_v63, %v7811_v38  ;;  %v7890_v27 = vmax.f32 %v7874_v32, 0.0 }
 0xc20   : > { %v7712_v41 = vadd.f32 %v7711_v43, %v7710_v40  ;;  %v7846_v44 = vmul.f32 %v13807_v19, %v7828_v56  ;;  %v7894_v43 = vmax.f32 %v7878_v2, 0.0  ;;  %v7923_v10 = vsel %vm14639_vm5, %v7922_v17, %v7890_v27 }
 0xc21   : > { %v7581_v24 = vpop.f32.mrf.mxu1  ;;  %v7925_v8 = vsel %vm14640_vm0, %v7924_v9, %v7923_v10 }
 0xc22   : > { %v7713_v25 = vrot.slane %v7712_v41, 2  ;;  %v7864_v7 = vadd.f32 %v13819_v42, %v7846_v44  ;;  %v7645_v39 = vmul.f32 %v7581_v24, %v13170_v45  ;;  %v7928_v24 = vrot.slane %v7894_v43, 4 }
 0xc23   : > { %v7927_v0 = vsel %vm14641_vm2, %v7926_v35, %v7925_v8 }
 0xc24   : > { %v7714_v12 = vadd.f32 %v7713_v25, %v7712_v41  ;;  %v7880_v26 = vadd.f32 %v7864_v7, %v13111_v28  ;;  %v7929_v48 = vsel %vm14642_vm1, %v7928_v24, %v7927_v0 }
 0xc26   : > { %v7715_v31 = vrot.slane %v7714_v12, 1  ;;  %v7896_v23 = vmax.f32 %v7880_v26, 0.0 }
 0xc28   : > { %v7716_v15 = vadd.f32 %v7715_v31, %v7714_v12  ;;  %v7932_v58 = vrot.slane %v7896_v23, 2  ;;  %v7931_v31 = vsel %vm14643_vm4, %v7930_v59, %v7929_v48 }
 0xc29   : > { %v7584_v46 = vpop.f32.mrf.mxu1 }
 0xc2a   : > { %v7782_v16 = vadd.f32 %v13769_v18, %v7716_v15  ;;  %v7646_v13 = vmul.f32 %v7584_v46, %v13180_v20  ;;  %v7933_v60 = vsel %vm14644_vm6, %v7932_v58, %v7931_v31 }
 0xc2c   : > { %v7812_v51 = vsub.f32 %v7782_v16, %v13785_v49  ;;  %v7717_v40 = vadd.f32 %v7646_v13, %v7645_v39 }
 0xc2e   : > { %v7829_v38 = vmul.f32 %v13793_v63, %v7812_v51  ;;  %v7718_v4 = vrot.slane %v7717_v40, 4 }
 0xc30   : > { %v7847_v53 = vmul.f32 %v13807_v19, %v7829_v38  ;;  %v7719_v11 = vadd.f32 %v7718_v4, %v7717_v40 }
 0xc31   : > { %v7587_v41 = vpop.f32.mrf.mxu1 }
 0xc32   : > { %v7865_v56 = vadd.f32 %v13819_v42, %v7847_v53  ;;  %v7720_v28 = vrot.slane %v7719_v11, 2  ;;  %v7647_v22 = vmul.f32 %v7587_v41, %v13170_v45 }
 0xc34   : > { %v7881_v25 = vadd.f32 %v7865_v56, %v13123_v54  ;;  %v7721_v5 = vadd.f32 %v7720_v28, %v7719_v11 }
 0xc36   : > { %v7897_v12 = vmax.f32 %v7881_v25, 0.0  ;;  %v7722_v57 = vrot.slane %v7721_v5, 1 }
 0xc38   : > { %v7934_v44 = vrot.slane %v7897_v12, 1  ;;  %v7723_v52 = vadd.f32 %v7722_v57, %v7721_v5 }
 0xc39   : > { %v7590_v30 = vpop.f32.mrf.mxu1 }
 0xc3a   : > { %v7648_v54 = vmul.f32 %v7590_v30, %v13180_v20  ;;  %v7935_v15 = vsel %vm14645_vm9, %v7934_v44, %v7933_v60  ;;  %v7783_v46 = vadd.f32 %v13769_v18, %v7723_v52 }
 0xc3b   : > { %7952 = vst [vmem:[%s13858_s29] sm:$0xff] %v7935_v15 }
 0xc3c   : > { %v7724_v37 = vadd.f32 %v7648_v54, %v7647_v22  ;;  %v7813_v13 = vsub.f32 %v7783_v46, %v13785_v49 }
 0xc3e   : > { %v7725_v7 = vrot.slane %v7724_v37, 4  ;;  %v7830_v3 = vmul.f32 %v13793_v63, %v7813_v13 }
 0xc40   : > { %v7726_v33 = vadd.f32 %v7725_v7, %v7724_v37  ;;  %v7848_v62 = vmul.f32 %v13807_v19, %v7830_v3 }
 0xc41   : > { %v7593_v39 = vpop.f32.mrf.mxu1 }
 0xc42   : > { %v7727_v16 = vrot.slane %v7726_v33, 2  ;;  %v7649_v26 = vmul.f32 %v7593_v39, %v13170_v45  ;;  %v7866_v29 = vadd.f32 %v13819_v42, %v7848_v62 }
 0xc44   : > { %v7728_v2 = vadd.f32 %v7727_v16, %v7726_v33  ;;  %v7882_v41 = vadd.f32 %v7866_v29, %v13118_v36 }
 0xc46   : > { %v7729_v21 = vrot.slane %v7728_v2, 1  ;;  %v7898_v10 = vmax.f32 %v7882_v41, 0.0 }
 0xc48   : > { %v7730_v51 = vadd.f32 %v7729_v21, %v7728_v2 }
 0xc49   : > { %v7596_v1 = vpop.f32.mrf.mxu1 }
 0xc4a   : > { %v7784_v40 = vadd.f32 %v13769_v18, %v7730_v51  ;;  %v7650_v32 = vmul.f32 %v7596_v1, %v13180_v20 }
 0xc4c   : > { %v7814_v38 = vsub.f32 %v7784_v40, %v13785_v49  ;;  %v7731_v4 = vadd.f32 %v7650_v32, %v7649_v26 }
 0xc4e   : > { %v7831_v43 = vmul.f32 %v13793_v63, %v7814_v38  ;;  %v7732_v17 = vrot.slane %v7731_v4, 4 }
 0xc50   : > { %v7849_v53 = vmul.f32 %v13807_v19, %v7831_v43  ;;  %v7733_v11 = vadd.f32 %v7732_v17, %v7731_v4 }
 0xc51   : > { %v7599_v35 = vpop.f32.mrf.mxu1 }
 0xc52   : > { %v7867_v9 = vadd.f32 %v13819_v42, %v7849_v53  ;;  %v7734_v23 = vrot.slane %v7733_v11, 2  ;;  %v7651_v0 = vmul.f32 %v7599_v35, %v13170_v45 }
 0xc54   : > { %v7883_v27 = vadd.f32 %v7867_v9, %v13078_v61  ;;  %v7735_v56 = vadd.f32 %v7734_v23, %v7733_v11 }
 0xc56   : > { %v7899_v28 = vmax.f32 %v7883_v27, 0.0  ;;  %v7736_v24 = vrot.slane %v7735_v56, 1 }
 0xc58   : > { %v7936_v59 = vrot.slane %v7899_v28, 7  ;;  %v7737_v25 = vadd.f32 %v7736_v24, %v7735_v56 }
 0xc59   : > { %v7602_v58 = vpop.f32.mrf.mxu1 }
 0xc5a   : > { %v7937_v5 = vsel %vm14646_vm10, %v7936_v59, %v7898_v10  ;;  %v7785_v8 = vadd.f32 %v13769_v18, %v7737_v25  ;;  %v7652_v36 = vmul.f32 %v7602_v58, %v13180_v20 }
 0xc5c   : > { %v7815_v12 = vsub.f32 %v7785_v8, %v13785_v49  ;;  %v7738_v48 = vadd.f32 %v7652_v36, %v7651_v0 }
 0xc5e   : > { %v7832_v61 = vmul.f32 %v13793_v63, %v7815_v12  ;;  %v7739_v57 = vrot.slane %v7738_v48, 4 }
 0xc60   : > { %v7850_v44 = vmul.f32 %v13807_v19, %v7832_v61  ;;  %v7740_v30 = vadd.f32 %v7739_v57, %v7738_v48 }
 0xc61   : > { %v7605_v54 = vpop.f32.mrf.mxu1 }
 0xc62   : > { %v7868_v31 = vadd.f32 %v13819_v42, %v7850_v44  ;;  %v7741_v22 = vrot.slane %v7740_v30, 2  ;;  %v7653_v62 = vmul.f32 %v7605_v54, %v13170_v45 }
 0xc64   : > { %v7884_v60 = vadd.f32 %v7868_v31, %v13084_v55  ;;  %v7742_v52 = vadd.f32 %v7741_v22, %v7740_v30 }
 0xc66   : > { %v7900_v15 = vmax.f32 %v7884_v60, 0.0  ;;  %v7743_v7 = vrot.slane %v7742_v52, 1 }
 0xc68   : > { %v7938_v37 = vrot.slane %v7900_v15, 6  ;;  %v7744_v33 = vadd.f32 %v7743_v7, %v7742_v52 }
 0xc69   : > { %v7608_v39 = vpop.f32.mrf.mxu1 }
 0xc6a   : > { %v7939_v46 = vsel %vm14647_vm13, %v7938_v37, %v7937_v5  ;;  %v7786_v16 = vadd.f32 %v13769_v18, %v7744_v33  ;;  %v7654_v26 = vmul.f32 %v7608_v39, %v13180_v20 }
 0xc6c   : > { %v7816_v13 = vsub.f32 %v7786_v16, %v13785_v49  ;;  %v7745_v17 = vadd.f32 %v7654_v26, %v7653_v62 }
 0xc6e   : > { %v7833_v2 = vmul.f32 %v13793_v63, %v7816_v13  ;;  %v7746_v53 = vrot.slane %v7745_v17, 4 }
 0xc70   : > { %v7851_v21 = vmul.f32 %v13807_v19, %v7833_v2 }
 0xc71   : > { %v7611_v3 = vpop.f32.mrf.mxu1 }
 0xc72   : > { %v7869_v55 = vadd.f32 %v13819_v42, %v7851_v21  ;;  %v7655_v4 = vmul.f32 %v7611_v3, %v13170_v45 }
 0xc74   : > { %v7885_v51 = vadd.f32 %v7869_v55, %v13090_v14  ;;  %v7747_v14 = vadd.f32 %v7746_v53, %v7745_v17 }
 0xc76   : > { %v7901_v40 = vmax.f32 %v7885_v51, 0.0  ;;  %v7748_v41 = vrot.slane %v7747_v14, 2 }
 0xc78   : > { %v7940_v1 = vrot.slane %v7901_v40, 5  ;;  %v7749_v24 = vadd.f32 %v7748_v41, %v7747_v14 }
 0xc79   : > { %v7614_v38 = vpop.f32.mrf.mxu1 }
 0xc7a   : > { %v13893_v32 = vsel %vm14648_vm14, %v7940_v1, %v7939_v46  ;;  %v7656_v43 = vmul.f32 %v7614_v38, %v13180_v20  ;;  %v7750_v5 = vrot.slane %v7749_v24, 1 }
 0xc7c   : > { %v7752_v29 = vadd.f32 %v7656_v43, %v7655_v4  ;;  %v7751_v36 = vadd.f32 %v7750_v5, %v7749_v24 }
 0xc7e   : > { %v7753_v11 = vrot.slane %v7752_v29, 4  ;;  %v7787_v57 = vadd.f32 %v13769_v18, %v7751_v36 }
 0xc80   : > { %v7754_v23 = vadd.f32 %v7753_v11, %v7752_v29  ;;  %v7817_v52 = vsub.f32 %v7787_v57, %v13785_v49 }
 0xc81   : > { %v7617_v9 = vpop.f32.mrf.mxu1 }
 0xc82   : > { %v7755_v27 = vrot.slane %v7754_v23, 2  ;;  %v7657_v56 = vmul.f32 %v7617_v9, %v13170_v45  ;;  %v7834_v16 = vmul.f32 %v13793_v63, %v7817_v52 }
 0xc84   : > { %v7756_v10 = vadd.f32 %v7755_v27, %v7754_v23 }
 0xc86   : > { %v7757_v8 = vrot.slane %v7756_v10, 1 }
 0xc88   : > { %v7758_v61 = vadd.f32 %v7757_v8, %v7756_v10 }
 0xc89   : > { %v7620_v35 = vpop.f32.mrf.mxu1 }
 0xc8a   : > { %v7658_v28 = vmul.f32 %v7620_v35, %v13180_v20  ;;  %v7788_v31 = vadd.f32 %v13769_v18, %v7758_v61 }
 0xc8c   : > { %v7759_v59 = vadd.f32 %v7658_v28, %v7657_v56  ;;  %v7818_v37 = vsub.f32 %v7788_v31, %v13785_v49 }
 0xc8e   : > { %v7760_v25 = vrot.slane %v7759_v59, 4  ;;  %v7835_v39 = vmul.f32 %v13793_v63, %v7818_v37 }
 0xc90   : > { %v7761_v58 = vadd.f32 %v7760_v25, %v7759_v59  ;;  %v7853_v21 = vmul.f32 %v13807_v19, %v7835_v39 }
 0xc91   : > { %v7623_v12 = vpop.f32.mrf.mxu1 }
 0xc92   : > { %v7762_v0 = vrot.slane %v7761_v58, 2  ;;  %v7659_v54 = vmul.f32 %v7623_v12, %v13170_v45  ;;  %v7871_v1 = vadd.f32 %v13819_v42, %v7853_v21 }
 0xc94   : > { %v7763_v48 = vadd.f32 %v7762_v0, %v7761_v58  ;;  %v7887_v43 = vadd.f32 %v7871_v1, %v13106_v50 }
 0xc96   : > { %v7764_v44 = vrot.slane %v7763_v48, 1  ;;  %v7903_v9 = vmax.f32 %v7887_v43, 0.0 }
 0xc98   : > { %v7765_v30 = vadd.f32 %v7764_v44, %v7763_v48  ;;  %v7944_v50 = vrot.slane %v7903_v9, 3 }
 0xc99   : > { %v7626_v60 = vpop.f32.mrf.mxu1 }
 0xc9a   : > { %v7789_v22 = vadd.f32 %v13769_v18, %v7765_v30  ;;  %v7660_v15 = vmul.f32 %v7626_v60, %v13180_v20  ;;  %v7852_v20 = vmul.f32 %v13807_v19, %v7834_v16 }
 0xc9c   : > { %v7766_v7 = vadd.f32 %v7660_v15, %v7659_v54  ;;  %v7819_v46 = vsub.f32 %v7789_v22, %v13785_v49  ;;  %v7870_v40 = vadd.f32 %v13819_v42, %v7852_v20 }
 0xc9e   : > { %v7767_v33 = vrot.slane %v7766_v7, 4  ;;  %v7836_v2 = vmul.f32 %v13793_v63, %v7819_v46  ;;  %v7886_v4 = vadd.f32 %v7870_v40, %v13099_v6 }
 0xca0   : > { %v7768_v13 = vadd.f32 %v7767_v33, %v7766_v7  ;;  %v7854_v3 = vmul.f32 %v13807_v19, %v7836_v2  ;;  %v7902_v11 = vmax.f32 %v7886_v4, 0.0 }
 0xca2   : > { %v7769_v45 = vrot.slane %v7768_v13, 2  ;;  %v7872_v62 = vadd.f32 %v13819_v42, %v7854_v3  ;;  %v7942_v6 = vrot.slane %v7902_v11, 4 }
 0xca4   : > { %v7770_v55 = vadd.f32 %v7769_v45, %v7768_v13  ;;  %v7888_v29 = vadd.f32 %v7872_v62, %v13115_v34 }
 0xca6   : > { %v7771_v51 = vrot.slane %v7770_v55, 1 }
 0xca8   : > { %v7772_v26 = vadd.f32 %v7771_v51, %v7770_v55 }
 0xcaa   : > { %v7790_v38 = vadd.f32 %v13769_v18, %v7772_v26  ;;  %v7904_v18 = vmax.f32 %v7888_v29, 0.0 }
 0xcac   : > { %v7820_v17 = vsub.f32 %v7790_v38, %v13785_v49  ;;  %v7946_v49 = vrot.slane %v7904_v18, 2 }
 0xcae   : > { %v7837_v53 = vmul.f32 %v13793_v63, %v7820_v17 }
 0xcb0   : > { %v7855_v14 = vmul.f32 %v13807_v19, %v7837_v53  ;;  %v7943_v19 = vsel %vm14650_vm15, %v7942_v6, %v13893_v32 }
 0xcb2   : > { %v7873_v23 = vadd.f32 %v13819_v42, %v7855_v14  ;;  %v7945_v42 = vsel %vm14651_vm12, %v7944_v50, %v7943_v19 }
 0xcb3   : > { %v7947_v27 = vsel %vm14652_vm3, %v7946_v49, %v7945_v42 }
 0xcb4   : > { %v7889_v34 = vadd.f32 %v7873_v23, %v13144_v47 }
 0xcb6   : > { %v7905_v63 = vmax.f32 %v7889_v34, 0.0 }
 0xcb8   : > { %v7948_v41 = vrot.slane %v7905_v63, 1 }
 0xcba   : > { %v7949_v35 = vsel %vm14653_vm7, %v7948_v41, %v7947_v27 }
 0xcbb   : > { %7953 = vst [vmem:[%s13858_s29 + $0x8] sm:$0xff] %v7949_v35 }
 0xcbc   : > { %9872 = shalt.err (!%p9869_p9)
}
 0xcbd   : > { %s9985_s6 = smov 128   ;;  %s9986_s10 = smov 8  }
 0xcbe   : > { %8976 = dma.vmem_to_hbm [thread:$0]  (%p10252_p6), %s7970_s8, 256, %s7972_s20, %s7955_s14, %s9985_s6, %s9985_s6, %s9986_s10  }
 0xcbf PF: > { %p9016_p10 = scmp.ge.s32.totalorder %s9979_s1, 2  ;;  %s7986_s26 = sand.u32 1, %s9951_s27  }
 0xcc0   : > { %s7987_s7 = scalar_lea.sflag [#allocation4], %s7986_s26 }
 0xcc1   : > { %p9008_p1 = pnand %p9016_p10, %p10256_p7 }
 0xcc3   : > { %p9009_p12 = pneg %p9008_p1 }
 0xcc5   : > { %9934 = dma.done.wait (%p9009_p12), %s7987_s7, 256  }
 0xcc6   : > { %9936 = vsyncadd (%p9009_p12), %s7987_s7, 4294967040  ;;  %s34_s1 = sadd.s32 1, %s9979_s1   ;;  %s14655_s11 = sld [smem:[#allocation20_spill]] }
 0xcc7   : > { %p31_p11 = scmp.ge.s32.totalorder %s34_s1, 6   ;;  %s14656_s26 = sld [smem:[#allocation29_spill]] }
 0xcc8   : > { %s14657_s19 = sld [smem:[#allocation21_spill]]  ;;  %s14663_s24 = smov %s9943_s25 }
 0xcc9   : > { %s14658_s29 = sld [smem:[#allocation28_spill]]  ;;  %s14665_s27 = smov %s9955_s28 }
 0xcca   : > { %s14659_s0 = sld [smem:[#allocation24_spill]] }
 0xccb   : > { %s14660_s30 = sld [smem:[#allocation25_spill]] }
 0xccc   : > { %s14661_s18 = sld [smem:[#allocation26_spill]]  ;;  %s14664_s25 = smov %s14655_s11 }
 0xccd   : > { %s14662_s12 = sld [smem:[#allocation27_spill]] }
 0xcce   : > { %s14666_s28 = smov %s14657_s19 }
 0xccf   :  { %33 = sbr.rel (!%p31_p11) target bundleno = 29 (0x1d), region = 237 }
 0xcd3   : > { %s14667_s19 = smov %s14662_s12 }
 0xcd4   :  { %7993 = vsyncpa [#allocation3], 1 }
 0xcd5   :  { %7995 = vsyncpa [#allocation3 + $0x1], 1 }
 0xcd6   :  { %7996 = vsyncpa [#allocation6], 1 }
 0xcd7   :  { %7997 = vsyncpa [#allocation4], 1 }
 0xcd8   :  { %7999 = vsyncpa [#allocation4 + $0x1], 1 }

</bundles_post_ra>
